<compile_context>
chip_gen: v5e
topology: v5e:2x2
jax: 0.10.0
libtpu: 0.0.40
codegen_flags: <defaults>
</compile_context>

<pallas_src>
import functools

import jax
import jax.numpy as jnp
from jax.experimental import pallas as pl
from jax.experimental.pallas import tpu as pltpu


def _vae_block_kernel(x_ref, eps_ref,
                      w1_ref, b1_ref,
                      w2_ref, b2_ref,
                      wd1_ref, bd1_ref, wd2_ref, bd2_ref,
                      out_ref, *, tb, z_dim, batch, bf16_loss):
    """One (tb, im_dim) batch tile -> one lane-dense (1,8,128) partial loss sum."""
    i = pl.program_id(0)

    xb = x_ref[...]                              # [tb, im_dim] bf16 (MXU / loss operand)

    # ---- Encoder layer 1, mean|cov branches fused along N ----
    h = jnp.dot(xb, w1_ref[...], preferred_element_type=jnp.float32) + b1_ref[...]
    h = jnp.maximum(h, 0.0)                      # [tb, 2*hidden] f32

    # ---- Encoder layer 2, mean|cov fused via block-diagonal weights ----
    mz = jnp.dot(h.astype(jnp.bfloat16), w2_ref[...],
                 preferred_element_type=jnp.float32) + b2_ref[...]        # [tb, 2*z]
    mean = mz[:, :z_dim]
    std = jnp.maximum(mz[:, z_dim:], 0.0)        # final ReLU of covariance branch

    # ---- Reparameterization: eps is [1, z_dim], broadcast over the batch tile ----
    z = mean + std * eps_ref[...]                # [tb, z_dim] f32

    # ---- Decoder: Linear -> ReLU -> Linear (kept as logits) ----
    hd = jnp.dot(z.astype(jnp.bfloat16), wd1_ref[...],
                 preferred_element_type=jnp.float32) + bd1_ref[...]
    hd = jnp.maximum(hd, 0.0)
    logits = jnp.dot(hd.astype(jnp.bfloat16), wd2_ref[...],
                     preferred_element_type=jnp.float32) + bd2_ref[...]   # [tb, im_dim] f32

    # ---- Bernoulli NLL in logits form: softplus(l) - x*l == BCE-with-logits ----
    # bf16 elementwise path on v6e/v7x (bf16 VPU/EUP); f32 on v5e.  Row sums
    # always accumulate in f32.
    if bf16_loss:
        l = logits.astype(jnp.bfloat16)
        xl = xb * l                              # bf16 * bf16, no f32 copy of x
    else:
        l = logits
        xl = xb.astype(jnp.float32) * logits     # cast fused into its single use
    softplus = jnp.maximum(l, 0.0) + jnp.log(1.0 + jnp.exp(-jnp.abs(l)))
    recon = jnp.sum(softplus - xl, axis=1, keepdims=True,
                    dtype=jnp.float32)                                    # [tb, 1] f32

    # ---- KL(q || N(0, I)) with the reference's ReLU-std parameterization ----
    kl = jnp.sum(-jnp.log(std + 1e-8) + 0.5 * (std * std + mean * mean) - 0.5,
                 axis=1, keepdims=True)                                   # [tb, 1]

    # ---- Mask padded batch rows, reduce this tile to a single partial sum ----
    rows = i * tb + jax.lax.broadcasted_iota(jnp.int32, (tb, 1), 0)
    per_row = jnp.where(rows < batch, recon + kl, 0.0)
    out_ref[...] = jnp.sum(per_row) * jnp.ones((1, 8, 128), jnp.float32)


def _choose_tb(batch, *, max_tb=1024, min_blocks=2):
    """Batch-tile size: multiple of 16 (bf16 sublane packing), at least
    `min_blocks` (even) grid steps so both v7x TensorCores get balanced work,
    capped at `max_tb` to amortize per-step pipeline overhead on v5e/v6e."""
    nb = max(min_blocks, -(-batch // max_tb))
    if nb > 1 and nb % 2:
        nb += 1                                  # even block count -> 2-TC balance
    tb = -(-batch // nb)
    tb = max(16, ((tb + 15) // 16) * 16)
    return min(tb, max_tb)


def _bf16_loss_default():
    """bf16 VPU/EUP exist on v6e/v7x; keep the loss math f32 on older chips."""
    try:
        kind = jax.devices()[0].device_kind.lower()
    except Exception:
        return True
    if "v6" in kind or "v7" in kind:
        return True
    if any(v in kind for v in ("v5", "v4", "v3", "v2")):
        return False
    return True


def vae_forward(x_img, eps, params, *, tb=None, bf16_loss=None):
    """x_img: [B, 1, H, W] (or [B, im_dim]); returns scalar negative average ELBO."""
    im_dim = params["w1"].shape[0]
    two_h = params["w1"].shape[1]
    hidden = params["wd1"].shape[1]
    z_dim = params["wd1"].shape[0]

    x = x_img.reshape(-1, im_dim)                 # == input.view(-1, im_dim)
    batch = x.shape[0]
    x = x.astype(jnp.bfloat16)                    # halve x HBM/VMEM bytes

    if bf16_loss is None:
        bf16_loss = _bf16_loss_default()
    if tb is None:
        tb = _choose_tb(batch)
    assert tb % 16 == 0                           # bf16 sublane packing

    num_blocks = (batch + tb - 1) // tb
    padded = num_blocks * tb
    if padded != batch:
        x = jnp.pad(x, ((0, padded - batch), (0, 0)))

    def const(shape):
        return pl.BlockSpec(shape, lambda i, _n=len(shape): (0,) * _n)

    in_specs = [
        pl.BlockSpec((tb, im_dim), lambda i: (i, 0)),          # x tile (streamed)
        const((1, z_dim)),                                     # eps
        const((im_dim, two_h)), const((1, two_h)),             # fused encoder L1
        const((two_h, 2 * z_dim)), const((1, 2 * z_dim)),      # block-diag encoder L2
        const((z_dim, hidden)), const((1, hidden)),            # decoder L1
        const((hidden, im_dim)), const((1, im_dim)),           # decoder L2
    ]
    out_spec = pl.BlockSpec((1, 8, 128), lambda i: (i, 0, 0))

    kernel = functools.partial(_vae_block_kernel, tb=tb, z_dim=z_dim,
                               batch=batch, bf16_loss=bf16_loss)

    weight_bytes = sum(int(v.size) * v.dtype.itemsize for v in params.values())
    cost = pl.CostEstimate(
        flops=int(2 * padded * (im_dim * two_h + two_h * 2 * z_dim
                                + z_dim * hidden + hidden * im_dim)),
        transcendentals=int(padded * (2 * im_dim + z_dim)),
        bytes_accessed=int(padded * im_dim * 2 + weight_bytes
                           + num_blocks * 8 * 128 * 4),
    )

    partials = pl.pallas_call(
        kernel,
        grid=(num_blocks,),
        in_specs=in_specs,
        out_specs=out_spec,
        out_shape=jax.ShapeDtypeStruct((num_blocks, 8, 128), jnp.float32),
        compiler_params=pltpu.CompilerParams(dimension_semantics=("parallel",)),
        cost_estimate=cost,
    )(x, eps.astype(jnp.float32),
      params["w1"], params["b1"],
      params["w2"], params["b2"],
      params["wd1"], params["bd1"], params["wd2"], params["bd2"])

    return jnp.sum(partials[:, 0, 0]) / batch


def vae_forward_ref(x_img, eps, params):
    """Pure-JAX reference in the original (unfused, sigmoid+log) formulation."""
    im_dim = params["w1"].shape[0]
    hidden = params["wd1"].shape[1]
    z_dim = params["wd1"].shape[0]

    x = x_img.reshape(-1, im_dim).astype(jnp.bfloat16).astype(jnp.float32)
    xb = x.astype(jnp.bfloat16)

    w1m, w1c = params["w1"][:, :hidden], params["w1"][:, hidden:]
    b1m, b1c = params["b1"][:, :hidden], params["b1"][:, hidden:]
    w2m, w2c = params["w2"][:hidden, :z_dim], params["w2"][hidden:, z_dim:]
    b2m, b2c = params["b2"][:, :z_dim], params["b2"][:, z_dim:]

    def dot(a, b):
        return jnp.dot(a.astype(jnp.bfloat16), b, preferred_element_type=jnp.float32)

    h_m = jax.nn.relu(dot(xb, w1m) + b1m)
    mean = dot(h_m, w2m) + b2m
    h_c = jax.nn.relu(dot(xb, w1c) + b1c)
    std = jax.nn.relu(dot(h_c, w2c) + b2c)

    z = mean + std * eps
    h_d = jax.nn.relu(dot(z, params["wd1"]) + params["bd1"])
    decoded = jax.nn.sigmoid(dot(h_d, params["wd2"]) + params["bd2"])

    epsilon = 1e-8
    d = decoded + epsilon
    recon = -jnp.sum(x * jnp.log(d) + (1.0 - x) * jnp.log(1.0 - d), axis=1)
    kl = jnp.sum(-jnp.log(std + epsilon) + (std * std + mean * mean) / 2.0 - 0.5, axis=1)
    return jnp.mean(recon + kl)


def init_vae_params(key, im_dim=784, hidden_dim=128, z_dim=20):
    """Deterministic synthetic parameters matching the nn.Linear layers
    (stored as [in, out]); encoder layer-1 weights pre-fused along N, encoder
    layer-2 weights pre-fused as a block-diagonal matrix."""
    ks = jax.random.split(key, 6)

    def lin(k, fan_in, fan_out):
        bound = 1.0 / jnp.sqrt(fan_in)
        kw, kb = jax.random.split(k)
        w = jax.random.uniform(kw, (fan_in, fan_out), jnp.float32, -bound, bound)
        b = jax.random.uniform(kb, (1, fan_out), jnp.float32, -bound, bound)
        return w, b

    w1m, b1m = lin(ks[0], im_dim, hidden_dim)      # encoder.mean[0]
    w2m, b2m = lin(ks[1], hidden_dim, z_dim)       # encoder.mean[2]
    w1c, b1c = lin(ks[2], im_dim, hidden_dim)      # encoder.covariance[0]
    w2c, b2c = lin(ks[3], hidden_dim, z_dim)       # encoder.covariance[2]
    wd1, bd1 = lin(ks[4], z_dim, hidden_dim)       # decoder.generator[0]
    wd2, bd2 = lin(ks[5], hidden_dim, im_dim)      # decoder.generator[2]

    w1 = jnp.concatenate([w1m, w1c], axis=1)       # [im_dim, 2*hidden] fused L1
    b1 = jnp.concatenate([b1m, b1c], axis=1)       # [1, 2*hidden]
    zpad = jnp.zeros((hidden_dim, z_dim), jnp.float32)
    w2 = jnp.concatenate([jnp.concatenate([w2m, zpad], axis=1),
                          jnp.concatenate([zpad, w2c], axis=1)], axis=0)  # block-diag
    b2 = jnp.concatenate([b2m, b2c], axis=1)       # [1, 2*z_dim]

    bf = lambda a: a.astype(jnp.bfloat16)          # bf16 MXU operands, f32 biases
    return dict(w1=bf(w1), b1=b1,
                w2=bf(w2), b2=b2,
                wd1=bf(wd1), bd1=bd1, wd2=bf(wd2), bd2=bd2)


if __name__ == "__main__":
    B, H_IMG, W_IMG = 300, 28, 28          # im_dim = 784; B spans 2 grid blocks
    hidden_dim, z_dim = 128, 20

    key = jax.random.PRNGKey(0)
    k_x, k_eps, k_p = jax.random.split(key, 3)

    # Binarized-MNIST-style input in [0, 1] so the Bernoulli log-likelihood is finite.
    x_img = jax.random.uniform(k_x, (B, 1, H_IMG, W_IMG), jnp.float32)
    # eps ~ N(0, 1), shape [1, z_dim], mirroring torch.randn((1, z_dim)).
    eps = jax.random.normal(k_eps, (1, z_dim), jnp.float32)

    params = init_vae_params(k_p, im_dim=H_IMG * W_IMG,
                             hidden_dim=hidden_dim, z_dim=z_dim)

    loss = vae_forward(x_img, eps, params)
    jax.block_until_ready(loss)

    ref = vae_forward_ref(x_img, eps, params)
    assert loss.shape == () and bool(jnp.isfinite(loss))
    assert jnp.allclose(loss, ref, rtol=2e-2, atol=1e-2), (float(loss), float(ref))
    print("KERNEL_OK")
</pallas_src>

<mosaic_0001>
module attributes {stable_mosaic.version = 11 : i64} {
  func.func @_vae_block_kernel(%arg0: i32, %arg1: memref<160x784xbf16, #tpu.memory_space<vmem>>, %arg2: memref<1x20xf32, #tpu.memory_space<vmem>>, %arg3: memref<784x256xbf16, #tpu.memory_space<vmem>>, %arg4: memref<1x256xf32, #tpu.memory_space<vmem>>, %arg5: memref<256x40xbf16, #tpu.memory_space<vmem>>, %arg6: memref<1x40xf32, #tpu.memory_space<vmem>>, %arg7: memref<20x128xbf16, #tpu.memory_space<vmem>>, %arg8: memref<1x128xf32, #tpu.memory_space<vmem>>, %arg9: memref<128x784xbf16, #tpu.memory_space<vmem>>, %arg10: memref<1x784xf32, #tpu.memory_space<vmem>>, %arg11: memref<1x8x128xf32, #tpu.memory_space<vmem>>) attributes {dimension_semantics = [#tpu.dimension_semantics<parallel>], iteration_bounds = array<i64: 2>, scalar_prefetch = 0 : i64, scratch_operands = 0 : i64, tpu.core_type = #tpu.core_type<tc>, window_params = [{transform_indices = @transform_0, window_bounds = array<i64: 160, 784>}, {pipeline_mode = #tpu.pipeline_mode<synchronous>, transform_indices = @transform_1, window_bounds = array<i64: 1, 20>}, {pipeline_mode = #tpu.pipeline_mode<synchronous>, transform_indices = @transform_2, window_bounds = array<i64: 784, 256>}, {pipeline_mode = #tpu.pipeline_mode<synchronous>, transform_indices = @transform_3, window_bounds = array<i64: 1, 256>}, {pipeline_mode = #tpu.pipeline_mode<synchronous>, transform_indices = @transform_4, window_bounds = array<i64: 256, 40>}, {pipeline_mode = #tpu.pipeline_mode<synchronous>, transform_indices = @transform_5, window_bounds = array<i64: 1, 40>}, {pipeline_mode = #tpu.pipeline_mode<synchronous>, transform_indices = @transform_6, window_bounds = array<i64: 20, 128>}, {pipeline_mode = #tpu.pipeline_mode<synchronous>, transform_indices = @transform_7, window_bounds = array<i64: 1, 128>}, {pipeline_mode = #tpu.pipeline_mode<synchronous>, transform_indices = @transform_8, window_bounds = array<i64: 128, 784>}, {pipeline_mode = #tpu.pipeline_mode<synchronous>, transform_indices = @transform_9, window_bounds = array<i64: 1, 784>}, {transform_indices = @transform_10, window_bounds = array<i64: 1, 8, 128>}]} {
    %c0 = arith.constant 0 : index
    %c0_0 = arith.constant 0 : index
    %0 = vector.load %arg1[%c0, %c0_0] : memref<160x784xbf16, #tpu.memory_space<vmem>>, vector<160x784xbf16>
    %c0_1 = arith.constant 0 : index
    %c0_2 = arith.constant 0 : index
    %1 = vector.load %arg3[%c0_1, %c0_2] : memref<784x256xbf16, #tpu.memory_space<vmem>>, vector<784x256xbf16>
    %cst = arith.constant dense<0.000000e+00> : vector<160x256xf32>
    %2 = tpu.matmul %0, %1, %cst {dimension_numbers = #tpu.dot_dimension_numbers<[1], [0], [0], [1], [0, 0, 1, 1], [], []>} : vector<160x784xbf16>, vector<784x256xbf16>, vector<160x256xf32> -> vector<160x256xf32>
    %c0_3 = arith.constant 0 : index
    %c0_4 = arith.constant 0 : index
    %3 = vector.load %arg4[%c0_3, %c0_4] : memref<1x256xf32, #tpu.memory_space<vmem>>, vector<1x256xf32>
    %4 = vector.broadcast %3 : vector<1x256xf32> to vector<160x256xf32>
    %5 = arith.addf %2, %4 : vector<160x256xf32>
    %cst_5 = arith.constant 0.000000e+00 : f32
    %6 = vector.broadcast %cst_5 : f32 to vector<160x256xf32>
    %7 = arith.maximumf %5, %6 : vector<160x256xf32>
    %8 = arith.truncf %7 : vector<160x256xf32> to vector<160x256xbf16>
    %c0_6 = arith.constant 0 : index
    %c0_7 = arith.constant 0 : index
    %9 = vector.load %arg5[%c0_6, %c0_7] : memref<256x40xbf16, #tpu.memory_space<vmem>>, vector<256x40xbf16>
    %cst_8 = arith.constant dense<0.000000e+00> : vector<160x40xf32>
    %10 = tpu.matmul %8, %9, %cst_8 {dimension_numbers = #tpu.dot_dimension_numbers<[1], [0], [0], [1], [0, 0, 1, 1], [], []>} : vector<160x256xbf16>, vector<256x40xbf16>, vector<160x40xf32> -> vector<160x40xf32>
    %c0_9 = arith.constant 0 : index
    %c0_10 = arith.constant 0 : index
    %11 = vector.load %arg6[%c0_9, %c0_10] : memref<1x40xf32, #tpu.memory_space<vmem>>, vector<1x40xf32>
    %12 = vector.broadcast %11 : vector<1x40xf32> to vector<160x40xf32>
    %13 = arith.addf %10, %12 : vector<160x40xf32>
    %14 = vector.extract_strided_slice %13 {offsets = [0, 0], sizes = [160, 20], strides = [1, 1]} : vector<160x40xf32> to vector<160x20xf32>
    %15 = vector.extract_strided_slice %13 {offsets = [0, 20], sizes = [160, 20], strides = [1, 1]} : vector<160x40xf32> to vector<160x20xf32>
    %cst_11 = arith.constant 0.000000e+00 : f32
    %16 = vector.broadcast %cst_11 : f32 to vector<160x20xf32>
    %17 = arith.maximumf %15, %16 : vector<160x20xf32>
    %c0_12 = arith.constant 0 : index
    %c0_13 = arith.constant 0 : index
    %18 = vector.load %arg2[%c0_12, %c0_13] : memref<1x20xf32, #tpu.memory_space<vmem>>, vector<1x20xf32>
    %19 = vector.broadcast %18 : vector<1x20xf32> to vector<160x20xf32>
    %20 = arith.mulf %17, %19 : vector<160x20xf32>
    %21 = arith.addf %14, %20 : vector<160x20xf32>
    %22 = arith.truncf %21 : vector<160x20xf32> to vector<160x20xbf16>
    %c0_14 = arith.constant 0 : index
    %c0_15 = arith.constant 0 : index
    %23 = vector.load %arg7[%c0_14, %c0_15] : memref<20x128xbf16, #tpu.memory_space<vmem>>, vector<20x128xbf16>
    %cst_16 = arith.constant dense<0.000000e+00> : vector<160x128xf32>
    %24 = tpu.matmul %22, %23, %cst_16 {dimension_numbers = #tpu.dot_dimension_numbers<[1], [0], [0], [1], [0, 0, 1, 1], [], []>} : vector<160x20xbf16>, vector<20x128xbf16>, vector<160x128xf32> -> vector<160x128xf32>
    %c0_17 = arith.constant 0 : index
    %c0_18 = arith.constant 0 : index
    %25 = vector.load %arg8[%c0_17, %c0_18] : memref<1x128xf32, #tpu.memory_space<vmem>>, vector<1x128xf32>
    %26 = vector.broadcast %25 : vector<1x128xf32> to vector<160x128xf32>
    %27 = arith.addf %24, %26 : vector<160x128xf32>
    %cst_19 = arith.constant 0.000000e+00 : f32
    %28 = vector.broadcast %cst_19 : f32 to vector<160x128xf32>
    %29 = arith.maximumf %27, %28 : vector<160x128xf32>
    %30 = arith.truncf %29 : vector<160x128xf32> to vector<160x128xbf16>
    %c0_20 = arith.constant 0 : index
    %c0_21 = arith.constant 0 : index
    %31 = vector.load %arg9[%c0_20, %c0_21] : memref<128x784xbf16, #tpu.memory_space<vmem>>, vector<128x784xbf16>
    %cst_22 = arith.constant dense<0.000000e+00> : vector<160x784xf32>
    %32 = tpu.matmul %30, %31, %cst_22 {dimension_numbers = #tpu.dot_dimension_numbers<[1], [0], [0], [1], [0, 0, 1, 1], [], []>} : vector<160x128xbf16>, vector<128x784xbf16>, vector<160x784xf32> -> vector<160x784xf32>
    %c0_23 = arith.constant 0 : index
    %c0_24 = arith.constant 0 : index
    %33 = vector.load %arg10[%c0_23, %c0_24] : memref<1x784xf32, #tpu.memory_space<vmem>>, vector<1x784xf32>
    %34 = vector.broadcast %33 : vector<1x784xf32> to vector<160x784xf32>
    %35 = arith.addf %32, %34 : vector<160x784xf32>
    %36 = arith.truncf %35 : vector<160x784xf32> to vector<160x784xbf16>
    %37 = arith.mulf %0, %36 : vector<160x784xbf16>
    %cst_25 = arith.constant 0.000000e+00 : bf16
    %38 = vector.broadcast %cst_25 : bf16 to vector<160x784xbf16>
    %39 = arith.maximumf %36, %38 : vector<160x784xbf16>
    %40 = math.absf %36 : vector<160x784xbf16>
    %cst_26 = arith.constant 0.000000e+00 : bf16
    %41 = vector.broadcast %cst_26 : bf16 to vector<160x784xbf16>
    %42 = arith.subf %41, %40 : vector<160x784xbf16>
    %43 = math.exp %42 : vector<160x784xbf16>
    %cst_27 = arith.constant 1.000000e+00 : bf16
    %44 = vector.broadcast %cst_27 : bf16 to vector<160x784xbf16>
    %45 = arith.addf %44, %43 : vector<160x784xbf16>
    %46 = math.log %45 : vector<160x784xbf16>
    %47 = arith.addf %39, %46 : vector<160x784xbf16>
    %48 = arith.subf %47, %37 : vector<160x784xbf16>
    %49 = arith.extf %48 : vector<160x784xbf16> to vector<160x784xf32>
    %cst_28 = arith.constant dense<0.000000e+00> : vector<160xf32>
    %50 = vector.multi_reduction <add>, %49, %cst_28 [1] : vector<160x784xf32> to vector<160xf32>
    %51 = vector.shape_cast %50 : vector<160xf32> to vector<160x1xf32>
    %cst_29 = arith.constant 9.99999993E-9 : f32
    %52 = vector.broadcast %cst_29 : f32 to vector<160x20xf32>
    %53 = arith.addf %17, %52 : vector<160x20xf32>
    %54 = math.log %53 : vector<160x20xf32>
    %cst_30 = arith.constant 0.000000e+00 : f32
    %55 = vector.broadcast %cst_30 : f32 to vector<160x20xf32>
    %56 = arith.subf %55, %54 : vector<160x20xf32>
    %57 = arith.mulf %17, %17 : vector<160x20xf32>
    %58 = arith.mulf %14, %14 : vector<160x20xf32>
    %59 = arith.addf %57, %58 : vector<160x20xf32>
    %cst_31 = arith.constant 5.000000e-01 : f32
    %60 = vector.broadcast %cst_31 : f32 to vector<160x20xf32>
    %61 = arith.mulf %60, %59 : vector<160x20xf32>
    %62 = arith.addf %56, %61 : vector<160x20xf32>
    %cst_32 = arith.constant 5.000000e-01 : f32
    %63 = vector.broadcast %cst_32 : f32 to vector<160x20xf32>
    %64 = arith.subf %62, %63 : vector<160x20xf32>
    %cst_33 = arith.constant dense<0.000000e+00> : vector<160xf32>
    %65 = vector.multi_reduction <add>, %64, %cst_33 [1] : vector<160x20xf32> to vector<160xf32>
    %66 = vector.shape_cast %65 : vector<160xf32> to vector<160x1xf32>
    %c160_i32 = arith.constant 160 : i32
    %67 = arith.muli %arg0, %c160_i32 : i32
    %68 = tpu.iota {dimensions = array<i32: 0>} : vector<160x1xi32>
    %69 = vector.broadcast %67 : i32 to vector<160x1xi32>
    %70 = arith.addi %69, %68 : vector<160x1xi32>
    %c300_i32 = arith.constant 300 : i32
    %71 = vector.broadcast %c300_i32 : i32 to vector<160x1xi32>
    %72 = arith.cmpi slt, %70, %71 : vector<160x1xi32>
    %73 = arith.addf %51, %66 : vector<160x1xf32>
    %cst_34 = arith.constant 0.000000e+00 : f32
    %74 = vector.broadcast %cst_34 : f32 to vector<160x1xf32>
    %75 = arith.select %72, %73, %74 : vector<160x1xi1>, vector<160x1xf32>
    %76 = vector.shape_cast %75 : vector<160x1xf32> to vector<1x160x1xf32>
    %cst_35 = arith.constant dense<0.000000e+00> : vector<1xf32>
    %77 = vector.multi_reduction <add>, %76, %cst_35 [1, 2] : vector<1x160x1xf32> to vector<1xf32>
    %78 = vector.shape_cast %77 : vector<1xf32> to vector<1x1x1xf32>
    %79 = vector.extract %78[0, 0, 0] : f32 from vector<1x1x1xf32>
    %cst_36 = arith.constant 1.000000e+00 : f32
    %80 = vector.broadcast %cst_36 : f32 to vector<1x8x128xf32>
    %81 = vector.broadcast %79 : f32 to vector<1x8x128xf32>
    %82 = arith.mulf %81, %80 : vector<1x8x128xf32>
    %c0_37 = arith.constant 0 : index
    %c0_38 = arith.constant 0 : index
    %c0_39 = arith.constant 0 : index
    %83 = vector.load %arg11[%c0_37, %c0_38, %c0_39] : memref<1x8x128xf32, #tpu.memory_space<vmem>>, vector<1x8x128xf32>
    tpu.vector_store %arg11[%c0_37, %c0_38, %c0_39], %82 {strides = array<i32>} : memref<1x8x128xf32, #tpu.memory_space<vmem>>, vector<1x8x128xf32>,
    return
  }
  func.func @transform_0(%arg0: i32) -> (i32, i32) {
    %c0_i32 = arith.constant 0 : i32
    %c0_i32_0 = arith.constant 0 : i32
    return %arg0, %c0_i32 : i32, i32
  }
  func.func @transform_1(%arg0: i32) -> (i32, i32) {
    %c0_i32 = arith.constant 0 : i32
    %c0_i32_0 = arith.constant 0 : i32
    %c0_i32_1 = arith.constant 0 : i32
    return %c0_i32, %c0_i32_0 : i32, i32
  }
  func.func @transform_2(%arg0: i32) -> (i32, i32) {
    %c0_i32 = arith.constant 0 : i32
    %c0_i32_0 = arith.constant 0 : i32
    %c0_i32_1 = arith.constant 0 : i32
    return %c0_i32, %c0_i32_0 : i32, i32
  }
  func.func @transform_3(%arg0: i32) -> (i32, i32) {
    %c0_i32 = arith.constant 0 : i32
    %c0_i32_0 = arith.constant 0 : i32
    %c0_i32_1 = arith.constant 0 : i32
    return %c0_i32, %c0_i32_0 : i32, i32
  }
  func.func @transform_4(%arg0: i32) -> (i32, i32) {
    %c0_i32 = arith.constant 0 : i32
    %c0_i32_0 = arith.constant 0 : i32
    %c0_i32_1 = arith.constant 0 : i32
    return %c0_i32, %c0_i32_0 : i32, i32
  }
  func.func @transform_5(%arg0: i32) -> (i32, i32) {
    %c0_i32 = arith.constant 0 : i32
    %c0_i32_0 = arith.constant 0 : i32
    %c0_i32_1 = arith.constant 0 : i32
    return %c0_i32, %c0_i32_0 : i32, i32
  }
  func.func @transform_6(%arg0: i32) -> (i32, i32) {
    %c0_i32 = arith.constant 0 : i32
    %c0_i32_0 = arith.constant 0 : i32
    %c0_i32_1 = arith.constant 0 : i32
    return %c0_i32, %c0_i32_0 : i32, i32
  }
  func.func @transform_7(%arg0: i32) -> (i32, i32) {
    %c0_i32 = arith.constant 0 : i32
    %c0_i32_0 = arith.constant 0 : i32
    %c0_i32_1 = arith.constant 0 : i32
    return %c0_i32, %c0_i32_0 : i32, i32
  }
  func.func @transform_8(%arg0: i32) -> (i32, i32) {
    %c0_i32 = arith.constant 0 : i32
    %c0_i32_0 = arith.constant 0 : i32
    %c0_i32_1 = arith.constant 0 : i32
    return %c0_i32, %c0_i32_0 : i32, i32
  }
  func.func @transform_9(%arg0: i32) -> (i32, i32) {
    %c0_i32 = arith.constant 0 : i32
    %c0_i32_0 = arith.constant 0 : i32
    %c0_i32_1 = arith.constant 0 : i32
    return %c0_i32, %c0_i32_0 : i32, i32
  }
  func.func @transform_10(%arg0: i32) -> (i32, i32, i32) {
    %c0_i32 = arith.constant 0 : i32
    %c0_i32_0 = arith.constant 0 : i32
    %c0_i32_1 = arith.constant 0 : i32
    return %arg0, %c0_i32, %c0_i32_0 : i32, i32, i32
  }
}

</mosaic_0001>

<bundles_post_ra>
// kernel: tpu_custom_call.1
= control target key start
LH: loop header
LB: loop body
LE: loop exit
PB: predicated region body
PF: predicated region fallthrough
CT: control target
= control target key end

     0   :  { %15 = vsyncpa [#allocation3], 0  ;;  %s15231_s0 = inlined_call_operand.hbm [shape: bf16[320,784], index: 0, kind: input, shape index: {}]   ;;  %s15232_s1 = inlined_call_operand.vmem [shape: f32[1,20], index: 1, kind: input, shape index: {}]   ;;  %s15233_s2 = inlined_call_operand.vmem [shape: bf16[784,256], index: 2, kind: input, shape index: {}]   ;;  %s15234_s3 = inlined_call_operand.vmem [shape: f32[1,256], index: 3, kind: input, shape index: {}]   ;;  %s15235_s4 = inlined_call_operand.vmem [shape: bf16[256,40], index: 4, kind: input, shape index: {}]   ;;  %s15236_s5 = inlined_call_operand.vmem [shape: f32[1,40], index: 5, kind: input, shape index: {}]   ;;  %s15237_s6 = inlined_call_operand.vmem [shape: bf16[20,128], index: 6, kind: input, shape index: {}]   ;;  %s15238_s7 = inlined_call_operand.vmem [shape: f32[1,128], index: 7, kind: input, shape index: {}]   ;;  %s15239_s8 = inlined_call_operand.vmem [shape: bf16[128,784], index: 8, kind: input, shape index: {}]   ;;  %s15240_s9 = inlined_call_operand.vmem [shape: f32[1,784], index: 9, kind: input, shape index: {}]   ;;  %s15241_s10 = inlined_call_operand.hbm [shape: f32[2,8,128], index: 10, kind: output, shape index: {}]  }
   0x1   :  { %17 = vsyncpa [#allocation3 + $0x1], 0 }
   0x2   :  { %18 = vsyncpa [#allocation4], 0 }
   0x3   :  { %20 = vsyncpa [#allocation4 + $0x1], 0  ;;  %s10304_s13 = smov 0   ;;  %s10306_s14 = smov 0  }
   0x4   :  { %s10308_s15 = smov 0   ;;  %s10310_s16 = smov 0  }
   0x5 LB: > { %15365 = sst [smem:[#allocation8_spill]] %s10231_s13  ;;  %s10325_s17 = sadd.s32 4294967295, %s10243_s16   ;;  %s10243_s16 = sphi %s10310_s16, %s15962_s16   ;;  %s10239_s15 = sphi %s10308_s15, %s15964_s15   ;;  %s10235_s14 = sphi %s10306_s14, %s15966_s14   ;;  %s10231_s13 = sphi %s10304_s13, %s15965_s13  }
   0x6   : > { %15366 = sst [smem:[#allocation9_spill]] %s10239_s15  ;;  %s8221_s18 = sadd.s32 4294967294, %s10243_s16  }
   0x7   : > { %s10329_s19 = sadd.s32 1, %s10243_s16   ;;  %s33_s20 = sadd.s32 1, %s10239_s15 }
   0x8   : > { %15367 = sst [smem:[#allocation10_spill]] %s10329_s19  ;;  %s30_s21 = ssub.s32 %s10243_s16, %s10329_s19 }
   0x9   : > { %p40_p0 = scmp.ne.s32.totalorder %s10239_s15, %s10235_s14  ;;  %p31_p1 = scmp.eq.s32.totalorder %s30_s21, 0 }
   0xa   : > { %p41_p2 = scmp.eq.s32.totalorder %s10243_s16, 0  ;;  %p46_p3 = scmp.ne.s32.totalorder %s10235_s14, %s10231_s13 }
   0xb   : > { %p47_p4 = scmp.eq.s32.totalorder %s10325_s17, 0  ;;  %p259_p7 = scmp.eq.s32.totalorder %s10325_s17, 1 }
   0xc   : > { %s10341_s22 = scalar_select %p31_p1, %s10239_s15, %s33_s20  }
   0xd   : > { %p42_p5 = por %p41_p2, %p40_p0  ;;  %p10343_p6 = por %p47_p4, %p46_p3 }
   0xe   : > { %15368 = sst [smem:[#allocation11_spill]] %s10341_s22  ;;  %p265_p8 = scmp.eq.s32.totalorder %s8221_s18, 1 }
   0xf   : > { %p8223_p9 = scmp.ge.s32.totalorder %s10243_s16, 2  ;;  %p9503_p10 = scmp.lt.s32.totalorder %s10243_s16, 2 }
  0x10   : > { %p10350_p11 = por %p259_p7, %p40_p0  ;;  %p10354_p12 = por %p265_p8, %p46_p3 }
  0x11   : > { %s312_s26 = sand.u32 1, %s10239_s15   ;;  %s9504_s28 = smul.u32 560, %s10243_s16 }
  0x12   : > { %s15371_s25 = scalar_select %p10354_p12, 1, 0 }
  0x13   : > { %s9486_s27 = smul.u32 560, %s312_s26  ;;  %p10360_p13 = pnand %p9503_p10, %p42_p5 }
  0x14   : > { %15372 = sst [smem:[#allocation12_spill]] %s15371_s25  ;;  %s322_s12 = scalar_lea.hbm %s15231_s0, %s9504_s28 }
  0x15   : > { %s316_s18 = scalar_lea.vmem [#allocation2], %s9486_s27  ;;  %s323_s21 = sshll.u32 %s322_s12, 4  ;;  %s324_s21 = int_to_ptr.hbm [resolvable:$true] %s323_s21 }
  0x16   : > { %s325_s20 = sshll.u32 %s316_s18, 4  ;;  %p8225_p0 = scmp.ge.s32.totalorder %s10243_s16, 1  ;;  %s326_s20 = int_to_ptr.vmem [resolvable:$true] %s325_s20 }
  0x17   : > { %s313_s22 = scalar_lea.sflag [#allocation3], %s312_s26  ;;  %s10147_s19 = sshra.s32 %s324_s21, 4  ;;  %s10148_s19 = int_to_ptr.hbm [resolvable:$true] %s10147_s19 }
  0x18   : > { %s10149_s15 = scalar_lea.hbm %s10148_s19, 560  ;;  %p10151_p2 = pneg %p10360_p13 }
  0x19   : > { %p10150_p1 = scmp.ne.s32.totalorder %s10148_s19, %s10149_s15  ;;  %s10154_s30 = scalar_lea.hbm %s15231_s0, 1120 }
  0x1a   : > { %p10155_p5 = scmp.lt.s32.totalorder %s10148_s19, %s15231_s0  ;;  %p10156_p7 = scmp.lt.s32.totalorder %s10154_s30, %s10149_s15 }
  0x1b   : > { %p10152_p3 = pnand %p10151_p2, %p10150_p1 }
  0x1c   : > { %p10157_p8 = por %p10156_p7, %p10155_p5 }
  0x1d   : > { %p10153_p4 = pneg %p10152_p3 }
  0x1f   : > { %p10158_p10 = pnand %p10157_p8, %p10153_p4 }
  0x21   : > { %10161 = shalt.err (!%p10158_p10)
}
  0x22   : > { %s10245_s26 = smov 448   ;;  %s10246_s11 = smov 28  }
  0x23   : > { %9498 = dma.hbm_to_vmem [thread:$0]  (!%p10360_p13), %s324_s21, 8960, %s326_s20, %s313_s22, %s10245_s26, %s10245_s26, %s10246_s11  }
  0x24   : > { %p333_p1 = scmp.lt.s32.totalorder %s10243_s16, 3 }
  0x26   : > { %p334_p2 = pnand %p8225_p0, %p333_p1 }
  0x28   : > { %337 = sbr.rel (%p334_p2) target bundleno = 2639 (0xa4f), region = 60 }
  0x2d   : > { %s10382_s13 = sand.u32 1, %s10235_s14  }
  0x2e   : > { %s9488_s15 = smul.u32 560, %s10382_s13  ;;  %s340_s19 = scalar_lea.sflag [#allocation3], %s10382_s13 }
  0x30   : > { %s10386_s25 = scalar_lea.vmem [#allocation2], %s9488_s15 }
  0x31   : > { %10222 = dma.done.wait (%p10343_p6), %s340_s19, 8960  }
  0x32   : > { %10224 = vsyncadd (%p10343_p6), %s340_s19, 4294958336  ;;  %v8565_v0 = vld [vmem:[%s15233_s2 + $0x70] sm:$0xf]  ;;  %v9330_v1 = vld [vmem:[%s15233_s2 + $0x74] sm:$0xf0]  ;;  %vm1407_vm0 = vcmask 130048  }
  0x33   : > { %v8629_v2 = vld [vmem:[%s15233_s2 + $0xf0] sm:$0xf]  ;;  %v8566_v3 = vor.u32 %v9330_v1, %v8565_v0  ;;  %v9346_v4 = vld [vmem:[%s15233_s2 + $0xf4] sm:$0xf0]  ;;  %v8557_v11 = vld [vmem:[%s15233_s2 + $0x60] sm:$0xf] }
  0x34   : > { %v8693_v5 = vld [vmem:[%s15233_s2 + $0x170] sm:$0xf]  ;;  %v9362_v6 = vld [vmem:[%s15233_s2 + $0x174] sm:$0xf0]  ;;  %v8630_v7 = vor.u32 %v9346_v4, %v8629_v2  ;;  %v9328_v13 = vld [vmem:[%s15233_s2 + $0x64] sm:$0xf0] }
  0x35   : > { %v8694_v8 = vor.u32 %v9362_v6, %v8693_v5  ;;  %v8757_v9 = vld [vmem:[%s15233_s2 + $0x1f0] sm:$0xf]  ;;  %v9378_v10 = vld [vmem:[%s15233_s2 + $0x1f4] sm:$0xf0]  ;;  %1438 = vmatpush.bf16.msra.mxu0 %v8566_v3  ;;  %v8621_v14 = vld [vmem:[%s15233_s2 + $0xe0] sm:$0xf]  ;;  %v8558_v16 = vor.u32 %v9328_v13, %v8557_v11 }
  0x36   : > { %v8758_v12 = vor.u32 %v9378_v10, %v8757_v9  ;;  %v9344_v15 = vld [vmem:[%s15233_s2 + $0xe4] sm:$0xf0]  ;;  %1497 = vmatpush.bf16.msra.mxu1 %v8630_v7  ;;  %v8685_v18 = vld [vmem:[%s15233_s2 + $0x160] sm:$0xf]  ;;  %v8549_v23 = vld [vmem:[%s15233_s2 + $0x50] sm:$0xf] }
  0x37   : > { %1556 = vmatpush.bf16.msra.mxu2 %v8694_v8  ;;  %v8622_v17 = vor.u32 %v9344_v15, %v8621_v14  ;;  %v9360_v19 = vld [vmem:[%s15233_s2 + $0x164] sm:$0xf0]  ;;  %v8749_v20 = vld [vmem:[%s15233_s2 + $0x1e0] sm:$0xf]  ;;  %v9326_v24 = vld [vmem:[%s15233_s2 + $0x54] sm:$0xf0] }
  0x38   : > { %1615 = vmatpush.bf16.msra.mxu3 %v8758_v12  ;;  %v8686_v21 = vor.u32 %v9360_v19, %v8685_v18  ;;  %v9376_v22 = vld [vmem:[%s15233_s2 + $0x1e4] sm:$0xf0]  ;;  %v8613_v26 = vld [vmem:[%s15233_s2 + $0xd0] sm:$0xf]  ;;  %v9342_v27 = vld [vmem:[%s15233_s2 + $0xd4] sm:$0xf0]  ;;  %v8550_v29 = vor.u32 %v9326_v24, %v8549_v23 }
  0x39   : > { %v8750_v25 = vor.u32 %v9376_v22, %v8749_v20  ;;  %v8677_v28 = vld [vmem:[%s15233_s2 + $0x150] sm:$0xf]  ;;  %1439 = vmatpush.bf16.msra.mxu0 %v8558_v16  ;;  %v9358_v30 = vld [vmem:[%s15233_s2 + $0x154] sm:$0xf0]  ;;  %v8614_v33 = vor.u32 %v9342_v27, %v8613_v26  ;;  %v8541_v35 = vld [vmem:[%s15233_s2 + $0x40] sm:$0xf] }
  0x3a   : > { %v8741_v31 = vld [vmem:[%s15233_s2 + $0x1d0] sm:$0xf]  ;;  %v9374_v32 = vld [vmem:[%s15233_s2 + $0x1d4] sm:$0xf0]  ;;  %1498 = vmatpush.bf16.msra.mxu1 %v8622_v17  ;;  %v8678_v34 = vor.u32 %v9358_v30, %v8677_v28  ;;  %v9324_v36 = vld [vmem:[%s15233_s2 + $0x44] sm:$0xf0] }
  0x3b   : > { %1557 = vmatpush.bf16.msra.mxu2 %v8686_v21  ;;  %v8605_v37 = vld [vmem:[%s15233_s2 + $0xc0] sm:$0xf]  ;;  %v8742_v38 = vor.u32 %v9374_v32, %v8741_v31  ;;  %v9340_v39 = vld [vmem:[%s15233_s2 + $0xc4] sm:$0xf0]  ;;  %v8542_v44 = vor.u32 %v9324_v36, %v8541_v35  ;;  %v8533_v47 = vld [vmem:[%s15233_s2 + $0x30] sm:$0xf] }
  0x3c   : > { %1616 = vmatpush.bf16.msra.mxu3 %v8750_v25  ;;  %v8669_v40 = vld [vmem:[%s15233_s2 + $0x140] sm:$0xf]  ;;  %v9356_v41 = vld [vmem:[%s15233_s2 + $0x144] sm:$0xf0]  ;;  %v8606_v45 = vor.u32 %v9340_v39, %v8605_v37  ;;  %v9322_v48 = vld [vmem:[%s15233_s2 + $0x34] sm:$0xf0] }
  0x3d   : > { %v8733_v42 = vld [vmem:[%s15233_s2 + $0x1c0] sm:$0xf]  ;;  %v9372_v43 = vld [vmem:[%s15233_s2 + $0x1c4] sm:$0xf0]  ;;  %1440 = vmatpush.bf16.msra.mxu0 %v8550_v29  ;;  %v8670_v46 = vor.u32 %v9356_v41, %v8669_v40  ;;  %v8597_v49 = vld [vmem:[%s15233_s2 + $0xb0] sm:$0xf]  ;;  %v8534_v56 = vor.u32 %v9322_v48, %v8533_v47 }
  0x3e   : > { %1499 = vmatpush.bf16.msra.mxu1 %v8614_v33  ;;  %v8734_v50 = vor.u32 %v9372_v43, %v8733_v42  ;;  %v9338_v51 = vld [vmem:[%s15233_s2 + $0xb4] sm:$0xf0]  ;;  %v8661_v52 = vld [vmem:[%s15233_s2 + $0x130] sm:$0xf]  ;;  %v8525_v59 = vld [vmem:[%s15233_s2 + $0x20] sm:$0xf] }
  0x3f   : > { %1558 = vmatpush.bf16.msra.mxu2 %v8678_v34  ;;  %v9354_v53 = vld [vmem:[%s15233_s2 + $0x134] sm:$0xf0]  ;;  %v8725_v54 = vld [vmem:[%s15233_s2 + $0x1b0] sm:$0xf]  ;;  %v8598_v57 = vor.u32 %v9338_v51, %v8597_v49  ;;  %v9320_v60 = vld [vmem:[%s15233_s2 + $0x24] sm:$0xf0] }
  0x40   : > { %1617 = vmatpush.bf16.msra.mxu3 %v8742_v38  ;;  %v9370_v55 = vld [vmem:[%s15233_s2 + $0x1b4] sm:$0xf0]  ;;  %v8662_v58 = vor.u32 %v9354_v53, %v8661_v52  ;;  %v8589_v61 = vld [vmem:[%s15233_s2 + $0xa0] sm:$0xf]  ;;  %v9336_v63 = vld [vmem:[%s15233_s2 + $0xa4] sm:$0xf0]  ;;  %v8526_v4 = vor.u32 %v9320_v60, %v8525_v59 }
  0x41   : > { %1441 = vmatpush.bf16.msra.mxu0 %v8542_v44  ;;  %v8726_v62 = vor.u32 %v9370_v55, %v8725_v54  ;;  %v8653_v0 = vld [vmem:[%s15233_s2 + $0x120] sm:$0xf]  ;;  %v9352_v1 = vld [vmem:[%s15233_s2 + $0x124] sm:$0xf0]  ;;  %v8590_v5 = vor.u32 %v9336_v63, %v8589_v61  ;;  %v8517_v7 = vld [vmem:[%s15233_s2 + $0x10] sm:$0xf] }
  0x42   : > { %1500 = vmatpush.bf16.msra.mxu1 %v8606_v45  ;;  %v8717_v2 = vld [vmem:[%s15233_s2 + $0x1a0] sm:$0xf]  ;;  %v9368_v3 = vld [vmem:[%s15233_s2 + $0x1a4] sm:$0xf0]  ;;  %v8654_v6 = vor.u32 %v9352_v1, %v8653_v0  ;;  %v9318_v8 = vld [vmem:[%s15233_s2 + $0x14] sm:$0xf0] }
  0x43   : > { %1559 = vmatpush.bf16.msra.mxu2 %v8670_v46  ;;  %v8581_v9 = vld [vmem:[%s15233_s2 + $0x90] sm:$0xf]  ;;  %v8718_v10 = vor.u32 %v9368_v3, %v8717_v2  ;;  %v9334_v11 = vld [vmem:[%s15233_s2 + $0x94] sm:$0xf0]  ;;  %v8509_v16 = vld [vmem:[%s15233_s2] sm:$0xf]  ;;  %v8518_v17 = vor.u32 %v9318_v8, %v8517_v7 }
  0x44   : > { %1618 = vmatpush.bf16.msra.mxu3 %v8734_v50  ;;  %v8645_v12 = vld [vmem:[%s15233_s2 + $0x110] sm:$0xf]  ;;  %v9350_v13 = vld [vmem:[%s15233_s2 + $0x114] sm:$0xf0]  ;;  %v9316_v18 = vld [vmem:[%s15233_s2 + $0x4] sm:$0xf0]  ;;  %v8582_v21 = vor.u32 %v9334_v11, %v8581_v9 }
  0x45   : > { %1442 = vmatpush.bf16.msra.mxu0 %v8534_v56  ;;  %v8709_v14 = vld [vmem:[%s15233_s2 + $0x190] sm:$0xf]  ;;  %v9366_v15 = vld [vmem:[%s15233_s2 + $0x194] sm:$0xf0]  ;;  %v8573_v19 = vld [vmem:[%s15233_s2 + $0x80] sm:$0xf]  ;;  %v8646_v22 = vor.u32 %v9350_v13, %v8645_v12  ;;  %v8510_v33 = vor.u32 %v9316_v18, %v8509_v16 }
  0x46   : > { %1501 = vmatpush.bf16.msra.mxu1 %v8598_v57  ;;  %v9332_v20 = vld [vmem:[%s15233_s2 + $0x84] sm:$0xf0]  ;;  %v8637_v23 = vld [vmem:[%s15233_s2 + $0x100] sm:$0xf]  ;;  %v8710_v26 = vor.u32 %v9366_v15, %v8709_v14  ;;  %v9248_v29 = vld [vmem:[%s10386_s25 + $0x18] sm:$0xf0] }
  0x47   : > { %1560 = vmatpush.bf16.msra.mxu2 %v8662_v58  ;;  %v9348_v24 = vld [vmem:[%s15233_s2 + $0x104] sm:$0xf0]  ;;  %v8701_v25 = vld [vmem:[%s15233_s2 + $0x180] sm:$0xf]  ;;  %v9245_v30 = vld [vmem:[%s10386_s25 + $0x4] sm:$0xf]  ;;  %v8574_v37 = vor.u32 %v9332_v20, %v8573_v19 }
  0x48   : > { %1619 = vmatpush.bf16.msra.mxu3 %v8726_v62  ;;  %v9364_v27 = vld [vmem:[%s15233_s2 + $0x184] sm:$0xf0]  ;;  %v8229_v28 = vld [vmem:[%s10386_s25] sm:$0xf]  ;;  %v9394_v32 = vld [vmem:[%s15233_s2 + $0x274] sm:$0xf0]  ;;  %v8638_v38 = vor.u32 %v9348_v24, %v8637_v23 }
  0x49   : > { %1443 = vmatpush.bf16.msra.mxu0 %v8526_v4  ;;  %v8821_v31 = vld [vmem:[%s15233_s2 + $0x270] sm:$0xf]  ;;  %v9410_v36 = vld [vmem:[%s15233_s2 + $0x2f4] sm:$0xf0]  ;;  %v9249_v40 = vld [vmem:[%s10386_s25 + $0x20] sm:$0xf0]  ;;  %v8702_v42 = vor.u32 %v9364_v27, %v8701_v25  ;;  %v10610_v47 = vor.u32 %v9248_v29, %v8229_v28 }
  0x4a   : > { %1502 = vmatpush.bf16.msra.mxu1 %v8590_v5  ;;  %v8231_v34 = vld [vmem:[%s10386_s25 + $0x1c] sm:$0xf0]  ;;  %v8237_v39 = vld [vmem:[%s10386_s25 + $0x8] sm:$0xf]  ;;  %v9246_v41 = vld [vmem:[%s10386_s25 + $0xc] sm:$0xf]  ;;  %v8822_v43 = vor.u32 %v9394_v32, %v8821_v31 }
  0x4b   : > { %1561 = vmatpush.bf16.msra.mxu2 %v8654_v6  ;;  %v8885_v35 = vld [vmem:[%s15233_s2 + $0x2f0] sm:$0xf]  ;;  %v8239_v44 = vld [vmem:[%s10386_s25 + $0x24] sm:$0xf0]  ;;  %v8813_v45 = vld [vmem:[%s15233_s2 + $0x260] sm:$0xf]  ;;  %v10612_v49 = vor.u32 %v9245_v30, %v8231_v34  ;;  %v10614_v50 = vor.u32 %v9249_v40, %v8237_v39 }
  0x4c   : > { %1620 = vmatpush.bf16.msra.mxu3 %v8718_v10  ;;  %v9392_v46 = vld [vmem:[%s15233_s2 + $0x264] sm:$0xf0]  ;;  %v8886_v48 = vor.u32 %v9410_v36, %v8885_v35  ;;  %v8877_v51 = vld [vmem:[%s15233_s2 + $0x2e0] sm:$0xf]  ;;  %v10622_v53 = vor.u32 %v9246_v41, %v8239_v44  ;;  %v8805_v56 = vld [vmem:[%s15233_s2 + $0x250] sm:$0xf] }
  0x4d   : > { %1444 = vmatpush.bf16.msra.mxu0 %v8518_v17  ;;  %v9408_v52 = vld [vmem:[%s15233_s2 + $0x2e4] sm:$0xf0]  ;;  %v8814_v54 = vor.u32 %v9392_v46, %v8813_v45  ;;  %v9390_v57 = vld [vmem:[%s15233_s2 + $0x254] sm:$0xf0]  ;;  %v8869_v58 = vld [vmem:[%s15233_s2 + $0x2d0] sm:$0xf] }
  0x4e   : > { %1503 = vmatpush.bf16.msra.mxu1 %v8582_v21  ;;  %v8878_v55 = vor.u32 %v9408_v52, %v8877_v51  ;;  %v8806_v59 = vor.u32 %v9390_v57, %v8805_v56  ;;  %v9406_v60 = vld [vmem:[%s15233_s2 + $0x2d4] sm:$0xf0]  ;;  %v9255_v63 = vld [vmem:[%s10386_s25 + $0x50] sm:$0xf0]  ;;  %v9252_v0 = vld [vmem:[%s10386_s25 + $0x3c] sm:$0xf] }
  0x4f   : > { %1562 = vmatpush.bf16.msra.mxu2 %v8646_v22  ;;  %v8870_v61 = vor.u32 %v9406_v60, %v8869_v58  ;;  %v8257_v62 = vld [vmem:[%s10386_s25 + $0x38] sm:$0xf]  ;;  %v8265_v2 = vld [vmem:[%s10386_s25 + $0x40] sm:$0xf]  ;;  %v9256_v3 = vld [vmem:[%s10386_s25 + $0x58] sm:$0xf0] }
  0x50   : > { %1621 = vmatpush.bf16.msra.mxu3 %v8710_v26  ;;  %v8259_v1 = vld [vmem:[%s10386_s25 + $0x54] sm:$0xf0]  ;;  %v9253_v4 = vld [vmem:[%s10386_s25 + $0x44] sm:$0xf]  ;;  %v8267_v5 = vld [vmem:[%s10386_s25 + $0x5c] sm:$0xf0]  ;;  %v10648_v6 = vor.u32 %v9255_v63, %v8257_v62  ;;  %v10652_v8 = vor.u32 %v9256_v3, %v8265_v2 }
  0x51   : > { %1445 = vmatpush.bf16.msra.mxu0 %v8510_v33  ;;  %v10650_v7 = vor.u32 %v9252_v0, %v8259_v1  ;;  %v10654_v9 = vor.u32 %v9253_v4, %v8267_v5  ;;  %v8797_v10 = vld [vmem:[%s15233_s2 + $0x240] sm:$0xf]  ;;  %v9388_v11 = vld [vmem:[%s15233_s2 + $0x244] sm:$0xf0]  ;;  %v9262_v17 = vld [vmem:[%s10386_s25 + $0x88] sm:$0xf0] }
  0x52   : > { %1504 = vmatpush.bf16.msra.mxu1 %v8574_v37  ;;  %v8861_v12 = vld [vmem:[%s15233_s2 + $0x2c0] sm:$0xf]  ;;  %v8798_v13 = vor.u32 %v9388_v11, %v8797_v10  ;;  %v9404_v14 = vld [vmem:[%s15233_s2 + $0x2c4] sm:$0xf0]  ;;  %v9259_v18 = vld [vmem:[%s10386_s25 + $0x74] sm:$0xf] }
  0x53   : > { %1563 = vmatpush.bf16.msra.mxu2 %v8638_v38  ;;  %v8862_v15 = vor.u32 %v9404_v14, %v8861_v12  ;;  %v8285_v16 = vld [vmem:[%s10386_s25 + $0x70] sm:$0xf]  ;;  %v8293_v20 = vld [vmem:[%s10386_s25 + $0x78] sm:$0xf]  ;;  %v9263_v21 = vld [vmem:[%s10386_s25 + $0x90] sm:$0xf0] }
  0x54   : > { %1622 = vmatpush.bf16.msra.mxu3 %v8702_v42  ;;  %1446 = vmatmul.bf16.vlgmr.msra.gmra.mxu0 %v10610_v47  ;;  %v8287_v19 = vld [vmem:[%s10386_s25 + $0x8c] sm:$0xf0]  ;;  %v9260_v22 = vld [vmem:[%s10386_s25 + $0x7c] sm:$0xf]  ;;  %v8295_v23 = vld [vmem:[%s10386_s25 + $0x94] sm:$0xf0]  ;;  %v10680_v24 = vor.u32 %v9262_v17, %v8285_v16  ;;  %v10684_v26 = vor.u32 %v9263_v21, %v8293_v20 }
  0x55   : > { %1674 = vmatpush.bf16.msrb.mxu0 %v8822_v43  ;;  %1505 = vmatmul.bf16.vlgmr.msra.gmra.mxu1 %v10612_v49  ;;  %v10682_v25 = vor.u32 %v9259_v18, %v8287_v19  ;;  %v10686_v27 = vor.u32 %v9260_v22, %v8295_v23  ;;  %v8313_v28 = vld [vmem:[%s10386_s25 + $0xa8] sm:$0xf]  ;;  %v9269_v29 = vld [vmem:[%s10386_s25 + $0xc0] sm:$0xf0]  ;;  %v9266_v30 = vld [vmem:[%s10386_s25 + $0xac] sm:$0xf] }
  0x56   : > { %1733 = vmatpush.bf16.msrb.mxu1 %v8886_v48  ;;  %1564 = vmatmul.bf16.vlgmr.msra.gmra.mxu2 %v10614_v50  ;;  %v8315_v31 = vld [vmem:[%s10386_s25 + $0xc4] sm:$0xf0]  ;;  %v8321_v32 = vld [vmem:[%s10386_s25 + $0xb0] sm:$0xf]  ;;  %v9270_v33 = vld [vmem:[%s10386_s25 + $0xc8] sm:$0xf0]  ;;  %v10700_v36 = vor.u32 %v9269_v29, %v8313_v28 }
  0x57   : > { %1623 = vmatmul.bf16.vlgmr.msra.gmra.mxu3 %v10622_v53  ;;  %v9267_v34 = vld [vmem:[%s10386_s25 + $0xb4] sm:$0xf]  ;;  %v8323_v35 = vld [vmem:[%s10386_s25 + $0xcc] sm:$0xf0]  ;;  %v10702_v37 = vor.u32 %v9266_v30, %v8315_v31  ;;  %v10704_v38 = vor.u32 %v9270_v33, %v8321_v32  ;;  %v9386_v41 = vld [vmem:[%s15233_s2 + $0x234] sm:$0xf0] }
  0x58   : > { %v10706_v39 = vor.u32 %v9267_v34, %v8323_v35  ;;  %v8789_v40 = vld [vmem:[%s15233_s2 + $0x230] sm:$0xf]  ;;  %v9402_v44 = vld [vmem:[%s15233_s2 + $0x2b4] sm:$0xf0]  ;;  %v9276_v48 = vld [vmem:[%s10386_s25 + $0xf8] sm:$0xf0] }
  0x59   : > { %1675 = vmatpush.bf16.msrb.mxu0 %v8814_v54  ;;  %v8790_v42 = vor.u32 %v9386_v41, %v8789_v40  ;;  %v8853_v43 = vld [vmem:[%s15233_s2 + $0x2b0] sm:$0xf]  ;;  %v9273_v51 = vld [vmem:[%s10386_s25 + $0xe4] sm:$0xf]  ;;  %v8349_v54 = vld [vmem:[%s10386_s25 + $0xe8] sm:$0xf] }
  0x5a   : > { %1734 = vmatpush.bf16.msrb.mxu1 %v8878_v55  ;;  %v8854_v45 = vor.u32 %v9402_v44, %v8853_v43  ;;  %v8341_v46 = vld [vmem:[%s10386_s25 + $0xe0] sm:$0xf]  ;;  %v9277_v55 = vld [vmem:[%s10386_s25 + $0x100] sm:$0xf0]  ;;  %v9274_v56 = vld [vmem:[%s10386_s25 + $0xec] sm:$0xf] }
  0x5b   : > { %v8343_v52 = vld [vmem:[%s10386_s25 + $0xfc] sm:$0xf0]  ;;  %v8351_v57 = vld [vmem:[%s10386_s25 + $0x104] sm:$0xf0]  ;;  %v10732_v58 = vor.u32 %v9276_v48, %v8341_v46  ;;  %v10736_v60 = vor.u32 %v9277_v55, %v8349_v54  ;;  %v8369_v4 = vld [vmem:[%s10386_s25 + $0x118] sm:$0xf] }
  0x5c   : > { %v8781_v62 = vld [vmem:[%s15233_s2 + $0x220] sm:$0xf]  ;;  %v9384_v63 = vld [vmem:[%s15233_s2 + $0x224] sm:$0xf0]  ;;  %v9283_v5 = vld [vmem:[%s10386_s25 + $0x130] sm:$0xf0] }
  0x5d   : > { %1676 = vmatpush.bf16.msrb.mxu0 %v8806_v59  ;;  %v10734_v59 = vor.u32 %v9273_v51, %v8343_v52  ;;  %v8845_v0 = vld [vmem:[%s15233_s2 + $0x2a0] sm:$0xf]  ;;  %v8782_v1 = vor.u32 %v9384_v63, %v8781_v62  ;;  %v9400_v2 = vld [vmem:[%s15233_s2 + $0x2a4] sm:$0xf0]  ;;  %v9280_v10 = vld [vmem:[%s10386_s25 + $0x11c] sm:$0xf]  ;;  %v10764_v16 = vor.u32 %v9283_v5, %v8369_v4 }
  0x5e   : > { %1735 = vmatpush.bf16.msrb.mxu1 %v8870_v61  ;;  %v10738_v61 = vor.u32 %v9274_v56, %v8351_v57  ;;  %v8846_v3 = vor.u32 %v9400_v2, %v8845_v0  ;;  %v8371_v11 = vld [vmem:[%s10386_s25 + $0x134] sm:$0xf0]  ;;  %v8377_v12 = vld [vmem:[%s10386_s25 + $0x120] sm:$0xf]  ;;  %v9281_v14 = vld [vmem:[%s10386_s25 + $0x124] sm:$0xf] }
  0x5f   : > { %v10766_v17 = vor.u32 %v9280_v10, %v8371_v11  ;;  %v8773_v20 = vld [vmem:[%s15233_s2 + $0x210] sm:$0xf]  ;;  %v9382_v21 = vld [vmem:[%s15233_s2 + $0x214] sm:$0xf0]  ;;  %v9290_v31 = vld [vmem:[%s10386_s25 + $0x168] sm:$0xf0] }
  0x60   : > { %v8837_v22 = vld [vmem:[%s15233_s2 + $0x290] sm:$0xf]  ;;  %v8774_v23 = vor.u32 %v9382_v21, %v8773_v20  ;;  %v9398_v28 = vld [vmem:[%s15233_s2 + $0x294] sm:$0xf0]  ;;  %v9287_v32 = vld [vmem:[%s10386_s25 + $0x154] sm:$0xf] }
  0x61   : > { %1677 = vmatpush.bf16.msrb.mxu0 %v8798_v13  ;;  %v9284_v13 = vld [vmem:[%s10386_s25 + $0x138] sm:$0xf0]  ;;  %v8838_v29 = vor.u32 %v9398_v28, %v8837_v22  ;;  %v8397_v30 = vld [vmem:[%s10386_s25 + $0x150] sm:$0xf]  ;;  %v8405_v34 = vld [vmem:[%s10386_s25 + $0x158] sm:$0xf] }
  0x62   : > { %1736 = vmatpush.bf16.msrb.mxu1 %v8862_v15  ;;  %v8379_v15 = vld [vmem:[%s10386_s25 + $0x13c] sm:$0xf0]  ;;  %v10768_v18 = vor.u32 %v9284_v13, %v8377_v12  ;;  %v8399_v33 = vld [vmem:[%s10386_s25 + $0x16c] sm:$0xf0]  ;;  %v9291_v35 = vld [vmem:[%s10386_s25 + $0x170] sm:$0xf0] }
  0x63   : > { %v10770_v19 = vor.u32 %v9281_v14, %v8379_v15  ;;  %v9288_v40 = vld [vmem:[%s10386_s25 + $0x15c] sm:$0xf]  ;;  %v8407_v41 = vld [vmem:[%s10386_s25 + $0x174] sm:$0xf0]  ;;  %v10798_v43 = vor.u32 %v9287_v32, %v8399_v33  ;;  %v10800_v44 = vor.u32 %v9291_v35, %v8405_v34  ;;  %v9329_v46 = vld [vmem:[%s15233_s2 + $0x74] sm:$0xf] }
  0x64   : > { %1451 = vmatmul.bf16.gmra.mxu0 %v10648_v6  ;;  %v8567_v48 = vld [vmem:[%s15233_s2 + $0x78] sm:$0xf0]  ;;  %v9327_v52 = vld [vmem:[%s15233_s2 + $0x64] sm:$0xf]  ;;  %v8559_v54 = vld [vmem:[%s15233_s2 + $0x68] sm:$0xf0] }
  0x65   : > { %1510 = vmatmul.bf16.gmra.mxu1 %v10650_v7  ;;  %1678 = vmatpush.bf16.msrb.mxu0 %v8790_v42  ;;  %15374 = vst [vmem:[#allocation13_spill] sm:$0xff] %v10770_v19  ;;  %v10796_v42 = vor.u32 %v9290_v31, %v8397_v30  ;;  %v8570_v51 = vor.u32 %v9329_v46, %v8567_v48  ;;  %v8425_v56 = vld [vmem:[%s10386_s25 + $0x188] sm:$0xf]  ;;  %v9297_v57 = vld [vmem:[%s10386_s25 + $0x1a0] sm:$0xf0]  ;;  %s10247_s26 = smov 20  }
  0x66   : > { %1569 = vmatmul.bf16.gmra.mxu2 %v10652_v8  ;;  %1737 = vmatpush.bf16.msrb.mxu1 %v8854_v45  ;;  %15375 = vst [vmem:[#allocation14_spill] sm:$0xff] %v10798_v43  ;;  %v10802_v45 = vor.u32 %v9288_v40, %v8407_v41  ;;  %v8562_v55 = vor.u32 %v9327_v52, %v8559_v54  ;;  %v9294_v62 = vld [vmem:[%s10386_s25 + $0x18c] sm:$0xf]  ;;  %v9325_v63 = vld [vmem:[%s15233_s2 + $0x54] sm:$0xf]  ;;  %vm2777_vm1 = vcmask 1041408  }
  0x67   : > { %1628 = vmatmul.bf16.gmra.mxu3 %v10654_v9  ;;  %15376 = vst [vmem:[#allocation15_spill] sm:$0xff] %v10800_v44  ;;  %v8551_v0 = vld [vmem:[%s15233_s2 + $0x58] sm:$0xf0]  ;;  %v8433_v2 = vld [vmem:[%s10386_s25 + $0x190] sm:$0xf]  ;;  %v10834_v11 = vor.u32 %v9297_v57, %v8425_v56  ;;  %s10248_s29 = smov 108  }
  0x68   : > { %15377 = vst [vmem:[#allocation16_spill] sm:$0xff] %v10802_v45  ;;  %1851 = vmatpush.bf16.msrb.mxu3 %v8570_v51  ;;  %v8554_v4 = vor.u32 %v9325_v63, %v8551_v0  ;;  %v9295_v5 = vld [vmem:[%s10386_s25 + $0x194] sm:$0xf]  ;;  %v8435_v10 = vld [vmem:[%s10386_s25 + $0x1ac] sm:$0xf0]  ;;  %vm2746_vm2 = vcmask 162816  }
  0x69   : > { %1679 = vmatpush.bf16.msrb.mxu0 %v8782_v1  ;;  %v8427_v1 = vld [vmem:[%s10386_s25 + $0x1a4] sm:$0xf0]  ;;  %v8765_v14 = vld [vmem:[%s15233_s2 + $0x200] sm:$0xf]  ;;  %v10849_v21 = vor.u32 %v9295_v5, %v8435_v10  ;;  %v9323_v28 = vld [vmem:[%s15233_s2 + $0x44] sm:$0xf] }
  0x6a   : > { %1738 = vmatpush.bf16.msrb.mxu1 %v8846_v3  ;;  %v9298_v3 = vld [vmem:[%s10386_s25 + $0x1a8] sm:$0xf0]  ;;  %v10836_v12 = vor.u32 %v9294_v62, %v8427_v1  ;;  %v9380_v15 = vld [vmem:[%s15233_s2 + $0x204] sm:$0xf0]  ;;  %v8893_v20 = vld [vmem:[%s15233_s2 + $0x300] sm:$0xf] }
  0x6b   : > { %v10838_v13 = vor.u32 %v9298_v3, %v8433_v2  ;;  %15380 = vst [vmem:[#allocation19_spill] sm:$0xff] %v10849_v21  ;;  %v8766_v22 = vor.u32 %v9380_v15, %v8765_v14  ;;  %v8829_v31 = vld [vmem:[%s15233_s2 + $0x280] sm:$0xf]  ;;  %v9396_v32 = vld [vmem:[%s15233_s2 + $0x284] sm:$0xf0]  ;;  %vm8084_vm4 = vcmask 7168  }
  0x6c   : > { %1852 = vmatpush.bf16.msrb.mxu3 %v8562_v55  ;;  %15378 = vst [vmem:[#allocation17_spill] sm:$0xff] %v10836_v12  ;;  %v8830_v34 = vor.u32 %v9396_v32, %v8829_v31  ;;  %v9321_v35 = vld [vmem:[%s15233_s2 + $0x34] sm:$0xf]  ;;  %v8535_v40 = vld [vmem:[%s15233_s2 + $0x38] sm:$0xf0]  ;;  %s8226_s30 = sshll.u32 %s10382_s13, 3 }
  0x6d   : > { %1680 = vmatpush.bf16.msrb.mxu0 %v8774_v23  ;;  %15379 = vst [vmem:[#allocation18_spill] sm:$0xff] %v10838_v13  ;;  %v9412_v23 = vld [vmem:[%s15233_s2 + $0x304] sm:$0xf0]  ;;  %v8538_v41 = vor.u32 %v9321_v35, %v8535_v40  ;;  %v561_v46 = vld [vmem:[%s15234_s3] sm:$0x3]  ;;  %s9242_s28 = sshll.u32 %s10325_s17, 3 }
  0x6e   : > { %1739 = vmatpush.bf16.msrb.mxu1 %v8838_v29  ;;  %v8543_v29 = vld [vmem:[%s15233_s2 + $0x48] sm:$0xf0]  ;;  %v8894_v30 = vor.u32 %v9412_v23, %v8893_v20  ;;  %v9319_v48 = vld [vmem:[%s15233_s2 + $0x24] sm:$0xf]  ;;  %v10885_v52 = vperm.slane %v561_v46, 0  ;;  %s380_s11 = scalar_lea.vmem [#allocation5], %s8226_s30 }
  0x6f   : > { %v8546_v33 = vor.u32 %v9323_v28, %v8543_v29  ;;  %v8527_v51 = vld [vmem:[%s15233_s2 + $0x28] sm:$0xf0]  ;;  %v8453_v54 = vld [vmem:[%s10386_s25 + $0x1c0] sm:$0xf]  ;;  %v9301_v57 = vld [vmem:[%s10386_s25 + $0x1c4] sm:$0xf] }
  0x70   : > { %1853 = vmatpush.bf16.msrb.mxu3 %v8554_v4  ;;  %1799 = vmatpush.bf16.msrb.mxu2 %v8894_v30  ;;  %v9304_v55 = vld [vmem:[%s10386_s25 + $0x1d8] sm:$0xf0]  ;;  %v8530_v56 = vor.u32 %v9319_v48, %v8527_v51  ;;  %v9317_v62 = vld [vmem:[%s15233_s2 + $0x14] sm:$0xf]  ;;  %v8455_v0 = vld [vmem:[%s10386_s25 + $0x1dc] sm:$0xf0] }
  0x71   : > { %1681 = vmatpush.bf16.msrb.mxu0 %v8766_v22  ;;  %v8519_v63 = vld [vmem:[%s15233_s2 + $0x18] sm:$0xf0]  ;;  %v8461_v1 = vld [vmem:[%s10386_s25 + $0x1c8] sm:$0xf]  ;;  %v9305_v2 = vld [vmem:[%s10386_s25 + $0x1e0] sm:$0xf0]  ;;  %v10901_v5 = vor.u32 %v9304_v55, %v8453_v54  ;;  %v10903_v15 = vor.u32 %v9301_v57, %v8455_v0 }
  0x72   : > { %1740 = vmatpush.bf16.msrb.mxu1 %v8830_v34  ;;  %v9302_v3 = vld [vmem:[%s10386_s25 + $0x1cc] sm:$0xf]  ;;  %v8463_v4 = vld [vmem:[%s10386_s25 + $0x1e4] sm:$0xf0]  ;;  %v8522_v10 = vor.u32 %v9317_v62, %v8519_v63  ;;  %v10905_v20 = vor.u32 %v9305_v2, %v8461_v1  ;;  %v9315_v22 = vld [vmem:[%s15233_s2 + $0x4] sm:$0xf] }
  0x73   : > { %15381 = vst [vmem:[#allocation20_spill] sm:$0xff] %v10903_v15  ;;  %v8511_v23 = vld [vmem:[%s15233_s2 + $0x8] sm:$0xf0]  ;;  %v10914_v30 = vor.u32 %v9302_v3, %v8463_v4  ;;  %v8631_v34 = vld [vmem:[%s15233_s2 + $0xf8] sm:$0xf0]  ;;  %s8148_s15 = sshll.u32 %s380_s11, 4  ;;  %s8149_s15 = int_to_ptr.vmem [resolvable:$true] %s8148_s15 }
  0x74   : > { %1456 = vmatmul.bf16.gmra.mxu0 %v10680_v24  ;;  %1854 = vmatpush.bf16.msrb.mxu3 %v8546_v33  ;;  %15382 = vst [vmem:[#allocation21_spill] sm:$0xff] %v10905_v20  ;;  %v8514_v32 = vor.u32 %v9315_v22, %v8511_v23  ;;  %v9345_v33 = vld [vmem:[%s15233_s2 + $0xf4] sm:$0xf]  ;;  %v8481_v0 = vld [vmem:[%s10386_s25 + $0x1f8] sm:$0xf]  ;;  %s8136_s12 = scalar_lea.sflag [#allocation4], %s10382_s13 }
  0x75   : > { %1515 = vmatmul.bf16.gmra.mxu1 %v10682_v25  ;;  %15383 = vst [vmem:[#allocation22_spill] sm:$0xff] %v10914_v30  ;;  %v8634_v35 = vor.u32 %v9345_v33, %v8631_v34  ;;  %v9361_v40 = vld [vmem:[%s15233_s2 + $0x174] sm:$0xf]  ;;  %v9308_v2 = vld [vmem:[%s10386_s25 + $0x1fc] sm:$0xf]  ;;  %s10197_s21 = scalar_lea.hbm %s15241_s10, 16 }
  0x76   : > { %1574 = vmatmul.bf16.gmra.mxu2 %v10684_v26  ;;  %v9311_v1 = vld [vmem:[%s10386_s25 + $0x210] sm:$0xf0]  ;;  %v8483_v3 = vld [vmem:[%s10386_s25 + $0x214] sm:$0xf0]  ;;  %v8489_v4 = vld [vmem:[%s10386_s25 + $0x200] sm:$0xf] }
  0x77   : > { %1633 = vmatmul.bf16.gmra.mxu3 %v10686_v27  ;;  %1910 = vmatpush.bf16.msra.mxu0 %v8634_v35  ;;  %v8491_v22 = vld [vmem:[%s10386_s25 + $0x21c] sm:$0xf0]  ;;  %v10945_v33 = vor.u32 %v9308_v2, %v8483_v3 }
  0x78   : > { %1855 = vmatpush.bf16.msrb.mxu3 %v8538_v41  ;;  %v8695_v41 = vld [vmem:[%s15233_s2 + $0x178] sm:$0xf0] }
  0x79   : > { %v8698_v46 = vor.u32 %v9361_v40, %v8695_v41  ;;  %15384 = vst [vmem:[#allocation23_spill] sm:$0xff] %v10945_v33 }
  0x7b   : > { %1969 = vmatpush.bf16.msra.mxu1 %v8698_v46 }
  0x7c   : > { %1856 = vmatpush.bf16.msrb.mxu3 %v8530_v56 }
  0x80   : > { %1857 = vmatpush.bf16.msrb.mxu3 %v8522_v10  ;;  %v9312_v10 = vld [vmem:[%s10386_s25 + $0x218] sm:$0xf0] }
  0x81   : > { %v10947_v34 = vor.u32 %v9312_v10, %v8489_v4  ;;  %v9359_v10 = vld [vmem:[%s15233_s2 + $0x164] sm:$0xf] }
  0x83   : > { %15385 = vst [vmem:[#allocation24_spill] sm:$0xff] %v10947_v34 }
  0x84   : > { %1461 = vmatmul.bf16.gmra.mxu0 %v10700_v36  ;;  %1858 = vmatpush.bf16.msrb.mxu3 %v8514_v32 }
  0x85   : > { %1520 = vmatmul.bf16.gmra.mxu1 %v10702_v37 }
  0x86   : > { %1579 = vmatmul.bf16.gmra.mxu2 %v10704_v38 }
  0x87   : > { %1638 = vmatmul.bf16.gmra.mxu3 %v10706_v39 }
  0x94   : > { %1466 = vmatmul.bf16.gmra.mxu0 %v10732_v58 }
  0x95   : > { %1525 = vmatmul.bf16.gmra.mxu1 %v10734_v59 }
  0x96   : > { %1584 = vmatmul.bf16.gmra.mxu2 %v10736_v60 }
  0x97   : > { %1643 = vmatmul.bf16.gmra.mxu3 %v10738_v61 }
  0xa4   : > { %1471 = vmatmul.bf16.gmra.mxu0 %v10764_v16 }
  0xa5   : > { %1530 = vmatmul.bf16.gmra.mxu1 %v10766_v17 }
  0xa6   : > { %1589 = vmatmul.bf16.gmra.mxu2 %v10768_v18 }
  0xa7   : > { %1648 = vmatmul.bf16.gmra.mxu3 %v10770_v19 }
  0xb4   : > { %1476 = vmatmul.bf16.gmra.mxu0 %v10796_v42 }
  0xb5   : > { %1535 = vmatmul.bf16.gmra.mxu1 %v10798_v43 }
  0xb6   : > { %1594 = vmatmul.bf16.gmra.mxu2 %v10800_v44 }
  0xb7   : > { %1653 = vmatmul.bf16.gmra.mxu3 %v10802_v45 }
  0xc4   : > { %1481 = vmatmul.bf16.gmra.mxu0 %v10834_v11 }
  0xc5   : > { %1540 = vmatmul.bf16.gmra.mxu1 %v10836_v12 }
  0xc6   : > { %1599 = vmatmul.bf16.gmra.mxu2 %v10838_v13 }
  0xc7   : > { %1658 = vmatmul.bf16.gmra.mxu3 %v10849_v21 }
  0xd1   : > { %v1447_v14 = vpop.f32.mrf.mxu0 }
  0xd2   : > { %v1448_v28 = vadd.f32 %v1447_v14, %v10885_v52  ;;  %v1506_v29 = vpop.f32.mrf.mxu1  ;;  %v9309_v14 = vld [vmem:[%s10386_s25 + $0x204] sm:$0xf] }
  0xd3   : > { %v10950_v41 = vor.u32 %v9309_v14, %v8491_v22  ;;  %v8687_v14 = vld [vmem:[%s15233_s2 + $0x168] sm:$0xf0]  ;;  %v8245_v22 = vld [vmem:[%s10386_s25 + $0x10] sm:$0xf] }
  0xd4   : > { %v1507_v31 = vadd.f32 %v1506_v29, %v1448_v28  ;;  %1486 = vmatmul.bf16.gmra.mxu0 %v10901_v5  ;;  %v10943_v28 = vor.u32 %v9311_v1, %v8481_v0 }
  0xd5   : > { %1545 = vmatmul.bf16.gmra.mxu1 %v10903_v15  ;;  %15386 = vst [vmem:[#allocation25_spill] sm:$0xff] %v10950_v41  ;;  %v9279_v15 = vld [vmem:[%s10386_s25 + $0x110] sm:$0xf0] }
  0xd6   : > { %1604 = vmatmul.bf16.gmra.mxu2 %v10905_v20 }
  0xd7   : > { %1663 = vmatmul.bf16.gmra.mxu3 %v10914_v30 }
  0xd9   : > { %v1565_v48 = vpop.f32.mrf.mxu2  ;;  %v1449_v54 = vpop.f32.mrf.mxu0 }
  0xda   : > { %v1566_v51 = vadd.f32 %v1565_v48, %v1507_v31  ;;  %v1624_v55 = vpop.f32.mrf.mxu3  ;;  %v1450_v56 = vadd.f32 %v1449_v54, %v10885_v52  ;;  %v1508_v57 = vpop.f32.mrf.mxu1 }
  0xdc   : > { %v10933_v62 = vadd.f32 %v1624_v55, %v1566_v51  ;;  %v1509_v63 = vadd.f32 %v1508_v57, %v1450_v56  ;;  %v9343_v57 = vld [vmem:[%s15233_s2 + $0xe4] sm:$0xf] }
  0xe1   : > { %v1567_v23 = vpop.f32.mrf.mxu2  ;;  %v1452_v31 = vpop.f32.mrf.mxu0 }
  0xe2   : > { %v1568_v29 = vadd.f32 %v1567_v23, %v1509_v63  ;;  %v1626_v32 = vpop.f32.mrf.mxu3  ;;  %v1453_v35 = vadd.f32 %v1452_v31, %v10885_v52  ;;  %v1511_v40 = vpop.f32.mrf.mxu1  ;;  %v8623_v63 = vld [vmem:[%s15233_s2 + $0xe8] sm:$0xf0]  ;;  %v8690_v31 = vor.u32 %v9359_v10, %v8687_v14 }
  0xe3   : > { %v8626_v2 = vor.u32 %v9343_v57, %v8623_v63  ;;  %v9250_v23 = vld [vmem:[%s10386_s25 + $0x28] sm:$0xf0] }
  0xe4   : > { %v10952_v46 = vadd.f32 %v1626_v32, %v1568_v29  ;;  %v1512_v48 = vadd.f32 %v1511_v40, %v1453_v35  ;;  %1491 = vmatmul.bf16.gmra.mxu0 %v10943_v28  ;;  %v9247_v29 = vld [vmem:[%s10386_s25 + $0x14] sm:$0xf]  ;;  %v8247_v32 = vld [vmem:[%s10386_s25 + $0x2c] sm:$0xf0]  ;;  %v8253_v35 = vld [vmem:[%s10386_s25 + $0x18] sm:$0xf]  ;;  %1970 = vmatpush.bf16.msra.mxu1 %v8690_v31 }
  0xe5   : > { %1550 = vmatmul.bf16.gmra.mxu1 %v10945_v33  ;;  %1911 = vmatpush.bf16.msra.mxu0 %v8626_v2  ;;  %v9251_v40 = vld [vmem:[%s10386_s25 + $0x30] sm:$0xf0]  ;;  %v10981_v57 = vor.u32 %v9247_v29, %v8247_v32 }
  0xe6   : > { %1609 = vmatmul.bf16.gmra.mxu2 %v10947_v34  ;;  %v10983_v63 = vor.u32 %v9251_v40, %v8253_v35  ;;  %v8273_v35 = vld [vmem:[%s10386_s25 + $0x48] sm:$0xf] }
  0xe7   : > { %1668 = vmatmul.bf16.gmra.mxu3 %v10950_v41  ;;  %15387 = vst [vmem:[#allocation26_spill] sm:$0xff] %v10981_v57 }
  0xe8   : > { %15388 = vst [vmem:[#allocation27_spill] sm:$0xff] %v10983_v63 }
  0xe9   : > { %v1570_v51 = vpop.f32.mrf.mxu2  ;;  %v1454_v55 = vpop.f32.mrf.mxu0 }
  0xea   : > { %v1571_v54 = vadd.f32 %v1570_v51, %v1512_v48  ;;  %v1629_v56 = vpop.f32.mrf.mxu3  ;;  %v1455_v0 = vadd.f32 %v1454_v55, %v10885_v52  ;;  %v1513_v1 = vpop.f32.mrf.mxu1  ;;  %v10979_v51 = vor.u32 %v9250_v23, %v8245_v22 }
  0xec   : > { %v10965_v3 = vadd.f32 %v1629_v56, %v1571_v54  ;;  %v1514_v4 = vadd.f32 %v1513_v1, %v1455_v0 }
  0xf1   : > { %v1572_v48 = vpop.f32.mrf.mxu2  ;;  %v1457_v55 = vpop.f32.mrf.mxu0 }
  0xf2   : > { %v1573_v54 = vadd.f32 %v1572_v48, %v1514_v4  ;;  %v1631_v56 = vpop.f32.mrf.mxu3  ;;  %v1458_v0 = vadd.f32 %v1457_v55, %v10885_v52  ;;  %v1516_v1 = vpop.f32.mrf.mxu1  ;;  %v9341_v48 = vld [vmem:[%s15233_s2 + $0xd4] sm:$0xf] }
  0xf3   : > { %v9257_v55 = vld [vmem:[%s10386_s25 + $0x60] sm:$0xf0] }
  0xf4   : > { %v10986_v2 = vadd.f32 %v1631_v56, %v1573_v54  ;;  %v1517_v10 = vadd.f32 %v1516_v1, %v1458_v0  ;;  %1682 = vmatmul.bf16.vlgmr.msrb.gmra.mxu0 %v10979_v51  ;;  %v9357_v54 = vld [vmem:[%s15233_s2 + $0x154] sm:$0xf]  ;;  %v9254_v56 = vld [vmem:[%s10386_s25 + $0x4c] sm:$0xf] }
  0xf5   : > { %1741 = vmatmul.bf16.vlgmr.msrb.gmra.mxu1 %v10981_v57  ;;  %v8679_v1 = vld [vmem:[%s15233_s2 + $0x158] sm:$0xf0] }
  0xf6   : > { %8899 = vmatmul.msk.bf16.vlgmr.msrb.gmra.mxu2 %vm1407_vm0, %v10983_v63 }
  0xf7   : > { %1859 = vmatmul.bf16.vlgmr.msrb.gmra.mxu3 %v10610_v47  ;;  %v8615_v47 = vld [vmem:[%s15233_s2 + $0xd8] sm:$0xf0] }
  0xf8   : > { %v8618_v0 = vor.u32 %v9341_v48, %v8615_v47 }
  0xf9   : > { %v1575_v4 = vpop.f32.mrf.mxu2  ;;  %v1459_v22 = vpop.f32.mrf.mxu0 }
  0xfa   : > { %v1576_v14 = vadd.f32 %v1575_v4, %v1517_v10  ;;  %v1634_v23 = vpop.f32.mrf.mxu3  ;;  %v1460_v29 = vadd.f32 %v1459_v22, %v10885_v52  ;;  %v1518_v31 = vpop.f32.mrf.mxu1  ;;  %v8275_v10 = vld [vmem:[%s10386_s25 + $0x64] sm:$0xf0]  ;;  %v8281_v4 = vld [vmem:[%s10386_s25 + $0x50] sm:$0xf]  ;;  %v8682_v22 = vor.u32 %v9357_v54, %v8679_v1  ;;  %1912 = vmatpush.bf16.msra.mxu0 %v8618_v0 }
  0xfb   : > { %v11016_v41 = vor.u32 %v9254_v56, %v8275_v10  ;;  %v8301_v10 = vld [vmem:[%s10386_s25 + $0x80] sm:$0xf] }
  0xfc   : > { %v10994_v32 = vadd.f32 %v1634_v23, %v1576_v14  ;;  %v1519_v40 = vadd.f32 %v1518_v31, %v1460_v29  ;;  %v9258_v14 = vld [vmem:[%s10386_s25 + $0x68] sm:$0xf0]  ;;  %v11014_v29 = vor.u32 %v9257_v55, %v8273_v35  ;;  %1971 = vmatpush.bf16.msra.mxu1 %v8682_v22  ;;  %v8303_v22 = vld [vmem:[%s10386_s25 + $0x9c] sm:$0xf0] }
  0xfd   : > { %15389 = vst [vmem:[#allocation28_spill] sm:$0xff] %v11016_v41  ;;  %v11018_v34 = vor.u32 %v9258_v14, %v8281_v4  ;;  %v9264_v4 = vld [vmem:[%s10386_s25 + $0x98] sm:$0xf0]  ;;  %v9261_v14 = vld [vmem:[%s10386_s25 + $0x84] sm:$0xf] }
  0xff   : > { %15390 = vst [vmem:[#allocation29_spill] sm:$0xff] %v11018_v34 }
 0x101   : > { %v1577_v23 = vpop.f32.mrf.mxu2  ;;  %v1462_v63 = vpop.f32.mrf.mxu0 }
 0x102   : > { %v1578_v31 = vadd.f32 %v1577_v23, %v1519_v40  ;;  %v1636_v57 = vpop.f32.mrf.mxu3  ;;  %v1463_v48 = vadd.f32 %v1462_v63, %v10885_v52  ;;  %v1521_v47 = vpop.f32.mrf.mxu1  ;;  %v8309_v23 = vld [vmem:[%s10386_s25 + $0x88] sm:$0xf] }
 0x104   : > { %v11021_v33 = vadd.f32 %v1636_v57, %v1578_v31  ;;  %v1522_v54 = vadd.f32 %v1521_v47, %v1463_v48  ;;  %1687 = vmatmul.bf16.gmra.mxu0 %v11014_v29  ;;  %v9265_v31 = vld [vmem:[%s10386_s25 + $0xa0] sm:$0xf0]  ;;  %v11037_v47 = vor.u32 %v9264_v4, %v8301_v10 }
 0x105   : > { %1746 = vmatmul.bf16.gmra.mxu1 %v11016_v41  ;;  %v11041_v41 = vor.u32 %v9265_v31, %v8309_v23  ;;  %v9355_v4 = vld [vmem:[%s15233_s2 + $0x144] sm:$0xf] }
 0x106   : > { %8900 = vmatmul.msk.bf16.gmra.mxu2 %vm1407_vm0, %v11018_v34 }
 0x107   : > { %1864 = vmatmul.bf16.gmra.mxu3 %v10648_v6  ;;  %15392 = vst [vmem:[#allocation31_spill] sm:$0xff] %v11041_v41 }
 0x109   : > { %v1580_v63 = vpop.f32.mrf.mxu2  ;;  %v1464_v40 = vpop.f32.mrf.mxu0 }
 0x10a   : > { %v1581_v35 = vadd.f32 %v1580_v63, %v1522_v54  ;;  %v1639_v55 = vpop.f32.mrf.mxu3  ;;  %v1465_v57 = vadd.f32 %v1464_v40, %v10885_v52  ;;  %v1523_v56 = vpop.f32.mrf.mxu1  ;;  %v11039_v63 = vor.u32 %v9261_v14, %v8303_v22  ;;  %v8607_v40 = vld [vmem:[%s15233_s2 + $0xc8] sm:$0xf0] }
 0x10b   : > { %v8671_v14 = vld [vmem:[%s15233_s2 + $0x148] sm:$0xf0] }
 0x10c   : > { %v11029_v0 = vadd.f32 %v1639_v55, %v1581_v35  ;;  %v1524_v1 = vadd.f32 %v1523_v56, %v1465_v57  ;;  %15391 = vst [vmem:[#allocation30_spill] sm:$0xff] %v11039_v63  ;;  %v9339_v35 = vld [vmem:[%s15233_s2 + $0xc4] sm:$0xf] }
 0x10d   : > { %v8610_v56 = vor.u32 %v9339_v35, %v8607_v40 }
 0x10f   : > { %1913 = vmatpush.bf16.msra.mxu0 %v8610_v56 }
 0x111   : > { %v1582_v48 = vpop.f32.mrf.mxu2  ;;  %v1467_v34 = vpop.f32.mrf.mxu0 }
 0x112   : > { %v1583_v6 = vadd.f32 %v1582_v48, %v1524_v1  ;;  %v1641_v54 = vpop.f32.mrf.mxu3  ;;  %v1468_v55 = vadd.f32 %v1467_v34, %v10885_v52  ;;  %v1526_v57 = vpop.f32.mrf.mxu1  ;;  %v8674_v34 = vor.u32 %v9355_v4, %v8671_v14  ;;  %v8331_v4 = vld [vmem:[%s10386_s25 + $0xd4] sm:$0xf0]  ;;  %v8337_v14 = vld [vmem:[%s10386_s25 + $0xc0] sm:$0xf] }
 0x114   : > { %v11050_v10 = vadd.f32 %v1641_v54, %v1583_v6  ;;  %v1527_v1 = vadd.f32 %v1526_v57, %v1468_v55  ;;  %1692 = vmatmul.bf16.gmra.mxu0 %v11037_v47  ;;  %1972 = vmatpush.bf16.msra.mxu1 %v8674_v34  ;;  %v8329_v55 = vld [vmem:[%s10386_s25 + $0xb8] sm:$0xf]  ;;  %v9271_v57 = vld [vmem:[%s10386_s25 + $0xd0] sm:$0xf0] }
 0x115   : > { %1751 = vmatmul.bf16.gmra.mxu1 %v11039_v63  ;;  %v9272_v63 = vld [vmem:[%s10386_s25 + $0xd8] sm:$0xf0]  ;;  %v11072_v30 = vor.u32 %v9271_v57, %v8329_v55 }
 0x116   : > { %8901 = vmatmul.msk.bf16.gmra.mxu2 %vm1407_vm0, %v11041_v41  ;;  %v9268_v41 = vld [vmem:[%s10386_s25 + $0xbc] sm:$0xf]  ;;  %v11076_v20 = vor.u32 %v9272_v63, %v8337_v14 }
 0x117   : > { %1869 = vmatmul.bf16.gmra.mxu3 %v10680_v24  ;;  %v8599_v63 = vld [vmem:[%s15233_s2 + $0xb8] sm:$0xf0] }
 0x118   : > { %15394 = vst [vmem:[#allocation33_spill] sm:$0xff] %v11076_v20  ;;  %v8663_v55 = vld [vmem:[%s15233_s2 + $0x138] sm:$0xf0] }
 0x119   : > { %v1585_v22 = vpop.f32.mrf.mxu2  ;;  %v1469_v31 = vpop.f32.mrf.mxu0 }
 0x11a   : > { %v1586_v23 = vadd.f32 %v1585_v22, %v1527_v1  ;;  %v1644_v48 = vpop.f32.mrf.mxu3  ;;  %v1470_v6 = vadd.f32 %v1469_v31, %v10885_v52  ;;  %v1528_v54 = vpop.f32.mrf.mxu1  ;;  %v11074_v22 = vor.u32 %v9268_v41, %v8331_v4  ;;  %v9337_v41 = vld [vmem:[%s15233_s2 + $0xb4] sm:$0xf] }
 0x11c   : > { %v11064_v35 = vadd.f32 %v1644_v48, %v1586_v23  ;;  %v1529_v40 = vadd.f32 %v1528_v54, %v1470_v6  ;;  %15393 = vst [vmem:[#allocation32_spill] sm:$0xff] %v11074_v22  ;;  %v8602_v54 = vor.u32 %v9337_v41, %v8599_v63  ;;  %v9278_v41 = vld [vmem:[%s10386_s25 + $0x108] sm:$0xf0]  ;;  %v9275_v63 = vld [vmem:[%s10386_s25 + $0xf4] sm:$0xf] }
 0x11e   : > { %1914 = vmatpush.bf16.msra.mxu0 %v8602_v54 }
 0x121   : > { %v1587_v24 = vpop.f32.mrf.mxu2  ;;  %v1472_v34 = vpop.f32.mrf.mxu0 }
 0x122   : > { %v1588_v56 = vadd.f32 %v1587_v24, %v1529_v40  ;;  %v1646_v1 = vpop.f32.mrf.mxu3  ;;  %v1473_v23 = vadd.f32 %v1472_v34, %v10885_v52  ;;  %v1531_v31 = vpop.f32.mrf.mxu1  ;;  %v9353_v40 = vld [vmem:[%s15233_s2 + $0x134] sm:$0xf] }
 0x123   : > { %v8666_v57 = vor.u32 %v9353_v40, %v8663_v55 }
 0x124   : > { %v11079_v48 = vadd.f32 %v1646_v1, %v1588_v56  ;;  %v1532_v6 = vadd.f32 %v1531_v31, %v1473_v23  ;;  %1697 = vmatmul.bf16.gmra.mxu0 %v11072_v30  ;;  %v8357_v31 = vld [vmem:[%s10386_s25 + $0xf0] sm:$0xf] }
 0x125   : > { %1756 = vmatmul.bf16.gmra.mxu1 %v11074_v22  ;;  %v8365_v22 = vld [vmem:[%s10386_s25 + $0xf8] sm:$0xf]  ;;  %v11107_v55 = vor.u32 %v9278_v41, %v8357_v31  ;;  %v8591_v31 = vld [vmem:[%s15233_s2 + $0xa8] sm:$0xf0] }
 0x126   : > { %8902 = vmatmul.msk.bf16.gmra.mxu2 %vm1407_vm0, %v11076_v20  ;;  %1973 = vmatpush.bf16.msra.mxu1 %v8666_v57  ;;  %v8359_v20 = vld [vmem:[%s10386_s25 + $0x10c] sm:$0xf0]  ;;  %v11111_v57 = vor.u32 %v9279_v15, %v8365_v22 }
 0x127   : > { %1874 = vmatmul.bf16.gmra.mxu3 %v10700_v36  ;;  %v11109_v21 = vor.u32 %v9275_v63, %v8359_v20 }
 0x128   : > { %15396 = vst [vmem:[#allocation35_spill] sm:$0xff] %v11111_v57 }
 0x129   : > { %v1590_v4 = vpop.f32.mrf.mxu2  ;;  %v1474_v24 = vpop.f32.mrf.mxu0  ;;  %15395 = vst [vmem:[#allocation34_spill] sm:$0xff] %v11109_v21 }
 0x12a   : > { %v1591_v14 = vadd.f32 %v1590_v4, %v1532_v6  ;;  %v1649_v36 = vpop.f32.mrf.mxu3  ;;  %v1475_v56 = vadd.f32 %v1474_v24, %v10885_v52  ;;  %v1533_v34 = vpop.f32.mrf.mxu1 }
 0x12c   : > { %v11099_v1 = vadd.f32 %v1649_v36, %v1591_v14  ;;  %v1534_v23 = vadd.f32 %v1533_v34, %v1475_v56 }
 0x131   : > { %v1592_v40 = vpop.f32.mrf.mxu2  ;;  %v1477_v6 = vpop.f32.mrf.mxu0 }
 0x132   : > { %v1593_v54 = vadd.f32 %v1592_v40, %v1534_v23  ;;  %v1651_v4 = vpop.f32.mrf.mxu3  ;;  %v1478_v14 = vadd.f32 %v1477_v6, %v10885_v52  ;;  %v1536_v24 = vpop.f32.mrf.mxu1  ;;  %v9335_v23 = vld [vmem:[%s15233_s2 + $0xa4] sm:$0xf] }
 0x133   : > { %v8594_v63 = vor.u32 %v9335_v23, %v8591_v31  ;;  %v9351_v6 = vld [vmem:[%s15233_s2 + $0x124] sm:$0xf] }
 0x134   : > { %v11114_v36 = vadd.f32 %v1651_v4, %v1593_v54  ;;  %v1537_v56 = vadd.f32 %v1536_v24, %v1478_v14  ;;  %1702 = vmatmul.bf16.gmra.mxu0 %v11107_v55  ;;  %v8655_v4 = vld [vmem:[%s15233_s2 + $0x128] sm:$0xf0]  ;;  %v8385_v14 = vld [vmem:[%s10386_s25 + $0x128] sm:$0xf]  ;;  %v9285_v24 = vld [vmem:[%s10386_s25 + $0x140] sm:$0xf0] }
 0x135   : > { %1761 = vmatmul.bf16.gmra.mxu1 %v11109_v21  ;;  %1915 = vmatpush.bf16.msra.mxu0 %v8594_v63  ;;  %v9286_v21 = vld [vmem:[%s10386_s25 + $0x148] sm:$0xf0] }
 0x136   : > { %8903 = vmatmul.msk.bf16.gmra.mxu2 %vm1407_vm0, %v11111_v57  ;;  %v8387_v57 = vld [vmem:[%s10386_s25 + $0x144] sm:$0xf0] }
 0x137   : > { %1879 = vmatmul.bf16.gmra.mxu3 %v10732_v58 }
 0x139   : > { %v1595_v20 = vpop.f32.mrf.mxu2  ;;  %v1479_v22 = vpop.f32.mrf.mxu0 }
 0x13a   : > { %v1596_v15 = vadd.f32 %v1595_v20, %v1537_v56  ;;  %v1654_v34 = vpop.f32.mrf.mxu3  ;;  %v1480_v41 = vadd.f32 %v1479_v22, %v10885_v52  ;;  %v1538_v58 = vpop.f32.mrf.mxu1  ;;  %v9282_v56 = vld [vmem:[%s10386_s25 + $0x12c] sm:$0xf]  ;;  %v8658_v20 = vor.u32 %v9351_v6, %v8655_v4  ;;  %v8393_v22 = vld [vmem:[%s10386_s25 + $0x130] sm:$0xf] }
 0x13b   : > { %v11146_v63 = vor.u32 %v9286_v21, %v8393_v22  ;;  %v9349_v22 = vld [vmem:[%s15233_s2 + $0x114] sm:$0xf] }
 0x13c   : > { %v11128_v40 = vadd.f32 %v1654_v34, %v1596_v15  ;;  %v1539_v54 = vadd.f32 %v1538_v58, %v1480_v41  ;;  %1974 = vmatpush.bf16.msra.mxu1 %v8658_v20  ;;  %v11142_v34 = vor.u32 %v9285_v24, %v8385_v14  ;;  %v11144_v58 = vor.u32 %v9282_v56, %v8387_v57  ;;  %v8413_v24 = vld [vmem:[%s10386_s25 + $0x160] sm:$0xf]  ;;  %v9333_v20 = vld [vmem:[%s15233_s2 + $0x94] sm:$0xf] }
 0x13d   : > { %15399 = vst [vmem:[#allocation38_spill] sm:$0xff] %v11146_v63 }
 0x13e   : > { %15397 = vst [vmem:[#allocation36_spill] sm:$0xff] %v11142_v34 }
 0x13f   : > { %15398 = vst [vmem:[#allocation37_spill] sm:$0xff] %v11144_v58 }
 0x141   : > { %v1597_v15 = vpop.f32.mrf.mxu2  ;;  %v1482_v31 = vpop.f32.mrf.mxu0 }
 0x142   : > { %v1598_v23 = vadd.f32 %v1597_v15, %v1539_v54  ;;  %v1656_v41 = vpop.f32.mrf.mxu3  ;;  %v1483_v13 = vadd.f32 %v1482_v31, %v10885_v52  ;;  %v1541_v12 = vpop.f32.mrf.mxu1  ;;  %v9292_v15 = vld [vmem:[%s10386_s25 + $0x178] sm:$0xf0] }
 0x144   : > { %v11149_v45 = vadd.f32 %v1656_v41, %v1598_v23  ;;  %v1542_v6 = vadd.f32 %v1541_v12, %v1483_v13  ;;  %1707 = vmatmul.bf16.gmra.mxu0 %v11142_v34  ;;  %v9289_v23 = vld [vmem:[%s10386_s25 + $0x164] sm:$0xf]  ;;  %v8647_v41 = vld [vmem:[%s15233_s2 + $0x118] sm:$0xf0] }
 0x145   : > { %1766 = vmatmul.bf16.gmra.mxu1 %v11144_v58 }
 0x146   : > { %8904 = vmatmul.msk.bf16.gmra.mxu2 %vm1407_vm0, %v11146_v63 }
 0x147   : > { %1884 = vmatmul.bf16.gmra.mxu3 %v10764_v16  ;;  %v8583_v16 = vld [vmem:[%s15233_s2 + $0x98] sm:$0xf0] }
 0x148   : > { %v8586_v31 = vor.u32 %v9333_v20, %v8583_v16 }
 0x149   : > { %v1600_v21 = vpop.f32.mrf.mxu2  ;;  %v1484_v54 = vpop.f32.mrf.mxu0 }
 0x14a   : > { %v1601_v57 = vadd.f32 %v1600_v21, %v1542_v6  ;;  %v1659_v4 = vpop.f32.mrf.mxu3  ;;  %v1485_v12 = vadd.f32 %v1484_v54, %v10885_v52  ;;  %v1543_v13 = vpop.f32.mrf.mxu1  ;;  %v8415_v6 = vld [vmem:[%s10386_s25 + $0x17c] sm:$0xf0]  ;;  %v8421_v21 = vld [vmem:[%s10386_s25 + $0x168] sm:$0xf]  ;;  %v8650_v54 = vor.u32 %v9349_v22, %v8647_v41  ;;  %1916 = vmatpush.bf16.msra.mxu0 %v8586_v31  ;;  %v8823_v22 = vld [vmem:[%s15233_s2 + $0x278] sm:$0xf0] }
 0x14b   : > { %v11179_v44 = vor.u32 %v9289_v23, %v8415_v6  ;;  %v9375_v23 = vld [vmem:[%s15233_s2 + $0x1e4] sm:$0xf]  ;;  %v8751_v31 = vld [vmem:[%s15233_s2 + $0x1e8] sm:$0xf0] }
 0x14c   : > { %v11157_v14 = vadd.f32 %v1659_v4, %v1601_v57  ;;  %v1544_v56 = vadd.f32 %v1543_v13, %v1485_v12  ;;  %v9293_v57 = vld [vmem:[%s10386_s25 + $0x180] sm:$0xf0]  ;;  %v11177_v12 = vor.u32 %v9292_v15, %v8413_v24  ;;  %1975 = vmatpush.bf16.msra.mxu1 %v8650_v54  ;;  %v8754_v6 = vor.u32 %v9375_v23, %v8751_v31  ;;  %v9296_v23 = vld [vmem:[%s10386_s25 + $0x19c] sm:$0xf] }
 0x14d   : > { %15400 = vst [vmem:[#allocation39_spill] sm:$0xff] %v11179_v44  ;;  %v11181_v43 = vor.u32 %v9293_v57, %v8421_v21  ;;  %v9377_v24 = vld [vmem:[%s15233_s2 + $0x1f4] sm:$0xf] }
 0x14e   : > { %v9389_v31 = vld [vmem:[%s15233_s2 + $0x254] sm:$0xf] }
 0x14f   : > { %15401 = vst [vmem:[#allocation40_spill] sm:$0xff] %v11181_v43 }
 0x151   : > { %v1602_v4 = vpop.f32.mrf.mxu2  ;;  %v1487_v63 = vpop.f32.mrf.mxu0 }
 0x152   : > { %v1603_v13 = vadd.f32 %v1602_v4, %v1544_v56  ;;  %v1661_v58 = vpop.f32.mrf.mxu3  ;;  %v1488_v20 = vadd.f32 %v1487_v63, %v10885_v52  ;;  %v1546_v16 = vpop.f32.mrf.mxu1  ;;  %v8759_v56 = vld [vmem:[%s15233_s2 + $0x1f8] sm:$0xf0]  ;;  %v8815_v4 = vld [vmem:[%s15233_s2 + $0x268] sm:$0xf0] }
 0x153   : > { %v8762_v63 = vor.u32 %v9377_v24, %v8759_v56  ;;  %v8743_v56 = vld [vmem:[%s15233_s2 + $0x1d8] sm:$0xf0] }
 0x154   : > { %v11184_v34 = vadd.f32 %v1661_v58, %v1603_v13  ;;  %v1547_v19 = vadd.f32 %v1546_v16, %v1488_v20  ;;  %1712 = vmatmul.bf16.gmra.mxu0 %v11177_v12  ;;  %v9393_v58 = vld [vmem:[%s15233_s2 + $0x274] sm:$0xf] }
 0x155   : > { %1771 = vmatmul.bf16.gmra.mxu1 %v11179_v44  ;;  %v8826_v15 = vor.u32 %v9393_v58, %v8823_v22  ;;  %2028 = vmatpush.bf16.msra.mxu2 %v8762_v63  ;;  %v8441_v58 = vld [vmem:[%s10386_s25 + $0x198] sm:$0xf]  ;;  %v9299_v22 = vld [vmem:[%s10386_s25 + $0x1b0] sm:$0xf0] }
 0x156   : > { %8905 = vmatmul.msk.bf16.gmra.mxu2 %vm1407_vm0, %v11181_v43 }
 0x157   : > { %1889 = vmatmul.bf16.gmra.mxu3 %v10796_v42  ;;  %v9391_v42 = vld [vmem:[%s15233_s2 + $0x264] sm:$0xf] }
 0x158   : > { %2087 = vmatpush.bf16.msra.mxu3 %v8826_v15  ;;  %v8818_v16 = vor.u32 %v9391_v42, %v8815_v4  ;;  %v9371_v42 = vld [vmem:[%s15233_s2 + $0x1c4] sm:$0xf]  ;;  %v8735_v4 = vld [vmem:[%s15233_s2 + $0x1c8] sm:$0xf0] }
 0x159   : > { %v1605_v41 = vpop.f32.mrf.mxu2  ;;  %v1489_v57 = vpop.f32.mrf.mxu0  ;;  %2029 = vmatpush.bf16.msra.mxu2 %v8754_v6  ;;  %v8443_v6 = vld [vmem:[%s10386_s25 + $0x1b4] sm:$0xf0] }
 0x15a   : > { %v1606_v21 = vadd.f32 %v1605_v41, %v1547_v19  ;;  %v1664_v54 = vpop.f32.mrf.mxu3  ;;  %v1490_v13 = vadd.f32 %v1489_v57, %v10885_v52  ;;  %v1548_v20 = vpop.f32.mrf.mxu1  ;;  %v9373_v19 = vld [vmem:[%s15233_s2 + $0x1d4] sm:$0xf]  ;;  %v8807_v41 = vld [vmem:[%s15233_s2 + $0x258] sm:$0xf0]  ;;  %v11244_v44 = vor.u32 %v9296_v23, %v8443_v6 }
 0x15b   : > { %v8746_v15 = vor.u32 %v9373_v19, %v8743_v56  ;;  %v9300_v57 = vld [vmem:[%s10386_s25 + $0x1b8] sm:$0xf0]  ;;  %v9369_v23 = vld [vmem:[%s15233_s2 + $0x1b4] sm:$0xf] }
 0x15c   : > { %v11216_v24 = vadd.f32 %v1664_v54, %v1606_v21  ;;  %v1549_v63 = vadd.f32 %v1548_v20, %v1490_v13  ;;  %2088 = vmatpush.bf16.msra.mxu3 %v8818_v16  ;;  %v8449_v21 = vld [vmem:[%s10386_s25 + $0x1a0] sm:$0xf]  ;;  %v8810_v54 = vor.u32 %v9389_v31, %v8807_v41  ;;  %v11242_v20 = vor.u32 %v9299_v22, %v8441_v58  ;;  %v8799_v41 = vld [vmem:[%s15233_s2 + $0x248] sm:$0xf0]  ;;  %v8727_v6 = vld [vmem:[%s15233_s2 + $0x1b8] sm:$0xf0] }
 0x15d   : > { %2030 = vmatpush.bf16.msra.mxu2 %v8746_v15  ;;  %v8738_v16 = vor.u32 %v9371_v42, %v8735_v4  ;;  %15403 = vst [vmem:[#allocation42_spill] sm:$0xff] %v11244_v44  ;;  %v11246_v31 = vor.u32 %v9300_v57, %v8449_v21  ;;  %v9387_v15 = vld [vmem:[%s15233_s2 + $0x244] sm:$0xf]  ;;  %v8575_v21 = vld [vmem:[%s15233_s2 + $0x88] sm:$0xf0]  ;;  %v8730_v4 = vor.u32 %v9369_v23, %v8727_v6 }
 0x15e   : > { %15402 = vst [vmem:[#allocation41_spill] sm:$0xff] %v11242_v20  ;;  %v9347_v57 = vld [vmem:[%s15233_s2 + $0x104] sm:$0xf] }
 0x15f   : > { %15404 = vst [vmem:[#allocation43_spill] sm:$0xff] %v11246_v31 }
 0x160   : > { %2089 = vmatpush.bf16.msra.mxu3 %v8810_v54  ;;  %v8802_v54 = vor.u32 %v9387_v15, %v8799_v41 }
 0x161   : > { %v1607_v13 = vpop.f32.mrf.mxu2  ;;  %v1492_v56 = vpop.f32.mrf.mxu0  ;;  %2031 = vmatpush.bf16.msra.mxu2 %v8738_v16  ;;  %v8639_v16 = vld [vmem:[%s15233_s2 + $0x108] sm:$0xf0] }
 0x162   : > { %v1608_v19 = vadd.f32 %v1607_v13, %v1549_v63  ;;  %v1666_v43 = vpop.f32.mrf.mxu3  ;;  %v1493_v58 = vadd.f32 %v1492_v56, %v10885_v52  ;;  %v1551_v22 = vpop.f32.mrf.mxu1  ;;  %v8791_v56 = vld [vmem:[%s15233_s2 + $0x238] sm:$0xf0]  ;;  %v8642_v15 = vor.u32 %v9347_v57, %v8639_v16  ;;  %v8783_v57 = vld [vmem:[%s15233_s2 + $0x228] sm:$0xf0] }
 0x164   : > { %v11255_v42 = vadd.f32 %v1666_v43, %v1608_v19  ;;  %v1552_v63 = vadd.f32 %v1551_v22, %v1493_v58  ;;  %1717 = vmatmul.bf16.gmra.mxu0 %v11242_v20  ;;  %2090 = vmatpush.bf16.msra.mxu3 %v8802_v54  ;;  %v9331_v43 = vld [vmem:[%s15233_s2 + $0x84] sm:$0xf]  ;;  %v9385_v19 = vld [vmem:[%s15233_s2 + $0x234] sm:$0xf]  ;;  %v8719_v58 = vld [vmem:[%s15233_s2 + $0x1a8] sm:$0xf0] }
 0x165   : > { %1776 = vmatmul.bf16.gmra.mxu1 %v11244_v44  ;;  %v8578_v13 = vor.u32 %v9331_v43, %v8575_v21  ;;  %2032 = vmatpush.bf16.msra.mxu2 %v8730_v4  ;;  %v8794_v41 = vor.u32 %v9385_v19, %v8791_v56  ;;  %v9383_v21 = vld [vmem:[%s15233_s2 + $0x224] sm:$0xf]  ;;  %v9365_v19 = vld [vmem:[%s15233_s2 + $0x194] sm:$0xf]  ;;  %v8711_v56 = vld [vmem:[%s15233_s2 + $0x198] sm:$0xf0] }
 0x166   : > { %8906 = vmatmul.msk.bf16.gmra.mxu2 %vm1407_vm0, %v11246_v31  ;;  %1976 = vmatpush.bf16.msra.mxu1 %v8642_v15 }
 0x167   : > { %1894 = vmatmul.bf16.gmra.mxu3 %v10834_v11  ;;  %v9367_v11 = vld [vmem:[%s15233_s2 + $0x1a4] sm:$0xf]  ;;  %1917 = vmatpush.bf16.msra.mxu0 %v8578_v13 }
 0x168   : > { %v8722_v54 = vor.u32 %v9367_v11, %v8719_v58  ;;  %2091 = vmatpush.bf16.msra.mxu3 %v8794_v41  ;;  %v8469_v41 = vld [vmem:[%s10386_s25 + $0x1d0] sm:$0xf]  ;;  %v9306_v11 = vld [vmem:[%s10386_s25 + $0x1e8] sm:$0xf0]  ;;  %v8714_v58 = vor.u32 %v9365_v19, %v8711_v56 }
 0x169   : > { %v1610_v22 = vpop.f32.mrf.mxu2  ;;  %v1494_v6 = vpop.f32.mrf.mxu0 }
 0x16a   : > { %v1611_v23 = vadd.f32 %v1610_v22, %v1552_v63  ;;  %v1669_v43 = vpop.f32.mrf.mxu3  ;;  %v1495_v4 = vadd.f32 %v1494_v6, %v10885_v52  ;;  %v1553_v13 = vpop.f32.mrf.mxu1  ;;  %v8786_v63 = vor.u32 %v9383_v21, %v8783_v57  ;;  %2033 = vmatpush.bf16.msra.mxu2 %v8722_v54  ;;  %v9303_v52 = vld [vmem:[%s10386_s25 + $0x1d4] sm:$0xf]  ;;  %v8775_v54 = vld [vmem:[%s15233_s2 + $0x218] sm:$0xf0]  ;;  %v8477_v6 = vld [vmem:[%s10386_s25 + $0x1d8] sm:$0xf] }
 0x16b   : > { %v9381_v22 = vld [vmem:[%s15233_s2 + $0x214] sm:$0xf]  ;;  %v9363_v57 = vld [vmem:[%s15233_s2 + $0x184] sm:$0xf] }
 0x16c   : > { %v11299_v16 = vadd.f32 %v1669_v43, %v1611_v23  ;;  %v1554_v15 = vadd.f32 %v1553_v13, %v1495_v4  ;;  %2092 = vmatpush.bf16.msra.mxu3 %v8786_v63  ;;  %v8471_v23 = vld [vmem:[%s10386_s25 + $0x1ec] sm:$0xf0]  ;;  %v9307_v43 = vld [vmem:[%s10386_s25 + $0x1f0] sm:$0xf0]  ;;  %v8778_v21 = vor.u32 %v9381_v22, %v8775_v54  ;;  %v8703_v4 = vld [vmem:[%s15233_s2 + $0x188] sm:$0xf0]  ;;  %v11325_v63 = vor.u32 %v9306_v11, %v8469_v41 }
 0x16d   : > { %v8706_v19 = vor.u32 %v9363_v57, %v8703_v4  ;;  %v11327_v20 = vor.u32 %v9303_v52, %v8471_v23  ;;  %v8767_v22 = vld [vmem:[%s15233_s2 + $0x208] sm:$0xf0]  ;;  %v9409_v23 = vld [vmem:[%s15233_s2 + $0x2f4] sm:$0xf] }
 0x16e   : > { %15405 = vst [vmem:[#allocation44_spill] sm:$0xff] %v11299_v16  ;;  %2034 = vmatpush.bf16.msra.mxu2 %v8714_v58  ;;  %v11329_v16 = vor.u32 %v9307_v43, %v8477_v6  ;;  %v9379_v58 = vld [vmem:[%s15233_s2 + $0x204] sm:$0xf]  ;;  %v8895_v6 = vld [vmem:[%s15233_s2 + $0x308] sm:$0xf0] }
 0x170   : > { %15406 = vst [vmem:[#allocation45_spill] sm:$0xff] %v11329_v16  ;;  %2093 = vmatpush.bf16.msra.mxu3 %v8778_v21 }
 0x171   : > { %v1612_v13 = vpop.f32.mrf.mxu2  ;;  %v1683_v44 = vpop.f32.mrf.mxu0 }
 0x172   : > { %v1613_v56 = vadd.f32 %v1612_v13, %v1554_v15  ;;  %v1671_v31 = vpop.f32.mrf.mxu3  ;;  %v1684_v41 = vadd.f32 %v1683_v44, %v10933_v62  ;;  %v1742_v11 = vpop.f32.mrf.mxu1  ;;  %2035 = vmatpush.bf16.msra.mxu2 %v8706_v19  ;;  %v8770_v15 = vor.u32 %v9379_v58, %v8767_v22  ;;  %v8887_v44 = vld [vmem:[%s15233_s2 + $0x2f8] sm:$0xf0]  ;;  %v9313_v58 = vld [vmem:[%s10386_s25 + $0x220] sm:$0xf0] }
 0x173   : > { %v8890_v62 = vor.u32 %v9409_v23, %v8887_v44  ;;  %v9310_v22 = vld [vmem:[%s10386_s25 + $0x20c] sm:$0xf] }
 0x174   : > { %v11338_v54 = vadd.f32 %v1671_v31, %v1613_v56  ;;  %v1743_v52 = vadd.f32 %v1742_v11, %v1684_v41  ;;  %1722 = vmatmul.bf16.gmra.mxu0 %v11325_v63  ;;  %v9411_v31 = vld [vmem:[%s15233_s2 + $0x304] sm:$0xf]  ;;  %2094 = vmatpush.bf16.msra.mxu3 %v8770_v15  ;;  %v8497_v56 = vld [vmem:[%s10386_s25 + $0x208] sm:$0xf]  ;;  %v8505_v11 = vld [vmem:[%s10386_s25 + $0x210] sm:$0xf] }
 0x175   : > { %1781 = vmatmul.bf16.gmra.mxu1 %v11327_v20  ;;  %v8898_v43 = vor.u32 %v9411_v31, %v8895_v6  ;;  %2146 = vmatpush.bf16.msrb.mxu0 %v8890_v62  ;;  %v8499_v41 = vld [vmem:[%s10386_s25 + $0x224] sm:$0xf0]  ;;  %v9314_v23 = vld [vmem:[%s10386_s25 + $0x228] sm:$0xf0] }
 0x176   : > { %8907 = vmatmul.msk.bf16.gmra.mxu2 %vm1407_vm0, %v11329_v16  ;;  %v11364_v16 = vor.u32 %v9313_v58, %v8497_v56  ;;  %v11366_v6 = vor.u32 %v9310_v22, %v8499_v41  ;;  %v8879_v22 = vld [vmem:[%s15233_s2 + $0x2e8] sm:$0xf0] }
 0x177   : > { %1899 = vmatmul.bf16.gmra.mxu3 %v10901_v5  ;;  %2212 = vmatpush.bf16.msrb.mxu1 %v8898_v43 }
 0x179   : > { %v1801_v21 = vpop.f32.mrf.mxu2  ;;  %v1685_v4 = vpop.f32.mrf.mxu0 }
 0x17a   : > { %v1802_v57 = vadd.f32 %v1801_v21, %v1743_v52  ;;  %v1686_v5 = vadd.f32 %v1685_v4, %v10952_v46  ;;  %v1744_v13 = vpop.f32.mrf.mxu1  ;;  %v11368_v52 = vor.u32 %v9314_v23, %v8505_v11  ;;  %v11385_v23 = vpop.f32.mrf.mxu3 }
 0x17c   : > { %v1745_v19 = vadd.f32 %v1744_v13, %v1686_v5  ;;  %v2264_v43 = vmax.f32 %v1802_v57, 0.0  ;;  %v9407_v57 = vld [vmem:[%s15233_s2 + $0x2e4] sm:$0xf] }
 0x17d   : > { %v8882_v11 = vor.u32 %v9407_v57, %v8879_v22 }
 0x17f   : > { %2147 = vmatpush.bf16.msrb.mxu0 %v8882_v11 }
 0x181   : > { %v1803_v44 = vpop.f32.mrf.mxu2  ;;  %v1688_v31 = vpop.f32.mrf.mxu0 }
 0x182   : > { %v1804_v15 = vadd.f32 %v1803_v44, %v1745_v19  ;;  %v1689_v62 = vadd.f32 %v1688_v31, %v10965_v3  ;;  %v1747_v46 = vpop.f32.mrf.mxu1 }
 0x184   : > { %v2266_v21 = vmax.f32 %v1804_v15, 0.0  ;;  %v1748_v4 = vadd.f32 %v1747_v46, %v1689_v62  ;;  %1727 = vmatmul.bf16.gmra.mxu0 %v11364_v16 }
 0x185   : > { %1786 = vmatmul.bf16.gmra.mxu1 %v11366_v6 }
 0x186   : > { %v11372_v5 = vpack.c.bf16 %v2266_v21, %v2264_v43  ;;  %8908 = vmatmul.msk.bf16.gmra.mxu2 %vm1407_vm0, %v11368_v52 }
 0x187   : > { %1904 = vmatmul.bf16.gmra.mxu3 %v10943_v28 }
 0x189   : > { %v1806_v13 = vpop.f32.mrf.mxu2  ;;  %v1690_v56 = vpop.f32.mrf.mxu0 }
 0x18a   : > { %v1807_v19 = vadd.f32 %v1806_v13, %v1748_v4  ;;  %v1691_v3 = vadd.f32 %v1690_v56, %v10986_v2  ;;  %v1749_v58 = vpop.f32.mrf.mxu1 }
 0x18c   : > { %v1750_v41 = vadd.f32 %v1749_v58, %v1691_v3  ;;  %v2268_v62 = vmax.f32 %v1807_v19, 0.0  ;;  %v11394_v3 = vpop.f32.mrf.mxu3 }
 0x191   : > { %v1808_v28 = vpop.f32.mrf.mxu2  ;;  %v1693_v15 = vpop.f32.mrf.mxu0 }
 0x192   : > { %v1809_v44 = vadd.f32 %v1808_v28, %v1750_v41  ;;  %v1694_v31 = vadd.f32 %v1693_v15, %v10994_v32  ;;  %v1752_v2 = vpop.f32.mrf.mxu1 }
 0x194   : > { %v2270_v46 = vmax.f32 %v1809_v44, 0.0  ;;  %v1753_v43 = vadd.f32 %v1752_v2, %v1694_v31  ;;  %1918 = vmatmul.bf16.vlgmr.msra.gmra.mxu0 %v10612_v49  ;;  %v9405_v49 = vld [vmem:[%s15233_s2 + $0x2d4] sm:$0xf]  ;;  %v11404_v44 = vpop.f32.mrf.mxu3 }
 0x195   : > { %1977 = vmatmul.bf16.vlgmr.msra.gmra.mxu1 %v10614_v50  ;;  %v8871_v50 = vld [vmem:[%s15233_s2 + $0x2d8] sm:$0xf0] }
 0x196   : > { %2036 = vmatmul.bf16.vlgmr.msra.gmra.mxu2 %v10622_v53  ;;  %v11391_v21 = vpack.c.bf16 %v2270_v46, %v2268_v62  ;;  %v8874_v53 = vor.u32 %v9405_v49, %v8871_v50 }
 0x197   : > { %2095 = vmatmul.bf16.vlgmr.msra.gmra.mxu3 %v10979_v51 }
 0x198   : > { %2148 = vmatpush.bf16.msrb.mxu0 %v8874_v53 }
 0x199   : > { %v1811_v4 = vpop.f32.mrf.mxu2  ;;  %v1695_v56 = vpop.f32.mrf.mxu0 }
 0x19a   : > { %v1812_v13 = vadd.f32 %v1811_v4, %v1753_v43  ;;  %v1696_v32 = vadd.f32 %v1695_v56, %v11021_v33  ;;  %v1754_v19 = vpop.f32.mrf.mxu1 }
 0x19c   : > { %v1755_v58 = vadd.f32 %v1754_v19, %v1696_v32  ;;  %v2272_v28 = vmax.f32 %v1812_v13, 0.0  ;;  %v11413_v13 = vpop.f32.mrf.mxu3 }
 0x1a1   : > { %v1813_v51 = vpop.f32.mrf.mxu2  ;;  %v1698_v22 = vpop.f32.mrf.mxu0 }
 0x1a2   : > { %v1814_v57 = vadd.f32 %v1813_v51, %v1755_v58  ;;  %v1699_v41 = vadd.f32 %v1698_v22, %v11029_v0  ;;  %v1757_v11 = vpop.f32.mrf.mxu1 }
 0x1a4   : > { %v2274_v33 = vmax.f32 %v1814_v57, 0.0  ;;  %v1758_v15 = vadd.f32 %v1757_v11, %v1699_v41  ;;  %1923 = vmatmul.bf16.gmra.mxu0 %v10650_v7  ;;  %v11428_v53 = vpop.f32.mrf.mxu3 }
 0x1a5   : > { %1982 = vmatmul.bf16.gmra.mxu1 %v10652_v8 }
 0x1a6   : > { %2041 = vmatmul.bf16.gmra.mxu2 %v10654_v9  ;;  %v11409_v31 = vpack.c.bf16 %v2274_v33, %v2272_v28 }
 0x1a7   : > { %2100 = vmatmul.bf16.gmra.mxu3 %v11014_v29  ;;  %v9403_v29 = vld [vmem:[%s15233_s2 + $0x2c4] sm:$0xf] }
 0x1a9   : > { %v1816_v2 = vpop.f32.mrf.mxu2  ;;  %v1700_v46 = vpop.f32.mrf.mxu0 }
 0x1aa   : > { %v1817_v62 = vadd.f32 %v1816_v2, %v1758_v15  ;;  %v1701_v0 = vadd.f32 %v1700_v46, %v11050_v10  ;;  %v1759_v43 = vpop.f32.mrf.mxu1  ;;  %v8863_v10 = vld [vmem:[%s15233_s2 + $0x2c8] sm:$0xf0] }
 0x1ab   : > { %v8866_v50 = vor.u32 %v9403_v29, %v8863_v10 }
 0x1ac   : > { %v1760_v4 = vadd.f32 %v1759_v43, %v1701_v0  ;;  %v2276_v9 = vmax.f32 %v1817_v62, 0.0  ;;  %v8855_v0 = vld [vmem:[%s15233_s2 + $0x2b8] sm:$0xf0] }
 0x1ad   : > { %2149 = vmatpush.bf16.msrb.mxu0 %v8866_v50 }
 0x1b1   : > { %v1818_v56 = vpop.f32.mrf.mxu2  ;;  %v1703_v7 = vpop.f32.mrf.mxu0 }
 0x1b2   : > { %v1819_v32 = vadd.f32 %v1818_v56, %v1760_v4  ;;  %v1704_v8 = vadd.f32 %v1703_v7, %v11064_v35  ;;  %v1762_v19 = vpop.f32.mrf.mxu1 }
 0x1b4   : > { %v2278_v58 = vmax.f32 %v1819_v32, 0.0  ;;  %v1763_v49 = vadd.f32 %v1762_v19, %v1704_v8  ;;  %1928 = vmatmul.bf16.gmra.mxu0 %v10682_v25 }
 0x1b5   : > { %1987 = vmatmul.bf16.gmra.mxu1 %v10684_v26  ;;  %v11431_v26 = vpop.f32.mrf.mxu3 }
 0x1b6   : > { %2046 = vmatmul.bf16.gmra.mxu2 %v10686_v27  ;;  %v11425_v35 = vpack.c.bf16 %v2278_v58, %v2276_v9 }
 0x1b7   : > { %2105 = vmatmul.bf16.gmra.mxu3 %v11037_v47 }
 0x1b9   : > { %v1821_v51 = vpop.f32.mrf.mxu2  ;;  %v1705_v22 = vpop.f32.mrf.mxu0 }
 0x1ba   : > { %v1822_v57 = vadd.f32 %v1821_v51, %v1763_v49  ;;  %v1706_v41 = vadd.f32 %v1705_v22, %v11079_v48  ;;  %v1764_v11 = vpop.f32.mrf.mxu1  ;;  %v9401_v48 = vld [vmem:[%s15233_s2 + $0x2b4] sm:$0xf] }
 0x1bc   : > { %v1765_v28 = vadd.f32 %v1764_v11, %v1706_v41  ;;  %v2280_v62 = vmax.f32 %v1822_v57, 0.0 }
 0x1bd   : > { %v11447_v32 = vpop.f32.mrf.mxu3 }
 0x1c1   : > { %v1823_v25 = vpop.f32.mrf.mxu2  ;;  %v1708_v15 = vpop.f32.mrf.mxu0 }
 0x1c2   : > { %v1824_v33 = vadd.f32 %v1823_v25, %v1765_v28  ;;  %v1709_v27 = vadd.f32 %v1708_v15, %v11099_v1  ;;  %v1767_v2 = vpop.f32.mrf.mxu1  ;;  %v8858_v1 = vor.u32 %v9401_v48, %v8855_v0  ;;  %v15408_v48 = vld [vmem:[#allocation36_spill] sm:$0xff] }
 0x1c4   : > { %v2282_v47 = vmax.f32 %v1824_v33, 0.0  ;;  %v1768_v46 = vadd.f32 %v1767_v2, %v1709_v27  ;;  %1933 = vmatmul.bf16.gmra.mxu0 %v10702_v37 }
 0x1c5   : > { %1992 = vmatmul.bf16.gmra.mxu1 %v10704_v38  ;;  %2150 = vmatpush.bf16.msrb.mxu0 %v8858_v1  ;;  %v11455_v50 = vpop.f32.mrf.mxu3 }
 0x1c6   : > { %2051 = vmatmul.bf16.gmra.mxu2 %v10706_v39  ;;  %v11443_v43 = vpack.c.bf16 %v2282_v47, %v2280_v62  ;;  %v15407_v47 = vld [vmem:[#allocation13_spill] sm:$0xff] }
 0x1c7   : > { %2110 = vmatmul.bf16.gmra.mxu3 %v11072_v30 }
 0x1c9   : > { %v1826_v4 = vpop.f32.mrf.mxu2  ;;  %v1710_v56 = vpop.f32.mrf.mxu0 }
 0x1ca   : > { %v1827_v37 = vadd.f32 %v1826_v4, %v1768_v46  ;;  %v1711_v38 = vadd.f32 %v1710_v56, %v11114_v36  ;;  %v1769_v39 = vpop.f32.mrf.mxu1 }
 0x1cc   : > { %v1770_v7 = vadd.f32 %v1769_v39, %v1711_v38  ;;  %v2284_v10 = vmax.f32 %v1827_v37, 0.0 }
 0x1cd   : > { %v11465_v28 = vpop.f32.mrf.mxu3 }
 0x1d1   : > { %v1828_v8 = vpop.f32.mrf.mxu2  ;;  %v1713_v9 = vpop.f32.mrf.mxu0 }
 0x1d2   : > { %v1829_v19 = vadd.f32 %v1828_v8, %v1770_v7  ;;  %v1714_v58 = vadd.f32 %v1713_v9, %v11128_v40  ;;  %v1772_v29 = vpop.f32.mrf.mxu1 }
 0x1d4   : > { %v2286_v49 = vmax.f32 %v1829_v19, 0.0  ;;  %v1773_v30 = vadd.f32 %v1772_v29, %v1714_v58  ;;  %1938 = vmatmul.bf16.gmra.mxu0 %v10734_v59  ;;  %v9399_v59 = vld [vmem:[%s15233_s2 + $0x2a4] sm:$0xf] }
 0x1d5   : > { %1997 = vmatmul.bf16.gmra.mxu1 %v10736_v60  ;;  %v8847_v60 = vld [vmem:[%s15233_s2 + $0x2a8] sm:$0xf0]  ;;  %v11474_v37 = vpop.f32.mrf.mxu3 }
 0x1d6   : > { %2056 = vmatmul.bf16.gmra.mxu2 %v10738_v61  ;;  %v11453_v36 = vpack.c.bf16 %v2286_v49, %v2284_v10  ;;  %v8850_v11 = vor.u32 %v9399_v59, %v8847_v60 }
 0x1d7   : > { %2115 = vmatmul.bf16.gmra.mxu3 %v11107_v55 }
 0x1d8   : > { %2151 = vmatpush.bf16.msrb.mxu0 %v8850_v11 }
 0x1d9   : > { %v1831_v51 = vpop.f32.mrf.mxu2  ;;  %v1715_v22 = vpop.f32.mrf.mxu0 }
 0x1da   : > { %v1832_v57 = vadd.f32 %v1831_v51, %v1773_v30  ;;  %v1716_v40 = vadd.f32 %v1715_v22, %v11149_v45  ;;  %v1774_v41 = vpop.f32.mrf.mxu1  ;;  %v15409_v30 = vld [vmem:[#allocation14_spill] sm:$0xff]  ;;  %v15411_v22 = vld [vmem:[#allocation16_spill] sm:$0xff] }
 0x1db   : > { %v9420_v51 = vld [vmem:[%s15235_s4 + $0x38] sm:$0xff] }
 0x1dc   : > { %v1775_v61 = vadd.f32 %v1774_v41, %v1716_v40  ;;  %v2288_v27 = vmax.f32 %v1832_v57, 0.0  ;;  %v15410_v57 = vld [vmem:[#allocation15_spill] sm:$0xff]  ;;  %2456 = vmatpush.bf16.msrb.mxu2 %v9420_v51  ;;  %v9419_v41 = vld [vmem:[%s15235_s4 + $0x30] sm:$0xff] }
 0x1dd   : > { %v11484_v10 = vpop.f32.mrf.mxu3  ;;  %v10145_v51 = vld [vmem:[%s15234_s3] sm:$0x3] }
 0x1e0   : > { %2457 = vmatpush.bf16.msrb.mxu2 %v9419_v41 }
 0x1e1   : > { %v1833_v55 = vpop.f32.mrf.mxu2  ;;  %v1718_v33 = vpop.f32.mrf.mxu0 }
 0x1e2   : > { %v1834_v25 = vadd.f32 %v1833_v55, %v1775_v61  ;;  %v1719_v15 = vadd.f32 %v1718_v33, %v11157_v14  ;;  %v1777_v45 = vpop.f32.mrf.mxu1 }
 0x1e4   : > { %v2290_v2 = vmax.f32 %v1834_v25, 0.0  ;;  %v1778_v62 = vadd.f32 %v1777_v45, %v1719_v15  ;;  %1943 = vmatmul.bf16.gmra.mxu0 %v10766_v17  ;;  %v9397_v17 = vld [vmem:[%s15233_s2 + $0x294] sm:$0xf]  ;;  %v9418_v25 = vld [vmem:[%s15235_s4 + $0x28] sm:$0xff]  ;;  %v9417_v15 = vld [vmem:[%s15235_s4 + $0x20] sm:$0xff] }
 0x1e5   : > { %2002 = vmatmul.bf16.gmra.mxu1 %v10768_v18  ;;  %v8839_v18 = vld [vmem:[%s15233_s2 + $0x298] sm:$0xf0]  ;;  %v11502_v33 = vpop.f32.mrf.mxu3  ;;  %2458 = vmatpush.bf16.msrb.mxu2 %v9418_v25 }
 0x1e6   : > { %2061 = vmatmul.bf16.gmra.mxu2 %v15407_v47  ;;  %v11471_v46 = vpack.c.bf16 %v2290_v2, %v2288_v27  ;;  %v8842_v39 = vor.u32 %v9397_v17, %v8839_v18  ;;  %v8831_v2 = vld [vmem:[%s15233_s2 + $0x288] sm:$0xf0]  ;;  %v9416_v17 = vld [vmem:[%s15235_s4 + $0x18] sm:$0xff] }
 0x1e7   : > { %2120 = vmatmul.bf16.gmra.mxu3 %v15408_v48  ;;  %v15414_v18 = vld [vmem:[#allocation18_spill] sm:$0xff] }
 0x1e8   : > { %2152 = vmatpush.bf16.msrb.mxu0 %v8842_v39  ;;  %v15415_v39 = vld [vmem:[#allocation19_spill] sm:$0xff] }
 0x1e9   : > { %v1836_v0 = vpop.f32.mrf.mxu2  ;;  %v1720_v4 = vpop.f32.mrf.mxu0  ;;  %2459 = vmatpush.bf16.msrb.mxu2 %v9417_v15 }
 0x1ea   : > { %v1837_v1 = vadd.f32 %v1836_v0, %v1778_v62  ;;  %v1721_v14 = vadd.f32 %v1720_v4, %v11184_v34  ;;  %v1779_v56 = vpop.f32.mrf.mxu1  ;;  %v15412_v62 = vld [vmem:[#allocation44_spill] sm:$0xff] }
 0x1ec   : > { %v1780_v38 = vadd.f32 %v1779_v56, %v1721_v14  ;;  %v2292_v29 = vmax.f32 %v1837_v1, 0.0  ;;  %v15413_v56 = vld [vmem:[#allocation17_spill] sm:$0xff] }
 0x1ed   : > { %2460 = vmatpush.bf16.msrb.mxu2 %v9416_v17 }
 0x1f1   : > { %v1838_v7 = vpop.f32.mrf.mxu2  ;;  %v1723_v19 = vpop.f32.mrf.mxu0 }
 0x1f2   : > { %v1839_v8 = vadd.f32 %v1838_v7, %v1780_v38  ;;  %v1724_v9 = vadd.f32 %v1723_v19, %v11216_v24  ;;  %v1782_v58 = vpop.f32.mrf.mxu1  ;;  %v9428_v38 = vld [vmem:[%s15235_s4 + $0x78] sm:$0xff]  ;;  %v11526_v19 = vpop.f32.mrf.mxu3 }
 0x1f3   : > { %2515 = vmatpush.bf16.msrb.mxu3 %v9428_v38 }
 0x1f4   : > { %v2294_v34 = vmax.f32 %v1839_v8, 0.0  ;;  %v1783_v49 = vadd.f32 %v1782_v58, %v1724_v9  ;;  %1948 = vmatmul.bf16.gmra.mxu0 %v15409_v30  ;;  %v15416_v8 = vld [vmem:[#allocation41_spill] sm:$0xff] }
 0x1f5   : > { %2007 = vmatmul.bf16.gmra.mxu1 %v15410_v57  ;;  %v9415_v58 = vld [vmem:[%s15235_s4 + $0x10] sm:$0xff]  ;;  %v11535_v57 = vperm.slane %v10145_v51, 1 }
 0x1f6   : > { %2066 = vmatmul.bf16.gmra.mxu2 %v15411_v22  ;;  %v11492_v40 = vpack.c.bf16 %v2294_v34, %v2292_v29 }
 0x1f7   : > { %2125 = vmatmul.bf16.gmra.mxu3 %v11177_v12  ;;  %2461 = vmatpush.bf16.msrb.mxu2 %v9415_v58  ;;  %v1861_v41 = vadd.f32 %v11385_v23, %v11535_v57  ;;  %v15419_v23 = vld [vmem:[#allocation22_spill] sm:$0xff]  ;;  %v1866_v17 = vadd.f32 %v11404_v44, %v11535_v57  ;;  %v1868_v44 = vadd.f32 %v11413_v13, %v11535_v57 }
 0x1f9   : > { %v1841_v24 = vpop.f32.mrf.mxu2  ;;  %v1725_v60 = vpop.f32.mrf.mxu0 }
 0x1fa   : > { %v1842_v59 = vadd.f32 %v1841_v24, %v1783_v49  ;;  %v1726_v61 = vadd.f32 %v1725_v60, %v11255_v42  ;;  %v1784_v11 = vpop.f32.mrf.mxu1  ;;  %v9395_v42 = vld [vmem:[%s15233_s2 + $0x284] sm:$0xf]  ;;  %v9414_v24 = vld [vmem:[%s15235_s4 + $0x8] sm:$0xff] }
 0x1fb   : > { %v8834_v0 = vor.u32 %v9395_v42, %v8831_v2  ;;  %2462 = vmatpush.bf16.msrb.mxu2 %v9414_v24  ;;  %v15418_v42 = vld [vmem:[#allocation21_spill] sm:$0xff] }
 0x1fc   : > { %v1785_v55 = vadd.f32 %v1784_v11, %v1726_v61  ;;  %v2296_v1 = vmax.f32 %v1842_v59, 0.0  ;;  %v11545_v11 = vpop.f32.mrf.mxu3  ;;  %v9427_v2 = vld [vmem:[%s15235_s4 + $0x70] sm:$0xff] }
 0x1fd   : > { %2153 = vmatpush.bf16.msrb.mxu0 %v8834_v0  ;;  %2516 = vmatpush.bf16.msrb.mxu3 %v9427_v2 }
 0x201   : > { %v1843_v12 = vpop.f32.mrf.mxu2  ;;  %v1728_v27 = vpop.f32.mrf.mxu0 }
 0x202   : > { %v1844_v45 = vadd.f32 %v1843_v12, %v1785_v55  ;;  %v1729_v47 = vadd.f32 %v1728_v27, %v15412_v62  ;;  %v1787_v48 = vpop.f32.mrf.mxu1  ;;  %v15417_v27 = vld [vmem:[#allocation20_spill] sm:$0xff] }
 0x204   : > { %v2298_v4 = vmax.f32 %v1844_v45, 0.0  ;;  %v1788_v14 = vadd.f32 %v1787_v48, %v1729_v47  ;;  %1953 = vmatmul.bf16.gmra.mxu0 %v15413_v56  ;;  %v1863_v47 = vadd.f32 %v11394_v3, %v11535_v57  ;;  %v11560_v56 = vpop.f32.mrf.mxu3  ;;  %v15420_v3 = vld [vmem:[#allocation23_spill] sm:$0xff] }
 0x205   : > { %2012 = vmatmul.bf16.gmra.mxu1 %v15414_v18 }
 0x206   : > { %2071 = vmatmul.bf16.gmra.mxu2 %v15415_v39  ;;  %v11523_v7 = vpack.c.bf16 %v2298_v4, %v2296_v1 }
 0x207   : > { %2130 = vmatmul.bf16.gmra.mxu3 %v15416_v8 }
 0x209   : > { %v1846_v9 = vpop.f32.mrf.mxu2  ;;  %v1730_v34 = vpop.f32.mrf.mxu0 }
 0x20a   : > { %v1847_v29 = vadd.f32 %v1846_v9, %v1788_v14  ;;  %v1731_v49 = vadd.f32 %v1730_v34, %v11338_v54  ;;  %v1789_v30 = vpop.f32.mrf.mxu1  ;;  %v9413_v54 = vld [vmem:[%s15235_s4] sm:$0xff]  ;;  %v15422_v34 = vld [vmem:[#allocation25_spill] sm:$0xff] }
 0x20b   : > { %2463 = vmatpush.bf16.msrb.mxu2 %v9413_v54  ;;  %v9426_v54 = vld [vmem:[%s15235_s4 + $0x68] sm:$0xff] }
 0x20c   : > { %v1790_v22 = vadd.f32 %v1789_v30, %v1731_v49  ;;  %v2300_v12 = vmax.f32 %v1847_v29, 0.0  ;;  %v15421_v29 = vld [vmem:[#allocation24_spill] sm:$0xff]  ;;  %v11569_v49 = vpop.f32.mrf.mxu3  ;;  %2517 = vmatpush.bf16.msrb.mxu3 %v9426_v54 }
 0x211   : > { %v1848_v59 = vpop.f32.mrf.mxu2  ;;  %v1919_v61 = vpop.f32.mrf.mxu0 }
 0x212   : > { %v1849_v60 = vadd.f32 %v1848_v59, %v1790_v22  ;;  %v1920_v55 = vadd.f32 %v1919_v61, %v1861_v41  ;;  %v1978_v25 = vpop.f32.mrf.mxu1 }
 0x214   : > { %v2302_v15 = vmax.f32 %v1849_v60, 0.0  ;;  %v1979_v45 = vadd.f32 %v1978_v25, %v1920_v55  ;;  %1958 = vmatmul.bf16.gmra.mxu0 %v15417_v27  ;;  %v1871_v60 = vadd.f32 %v11428_v53, %v11535_v57  ;;  %v1873_v27 = vadd.f32 %v11431_v26, %v11535_v57 }
 0x215   : > { %2017 = vmatmul.bf16.gmra.mxu1 %v15418_v42 }
 0x216   : > { %2076 = vmatmul.bf16.gmra.mxu2 %v15419_v23  ;;  %v11553_v62 = vpack.c.bf16 %v2302_v15, %v2300_v12  ;;  %v15423_v15 = vld [vmem:[#allocation26_spill] sm:$0xff] }
 0x217   : > { %2135 = vmatmul.bf16.gmra.mxu3 %v11325_v63 }
 0x219   : > { %v2037_v48 = vpop.f32.mrf.mxu2  ;;  %v1921_v1 = vpop.f32.mrf.mxu0 }
 0x21a   : > { %v11558_v0 = vadd.f32 %v2037_v48, %v1979_v45  ;;  %v1922_v4 = vadd.f32 %v1921_v1, %v1863_v47  ;;  %v1980_v14 = vpop.f32.mrf.mxu1  ;;  %v15424_v45 = vld [vmem:[#allocation27_spill] sm:$0xff] }
 0x21b   : > { %v9425_v1 = vld [vmem:[%s15235_s4 + $0x60] sm:$0xff] }
 0x21c   : > { %v1981_v38 = vadd.f32 %v1980_v14, %v1922_v4  ;;  %2518 = vmatpush.bf16.msrb.mxu3 %v9425_v1  ;;  %v1876_v4 = vadd.f32 %v11447_v32, %v11535_v57 }
 0x221   : > { %v2039_v18 = vpop.f32.mrf.mxu2  ;;  %v1924_v63 = vpop.f32.mrf.mxu0 }
 0x222   : > { %v11564_v39 = vadd.f32 %v2039_v18, %v1981_v38  ;;  %v1925_v8 = vadd.f32 %v1924_v63, %v1866_v17  ;;  %v1983_v9 = vpop.f32.mrf.mxu1  ;;  %v15425_v63 = vld [vmem:[#allocation28_spill] sm:$0xff] }
 0x224   : > { %v1984_v58 = vadd.f32 %v1983_v9, %v1925_v8  ;;  %1963 = vmatmul.bf16.gmra.mxu0 %v15420_v3  ;;  %v15426_v8 = vld [vmem:[#allocation29_spill] sm:$0xff]  ;;  %v1878_v9 = vadd.f32 %v11455_v50, %v11535_v57  ;;  %v9424_v50 = vld [vmem:[%s15235_s4 + $0x58] sm:$0xff] }
 0x225   : > { %2022 = vmatmul.bf16.gmra.mxu1 %v15421_v29  ;;  %2519 = vmatpush.bf16.msrb.mxu3 %v9424_v50 }
 0x226   : > { %2081 = vmatmul.bf16.gmra.mxu2 %v15422_v34 }
 0x227   : > { %2140 = vmatmul.bf16.gmra.mxu3 %v11364_v16 }
 0x229   : > { %v2042_v30 = vpop.f32.mrf.mxu2  ;;  %v1926_v22 = vpop.f32.mrf.mxu0 }
 0x22a   : > { %v11574_v51 = vadd.f32 %v2042_v30, %v1984_v58  ;;  %v1927_v24 = vadd.f32 %v1926_v22, %v1868_v44  ;;  %v1985_v41 = vpop.f32.mrf.mxu1  ;;  %v1881_v30 = vadd.f32 %v11465_v28, %v11535_v57  ;;  %v11617_v28 = vpop.f32.mrf.mxu3 }
 0x22c   : > { %v1986_v59 = vadd.f32 %v1985_v41, %v1927_v24 }
 0x231   : > { %v2044_v61 = vpop.f32.mrf.mxu2  ;;  %v1929_v55 = vpop.f32.mrf.mxu0 }
 0x232   : > { %v11581_v16 = vadd.f32 %v2044_v61, %v1986_v59  ;;  %v1930_v13 = vadd.f32 %v1929_v55, %v1871_v60  ;;  %v1988_v25 = vpop.f32.mrf.mxu1  ;;  %v15427_v60 = vld [vmem:[#allocation30_spill] sm:$0xff]  ;;  %v15428_v61 = vld [vmem:[#allocation31_spill] sm:$0xff]  ;;  %v1883_v55 = vadd.f32 %v11474_v37, %v11535_v57  ;;  %v15429_v37 = vld [vmem:[#allocation32_spill] sm:$0xff] }
 0x234   : > { %v1989_v12 = vadd.f32 %v1988_v25, %v1930_v13  ;;  %2154 = vmatmul.bf16.vlgmr.msrb.gmra.mxu0 %v15423_v15 }
 0x235   : > { %8909 = vmatmul.msk.bf16.vlgmr.msrb.gmra.mxu1 %vm1407_vm0, %v15424_v45 }
 0x236   : > { %2464 = vmatmul.bf16.vlgmr.msrb.gmra.mxu2 %v11372_v5 }
 0x239   : > { %v2047_v42 = vpop.f32.mrf.mxu2  ;;  %v1931_v53 = vpop.f32.mrf.mxu0 }
 0x23a   : > { %v11589_v23 = vadd.f32 %v2047_v42, %v1989_v12  ;;  %v1932_v2 = vadd.f32 %v1931_v53, %v1873_v27  ;;  %v1990_v47 = vpop.f32.mrf.mxu1  ;;  %v1886_v42 = vadd.f32 %v11484_v10, %v11535_v57  ;;  %v9423_v10 = vld [vmem:[%s15235_s4 + $0x50] sm:$0xff] }
 0x23b   : > { %2520 = vmatpush.bf16.msrb.mxu3 %v9423_v10 }
 0x23c   : > { %v1991_v48 = vadd.f32 %v1990_v47, %v1932_v2  ;;  %v11625_v2 = vpop.f32.mrf.mxu3 }
 0x241   : > { %v2049_v14 = vpop.f32.mrf.mxu2  ;;  %v1934_v38 = vpop.f32.mrf.mxu0 }
 0x242   : > { %v11596_v5 = vadd.f32 %v2049_v14, %v1991_v48  ;;  %v1935_v26 = vadd.f32 %v1934_v38, %v1876_v4  ;;  %v1993_v17 = vpop.f32.mrf.mxu1  ;;  %v15430_v14 = vld [vmem:[#allocation33_spill] sm:$0xff]  ;;  %v1888_v38 = vadd.f32 %v11502_v33, %v11535_v57 }
 0x244   : > { %v1994_v18 = vadd.f32 %v1993_v17, %v1935_v26  ;;  %2159 = vmatmul.bf16.gmra.mxu0 %v15425_v63 }
 0x245   : > { %8910 = vmatmul.msk.bf16.gmra.mxu1 %vm1407_vm0, %v15426_v8 }
 0x246   : > { %2469 = vmatmul.bf16.gmra.mxu2 %v11391_v21 }
 0x249   : > { %v2052_v58 = vpop.f32.mrf.mxu2  ;;  %v1936_v32 = vpop.f32.mrf.mxu0 }
 0x24a   : > { %v11604_v3 = vadd.f32 %v2052_v58, %v1994_v18  ;;  %v1937_v29 = vadd.f32 %v1936_v32, %v1878_v9  ;;  %v1995_v34 = vpop.f32.mrf.mxu1  ;;  %v1905_v9 = vpop.f32.mrf.mxu3  ;;  %v1891_v32 = vadd.f32 %v11526_v19, %v11535_v57 }
 0x24c   : > { %v1996_v44 = vadd.f32 %v1995_v34, %v1937_v29 }
 0x251   : > { %v2054_v22 = vpop.f32.mrf.mxu2  ;;  %v1939_v41 = vpop.f32.mrf.mxu0 }
 0x252   : > { %v11608_v24 = vadd.f32 %v2054_v22, %v1996_v44  ;;  %v1940_v59 = vadd.f32 %v1939_v41, %v1881_v30  ;;  %v1998_v54 = vpop.f32.mrf.mxu1  ;;  %v15431_v41 = vld [vmem:[#allocation34_spill] sm:$0xff]  ;;  %v11645_v33 = vpop.f32.mrf.mxu3 }
 0x254   : > { %v1999_v21 = vadd.f32 %v1998_v54, %v1940_v59  ;;  %2164 = vmatmul.bf16.gmra.mxu0 %v15427_v60  ;;  %v15432_v59 = vld [vmem:[#allocation35_spill] sm:$0xff]  ;;  %v1893_v54 = vadd.f32 %v11545_v11, %v11535_v57 }
 0x255   : > { %8911 = vmatmul.msk.bf16.gmra.mxu1 %vm1407_vm0, %v15428_v61 }
 0x256   : > { %2474 = vmatmul.bf16.gmra.mxu2 %v11409_v31 }
 0x259   : > { %v2057_v13 = vpop.f32.mrf.mxu2  ;;  %v1941_v12 = vpop.f32.mrf.mxu0 }
 0x25a   : > { %v11621_v25 = vadd.f32 %v2057_v13, %v1999_v21  ;;  %v1942_v15 = vadd.f32 %v1941_v12, %v1883_v55  ;;  %v2000_v45 = vpop.f32.mrf.mxu1  ;;  %v9422_v13 = vld [vmem:[%s15235_s4 + $0x48] sm:$0xff]  ;;  %v2096_v12 = vpop.f32.mrf.mxu3 }
 0x25b   : > { %2521 = vmatpush.bf16.msrb.mxu3 %v9422_v13 }
 0x25c   : > { %v2001_v27 = vadd.f32 %v2000_v45, %v1942_v15  ;;  %v1896_v15 = vadd.f32 %v11560_v56, %v11535_v57 }
 0x261   : > { %v2059_v53 = vpop.f32.mrf.mxu2  ;;  %v1944_v47 = vpop.f32.mrf.mxu0 }
 0x262   : > { %v11627_v31 = vadd.f32 %v2059_v53, %v2001_v27  ;;  %v1945_v48 = vadd.f32 %v1944_v47, %v1886_v42  ;;  %v2003_v1 = vpop.f32.mrf.mxu1  ;;  %v15433_v47 = vld [vmem:[#allocation37_spill] sm:$0xff] }
 0x264   : > { %v2004_v4 = vadd.f32 %v2003_v1, %v1945_v48  ;;  %2169 = vmatmul.bf16.gmra.mxu0 %v15429_v37  ;;  %v15434_v48 = vld [vmem:[#allocation38_spill] sm:$0xff]  ;;  %v1898_v1 = vadd.f32 %v11569_v49, %v11535_v57  ;;  %v2098_v37 = vpop.f32.mrf.mxu3 }
 0x265   : > { %8912 = vmatmul.msk.bf16.gmra.mxu1 %vm1407_vm0, %v15430_v14 }
 0x266   : > { %2479 = vmatmul.bf16.gmra.mxu2 %v11425_v35 }
 0x269   : > { %v2062_v26 = vpop.f32.mrf.mxu2  ;;  %v1946_v18 = vpop.f32.mrf.mxu0 }
 0x26a   : > { %v11638_v17 = vadd.f32 %v2062_v26, %v2004_v4  ;;  %v1947_v63 = vadd.f32 %v1946_v18, %v1888_v38  ;;  %v2005_v8 = vpop.f32.mrf.mxu1  ;;  %v9421_v18 = vld [vmem:[%s15235_s4 + $0x40] sm:$0xff] }
 0x26b   : > { %2522 = vmatpush.bf16.msrb.mxu3 %v9421_v18 }
 0x26c   : > { %v2006_v58 = vadd.f32 %v2005_v8, %v1947_v63  ;;  %v1901_v63 = vadd.f32 %v11617_v28, %v11535_v57 }
 0x271   : > { %v2064_v35 = vpop.f32.mrf.mxu2  ;;  %v1949_v34 = vpop.f32.mrf.mxu0 }
 0x272   : > { %v11642_v29 = vadd.f32 %v2064_v35, %v2006_v58  ;;  %v1950_v44 = vadd.f32 %v1949_v34, %v1891_v32  ;;  %v2008_v30 = vpop.f32.mrf.mxu1  ;;  %v2101_v35 = vpop.f32.mrf.mxu3 }
 0x273   : > { %v2102_v18 = vadd.f32 %v2101_v35, %v11574_v51 }
 0x274   : > { %v2009_v22 = vadd.f32 %v2008_v30, %v1950_v44  ;;  %2174 = vmatmul.bf16.gmra.mxu0 %v15431_v41  ;;  %v15435_v44 = vld [vmem:[#allocation39_spill] sm:$0xff]  ;;  %v15436_v30 = vld [vmem:[#allocation40_spill] sm:$0xff] }
 0x275   : > { %8913 = vmatmul.msk.bf16.gmra.mxu1 %vm1407_vm0, %v15432_v59  ;;  %v1906_v59 = vadd.f32 %v1905_v9, %v11535_v57 }
 0x276   : > { %2484 = vmatmul.bf16.gmra.mxu2 %v11443_v43 }
 0x279   : > { %v2067_v19 = vpop.f32.mrf.mxu2  ;;  %v1951_v60 = vpop.f32.mrf.mxu0 }
 0x27a   : > { %v11652_v21 = vadd.f32 %v2067_v19, %v2009_v22  ;;  %v1952_v50 = vadd.f32 %v1951_v60, %v1893_v54  ;;  %v2010_v61 = vpop.f32.mrf.mxu1  ;;  %v2103_v28 = vpop.f32.mrf.mxu3 }
 0x27c   : > { %v2011_v55 = vadd.f32 %v2010_v61, %v1952_v50  ;;  %v15437_v61 = vld [vmem:[#allocation42_spill] sm:$0xff] }
 0x281   : > { %v2069_v43 = vpop.f32.mrf.mxu2  ;;  %v1954_v11 = vpop.f32.mrf.mxu0 }
 0x282   : > { %v11659_v45 = vadd.f32 %v2069_v43, %v2011_v55  ;;  %v1955_v27 = vadd.f32 %v1954_v11, %v1896_v15  ;;  %v2013_v42 = vpop.f32.mrf.mxu1  ;;  %v15438_v55 = vld [vmem:[#allocation43_spill] sm:$0xff] }
 0x284   : > { %v2014_v53 = vadd.f32 %v2013_v42, %v1955_v27  ;;  %2179 = vmatmul.bf16.gmra.mxu0 %v15433_v47  ;;  %v2097_v27 = vadd.f32 %v2096_v12, %v11558_v0  ;;  %v15439_v42 = vld [vmem:[#allocation45_spill] sm:$0xff]  ;;  %v2099_v47 = vadd.f32 %v2098_v37, %v11564_v39 }
 0x285   : > { %8914 = vmatmul.msk.bf16.gmra.mxu1 %vm1407_vm0, %v15434_v48 }
 0x286   : > { %2489 = vmatmul.bf16.gmra.mxu2 %v11453_v36 }
 0x289   : > { %v2072_v4 = vpop.f32.mrf.mxu2  ;;  %v1956_v14 = vpop.f32.mrf.mxu0 }
 0x28a   : > { %v11667_v56 = vadd.f32 %v2072_v4, %v2014_v53  ;;  %v1957_v10 = vadd.f32 %v1956_v14, %v1898_v1  ;;  %v2015_v38 = vpop.f32.mrf.mxu1 }
 0x28c   : > { %v2016_v26 = vadd.f32 %v2015_v38, %v1957_v10 }
 0x291   : > { %v2074_v36 = vpop.f32.mrf.mxu2  ;;  %v1959_v49 = vpop.f32.mrf.mxu0 }
 0x292   : > { %v11674_v8 = vadd.f32 %v2074_v36, %v2016_v26  ;;  %v1960_v58 = vadd.f32 %v1959_v49, %v1901_v63  ;;  %v2018_v32 = vpop.f32.mrf.mxu1  ;;  %v2104_v63 = vadd.f32 %v2103_v28, %v11581_v16 }
 0x294   : > { %v11676_v34 = vadd.f32 %v2018_v32, %v1960_v58  ;;  %2184 = vmatmul.bf16.gmra.mxu0 %v15435_v44 }
 0x295   : > { %8915 = vmatmul.msk.bf16.gmra.mxu1 %vm1407_vm0, %v15436_v30 }
 0x296   : > { %2494 = vmatmul.bf16.gmra.mxu2 %v11471_v46  ;;  %v2106_v46 = vpop.f32.mrf.mxu3 }
 0x299   : > { %v11682_v22 = vpop.f32.mrf.mxu0 }
 0x29a   : > { %v11684_v41 = vpop.f32.mrf.mxu1 }
 0x29e   : > { %v2108_v43 = vpop.f32.mrf.mxu3 }
 0x2a1   : > { %v1964_v54 = vpop.f32.mrf.mxu0 }
 0x2a2   : > { %v1965_v19 = vadd.f32 %v1964_v54, %v1906_v59  ;;  %v2023_v60 = vpop.f32.mrf.mxu1 }
 0x2a4   : > { %v11687_v50 = vadd.f32 %v2023_v60, %v1965_v19  ;;  %2189 = vmatmul.bf16.gmra.mxu0 %v15437_v61 }
 0x2a5   : > { %8916 = vmatmul.msk.bf16.gmra.mxu1 %vm1407_vm0, %v15438_v55 }
 0x2a6   : > { %2499 = vmatmul.bf16.gmra.mxu2 %v11492_v40  ;;  %v9543_v40 = vld [vmem:[%s15232_s1] ss:$0 sm:$0xff] }
 0x2a7   : > { %2597 = vrot.lane.b32.xlu0 %v9543_v40, %s10247_s26 }
 0x2a9   : > { %v11693_v13 = vpop.f32.mrf.mxu0 }
 0x2aa   : > { %v11695_v15 = vpop.f32.mrf.mxu1 }
 0x2b1   : > { %v2155_v11 = vpop.f32.mrf.mxu0 }
 0x2b2   : > { %v2214_v9 = vpop.f32.mrf.mxu1  ;;  %v2156_v53 = vadd.f32 %v2155_v11, %v2097_v27 }
 0x2b4   : > { %2194 = vmatmul.bf16.gmra.mxu0 %v11327_v20  ;;  %v2215_v1 = vadd.f32 %v2214_v9, %v2156_v53  ;;  %v2111_v20 = vpop.f32.mrf.mxu3 }
 0x2b5   : > { %8917 = vmatmul.msk.bf16.gmra.mxu1 %vm1407_vm0, %v15439_v42 }
 0x2b6   : > { %2504 = vmatmul.bf16.gmra.mxu2 %v11523_v7  ;;  %v2265_v14 = vmax.f32 %v2215_v1, 0.0 }
 0x2b9   : > { %v2157_v48 = vpop.f32.mrf.mxu0 }
 0x2ba   : > { %v2158_v0 = vadd.f32 %v2157_v48, %v2099_v47  ;;  %v2216_v12 = vpop.f32.mrf.mxu1  ;;  %v2112_v48 = vadd.f32 %v2111_v20, %v11604_v3 }
 0x2bc   : > { %v2217_v4 = vadd.f32 %v2216_v12, %v2158_v0  ;;  %v2113_v39 = vpop.f32.mrf.mxu3 }
 0x2be   : > { %v2267_v10 = vmax.f32 %v2217_v4, 0.0 }
 0x2c0   : > { %v2305_v38 = vpack.c.bf16 %v2267_v10, %v2265_v14 }
 0x2c1   : > { %v2160_v7 = vpop.f32.mrf.mxu0 }
 0x2c2   : > { %v2219_v26 = vpop.f32.mrf.mxu1  ;;  %2523 = vmatmul.bf16.vlgmr.msrb.gmra.mxu3 %v2305_v38  ;;  %v2161_v37 = vadd.f32 %v2160_v7, %v2102_v18  ;;  %v11717_v18 = vpop.f32.mrf.mxu2 }
 0x2c4   : > { %2199 = vmatmul.bf16.gmra.mxu0 %v11366_v6  ;;  %v2220_v49 = vadd.f32 %v2219_v26, %v2161_v37  ;;  %v2116_v54 = vpop.f32.mrf.mxu3 }
 0x2c5   : > { %8918 = vmatmul.msk.bf16.gmra.mxu1 %vm1407_vm0, %v11368_v52  ;;  %v2109_v52 = vadd.f32 %v2108_v43, %v11596_v5  ;;  %v2117_v37 = vadd.f32 %v2116_v54, %v11621_v25 }
 0x2c6   : > { %2509 = vmatmul.bf16.gmra.mxu2 %v11553_v62  ;;  %v2269_v30 = vmax.f32 %v2220_v49, 0.0  ;;  %v2107_v62 = vadd.f32 %v2106_v46, %v11589_v23  ;;  %v2114_v23 = vadd.f32 %v2113_v39, %v11608_v24 }
 0x2c9   : > { %v2162_v36 = vpop.f32.mrf.mxu0 }
 0x2ca   : > { %v2163_v58 = vadd.f32 %v2162_v36, %v2104_v63  ;;  %v2221_v32 = vpop.f32.mrf.mxu1 }
 0x2cc   : > { %v2222_v44 = vadd.f32 %v2221_v32, %v2163_v58  ;;  %v2118_v60 = vpop.f32.mrf.mxu3  ;;  %v11721_v32 = vpop.f32.mrf.mxu2 }
 0x2cd   : > { %v2119_v24 = vadd.f32 %v2118_v60, %v11627_v31 }
 0x2ce   : > { %v2271_v59 = vmax.f32 %v2222_v44, 0.0 }
 0x2d0   : > { %v2307_v51 = vpack.c.bf16 %v2271_v59, %v2269_v30 }
 0x2d1   : > { %v2165_v35 = vpop.f32.mrf.mxu0 }
 0x2d2   : > { %v2224_v6 = vpop.f32.mrf.mxu1  ;;  %2528 = vmatmul.bf16.gmra.mxu3 %v2307_v51  ;;  %v2166_v19 = vadd.f32 %v2165_v35, %v2107_v62 }
 0x2d4   : > { %v2225_v16 = vadd.f32 %v2224_v6, %v2166_v19  ;;  %v2121_v47 = vpop.f32.mrf.mxu3  ;;  %v11724_v62 = vpop.f32.mrf.mxu2 }
 0x2d5   : > { %v2122_v25 = vadd.f32 %v2121_v47, %v11638_v17 }
 0x2d6   : > { %v2273_v9 = vmax.f32 %v2225_v16, 0.0 }
 0x2d9   : > { %v2167_v61 = vpop.f32.mrf.mxu0 }
 0x2da   : > { %v2168_v28 = vadd.f32 %v2167_v61, %v2109_v52  ;;  %v2226_v55 = vpop.f32.mrf.mxu1 }
 0x2dc   : > { %v2227_v11 = vadd.f32 %v2226_v55, %v2168_v28  ;;  %v2123_v4 = vpop.f32.mrf.mxu3  ;;  %v11730_v17 = vpop.f32.mrf.mxu2 }
 0x2dd   : > { %v2124_v31 = vadd.f32 %v2123_v4, %v11642_v29 }
 0x2de   : > { %v2275_v27 = vmax.f32 %v2227_v11, 0.0 }
 0x2e0   : > { %v2309_v42 = vpack.c.bf16 %v2275_v27, %v2273_v9  ;;  %v2732_v9 = vld [vmem:[%s15237_s6 + $0x8] sm:$0x3] }
 0x2e1   : > { %v2170_v53 = vpop.f32.mrf.mxu0  ;;  %v2742_v27 = vunpack.c.l.b16 %v2732_v9 }
 0x2e2   : > { %v2229_v40 = vpop.f32.mrf.mxu1  ;;  %2533 = vmatmul.bf16.gmra.mxu3 %v2309_v42  ;;  %v2171_v1 = vadd.f32 %v2170_v53, %v2112_v48 }
 0x2e4   : > { %v2230_v5 = vadd.f32 %v2229_v40, %v2171_v1  ;;  %v2126_v20 = vpop.f32.mrf.mxu3  ;;  %v2744_v40 = vpack.c.b16 %v2742_v27, %v2742_v27  ;;  %v2465_v4 = vpop.f32.mrf.mxu2 }
 0x2e5   : > { %v2127_v48 = vadd.f32 %v2126_v20, %v11652_v21 }
 0x2e6   : > { %v2277_v14 = vmax.f32 %v2230_v5, 0.0  ;;  %v2779_v47 = vsel %vm2777_vm1, %v2744_v40, 0 }
 0x2e7   : > { %2787 = vmatpush.bf16.msra.mxu0 %v2779_v47 }
 0x2e9   : > { %v2172_v46 = vpop.f32.mrf.mxu0 }
 0x2ea   : > { %v2173_v43 = vadd.f32 %v2172_v46, %v2114_v23  ;;  %v2231_v0 = vpop.f32.mrf.mxu1 }
 0x2ec   : > { %v2232_v12 = vadd.f32 %v2231_v0, %v2173_v43  ;;  %v2128_v51 = vpop.f32.mrf.mxu3  ;;  %v2467_v20 = vpop.f32.mrf.mxu2 }
 0x2ed   : > { %v2129_v46 = vadd.f32 %v2128_v51, %v11659_v45 }
 0x2ee   : > { %v2279_v10 = vmax.f32 %v2232_v12, 0.0 }
 0x2f0   : > { %v2311_v38 = vpack.c.bf16 %v2279_v10, %v2277_v14 }
 0x2f1   : > { %v2175_v7 = vpop.f32.mrf.mxu0 }
 0x2f2   : > { %v2234_v26 = vpop.f32.mrf.mxu1  ;;  %2538 = vmatmul.bf16.gmra.mxu3 %v2311_v38  ;;  %v2176_v3 = vadd.f32 %v2175_v7, %v2117_v37 }
 0x2f4   : > { %v2235_v63 = vadd.f32 %v2234_v26, %v2176_v3  ;;  %v2131_v16 = vpop.f32.mrf.mxu3 }
 0x2f5   : > { %v2132_v21 = vadd.f32 %v2131_v16, %v11667_v56  ;;  %v2078_v56 = vadd.f32 %v11717_v18, %v11676_v34  ;;  %v1908_v34 = vadd.f32 %v11645_v33, %v11535_v57 }
 0x2f6   : > { %v2281_v44 = vmax.f32 %v2235_v63, 0.0 }
 0x2f9   : > { %v2177_v39 = vpop.f32.mrf.mxu0 }
 0x2fa   : > { %v2178_v36 = vadd.f32 %v2177_v39, %v2119_v24  ;;  %v2236_v49 = vpop.f32.mrf.mxu1 }
 0x2fc   : > { %v2237_v58 = vadd.f32 %v2236_v49, %v2178_v36  ;;  %v2133_v1 = vpop.f32.mrf.mxu3 }
 0x2fd   : > { %v2134_v39 = vadd.f32 %v2133_v1, %v11674_v8 }
 0x2fe   : > { %v2283_v30 = vmax.f32 %v2237_v58, 0.0 }
 0x300   : > { %v2313_v59 = vpack.c.bf16 %v2283_v30, %v2281_v44  ;;  %v1903_v44 = vadd.f32 %v11625_v2, %v11535_v57 }
 0x301   : > { %v2180_v35 = vpop.f32.mrf.mxu0 }
 0x302   : > { %v2239_v6 = vpop.f32.mrf.mxu1  ;;  %2543 = vmatmul.bf16.gmra.mxu3 %v2313_v59  ;;  %v2181_v54 = vadd.f32 %v2180_v35, %v2122_v25  ;;  %v1962_v59 = vadd.f32 %v11682_v22, %v1903_v44 }
 0x304   : > { %v2240_v52 = vadd.f32 %v2239_v6, %v2181_v54  ;;  %v2136_v7 = vpop.f32.mrf.mxu3  ;;  %v2470_v6 = vpop.f32.mrf.mxu2  ;;  %v2021_v8 = vadd.f32 %v11684_v41, %v1962_v59  ;;  %v1967_v41 = vadd.f32 %v11693_v13, %v1908_v34 }
 0x306   : > { %v2285_v55 = vmax.f32 %v2240_v52, 0.0  ;;  %v2137_v52 = vadd.f32 %v2136_v7, %v2078_v56  ;;  %v2026_v47 = vadd.f32 %v11695_v15, %v1967_v41 }
 0x308   : > { %v2085_v13 = vadd.f32 %v11730_v17, %v2026_v47 }
 0x309   : > { %v2182_v19 = vpop.f32.mrf.mxu0 }
 0x30a   : > { %v2183_v60 = vadd.f32 %v2182_v19, %v2124_v31  ;;  %v2241_v61 = vpop.f32.mrf.mxu1 }
 0x30c   : > { %v2242_v28 = vadd.f32 %v2241_v61, %v2183_v60  ;;  %v2138_v45 = vpop.f32.mrf.mxu3  ;;  %v2080_v60 = vadd.f32 %v11721_v32, %v2021_v8  ;;  %v2472_v16 = vpop.f32.mrf.mxu2  ;;  %v11751_v32 = vld [vmem:[%s15236_s5] ss:$0 sm:$0xff] }
 0x30d   : > { %v2466_v1 = vadd.f32 %v11751_v32, %v2465_v4  ;;  %v2468_v17 = vadd.f32 %v11751_v32, %v2467_v20  ;;  %v2471_v20 = vadd.f32 %v11751_v32, %v2470_v6 }
 0x30e   : > { %v2287_v11 = vmax.f32 %v2242_v28, 0.0  ;;  %v2139_v61 = vadd.f32 %v2138_v45, %v2080_v60 }
 0x310   : > { %v2315_v42 = vpack.c.bf16 %v2287_v11, %v2285_v55 }
 0x311   : > { %v2185_v53 = vpop.f32.mrf.mxu0 }
 0x312   : > { %v2244_v29 = vpop.f32.mrf.mxu1  ;;  %2548 = vmatmul.bf16.gmra.mxu3 %v2315_v42  ;;  %v2186_v23 = vadd.f32 %v2185_v53, %v2127_v48  ;;  %v2083_v53 = vadd.f32 %v11724_v62, %v11687_v50 }
 0x314   : > { %v2245_v43 = vadd.f32 %v2244_v29, %v2186_v23  ;;  %v2141_v19 = vpop.f32.mrf.mxu3  ;;  %v2475_v33 = vpop.f32.mrf.mxu2 }
 0x315   : > { %v2142_v48 = vadd.f32 %v2141_v19, %v2083_v53 }
 0x316   : > { %v2289_v10 = vmax.f32 %v2245_v43, 0.0 }
 0x319   : > { %v2187_v5 = vpop.f32.mrf.mxu0  ;;  %v11758_v62 = vpop.permute.xlu0 %2597 }
 0x31a   : > { %v2188_v0 = vadd.f32 %v2187_v5, %v2129_v46  ;;  %v2246_v12 = vpop.f32.mrf.mxu1 }
 0x31c   : > { %v2247_v14 = vadd.f32 %v2246_v12, %v2188_v0  ;;  %v2143_v9 = vpop.f32.mrf.mxu3 }
 0x31d   : > { %v2144_v5 = vadd.f32 %v2143_v9, %v2085_v13 }
 0x31e   : > { %v2291_v38 = vmax.f32 %v2247_v14, 0.0 }
 0x320   : > { %v2317_v26 = vpack.c.bf16 %v2291_v38, %v2289_v10  ;;  %v2477_v38 = vpop.f32.mrf.mxu2 }
 0x321   : > { %v2190_v37 = vpop.f32.mrf.mxu0  ;;  %v2478_v60 = vadd.f32 %v11751_v32, %v2477_v38  ;;  %v9479_v38 = vld [vmem:[%s15239_s8 + $0x18c] sm:$0xf] }
 0x322   : > { %v2249_v3 = vpop.f32.mrf.mxu1  ;;  %2553 = vmatmul.bf16.gmra.mxu3 %v2317_v26  ;;  %v2191_v24 = vadd.f32 %v2190_v37, %v2132_v21 }
 0x324   : > { %v2250_v36 = vadd.f32 %v2249_v3, %v2191_v24 }
 0x326   : > { %v2293_v51 = vmax.f32 %v2250_v36, 0.0 }
 0x328   : > { %v2480_v36 = vpop.f32.mrf.mxu2 }
 0x329   : > { %v2192_v63 = vpop.f32.mrf.mxu0 }
 0x32a   : > { %v2193_v49 = vadd.f32 %v2192_v63, %v2134_v39  ;;  %v2251_v58 = vpop.f32.mrf.mxu1 }
 0x32c   : > { %v2252_v30 = vadd.f32 %v2251_v58, %v2193_v49  ;;  %v9429_v58 = vld [vmem:[%s15237_s6] sm:$0xff] }
 0x32d   : > { %2788 = vmatpush.bf16.msra.mxu0 %v9429_v58 }
 0x32e   : > { %v2295_v35 = vmax.f32 %v2252_v30, 0.0  ;;  %v2473_v30 = vadd.f32 %v11751_v32, %v2472_v16 }
 0x330   : > { %v2319_v25 = vpack.c.bf16 %v2295_v35, %v2293_v51  ;;  %v2482_v6 = vpop.f32.mrf.mxu2 }
 0x331   : > { %v2195_v54 = vpop.f32.mrf.mxu0  ;;  %v2483_v41 = vadd.f32 %v11751_v32, %v2482_v6  ;;  %v9482_v6 = vld [vmem:[%s15239_s8 + $0x1a0] sm:$0xf0] }
 0x332   : > { %v2254_v31 = vpop.f32.mrf.mxu1  ;;  %2558 = vmatmul.bf16.gmra.mxu3 %v2319_v25  ;;  %v2196_v2 = vadd.f32 %v2195_v54, %v2137_v52  ;;  %v2476_v25 = vadd.f32 %v11751_v32, %v2475_v33 }
 0x334   : > { %v2255_v28 = vadd.f32 %v2254_v31, %v2196_v2 }
 0x336   : > { %v2297_v27 = vmax.f32 %v2255_v28, 0.0  ;;  %v2481_v28 = vadd.f32 %v11751_v32, %v2480_v36 }
 0x338   : > { %v2485_v52 = vpop.f32.mrf.mxu2 }
 0x339   : > { %v2197_v22 = vpop.f32.mrf.mxu0  ;;  %v2486_v47 = vadd.f32 %v11751_v32, %v2485_v52 }
 0x33a   : > { %v2198_v55 = vadd.f32 %v2197_v22, %v2139_v61  ;;  %v2256_v11 = vpop.f32.mrf.mxu1 }
 0x33c   : > { %v2257_v18 = vadd.f32 %v2256_v11, %v2198_v55 }
 0x33e   : > { %v2299_v42 = vmax.f32 %v2257_v18, 0.0 }
 0x340   : > { %v2321_v40 = vpack.c.bf16 %v2299_v42, %v2297_v27  ;;  %v2487_v55 = vpop.f32.mrf.mxu2 }
 0x341   : > { %v2200_v29 = vpop.f32.mrf.mxu0 }
 0x342   : > { %2563 = vmatmul.bf16.gmra.mxu3 %v2321_v40  ;;  %v2259_v57 = vpop.f32.mrf.mxu1  ;;  %v2201_v46 = vadd.f32 %v2200_v29, %v2142_v48 }
 0x344   : > { %v2260_v15 = vadd.f32 %v2259_v57, %v2201_v46 }
 0x345   : > { %v2524_v23 = vpop.f32.mrf.mxu3 }
 0x346   : > { %v11756_v50 = vadd.f32 %v2524_v23, %v2466_v1  ;;  %v2301_v26 = vmax.f32 %v2260_v15, 0.0  ;;  %v2488_v23 = vadd.f32 %v11751_v32, %v2487_v55  ;;  %v9169_v55 = vld [vmem:[%s15239_s8 + $0x16c] sm:$0xf0] }
 0x348   : > { %v11761_v43 = vmax.f32 %v11756_v50, 0.0  ;;  %v2490_v53 = vpop.f32.mrf.mxu2 }
 0x349   : > { %v2202_v0 = vpop.f32.mrf.mxu0 }
 0x34a   : > { %v2203_v12 = vadd.f32 %v2202_v0, %v2144_v5  ;;  %v2261_v14 = vpop.f32.mrf.mxu1  ;;  %v2600_v10 = vmul.f32 %v11758_v62, %v11761_v43 }
 0x34c   : > { %v2262_v4 = vadd.f32 %v2261_v14, %v2203_v12  ;;  %2640 = vrot.lane.b32.xlu0 %v2600_v10, %s10248_s29  ;;  %v2491_v14 = vadd.f32 %v11751_v32, %v2490_v53 }
 0x34d   : > { %v2526_v7 = vpop.f32.mrf.mxu3 }
 0x34e   : > { %v2303_v37 = vmax.f32 %v2262_v4, 0.0  ;;  %v11767_v3 = vadd.f32 %v2526_v7, %v2468_v17  ;;  %v9197_v7 = vld [vmem:[%s15239_s8 + $0x1a4] sm:$0xf0] }
 0x350   : > { %v2323_v21 = vpack.c.bf16 %v2303_v37, %v2301_v26  ;;  %v11770_v24 = vmax.f32 %v11767_v3, 0.0  ;;  %v2492_v13 = vpop.f32.mrf.mxu2  ;;  %v9200_v26 = vor.u32 %v9479_v38, %v9197_v7  ;;  %v9203_v37 = vld [vmem:[%s15239_s8 + $0x190] sm:$0xf] }
 0x352   : > { %2568 = vmatmul.bf16.gmra.mxu3 %v2323_v21  ;;  %v2601_v39 = vmul.f32 %v11758_v62, %v11770_v24  ;;  %v9483_v21 = vld [vmem:[%s15239_s8 + $0x1a8] sm:$0xf0]  ;;  %3297 = vmatpush.bf16.msra.mxu2 %v9200_v26 }
 0x354   : > { %2642 = vrot.lane.b32.xlu1 %v2601_v39, %s10248_s29 }
 0x355   : > { %v2529_v45 = vpop.f32.mrf.mxu3 }
 0x356   : > { %v11776_v63 = vadd.f32 %v2529_v45, %v2471_v20  ;;  %v9204_v20 = vor.u32 %v9483_v21, %v9203_v37  ;;  %v2493_v45 = vadd.f32 %v11751_v32, %v2492_v13 }
 0x358   : > { %v11779_v49 = vmax.f32 %v11776_v63, 0.0  ;;  %v2495_v12 = vpop.f32.mrf.mxu2  ;;  %3356 = vmatpush.bf16.msra.mxu3 %v9204_v20 }
 0x35a   : > { %v2602_v44 = vmul.f32 %v11758_v62, %v11779_v49 }
 0x35c   : > { %2644 = vrot.lane.b32.xlu1 %v2602_v44, %s10248_s29 }
 0x35d   : > { %v2531_v59 = vpop.f32.mrf.mxu3 }
 0x35e   : > { %v11788_v51 = vadd.f32 %v2531_v59, %v2473_v30  ;;  %v9195_v59 = vld [vmem:[%s15239_s8 + $0x188] sm:$0xf] }
 0x360   : > { %v11791_v35 = vmax.f32 %v11788_v51, 0.0  ;;  %v2497_v36 = vpop.f32.mrf.mxu2 }
 0x362   : > { %v2603_v56 = vmul.f32 %v11758_v62, %v11791_v35 }
 0x364   : > { %2646 = vrot.lane.b32.xlu2 %v2603_v56, %s10248_s29  ;;  %v9196_v56 = vor.u32 %v9482_v6, %v9195_v59  ;;  %v9147_v59 = vld [vmem:[%s15239_s8 + $0x120] sm:$0xf]  ;;  %v9469_v6 = vld [vmem:[%s15239_s8 + $0x138] sm:$0xf0] }
 0x365   : > { %v2534_v54 = vpop.f32.mrf.mxu3 }
 0x366   : > { %v11797_v8 = vadd.f32 %v2534_v54, %v2476_v25  ;;  %3238 = vmatpush.bf16.msra.mxu1 %v9196_v56  ;;  %v2496_v54 = vadd.f32 %v11751_v32, %v2495_v12 }
 0x368   : > { %v11800_v31 = vmax.f32 %v11797_v8, 0.0 }
 0x36a   : > { %v2604_v19 = vmul.f32 %v11758_v62, %v11800_v31 }
 0x36c   : > { %2648 = vrot.lane.b32.xlu2 %v2604_v19, %s10248_s29 }
 0x36d   : > { %v2536_v2 = vpop.f32.mrf.mxu3 }
 0x36e   : > { %v11806_v61 = vadd.f32 %v2536_v2, %v2478_v60  ;;  %v2500_v60 = vpop.f32.mrf.mxu2 }
 0x36f   : > { %v2501_v12 = vadd.f32 %v11751_v32, %v2500_v60 }
 0x370   : > { %v11809_v16 = vmax.f32 %v11806_v61, 0.0 }
 0x372   : > { %v2605_v22 = vmul.f32 %v11758_v62, %v11809_v16 }
 0x374   : > { %2650 = vrot.lane.b32.xlu0 %v2605_v22, %s10248_s29 }
 0x375   : > { %v2539_v11 = vpop.f32.mrf.mxu3 }
 0x376   : > { %v11815_v34 = vadd.f32 %v2539_v11, %v2481_v28  ;;  %v9472_v28 = vld [vmem:[%s15239_s8 + $0x154] sm:$0xf]  ;;  %v2498_v11 = vadd.f32 %v11751_v32, %v2497_v36  ;;  %v9141_v36 = vld [vmem:[%s15239_s8 + $0x134] sm:$0xf0] }
 0x378   : > { %v11818_v18 = vmax.f32 %v11815_v34, 0.0 }
 0x37a   : > { %v2606_v9 = vmul.f32 %v11758_v62, %v11818_v18 }
 0x37c   : > { %2652 = vrot.lane.b32.xlu1 %v2606_v9, %s10248_s29  ;;  %v9172_v9 = vor.u32 %v9472_v28, %v9169_v55  ;;  %v9139_v28 = vld [vmem:[%s15239_s8 + $0x118] sm:$0xf]  ;;  %v9468_v55 = vld [vmem:[%s15239_s8 + $0x130] sm:$0xf0] }
 0x37d   : > { %v2541_v27 = vpop.f32.mrf.mxu3 }
 0x37e   : > { %v11824_v42 = vadd.f32 %v2541_v27, %v2483_v41  ;;  %3298 = vmatpush.bf16.msra.mxu2 %v9172_v9 }
 0x380   : > { %v11827_v40 = vmax.f32 %v11824_v42, 0.0 }
 0x382   : > { %v2607_v29 = vmul.f32 %v11758_v62, %v11827_v40 }
 0x384   : > { %2654 = vrot.lane.b32.xlu2 %v2607_v29, %s10248_s29  ;;  %v9175_v29 = vld [vmem:[%s15239_s8 + $0x158] sm:$0xf] }
 0x385   : > { %v2544_v57 = vpop.f32.mrf.mxu3 }
 0x386   : > { %v11833_v33 = vadd.f32 %v2544_v57, %v2486_v47  ;;  %v9476_v47 = vld [vmem:[%s15239_s8 + $0x170] sm:$0xf0]  ;;  %v2502_v57 = vpop.f32.mrf.mxu2 }
 0x387   : > { %v9176_v13 = vor.u32 %v9476_v47, %v9175_v29  ;;  %v2503_v37 = vadd.f32 %v11751_v32, %v2502_v57 }
 0x388   : > { %v11836_v48 = vmax.f32 %v11833_v33, 0.0 }
 0x389   : > { %3357 = vmatpush.bf16.msra.mxu3 %v9176_v13 }
 0x38a   : > { %v2608_v1 = vmul.f32 %v11758_v62, %v11836_v48 }
 0x38c   : > { %2656 = vrot.lane.b32.xlu0 %v2608_v1, %s10248_s29  ;;  %v9167_v1 = vld [vmem:[%s15239_s8 + $0x150] sm:$0xf] }
 0x38d   : > { %v2546_v46 = vpop.f32.mrf.mxu3 }
 0x38e   : > { %v11842_v5 = vadd.f32 %v2546_v46, %v2488_v23  ;;  %v9475_v23 = vld [vmem:[%s15239_s8 + $0x168] sm:$0xf0]  ;;  %v2505_v26 = vpop.f32.mrf.mxu2 }
 0x390   : > { %v11845_v0 = vmax.f32 %v11842_v5, 0.0 }
 0x392   : > { %v2609_v15 = vmul.f32 %v11758_v62, %v11845_v0 }
 0x394   : > { %2658 = vrot.lane.b32.xlu1 %v2609_v15, %s10248_s29  ;;  %v9168_v15 = vor.u32 %v9475_v23, %v9167_v1 }
 0x395   : > { %v2549_v10 = vpop.f32.mrf.mxu3 }
 0x396   : > { %v11851_v17 = vadd.f32 %v2549_v10, %v2491_v14  ;;  %3239 = vmatpush.bf16.msra.mxu1 %v9168_v15  ;;  %v2507_v60 = vpop.f32.mrf.mxu2 }
 0x397   : > { %v2508_v23 = vadd.f32 %v11751_v32, %v2507_v60 }
 0x398   : > { %v11854_v4 = vmax.f32 %v11851_v17, 0.0 }
 0x39a   : > { %v2610_v39 = vmul.f32 %v11758_v62, %v11854_v4 }
 0x39c   : > { %2660 = vrot.lane.b32.xlu2 %v2610_v39, %s10248_s29 }
 0x39d   : > { %v2551_v58 = vpop.f32.mrf.mxu3 }
 0x39e   : > { %v11872_v44 = vadd.f32 %v2551_v58, %v2493_v45  ;;  %v9465_v45 = vld [vmem:[%s15239_s8 + $0x11c] sm:$0xf] }
 0x39f   : > { %v9144_v58 = vor.u32 %v9465_v45, %v9141_v36 }
 0x3a0   : > { %v11875_v30 = vmax.f32 %v11872_v44, 0.0 }
 0x3a1   : > { %3299 = vmatpush.bf16.msra.mxu2 %v9144_v58 }
 0x3a2   : > { %v2611_v25 = vmul.f32 %v11758_v62, %v11875_v30 }
 0x3a4   : > { %2662 = vrot.lane.b32.xlu0 %v2611_v25, %s10248_s29  ;;  %v9148_v25 = vor.u32 %v9469_v6, %v9147_v59 }
 0x3a5   : > { %v2554_v19 = vpop.f32.mrf.mxu3 }
 0x3a6   : > { %v11887_v52 = vadd.f32 %v2554_v19, %v2496_v54  ;;  %v2506_v54 = vadd.f32 %v11751_v32, %v2505_v26  ;;  %3358 = vmatpush.bf16.msra.mxu3 %v9148_v25  ;;  %v9113_v26 = vld [vmem:[%s15239_s8 + $0xfc] sm:$0xf0]  ;;  %v9462_v25 = vld [vmem:[%s15239_s8 + $0x100] sm:$0xf0] }
 0x3a8   : > { %v11890_v2 = vmax.f32 %v11887_v52, 0.0 }
 0x3aa   : > { %v2612_v22 = vmul.f32 %v11758_v62, %v11890_v2 }
 0x3ac   : > { %2664 = vrot.lane.b32.xlu1 %v2612_v22, %s10248_s29 }
 0x3ad   : > { %v2556_v41 = vpop.f32.mrf.mxu3 }
 0x3ae   : > { %v11902_v27 = vadd.f32 %v2556_v41, %v2498_v11  ;;  %v9140_v41 = vor.u32 %v9468_v55, %v9139_v28  ;;  %v9461_v28 = vld [vmem:[%s15239_s8 + $0xf8] sm:$0xf0] }
 0x3b0   : > { %v11905_v53 = vmax.f32 %v11902_v27, 0.0  ;;  %3240 = vmatpush.bf16.msra.mxu1 %v9140_v41 }
 0x3b2   : > { %v2613_v46 = vmul.f32 %v11758_v62, %v11905_v53 }
 0x3b4   : > { %2666 = vrot.lane.b32.xlu2 %v2613_v46, %s10248_s29 }
 0x3b5   : > { %v2559_v14 = vpop.f32.mrf.mxu3 }
 0x3b6   : > { %v11923_v10 = vadd.f32 %v2559_v14, %v2501_v12  ;;  %v2510_v12 = vpop.f32.mrf.mxu2 }
 0x3b7   : > { %v2511_v36 = vadd.f32 %v11751_v32, %v2510_v12 }
 0x3b8   : > { %v11926_v38 = vmax.f32 %v11923_v10, 0.0 }
 0x3ba   : > { %v2614_v7 = vmul.f32 %v11758_v62, %v11926_v38 }
 0x3bc   : > { %2668 = vrot.lane.b32.xlu0 %v2614_v7, %s10248_s29  ;;  %v9458_v7 = vld [vmem:[%s15239_s8 + $0xe4] sm:$0xf] }
 0x3bd   : > { %v2561_v21 = vpop.f32.mrf.mxu3  ;;  %v9116_v45 = vor.u32 %v9458_v7, %v9113_v26  ;;  %v7664_v26 = vmul.f32 %v11788_v51, %v11788_v51 }
 0x3be   : > { %v11932_v39 = vadd.f32 %v2561_v21, %v2503_v37  ;;  %v2641_v19 = vpop.permute.xlu0 %2640  ;;  %v2647_v58 = vpop.permute.xlu2 %2646 }
 0x3bf   : > { %v2700_v29 = vadd.f32 %v2641_v19, %v11756_v50  ;;  %3300 = vmatpush.bf16.msra.mxu2 %v9116_v45  ;;  %v2703_v60 = vadd.f32 %v2647_v58, %v11788_v51  ;;  %v2512_v41 = vpop.f32.mrf.mxu2  ;;  %v9091_v51 = vld [vmem:[%s15239_s8 + $0xb0] sm:$0xf]  ;;  %v7663_v58 = vmul.f32 %v11776_v63, %v11776_v63 }
 0x3c0   : > { %v11935_v20 = vmax.f32 %v11932_v39, 0.0 }
 0x3c2   : > { %v2615_v56 = vmul.f32 %v11758_v62, %v11935_v20 }
 0x3c4   : > { %2670 = vrot.lane.b32.xlu1 %v2615_v56, %s10248_s29  ;;  %v9119_v56 = vld [vmem:[%s15239_s8 + $0xe8] sm:$0xf] }
 0x3c5   : > { %v2564_v22 = vpop.f32.mrf.mxu3  ;;  %v9120_v19 = vor.u32 %v9462_v25, %v9119_v56  ;;  %v9455_v56 = vld [vmem:[%s15239_s8 + $0xc8] sm:$0xf0]  ;;  %v7667_v25 = vmul.f32 %v11815_v34, %v11815_v34 }
 0x3c6   : > { %v11959_v11 = vadd.f32 %v2564_v22, %v2506_v54  ;;  %v2643_v9 = vpop.permute.xlu1 %2642  ;;  %v9111_v22 = vld [vmem:[%s15239_s8 + $0xe0] sm:$0xf] }
 0x3c7   : > { %v2701_v47 = vadd.f32 %v2643_v9, %v11767_v3  ;;  %3359 = vmatpush.bf16.msra.mxu3 %v9120_v19  ;;  %v9112_v9 = vor.u32 %v9461_v28, %v9111_v22  ;;  %v9092_v19 = vor.u32 %v9455_v56, %v9091_v51  ;;  %v7666_v28 = vmul.f32 %v11806_v61, %v11806_v61 }
 0x3c8   : > { %v11964_v57 = vmax.f32 %v11959_v11, 0.0  ;;  %v7676_v51 = vmul.f32 %v11932_v39, %v11932_v39 }
 0x3c9   : > { %v2720_v13 = vpack.c.bf16 %v2701_v47, %v2700_v29  ;;  %3241 = vmatpush.bf16.msra.mxu1 %v9112_v9  ;;  %v7668_v9 = vmul.f32 %v11824_v42, %v11824_v42 }
 0x3ca   : > { %v2616_v1 = vmul.f32 %v11758_v62, %v11964_v57 }
 0x3cb   : > { %8987 = vmatmul.msk.bf16.vlgmr.msra.gmra.mxu0 %vm2746_vm2, %v2720_v13  ;;  %v7661_v13 = vmul.f32 %v11756_v50, %v11756_v50  ;;  %v7662_v50 = vmul.f32 %v11767_v3, %v11767_v3  ;;  %v9085_v3 = vld [vmem:[%s15239_s8 + $0xc4] sm:$0xf0]  ;;  %3360 = vmatpush.bf16.msra.mxu3 %v9092_v19  ;;  %v7675_v19 = vmul.f32 %v11923_v10, %v11923_v10 }
 0x3cc   : > { %2672 = vrot.lane.b32.xlu2 %v2616_v1, %s10248_s29  ;;  %v2513_v1 = vadd.f32 %v11751_v32, %v2512_v41  ;;  %v2649_v32 = vpop.permute.xlu2 %2648  ;;  %v7670_v41 = vmul.f32 %v11842_v5, %v11842_v5 }
 0x3cd   : > { %v2566_v46 = vpop.f32.mrf.mxu3 }
 0x3ce   : > { %v11971_v15 = vadd.f32 %v2566_v46, %v2508_v23  ;;  %v2645_v37 = vpop.permute.xlu1 %2644 }
 0x3cf   : > { %v2702_v59 = vadd.f32 %v2645_v37, %v11776_v63  ;;  %v9083_v63 = vld [vmem:[%s15239_s8 + $0xa8] sm:$0xf] }
 0x3d0   : > { %v11974_v14 = vmax.f32 %v11971_v15, 0.0 }
 0x3d1   : > { %v2721_v29 = vpack.c.bf16 %v2703_v60, %v2702_v59  ;;  %v7665_v59 = vmul.f32 %v11797_v8, %v11797_v8 }
 0x3d2   : > { %v2617_v21 = vmul.f32 %v11758_v62, %v11974_v14 }
 0x3d4   : > { %2674 = vrot.lane.b32.xlu0 %v2617_v21, %s10248_s29  ;;  %v2704_v21 = vadd.f32 %v2649_v32, %v11797_v8  ;;  %v9454_v8 = vld [vmem:[%s15239_s8 + $0xc0] sm:$0xf0]  ;;  %v9448_v32 = vld [vmem:[%s15239_s8 + $0x90] sm:$0xf0] }
 0x3d5   : > { %v2569_v6 = vpop.f32.mrf.mxu3  ;;  %v9084_v60 = vor.u32 %v9454_v8, %v9083_v63  ;;  %v7677_v63 = vmul.f32 %v11959_v11, %v11959_v11 }
 0x3d6   : > { %v11993_v54 = vadd.f32 %v2569_v6, %v2511_v36 }
 0x3d7   : > { %3242 = vmatpush.bf16.msra.mxu1 %v9084_v60  ;;  %v9035_v60 = vld [vmem:[%s15239_s8 + $0x40] sm:$0xf] }
 0x3d8   : > { %v12003_v55 = vmax.f32 %v11993_v54, 0.0  ;;  %v7679_v8 = vmul.f32 %v11993_v54, %v11993_v54 }
 0x3da   : > { %v2618_v47 = vmul.f32 %v11758_v62, %v12003_v55 }
 0x3db   : > { %8988 = vmatmul.msk.bf16.gmra.mxu0 %vm2746_vm2, %v2721_v29 }
 0x3dc   : > { %2676 = vrot.lane.b32.xlu1 %v2618_v47, %s10248_s29  ;;  %7701 = vrot.lane.b32.xlu0 %v7661_v13, %s10247_s26 }
 0x3dd   : > { %v2571_v23 = vpop.f32.mrf.mxu3 }
 0x3de   : > { %v12013_v46 = vadd.f32 %v2571_v23, %v2513_v1  ;;  %v2655_v29 = vpop.permute.xlu2 %2654  ;;  %v7671_v23 = vmul.f32 %v11851_v17, %v11851_v17 }
 0x3df   : > { %v2707_v13 = vadd.f32 %v2655_v29, %v11824_v42  ;;  %v9057_v42 = vld [vmem:[%s15239_s8 + $0x8c] sm:$0xf0] }
 0x3e0   : > { %v12016_v12 = vmax.f32 %v12013_v46, 0.0 }
 0x3e2   : > { %v2619_v7 = vmul.f32 %v11758_v62, %v12016_v12  ;;  %v9451_v62 = vld [vmem:[%s15239_s8 + $0xac] sm:$0xf] }
 0x3e3   : > { %v9088_v6 = vor.u32 %v9451_v62, %v9085_v3  ;;  %v7674_v62 = vmul.f32 %v11902_v27, %v11902_v27 }
 0x3e4   : > { %2678 = vrot.lane.b32.xlu2 %v2619_v7, %s10248_s29  ;;  %7703 = vrot.lane.b32.xlu1 %v7662_v50, %s10247_s26  ;;  %v7673_v7 = vmul.f32 %v11887_v52, %v11887_v52  ;;  %v9063_v50 = vld [vmem:[%s15239_s8 + $0x78] sm:$0xf] }
 0x3e5   : > { %7707 = vrot.lane.b32.xlu0 %v7664_v26, %s10247_s26  ;;  %3301 = vmatpush.bf16.msra.mxu2 %v9088_v6 }
 0x3e6   : > { %v2651_v37 = vpop.permute.xlu0 %2650 }
 0x3e7   : > { %v2705_v45 = vadd.f32 %v2651_v37, %v11806_v61  ;;  %v7669_v61 = vmul.f32 %v11833_v33, %v11833_v33  ;;  %v9064_v37 = vor.u32 %v9448_v32, %v9063_v50  ;;  %v9430_v50 = vld [vmem:[%s15239_s8 + $0x4] sm:$0xf]  ;;  %v9007_v32 = vld [vmem:[%s15239_s8 + $0x8] sm:$0xf] }
 0x3e9   : > { %v2722_v36 = vpack.c.bf16 %v2705_v45, %v2704_v21  ;;  %3361 = vmatpush.bf16.msra.mxu3 %v9064_v37  ;;  %v9055_v21 = vld [vmem:[%s15239_s8 + $0x70] sm:$0xf]  ;;  %v9447_v45 = vld [vmem:[%s15239_s8 + $0x88] sm:$0xf0] }
 0x3ea   : > { %v9056_v3 = vor.u32 %v9447_v45, %v9055_v21 }
 0x3eb   : > { %8989 = vmatmul.msk.bf16.gmra.mxu0 %vm2746_vm2, %v2722_v36  ;;  %v7672_v36 = vmul.f32 %v11872_v44, %v11872_v44 }
 0x3ec   : > { %7705 = vrot.lane.b32.xlu2 %v7663_v58, %s10247_s26  ;;  %7709 = vrot.lane.b32.xlu1 %v7665_v59, %s10247_s26 }
 0x3ed   : > { %7713 = vrot.lane.b32.xlu0 %v7667_v25, %s10247_s26  ;;  %3243 = vmatpush.bf16.msra.mxu1 %v9056_v3 }
 0x3ee   : > { %v2653_v22 = vpop.permute.xlu1 %2652 }
 0x3ef   : > { %v2706_v47 = vadd.f32 %v2653_v22, %v11815_v34  ;;  %v9444_v34 = vld [vmem:[%s15239_s8 + $0x74] sm:$0xf] }
 0x3f0   : > { %v9060_v26 = vor.u32 %v9444_v34, %v9057_v42 }
 0x3f1   : > { %v2723_v1 = vpack.c.bf16 %v2707_v13, %v2706_v47  ;;  %v7678_v13 = vmul.f32 %v11971_v15, %v11971_v15 }
 0x3f2   : > { %3302 = vmatpush.bf16.msra.mxu2 %v9060_v26  ;;  %v9001_v26 = vld [vmem:[%s15239_s8 + $0x1c] sm:$0xf0] }
 0x3f3   : > { %v9004_v37 = vor.u32 %v9430_v50, %v9001_v26  ;;  %v9219_v50 = vld [vmem:[%s15239_s8 + $0x1a0] sm:$0xf] }
 0x3f4   : > { %7711 = vrot.lane.b32.xlu2 %v7666_v28, %s10247_s26  ;;  %7715 = vrot.lane.b32.xlu1 %v7668_v9, %s10247_s26  ;;  %v9441_v28 = vld [vmem:[%s15239_s8 + $0x58] sm:$0xf0]  ;;  %v9027_v9 = vld [vmem:[%s15239_s8 + $0x38] sm:$0xf] }
 0x3f5   : > { %7719 = vrot.lane.b32.xlu0 %v7670_v41, %s10247_s26  ;;  %v9440_v41 = vld [vmem:[%s15239_s8 + $0x50] sm:$0xf0]  ;;  %v9036_v29 = vor.u32 %v9441_v28, %v9035_v60 }
 0x3f6   : > { %v9028_v47 = vor.u32 %v9440_v41, %v9027_v9  ;;  %v9459_v41 = vld [vmem:[%s15239_s8 + $0xec] sm:$0xf] }
 0x3f7   : > { %3362 = vmatpush.bf16.msra.mxu3 %v9036_v29  ;;  %v9121_v29 = vld [vmem:[%s15239_s8 + $0x104] sm:$0xf0] }
 0x3f8   : > { %3244 = vmatpush.bf16.msra.mxu1 %v9028_v47  ;;  %v7563_v47 = vadd.f32 1e-08, %v11779_v49 }
 0x3fa   : > { %9545 = vlog2.f32 %v7563_v47 }
 0x3fb   : > { %8990 = vmatmul.msk.bf16.gmra.mxu0 %vm2746_vm2, %v2723_v1  ;;  %v7680_v1 = vmul.f32 %v12013_v46, %v12013_v46 }
 0x3fc   : > { %7717 = vrot.lane.b32.xlu2 %v7669_v61, %s10247_s26  ;;  %7721 = vrot.lane.b32.xlu1 %v7671_v23, %s10247_s26  ;;  %v2661_v61 = vpop.permute.xlu2 %2660 }
 0x3fd   : > { %7725 = vrot.lane.b32.xlu0 %v7673_v7, %s10247_s26  ;;  %v2710_v7 = vadd.f32 %v2661_v61, %v11851_v17  ;;  %v9434_v17 = vld [vmem:[%s15239_s8 + $0x20] sm:$0xf0] }
 0x3fe   : > { %v2657_v58 = vpop.permute.xlu0 %2656 }
 0x3ff   : > { %v2708_v6 = vadd.f32 %v2657_v58, %v11833_v33  ;;  %v9437_v33 = vld [vmem:[%s15239_s8 + $0x3c] sm:$0xf]  ;;  %v9205_v58 = vld [vmem:[%s15239_s8 + $0x1ac] sm:$0xf0] }
 0x404   : > { %7723 = vrot.lane.b32.xlu2 %v7672_v36, %s10247_s26  ;;  %7727 = vrot.lane.b32.xlu1 %v7674_v62, %s10247_s26 }
 0x405   : > { %7731 = vrot.lane.b32.xlu0 %v7676_v51, %s10247_s26  ;;  %v9480_v51 = vld [vmem:[%s15239_s8 + $0x194] sm:$0xf] }
 0x406   : > { %v2659_v59 = vpop.permute.xlu1 %2658 }
 0x407   : > { %v2709_v56 = vadd.f32 %v2659_v59, %v11842_v5  ;;  %v9029_v5 = vld [vmem:[%s15239_s8 + $0x54] sm:$0xf0]  ;;  %v9208_v59 = vor.u32 %v9480_v51, %v9205_v58  ;;  %v9546_v51 = vpop.eup %9545  ;;  %v9438_v58 = vld [vmem:[%s15239_s8 + $0x44] sm:$0xf] }
 0x408   : > { %v9032_v22 = vor.u32 %v9437_v33, %v9029_v5 }
 0x409   : > { %v2724_v25 = vpack.c.bf16 %v2709_v56, %v2708_v6  ;;  %v8999_v6 = vld [vmem:[%s15239_s8] sm:$0xf]  ;;  %3415 = vmatpush.bf16.msrb.mxu0 %v9208_v59  ;;  %v9473_v56 = vld [vmem:[%s15239_s8 + $0x15c] sm:$0xf] }
 0x40a   : > { %3303 = vmatpush.bf16.msra.mxu2 %v9032_v22  ;;  %v9037_v59 = vld [vmem:[%s15239_s8 + $0x5c] sm:$0xf0] }
 0x40b   : > { %8991 = vmatmul.msk.bf16.gmra.mxu0 %vm2746_vm2, %v2724_v25  ;;  %v9177_v25 = vld [vmem:[%s15239_s8 + $0x174] sm:$0xf0] }
 0x40c   : > { %7729 = vrot.lane.b32.xlu2 %v7675_v19, %s10247_s26  ;;  %7733 = vrot.lane.b32.xlu1 %v7677_v63, %s10247_s26  ;;  %v9180_v19 = vor.u32 %v9473_v56, %v9177_v25  ;;  %v9466_v63 = vld [vmem:[%s15239_s8 + $0x124] sm:$0xf]  ;;  %v7643_v56 = vmul.f32 %v11779_v49, %v11779_v49  ;;  %v7564_v25 = vadd.f32 1e-08, %v11791_v35  ;;  %v7569_v49 = vadd.f32 1e-08, %v11836_v48 }
 0x40d   : > { %7737 = vrot.lane.b32.xlu0 %v7679_v8, %s10247_s26  ;;  %v9149_v8 = vld [vmem:[%s15239_s8 + $0x13c] sm:$0xf0] }
 0x40e   : > { %3304 = vmatpush.bf16.msra.mxu2 %v9004_v37  ;;  %v2667_v45 = vpop.permute.xlu2 %2666  ;;  %3416 = vmatpush.bf16.msrb.mxu0 %v9180_v19  ;;  %v9152_v33 = vor.u32 %v9466_v63, %v9149_v8  ;;  %v9211_v37 = vld [vmem:[%s15239_s8 + $0x198] sm:$0xf] }
 0x40f   : > { %v2713_v62 = vadd.f32 %v2667_v45, %v11902_v27 }
 0x412   : > { %3417 = vmatpush.bf16.msrb.mxu0 %v9152_v33 }
 0x414   : > { %7735 = vrot.lane.b32.xlu2 %v7678_v13, %s10247_s26  ;;  %7739 = vrot.lane.b32.xlu1 %v7680_v1, %s10247_s26  ;;  %v9124_v13 = vor.u32 %v9459_v41, %v9121_v29  ;;  %s8146_s26 = scalar_lea.hbm %s15241_s10, %s9242_s28 }
 0x415   : > { %s8150_s19 = sshll.u32 %s8146_s26, 4  ;;  %s8151_s19 = int_to_ptr.hbm [resolvable:$true] %s8150_s19 }
 0x416   : > { %v2663_v23 = vpop.permute.xlu0 %2662  ;;  %3418 = vmatpush.bf16.msrb.mxu0 %v9124_v13  ;;  %s10191_s18 = sshra.s32 %s8151_s19, 4  ;;  %s10192_s18 = int_to_ptr.hbm [resolvable:$true] %s10191_s18 }
 0x417   : > { %v2711_v34 = vadd.f32 %v2663_v23, %v11872_v44  ;;  %v9008_v44 = vor.u32 %v9434_v17, %v9007_v32  ;;  %v7561_v23 = vadd.f32 1e-08, %v11761_v43  ;;  %v9485_v32 = vld [vmem:[%s15239_s8 + $0x1b8] sm:$0xf0]  ;;  %v9484_v17 = vld [vmem:[%s15239_s8 + $0x1b0] sm:$0xf0]  ;;  %p10198_p3 = scmp.lt.s32.totalorder %s10192_s18, %s15241_s10 }
 0x418   : > { %v9212_v45 = vor.u32 %v9484_v17, %v9211_v37  ;;  %v7641_v37 = vmul.f32 %v11761_v43, %v11761_v43  ;;  %v9474_v17 = vld [vmem:[%s15239_s8 + $0x164] sm:$0xf]  ;;  %v7642_v43 = vmul.f32 %v11770_v24, %v11770_v24  ;;  %s10193_s20 = scalar_lea.hbm %s10192_s18, 8 }
 0x419   : > { %v2725_v42 = vpack.c.bf16 %v2711_v34, %v2710_v7  ;;  %3363 = vmatpush.bf16.msra.mxu3 %v9008_v44  ;;  %v9481_v34 = vld [vmem:[%s15239_s8 + $0x19c] sm:$0xf]  ;;  %v7566_v44 = vadd.f32 1e-08, %v11809_v16  ;;  %9547 = vlog2.f32 %v7561_v23  ;;  %p10194_p6 = scmp.ne.s32.totalorder %s10192_s18, %s10193_s20  ;;  %p10199_p4 = scmp.lt.s32.totalorder %s10197_s21, %s10193_s20 }
 0x41b   : > { %8992 = vmatmul.msk.bf16.gmra.mxu0 %vm2746_vm2, %v2725_v42  ;;  %v9213_v42 = vld [vmem:[%s15239_s8 + $0x1b4] sm:$0xf0]  ;;  %9549 = vlog2.f32 %v7566_v44  ;;  %v9185_v44 = vld [vmem:[%s15239_s8 + $0x17c] sm:$0xf0]  ;;  %p10195_p13 = pnand %p10194_p6, %p10350_p11  ;;  %p10200_p5 = por %p10199_p4, %p10198_p3 }
 0x41c   : > { %v9216_v26 = vor.u32 %v9481_v34, %v9213_v42  ;;  %v7646_v34 = vmul.f32 %v11809_v16, %v11809_v16  ;;  %v7567_v42 = vadd.f32 1e-08, %v11818_v18  ;;  %v9191_v16 = vld [vmem:[%s15239_s8 + $0x168] sm:$0xf] }
 0x41d   : > { %p10196_p0 = pneg %p10195_p13 }
 0x41e   : > { %v2665_v21 = vpop.permute.xlu1 %2664  ;;  %3533 = vmatpush.bf16.msrb.mxu2 %v9216_v26 }
 0x41f   : > { %v2712_v36 = vadd.f32 %v2665_v21, %v11887_v52  ;;  %v9433_v52 = vld [vmem:[%s15239_s8 + $0x18] sm:$0xf0]  ;;  %v9220_v21 = vor.u32 %v9485_v32, %v9219_v50  ;;  %v9548_v29 = vpop.eup %9547  ;;  %p10201_p7 = pnand %p10200_p5, %p10196_p0 }
 0x420   : > { %v9000_v27 = vor.u32 %v9433_v52, %v8999_v6  ;;  %v7562_v6 = vadd.f32 1e-08, %v11770_v24  ;;  %v9040_v52 = vor.u32 %v9438_v58, %v9037_v59 }
 0x421   : > { %v2726_v3 = vpack.c.bf16 %v2713_v62, %v2712_v36  ;;  %v9445_v36 = vld [vmem:[%s15239_s8 + $0x7c] sm:$0xf]  ;;  %v9065_v62 = vld [vmem:[%s15239_s8 + $0x94] sm:$0xf0]  ;;  %3592 = vmatpush.bf16.msrb.mxu3 %v9220_v21 }
 0x422   : > { %3245 = vmatpush.bf16.msra.mxu1 %v9000_v27  ;;  %v7586_v27 = vmul.f32 0.6931472, %v9546_v51  ;;  %9551 = vlog2.f32 %v7562_v6  ;;  %v9478_v51 = vld [vmem:[%s15239_s8 + $0x180] sm:$0xf0] }
 0x423   : > { %9553 = vlog2.f32 %v7564_v25 }
 0x424   : > { %v7623_v47 = vsub.f32 0.0, %v7586_v27  ;;  %9555 = vlog2.f32 %v7569_v49  ;;  %v9192_v27 = vor.u32 %v9478_v51, %v9191_v16 }
 0x426   : > { %v2673_v60 = vpop.permute.xlu2 %2672  ;;  %3474 = vmatpush.bf16.msrb.mxu1 %v9212_v45  ;;  %3593 = vmatpush.bf16.msrb.mxu3 %v9192_v27  ;;  %v7571_v27 = vadd.f32 1e-08, %v11854_v4 }
 0x427   : > { %v2716_v8 = vadd.f32 %v2673_v60, %v11959_v11 }
 0x42b   : > { %8993 = vmatmul.msk.bf16.gmra.mxu0 %vm2746_vm2, %v2726_v3  ;;  %v9068_v3 = vor.u32 %v9445_v36, %v9065_v62 }
 0x42e   : > { %v2669_v5 = vpop.permute.xlu0 %2668 }
 0x42f   : > { %v2714_v28 = vadd.f32 %v2669_v5, %v11923_v10  ;;  %v9452_v10 = vld [vmem:[%s15239_s8 + $0xb4] sm:$0xf] }
 0x436   : > { %v2671_v22 = vpop.permute.xlu1 %2670 }
 0x437   : > { %v2715_v9 = vadd.f32 %v2671_v22, %v11932_v39  ;;  %v9093_v39 = vld [vmem:[%s15239_s8 + $0xcc] sm:$0xf0]  ;;  %v9431_v22 = vld [vmem:[%s15239_s8 + $0xc] sm:$0xf] }
 0x438   : > { %v9096_v61 = vor.u32 %v9452_v10, %v9093_v39  ;;  %v7582_v10 = vmul.f32 0.6931472, %v9548_v29  ;;  %v7565_v39 = vadd.f32 1e-08, %v11800_v31  ;;  %v7570_v29 = vadd.f32 1e-08, %v11845_v0 }
 0x439   : > { %v2727_v1 = vpack.c.bf16 %v2715_v9, %v2714_v28  ;;  %v9009_v28 = vld [vmem:[%s15239_s8 + $0x24] sm:$0xf0] }
 0x43a   : > { %3419 = vmatpush.bf16.msrb.mxu0 %v9096_v61  ;;  %v9012_v41 = vor.u32 %v9431_v22, %v9009_v28  ;;  %v7621_v58 = vsub.f32 0.0, %v7582_v10  ;;  %9557 = vlog2.f32 %v7565_v39 }
 0x43b   : > { %8994 = vmatmul.msk.bf16.gmra.mxu0 %vm2746_vm2, %v2727_v1  ;;  %v12249_v1 = vld [vmem:[%s15238_s7] ss:$0 sm:$0xff]  ;;  %9559 = vlog2.f32 %v7567_v42 }
 0x43e   : > { %v12200_v7 = vpop.permute.xlu2 %2678  ;;  %3420 = vmatpush.bf16.msrb.mxu0 %v9068_v3  ;;  %v9188_v3 = vor.u32 %v9474_v17, %v9185_v44  ;;  %v7575_v17 = vadd.f32 1e-08, %v11926_v38 }
 0x440   : > { %3534 = vmatpush.bf16.msrb.mxu2 %v9188_v3 }
 0x442   : > { %3421 = vmatpush.bf16.msrb.mxu0 %v9040_v52  ;;  %v7572_v52 = vadd.f32 1e-08, %v11875_v30 }
 0x444   : > { %9561 = vlog2.f32 %v7572_v52 }
 0x446   : > { %v7706_v19 = vpop.permute.xlu2 %7705  ;;  %v2675_v63 = vpop.permute.xlu0 %2674  ;;  %3422 = vmatpush.bf16.msrb.mxu0 %v9012_v41  ;;  %v7649_v41 = vmul.f32 %v11836_v48, %v11836_v48  ;;  %v9183_v48 = vld [vmem:[%s15239_s8 + $0x160] sm:$0xf] }
 0x447   : > { %v7763_v33 = vadd.f32 %v7706_v19, %v7643_v56  ;;  %v2717_v5 = vadd.f32 %v2675_v63, %v11971_v15  ;;  %v9550_v15 = vpop.eup %9549 }
 0x448   : > { %v2790_v9 = vpop.f32.mrf.mxu0  ;;  %v7592_v23 = vmul.f32 0.6931472, %v9550_v15  ;;  %v9552_v50 = vpop.eup %9551 }
 0x449   : > { %v7783_v11 = vmul.f32 0.5, %v7763_v33  ;;  %v2728_v60 = vpack.c.bf16 %v2717_v5, %v2716_v8  ;;  %v9554_v21 = vpop.eup %9553  ;;  %v2791_v45 = vadd.f32 %v12249_v1, %v2790_v9  ;;  %v7584_v24 = vmul.f32 0.6931472, %v9552_v50 }
 0x44a   : > { %v7626_v56 = vsub.f32 0.0, %v7592_v23  ;;  %v9556_v63 = vpop.eup %9555  ;;  %v7588_v33 = vmul.f32 0.6931472, %v9554_v21  ;;  %v7568_v9 = vadd.f32 1e-08, %v11827_v40  ;;  %v7644_v23 = vmul.f32 %v11791_v35, %v11791_v35 }
 0x44b   : > { %v7803_v13 = vadd.f32 %v7783_v11, %v7623_v47  ;;  %8995 = vmatmul.msk.bf16.gmra.mxu0 %vm2746_vm2, %v2728_v60  ;;  %v2840_v5 = vmax.f32 %v2791_v45, 0.0  ;;  %v7598_v15 = vmul.f32 0.6931472, %v9556_v63  ;;  %v7622_v35 = vsub.f32 0.0, %v7584_v24 }
 0x44c   : > { %9563 = vlog2.f32 %v7568_v9  ;;  %v7573_v9 = vadd.f32 1e-08, %v11890_v2 }
 0x44d   : > { %v9223_v61 = vadd.f32 -0.5, %v7803_v13  ;;  %v2719_v13 = vadd.f32 %v12200_v7, %v12013_v46  ;;  %9565 = vlog2.f32 %v7570_v29  ;;  %v7629_v16 = vsub.f32 0.0, %v7598_v15 }
 0x44e   : > { %v7712_v26 = vpop.permute.xlu2 %7711  ;;  %v2677_v32 = vpop.permute.xlu1 %2676  ;;  %9567 = vlog2.f32 %v7575_v17 }
 0x44f   : > { %v7766_v36 = vadd.f32 %v7712_v26, %v7646_v34  ;;  %v7702_v62 = vpop.permute.xlu0 %7701  ;;  %7865 = vrot.lane.b32.xlu1 %v9223_v61, %s10248_s29  ;;  %v2718_v11 = vadd.f32 %v2677_v32, %v11993_v54  ;;  %v9477_v54 = vld [vmem:[%s15239_s8 + $0x178] sm:$0xf0]  ;;  %v9558_v34 = vpop.eup %9557  ;;  %9569 = vlog2.f32 %v7571_v27  ;;  %v9471_v27 = vld [vmem:[%s15239_s8 + $0x148] sm:$0xf0] }
 0x450   : > { %v7761_v59 = vadd.f32 %v7702_v62, %v7641_v37  ;;  %v2792_v6 = vpop.f32.mrf.mxu0  ;;  %v9184_v46 = vor.u32 %v9477_v54, %v9183_v48  ;;  %v9560_v7 = vpop.eup %9559  ;;  %v7624_v62 = vsub.f32 0.0, %v7588_v33  ;;  %9571 = vlog2.f32 %v7573_v9 }
 0x451   : > { %v7786_v25 = vmul.f32 0.5, %v7766_v36  ;;  %v2793_v19 = vadd.f32 %v12249_v1, %v2792_v6  ;;  %v2729_v44 = vpack.c.bf16 %v2719_v13, %v2718_v11  ;;  %v9562_v36 = vpop.eup %9561  ;;  %v7594_v52 = vmul.f32 0.6931472, %v9560_v7 }
 0x452   : > { %v7781_v8 = vmul.f32 0.5, %v7761_v59  ;;  %3475 = vmatpush.bf16.msrb.mxu1 %v9184_v46  ;;  %v7645_v59 = vmul.f32 %v11800_v31, %v11800_v31  ;;  %v7604_v63 = vmul.f32 0.6931472, %v9562_v36  ;;  %v7648_v31 = vmul.f32 %v11827_v40, %v11827_v40 }
 0x453   : > { %v7806_v22 = vadd.f32 %v7786_v25, %v7626_v56  ;;  %v2841_v28 = vmax.f32 %v2793_v19, 0.0  ;;  %v9564_v56 = vpop.eup %9563 }
 0x454   : > { %v7801_v49 = vadd.f32 %v7781_v8, %v7621_v58  ;;  %v7590_v58 = vmul.f32 0.6931472, %v9558_v34  ;;  %v7652_v8 = vmul.f32 %v11875_v30, %v11875_v30  ;;  %v9566_v24 = vpop.eup %9565  ;;  %v7627_v30 = vsub.f32 0.0, %v7594_v52 }
 0x455   : > { %v9226_v47 = vadd.f32 -0.5, %v7806_v22  ;;  %v12281_v60 = vpack.c.bf16 %v2841_v28, %v2840_v5  ;;  %v7647_v28 = vmul.f32 %v11818_v18, %v11818_v18  ;;  %v7578_v18 = vadd.f32 1e-08, %v11974_v14 }
 0x456   : > { %v9221_v10 = vadd.f32 -0.5, %v7801_v49  ;;  %v7718_v39 = vpop.permute.xlu2 %7717  ;;  %v7704_v61 = vpop.permute.xlu1 %7703  ;;  %v7625_v29 = vsub.f32 0.0, %v7590_v58  ;;  %v7596_v54 = vmul.f32 0.6931472, %v9564_v56  ;;  %v7600_v34 = vmul.f32 0.6931472, %v9566_v24 }
 0x457   : > { %v7769_v42 = vadd.f32 %v7718_v39, %v7649_v41  ;;  %v7762_v50 = vadd.f32 %v7704_v61, %v7642_v43  ;;  %v7708_v26 = vpop.permute.xlu0 %7707  ;;  %7871 = vrot.lane.b32.xlu1 %v9226_v47, %s10248_s29  ;;  %3246 = vmatmul.bf16.vlgmr.msra.gmra.mxu1 %v12281_v60  ;;  %9573 = vlog2.f32 %v7578_v18  ;;  %v9155_v24 = vld [vmem:[%s15239_s8 + $0x128] sm:$0xf] }
 0x458   : > { %v7764_v32 = vadd.f32 %v7708_v26, %v7644_v23  ;;  %3305 = vmatmul.bf16.vlgmr.msra.gmra.mxu2 %v12281_v60  ;;  %3364 = vmatmul.bf16.vlgmr.msra.gmra.mxu3 %v12281_v60  ;;  %v2795_v37 = vpop.f32.mrf.mxu0  ;;  %v9568_v23 = vpop.eup %9567 }
 0x459   : > { %v7789_v21 = vmul.f32 0.5, %v7769_v42  ;;  %v7782_v45 = vmul.f32 0.5, %v7762_v50  ;;  %7861 = vrot.lane.b32.xlu2 %v9221_v10, %s10248_s29  ;;  %v2796_v49 = vadd.f32 %v12249_v1, %v2795_v37  ;;  %v7632_v10 = vsub.f32 0.0, %v7604_v63 }
 0x45a   : > { %v7784_v43 = vmul.f32 0.5, %v7764_v32  ;;  %v7574_v32 = vadd.f32 1e-08, %v11905_v53 }
 0x45b   : > { %v7809_v3 = vadd.f32 %v7789_v21, %v7629_v16  ;;  %v7802_v51 = vadd.f32 %v7782_v45, %v7622_v35  ;;  %8996 = vmatmul.msk.bf16.gmra.mxu0 %vm2746_vm2, %v2729_v44  ;;  %v2842_v42 = vmax.f32 %v2796_v49, 0.0  ;;  %v7655_v35 = vmul.f32 %v11926_v38, %v11926_v38  ;;  %v9570_v21 = vpop.eup %9569  ;;  %v9157_v38 = vld [vmem:[%s15239_s8 + $0x144] sm:$0xf0] }
 0x45c   : > { %v7804_v6 = vadd.f32 %v7784_v43, %v7624_v62  ;;  %v7610_v16 = vmul.f32 0.6931472, %v9568_v23  ;;  %v7650_v43 = vmul.f32 %v11845_v0, %v11845_v0  ;;  %v9163_v0 = vld [vmem:[%s15239_s8 + $0x130] sm:$0xf]  ;;  %v9572_v56 = vpop.eup %9571  ;;  %v7630_v49 = vsub.f32 0.0, %v7600_v34 }
 0x45d   : > { %v9229_v25 = vadd.f32 -0.5, %v7809_v3  ;;  %v9222_v19 = vadd.f32 -0.5, %v7802_v51  ;;  %v9467_v3 = vld [vmem:[%s15239_s8 + $0x12c] sm:$0xf]  ;;  %v9574_v9 = vpop.eup %9573  ;;  %9575 = vlog2.f32 %v7574_v32 }
 0x45e   : > { %v9224_v33 = vadd.f32 -0.5, %v7804_v6  ;;  %v7724_v5 = vpop.permute.xlu2 %7723  ;;  %v7710_v22 = vpop.permute.xlu1 %7709  ;;  %v7576_v6 = vadd.f32 1e-08, %v11935_v20  ;;  %v9160_v52 = vor.u32 %v9467_v3, %v9157_v38 }
 0x45f   : > { %v7772_v41 = vadd.f32 %v7724_v5, %v7652_v8  ;;  %v7765_v47 = vadd.f32 %v7710_v22, %v7645_v59  ;;  %v7714_v11 = vpop.permute.xlu0 %7713  ;;  %7877 = vrot.lane.b32.xlu1 %v9229_v25, %s10248_s29  ;;  %7863 = vrot.lane.b32.xlu0 %v9222_v19, %s10248_s29  ;;  %v7628_v25 = vsub.f32 0.0, %v7596_v54  ;;  %v9164_v8 = vor.u32 %v9471_v27, %v9163_v0  ;;  %v9460_v0 = vld [vmem:[%s15239_s8 + $0xf4] sm:$0xf]  ;;  %v9129_v27 = vld [vmem:[%s15239_s8 + $0x10c] sm:$0xf0] }
 0x460   : > { %v7767_v15 = vadd.f32 %v7714_v11, %v7647_v28  ;;  %v2797_v13 = vpop.f32.mrf.mxu0  ;;  %v7635_v5 = vsub.f32 0.0, %v7610_v16  ;;  %3535 = vmatpush.bf16.msrb.mxu2 %v9160_v52  ;;  %9577 = vlog2.f32 %v7576_v6  ;;  %v7653_v54 = vmul.f32 %v11890_v2, %v11890_v2 }
 0x461   : > { %v7792_v40 = vmul.f32 0.5, %v7772_v41  ;;  %v7785_v39 = vmul.f32 0.5, %v7765_v47  ;;  %7867 = vrot.lane.b32.xlu2 %v9224_v33, %s10248_s29  ;;  %v2798_v61 = vadd.f32 %v12249_v1, %v2797_v13  ;;  %v9470_v33 = vld [vmem:[%s15239_s8 + $0x140] sm:$0xf0]  ;;  %3594 = vmatpush.bf16.msrb.mxu3 %v9164_v8  ;;  %v7654_v52 = vmul.f32 %v11905_v53, %v11905_v53  ;;  %v9135_v8 = vld [vmem:[%s15239_s8 + $0xf8] sm:$0xf] }
 0x462   : > { %v7787_v48 = vmul.f32 0.5, %v7767_v15  ;;  %v7651_v15 = vmul.f32 %v11854_v4, %v11854_v4  ;;  %v9464_v53 = vld [vmem:[%s15239_s8 + $0x110] sm:$0xf0] }
 0x463   : > { %v7812_v50 = vadd.f32 %v7792_v40, %v7632_v10  ;;  %v7805_v26 = vadd.f32 %v7785_v39, %v7625_v29  ;;  %v2843_v46 = vmax.f32 %v2798_v61, 0.0  ;;  %v7616_v10 = vmul.f32 0.6931472, %v9574_v9  ;;  %v9576_v4 = vpop.eup %9575 }
 0x464   : > { %v7807_v7 = vadd.f32 %v7787_v48, %v7627_v30  ;;  %v7602_v30 = vmul.f32 0.6931472, %v9570_v21  ;;  %v7658_v40 = vmul.f32 %v11974_v14, %v11974_v14  ;;  %v7606_v48 = vmul.f32 0.6931472, %v9572_v56 }
 0x465   : > { %v9232_v37 = vadd.f32 -0.5, %v7812_v50  ;;  %v9225_v17 = vadd.f32 -0.5, %v7805_v26  ;;  %v12319_v44 = vpack.c.bf16 %v2843_v46, %v2842_v42  ;;  %v7638_v32 = vsub.f32 0.0, %v7616_v10 }
 0x466   : > { %v9227_v45 = vadd.f32 -0.5, %v7807_v7  ;;  %v7730_v36 = vpop.permute.xlu2 %7729  ;;  %v7716_v62 = vpop.permute.xlu1 %7715  ;;  %v7631_v46 = vsub.f32 0.0, %v7602_v30  ;;  %v7633_v16 = vsub.f32 0.0, %v7606_v48  ;;  %v7608_v38 = vmul.f32 0.6931472, %v9576_v4 }
 0x467   : > { %v7775_v51 = vadd.f32 %v7730_v36, %v7655_v35  ;;  %v7768_v58 = vadd.f32 %v7716_v62, %v7648_v31  ;;  %v7720_v59 = vpop.permute.xlu0 %7719  ;;  %7883 = vrot.lane.b32.xlu1 %v9232_v37, %s10248_s29  ;;  %7869 = vrot.lane.b32.xlu0 %v9225_v17, %s10248_s29  ;;  %v9156_v31 = vor.u32 %v9470_v33, %v9155_v24  ;;  %v9578_v35 = vpop.eup %9577 }
 0x468   : > { %v7770_v19 = vadd.f32 %v7720_v59, %v7650_v43  ;;  %3251 = vmatmul.bf16.gmra.mxu1 %v12319_v44  ;;  %3310 = vmatmul.bf16.gmra.mxu2 %v12319_v44  ;;  %v2800_v63 = vpop.f32.mrf.mxu0 }
 0x469   : > { %v7795_v22 = vmul.f32 0.5, %v7775_v51  ;;  %v7788_v28 = vmul.f32 0.5, %v7768_v58  ;;  %3369 = vmatmul.bf16.gmra.mxu3 %v12319_v44  ;;  %7873 = vrot.lane.b32.xlu2 %v9227_v45, %s10248_s29  ;;  %v2801_v34 = vadd.f32 %v12249_v1, %v2800_v63  ;;  %v7612_v51 = vmul.f32 0.6931472, %v9578_v35 }
 0x46a   : > { %v7790_v41 = vmul.f32 0.5, %v7770_v19  ;;  %3476 = vmatpush.bf16.msrb.mxu1 %v9156_v31  ;;  %v7656_v19 = vmul.f32 %v11935_v20, %v11935_v20  ;;  %v9132_v63 = vor.u32 %v9460_v0, %v9129_v27 }
 0x46b   : > { %v7815_v29 = vadd.f32 %v7795_v22, %v7635_v5  ;;  %v7808_v47 = vadd.f32 %v7788_v28, %v7628_v25  ;;  %3423 = vmatmul.bf16.vlgmr.msrb.gmra.mxu0 %v12281_v60  ;;  %v2844_v45 = vmax.f32 %v2801_v34, 0.0  ;;  %v9136_v5 = vor.u32 %v9464_v53, %v9135_v8  ;;  %v9101_v34 = vld [vmem:[%s15239_s8 + $0xd4] sm:$0xf0]  ;;  %v9439_v8 = vld [vmem:[%s15239_s8 + $0x4c] sm:$0xf] }
 0x46c   : > { %v7810_v11 = vadd.f32 %v7790_v41, %v7630_v49  ;;  %v7634_v28 = vsub.f32 0.0, %v7608_v38  ;;  %v7636_v9 = vsub.f32 0.0, %v7612_v51  ;;  %3536 = vmatpush.bf16.msrb.mxu2 %v9132_v63  ;;  %v9045_v53 = vld [vmem:[%s15239_s8 + $0x64] sm:$0xf0] }
 0x46d   : > { %v9235_v13 = vadd.f32 -0.5, %v7815_v29  ;;  %v9228_v18 = vadd.f32 -0.5, %v7808_v47  ;;  %3595 = vmatpush.bf16.msrb.mxu3 %v9136_v5  ;;  %v9127_v29 = vld [vmem:[%s15239_s8 + $0xf0] sm:$0xf]  ;;  %v9463_v47 = vld [vmem:[%s15239_s8 + $0x108] sm:$0xf0] }
 0x46e   : > { %v9230_v39 = vadd.f32 -0.5, %v7810_v11  ;;  %v7736_v61 = vpop.permute.xlu2 %7735  ;;  %v7722_v23 = vpop.permute.xlu1 %7721  ;;  %v9128_v30 = vor.u32 %v9463_v47, %v9127_v29  ;;  %v7577_v5 = vadd.f32 1e-08, %v11964_v57  ;;  %v9051_v29 = vld [vmem:[%s15239_s8 + $0x50] sm:$0xf] }
 0x46f   : > { %v7778_v42 = vadd.f32 %v7736_v61, %v7658_v40  ;;  %v7771_v50 = vadd.f32 %v7722_v23, %v7651_v15  ;;  %v7726_v26 = vpop.permute.xlu0 %7725  ;;  %7889 = vrot.lane.b32.xlu1 %v9235_v13, %s10248_s29  ;;  %7875 = vrot.lane.b32.xlu0 %v9228_v18, %s10248_s29  ;;  %v9443_v47 = vld [vmem:[%s15239_s8 + $0x68] sm:$0xf0] }
 0x470   : > { %v7773_v7 = vadd.f32 %v7726_v26, %v7653_v54  ;;  %v2802_v14 = vpop.f32.mrf.mxu0  ;;  %3477 = vmatpush.bf16.msrb.mxu1 %v9128_v30  ;;  %v9453_v54 = vld [vmem:[%s15239_s8 + $0xbc] sm:$0xf]  ;;  %9579 = vlog2.f32 %v7577_v5  ;;  %v9043_v30 = vld [vmem:[%s15239_s8 + $0x48] sm:$0xf]  ;;  %v9436_v5 = vld [vmem:[%s15239_s8 + $0x30] sm:$0xf0] }
 0x471   : > { %v7798_v37 = vmul.f32 0.5, %v7778_v42  ;;  %v7791_v17 = vmul.f32 0.5, %v7771_v50  ;;  %7879 = vrot.lane.b32.xlu2 %v9230_v39, %s10248_s29  ;;  %v2803_v2 = vadd.f32 %v12249_v1, %v2802_v14  ;;  %v9104_v42 = vor.u32 %v9453_v54, %v9101_v34  ;;  %v9107_v50 = vld [vmem:[%s15239_s8 + $0xc0] sm:$0xf]  ;;  %v9457_v26 = vld [vmem:[%s15239_s8 + $0xd8] sm:$0xf0] }
 0x472   : > { %v7793_v21 = vmul.f32 0.5, %v7773_v7  ;;  %v9108_v4 = vor.u32 %v9457_v26, %v9107_v50  ;;  %v9456_v7 = vld [vmem:[%s15239_s8 + $0xd0] sm:$0xf0] }
 0x473   : > { %v7818_v36 = vadd.f32 %v7798_v37, %v7638_v32  ;;  %v7811_v62 = vadd.f32 %v7791_v17, %v7631_v46  ;;  %v2845_v43 = vmax.f32 %v2803_v2, 0.0  ;;  %3537 = vmatpush.bf16.msrb.mxu2 %v9104_v42  ;;  %v9099_v46 = vld [vmem:[%s15239_s8 + $0xb8] sm:$0xf] }
 0x474   : > { %v7813_v3 = vadd.f32 %v7793_v21, %v7633_v16  ;;  %v9100_v14 = vor.u32 %v9456_v7, %v9099_v46  ;;  %3596 = vmatpush.bf16.msrb.mxu3 %v9108_v4 }
 0x475   : > { %v9238_v58 = vadd.f32 -0.5, %v7818_v36  ;;  %v9231_v59 = vadd.f32 -0.5, %v7811_v62  ;;  %v12360_v6 = vpack.c.bf16 %v2845_v43, %v2844_v45  ;;  %v9446_v45 = vld [vmem:[%s15239_s8 + $0x84] sm:$0xf]  ;;  %v9073_v36 = vld [vmem:[%s15239_s8 + $0x9c] sm:$0xf0] }
 0x476   : > { %v9233_v56 = vadd.f32 -0.5, %v7813_v3  ;;  %v7728_v25 = vpop.permute.xlu1 %7727  ;;  %3478 = vmatpush.bf16.msrb.mxu1 %v9100_v14  ;;  %v9076_v62 = vor.u32 %v9446_v45, %v9073_v36  ;;  %v9079_v43 = vld [vmem:[%s15239_s8 + $0x88] sm:$0xf]  ;;  %v9450_v3 = vld [vmem:[%s15239_s8 + $0xa0] sm:$0xf0] }
 0x477   : > { %v7774_v24 = vadd.f32 %v7728_v25, %v7654_v52  ;;  %v7732_v33 = vpop.permute.xlu0 %7731  ;;  %7895 = vrot.lane.b32.xlu1 %v9238_v58, %s10248_s29  ;;  %7881 = vrot.lane.b32.xlu0 %v9231_v59, %s10248_s29  ;;  %v9080_v38 = vor.u32 %v9450_v3, %v9079_v43  ;;  %v9449_v25 = vld [vmem:[%s15239_s8 + $0x98] sm:$0xf0] }
 0x478   : > { %v7776_v22 = vadd.f32 %v7732_v33, %v7656_v19  ;;  %3256 = vmatmul.bf16.gmra.mxu1 %v12360_v6  ;;  %3315 = vmatmul.bf16.gmra.mxu2 %v12360_v6  ;;  %v2805_v20 = vpop.f32.mrf.mxu0 }
 0x479   : > { %v7794_v31 = vmul.f32 0.5, %v7774_v24  ;;  %3374 = vmatmul.bf16.gmra.mxu3 %v12360_v6  ;;  %7885 = vrot.lane.b32.xlu2 %v9233_v56, %s10248_s29  ;;  %v2806_v18 = vadd.f32 %v12249_v1, %v2805_v20  ;;  %v9071_v56 = vld [vmem:[%s15239_s8 + $0x80] sm:$0xf]  ;;  %v9048_v24 = vor.u32 %v9439_v8, %v9045_v53  ;;  %v9017_v8 = vld [vmem:[%s15239_s8 + $0x2c] sm:$0xf0] }
 0x47a   : > { %v7796_v49 = vmul.f32 0.5, %v7776_v22  ;;  %3538 = vmatpush.bf16.msrb.mxu2 %v9076_v62  ;;  %3597 = vmatpush.bf16.msrb.mxu3 %v9080_v38  ;;  %v9072_v19 = vor.u32 %v9449_v25, %v9071_v56  ;;  %v9023_v53 = vld [vmem:[%s15239_s8 + $0x18] sm:$0xf] }
 0x47b   : > { %v7814_v41 = vadd.f32 %v7794_v31, %v7634_v28  ;;  %3428 = vmatmul.bf16.gmra.mxu0 %v12319_v44  ;;  %v2846_v39 = vmax.f32 %v2806_v18, 0.0 }
 0x47c   : > { %v7816_v11 = vadd.f32 %v7796_v49, %v7636_v9  ;;  %3479 = vmatpush.bf16.msrb.mxu1 %v9072_v19  ;;  %v12508_v19 = vld [vmem:[%s15240_s9] sm:$0x7f] }
 0x47d   : > { %v9234_v15 = vadd.f32 -0.5, %v7814_v41 }
 0x47e   : > { %v9236_v13 = vadd.f32 -0.5, %v7816_v11  ;;  %3539 = vmatpush.bf16.msrb.mxu2 %v9048_v24  ;;  %v9052_v11 = vor.u32 %v9443_v47, %v9051_v29  ;;  %v7734_v18 = vpop.permute.xlu1 %7733  ;;  %v9024_v29 = vor.u32 %v9436_v5, %v9023_v53 }
 0x47f   : > { %7887 = vrot.lane.b32.xlu0 %v9234_v15, %s10248_s29  ;;  %v9442_v15 = vld [vmem:[%s15239_s8 + $0x60] sm:$0xf0] }
 0x480   : > { %v2807_v10 = vpop.f32.mrf.mxu0  ;;  %3598 = vmatpush.bf16.msrb.mxu3 %v9052_v11 }
 0x481   : > { %7891 = vrot.lane.b32.xlu2 %v9236_v13, %s10248_s29  ;;  %v2808_v40 = vadd.f32 %v12249_v1, %v2807_v10  ;;  %v9044_v13 = vor.u32 %v9442_v15, %v9043_v30  ;;  %v7579_v30 = vadd.f32 1e-08, %v12003_v55 }
 0x483   : > { %v2847_v61 = vmax.f32 %v2808_v40, 0.0  ;;  %v7657_v40 = vmul.f32 %v11964_v57, %v11964_v57  ;;  %3480 = vmatpush.bf16.msrb.mxu1 %v9044_v13  ;;  %9581 = vlog2.f32 %v7579_v30 }
 0x484   : > { %3599 = vmatpush.bf16.msrb.mxu3 %v9024_v29  ;;  %v12586_v29 = vperm.slane %v12508_v19, 3 }
 0x485   : > { %v12395_v23 = vpack.c.bf16 %v2847_v61, %v2846_v39  ;;  %v9580_v39 = vpop.eup %9579  ;;  %v7777_v61 = vadd.f32 %v7734_v18, %v7657_v40 }
 0x486   : > { %v7614_v34 = vmul.f32 0.6931472, %v9580_v39  ;;  %v12497_v62 = vpop.permute.xlu1 %7739 }
 0x487   : > { %v7797_v42 = vmul.f32 0.5, %v7777_v61 }
 0x488   : > { %3261 = vmatmul.bf16.gmra.mxu1 %v12395_v23  ;;  %3320 = vmatmul.bf16.gmra.mxu2 %v12395_v23  ;;  %v2810_v48 = vpop.f32.mrf.mxu0  ;;  %v7637_v4 = vsub.f32 0.0, %v7614_v34 }
 0x489   : > { %3379 = vmatmul.bf16.gmra.mxu3 %v12395_v23  ;;  %v2811_v35 = vadd.f32 %v12249_v1, %v2810_v48 }
 0x48a   : > { %v7817_v46 = vadd.f32 %v7797_v42, %v7637_v4  ;;  %v7659_v4 = vmul.f32 %v12003_v55, %v12003_v55 }
 0x48b   : > { %3433 = vmatmul.bf16.gmra.mxu0 %v12360_v6  ;;  %v2848_v17 = vmax.f32 %v2811_v35, 0.0 }
 0x490   : > { %v2812_v32 = vpop.f32.mrf.mxu0 }
 0x491   : > { %v2813_v37 = vadd.f32 %v12249_v1, %v2812_v32 }
 0x493   : > { %v2849_v2 = vmax.f32 %v2813_v37, 0.0 }
 0x495   : > { %v12421_v16 = vpack.c.bf16 %v2849_v2, %v2848_v17  ;;  %v9237_v17 = vadd.f32 -0.5, %v7817_v46  ;;  %v9582_v46 = vpop.eup %9581 }
 0x498   : > { %3266 = vmatmul.bf16.gmra.mxu1 %v12421_v16  ;;  %3325 = vmatmul.bf16.gmra.mxu2 %v12421_v16  ;;  %v2815_v21 = vpop.f32.mrf.mxu0 }
 0x499   : > { %3384 = vmatmul.bf16.gmra.mxu3 %v12421_v16  ;;  %v2816_v51 = vadd.f32 %v12249_v1, %v2815_v21  ;;  %v12491_v21 = vpop.permute.xlu0 %7737 }
 0x49b   : > { %3438 = vmatmul.bf16.gmra.mxu0 %v12395_v23  ;;  %v2850_v52 = vmax.f32 %v2816_v51, 0.0 }
 0x4a0   : > { %v2817_v58 = vpop.f32.mrf.mxu0 }
 0x4a1   : > { %v2818_v59 = vadd.f32 %v12249_v1, %v2817_v58 }
 0x4a3   : > { %v2851_v0 = vmax.f32 %v2818_v59, 0.0 }
 0x4a5   : > { %v12441_v27 = vpack.c.bf16 %v2851_v0, %v2850_v52 }
 0x4a8   : > { %3271 = vmatmul.bf16.gmra.mxu1 %v12441_v27  ;;  %3330 = vmatmul.bf16.gmra.mxu2 %v12441_v27  ;;  %v2820_v63 = vpop.f32.mrf.mxu0 }
 0x4a9   : > { %3389 = vmatmul.bf16.gmra.mxu3 %v12441_v27  ;;  %v2821_v33 = vadd.f32 %v12249_v1, %v2820_v63  ;;  %v9432_v63 = vld [vmem:[%s15239_s8 + $0x14] sm:$0xf] }
 0x4ab   : > { %3443 = vmatmul.bf16.gmra.mxu0 %v12421_v16  ;;  %v2852_v28 = vmax.f32 %v2821_v33, 0.0  ;;  %v9020_v33 = vor.u32 %v9432_v63, %v9017_v8 }
 0x4ad   : > { %3540 = vmatpush.bf16.msrb.mxu2 %v9020_v33 }
 0x4b0   : > { %v2822_v22 = vpop.f32.mrf.mxu0 }
 0x4b1   : > { %v2823_v20 = vadd.f32 %v12249_v1, %v2822_v22  ;;  %v9015_v22 = vld [vmem:[%s15239_s8 + $0x10] sm:$0xf] }
 0x4b3   : > { %v2853_v31 = vmax.f32 %v2823_v20, 0.0  ;;  %v7862_v9 = vpop.permute.xlu2 %7861  ;;  %v9435_v20 = vld [vmem:[%s15239_s8 + $0x28] sm:$0xf0] }
 0x4b4   : > { %v7921_v49 = vsel %vm2746_vm2, %v7862_v9, 0.0  ;;  %v9016_v47 = vor.u32 %v9435_v20, %v9015_v22 }
 0x4b5   : > { %v12463_v41 = vpack.c.bf16 %v2853_v31, %v2852_v28  ;;  %7922 = vadd.xlane.f32.xlu0 %v7921_v49  ;;  %v12529_v28 = vperm.slane %v12508_v19, 0  ;;  %v12534_v49 = vperm.slane %v12508_v19, 1 }
 0x4b6   : > { %3481 = vmatpush.bf16.msrb.mxu1 %v9016_v47 }
 0x4b8   : > { %3276 = vmatmul.bf16.gmra.mxu1 %v12463_v41  ;;  %3335 = vmatmul.bf16.gmra.mxu2 %v12463_v41  ;;  %v2825_v10 = vpop.f32.mrf.mxu0 }
 0x4b9   : > { %3394 = vmatmul.bf16.gmra.mxu3 %v12463_v41  ;;  %v2826_v50 = vadd.f32 %v12249_v1, %v2825_v10 }
 0x4bb   : > { %v7868_v48 = vpop.permute.xlu2 %7867  ;;  %3448 = vmatmul.bf16.gmra.mxu0 %v12441_v27  ;;  %v2854_v7 = vmax.f32 %v2826_v50, 0.0 }
 0x4bc   : > { %v7930_v54 = vsel %vm2746_vm2, %v7868_v48, 0.0 }
 0x4bd   : > { %7931 = vadd.xlane.f32.xlu1 %v7930_v54 }
 0x4c0   : > { %v2827_v26 = vpop.f32.mrf.mxu0 }
 0x4c1   : > { %v2828_v57 = vadd.f32 %v12249_v1, %v2827_v26  ;;  %v7866_v24 = vpop.permute.xlu1 %7865 }
 0x4c2   : > { %v7927_v11 = vsel %vm2746_vm2, %v7866_v24, 0.0 }
 0x4c3   : > { %v2855_v14 = vmax.f32 %v2828_v57, 0.0  ;;  %v7874_v35 = vpop.permute.xlu2 %7873 }
 0x4c4   : > { %v7939_v32 = vsel %vm2746_vm2, %v7874_v35, 0.0  ;;  %v7779_v35 = vadd.f32 %v12491_v21, %v7659_v4 }
 0x4c5   : > { %v12487_v37 = vpack.c.bf16 %v2855_v14, %v2854_v7  ;;  %7940 = vadd.xlane.f32.xlu1 %v7939_v32 }
 0x4c8   : > { %3281 = vmatmul.bf16.gmra.mxu1 %v12487_v37  ;;  %3340 = vmatmul.bf16.gmra.mxu2 %v12487_v37  ;;  %v2830_v2 = vpop.f32.mrf.mxu0 }
 0x4c9   : > { %3399 = vmatmul.bf16.gmra.mxu3 %v12487_v37  ;;  %7893 = vrot.lane.b32.xlu0 %v9237_v17, %s10248_s29  ;;  %v2831_v43 = vadd.f32 %v12249_v1, %v2830_v2  ;;  %v7618_v17 = vmul.f32 0.6931472, %v9582_v46 }
 0x4cb   : > { %v7880_v45 = vpop.permute.xlu2 %7879  ;;  %3453 = vmatmul.bf16.gmra.mxu0 %v12463_v41  ;;  %v2856_v59 = vmax.f32 %v2831_v43, 0.0  ;;  %v7639_v55 = vsub.f32 0.0, %v7618_v17 }
 0x4cc   : > { %v7948_v36 = vsel %vm2746_vm2, %v7880_v45, 0.0 }
 0x4cd   : > { %7949 = vadd.xlane.f32.xlu1 %v7948_v36  ;;  %v7580_v36 = vadd.f32 1e-08, %v12016_v12 }
 0x4cf   : > { %9583 = vlog2.f32 %v7580_v36 }
 0x4d0   : > { %v2832_v3 = vpop.f32.mrf.mxu0 }
 0x4d1   : > { %v2833_v38 = vadd.f32 %v12249_v1, %v2832_v3  ;;  %v7864_v51 = vpop.permute.xlu0 %7863 }
 0x4d2   : > { %v7924_v58 = vsel %vm2746_vm2, %v7864_v51, 0.0 }
 0x4d3   : > { %v2857_v52 = vmax.f32 %v2833_v38, 0.0  ;;  %v7886_v0 = vpop.permute.xlu2 %7885  ;;  %7925 = vadd.xlane.f32.xlu2 %v7924_v58 }
 0x4d4   : > { %v7957_v56 = vsel %vm2746_vm2, %v7886_v0, 0.0  ;;  %v3247_v31 = vpop.f32.mrf.mxu1 }
 0x4d5   : > { %v12503_v25 = vpack.c.bf16 %v2857_v52, %v2856_v59  ;;  %7958 = vadd.xlane.f32.xlu1 %v7957_v56  ;;  %v3248_v18 = vadd.f32 %v3247_v31, %v12529_v28  ;;  %v7660_v52 = vmul.f32 %v12016_v12, %v12016_v12  ;;  %v9584_v0 = vpop.eup %9583 }
 0x4d6   : > { %v7620_v8 = vmul.f32 0.6931472, %v9584_v0 }
 0x4d7   : > { %v7780_v56 = vadd.f32 %v12497_v62, %v7660_v52 }
 0x4d8   : > { %3286 = vmatmul.bf16.gmra.mxu1 %v12503_v25  ;;  %3345 = vmatmul.bf16.gmra.mxu2 %v12503_v25  ;;  %v2835_v9 = vpop.f32.mrf.mxu0  ;;  %v7640_v5 = vsub.f32 0.0, %v7620_v8  ;;  %v383_v8 = vld [vmem:[%s10386_s25] sm:$0xff] }
 0x4d9   : > { %3404 = vmatmul.bf16.gmra.mxu3 %v12503_v25  ;;  %v2836_v61 = vadd.f32 %v12249_v1, %v2835_v9  ;;  %v7870_v3 = vpop.permute.xlu0 %7869  ;;  %v7800_v24 = vmul.f32 0.5, %v7780_v56 }
 0x4da   : > { %v7933_v58 = vsel %vm2746_vm2, %v7870_v3, 0.0 }
 0x4db   : > { %v7892_v15 = vpop.permute.xlu2 %7891  ;;  %v3306_v13 = vpop.f32.mrf.mxu2  ;;  %3458 = vmatmul.bf16.gmra.mxu0 %v12487_v37  ;;  %7928 = vadd.xlane.f32.xlu2 %v7927_v11  ;;  %v2858_v42 = vmax.f32 %v2836_v61, 0.0  ;;  %v7820_v22 = vadd.f32 %v7800_v24, %v7640_v5 }
 0x4dc   : > { %v3307_v10 = vadd.f32 %v3306_v13, %v12534_v49  ;;  %v7966_v40 = vsel %vm2746_vm2, %v7892_v15, 0.0  ;;  %v3249_v34 = vpop.f32.mrf.mxu1  ;;  %v3365_v9 = vpop.f32.mrf.mxu3  ;;  %v12589_v15 = vperm.slane %v12508_v19, 2 }
 0x4dd   : > { %7967 = vadd.xlane.f32.xlu1 %v7966_v40  ;;  %v3250_v7 = vadd.f32 %v3249_v34, %v12529_v28  ;;  %v9240_v31 = vadd.f32 -0.5, %v7820_v22 }
 0x4de   : > { %v12543_v39 = vpack.c.bf16 %v3307_v10, %v3248_v18  ;;  %v3366_v40 = vadd.f32 %v3365_v9, %v12589_v15 }
 0x4e0   : > { %v2837_v48 = vpop.f32.mrf.mxu0  ;;  %v4451_v62 = vand.u32 2147450879, %v12543_v39  ;;  %v3871_v22 = vunpack.c.l.bf16 %v12543_v39 }
 0x4e1   : > { %v2838_v54 = vadd.f32 %v12249_v1, %v2837_v48  ;;  %v7799_v1 = vmul.f32 0.5, %v7779_v35 }
 0x4e2   : > { %v4531_v11 = vunpack.c.l.bf16 %v4451_v62  ;;  %v4532_v30 = vunpack.c.h.bf16 %v4451_v62 }
 0x4e3   : > { %v2859_v50 = vmax.f32 %v2838_v54, 0.0  ;;  %v3308_v26 = vpop.f32.mrf.mxu2  ;;  %v7819_v45 = vadd.f32 %v7799_v1, %v7639_v55 }
 0x4e4   : > { %v3309_v57 = vadd.f32 %v3308_v26, %v12534_v49  ;;  %v4671_v18 = vsub.f32 0.0, %v4531_v11  ;;  %v4672_v10 = vsub.f32 0.0, %v4532_v30  ;;  %v3732_v11 = vunpack.c.h.bf16 %v383_v8 }
 0x4e5   : > { %v12551_v14 = vpack.c.bf16 %v2859_v50, %v2858_v42  ;;  %v3252_v43 = vpop.f32.mrf.mxu1  ;;  %v9239_v51 = vadd.f32 -0.5, %v7819_v45 }
 0x4e6   : > { %v12554_v32 = vpack.c.bf16 %v3309_v57, %v3250_v7  ;;  %v3253_v38 = vadd.f32 %v3252_v43, %v12529_v28  ;;  %v4811_v42 = vpack.c.bf16 %v4672_v10, %v4671_v18 }
 0x4e8   : > { %3291 = vmatmul.bf16.gmra.mxu1 %v12551_v14  ;;  %3350 = vmatmul.bf16.gmra.mxu2 %v12551_v14  ;;  %v3424_v47 = vpop.f32.mrf.mxu0  ;;  %v4455_v50 = vand.u32 2147450879, %v12554_v32  ;;  %v4891_v4 = vunpack.c.l.bf16 %v4811_v42  ;;  %v4892_v7 = vunpack.c.h.bf16 %v4811_v42 }
 0x4e9   : > { %3409 = vmatmul.bf16.gmra.mxu3 %v12551_v14 }
 0x4ea   : > { %v4538_v57 = vunpack.c.l.bf16 %v4455_v50  ;;  %v4539_v46 = vunpack.c.h.bf16 %v4455_v50  ;;  %v5031_v55 = vmul.f32 1.442695, %v4891_v4  ;;  %v5033_v36 = vmul.f32 1.442695, %v4892_v7  ;;  %v12625_v4 = vld [vmem:[%s10386_s25 + $0x8] sm:$0xff] }
 0x4eb   : > { %3463 = vmatmul.bf16.gmra.mxu0 %v12503_v25  ;;  %v3311_v2 = vpop.f32.mrf.mxu2 }
 0x4ec   : > { %v3312_v21 = vadd.f32 %v3311_v2, %v12534_v49  ;;  %v4678_v2 = vsub.f32 0.0, %v4538_v57  ;;  %v4679_v45 = vsub.f32 0.0, %v4539_v46  ;;  %9585 = vpow2.f32 %v5031_v55 }
 0x4ed   : > { %v3254_v53 = vpop.f32.mrf.mxu1  ;;  %9587 = vpow2.f32 %v5033_v36 }
 0x4ee   : > { %v12564_v59 = vpack.c.bf16 %v3312_v21, %v3253_v38  ;;  %v3255_v12 = vadd.f32 %v3254_v53, %v12529_v28  ;;  %v4815_v21 = vpack.c.bf16 %v4679_v45, %v4678_v2 }
 0x4f0   : > { %v4898_v52 = vunpack.c.l.bf16 %v4815_v21  ;;  %v3426_v0 = vpop.f32.mrf.mxu0  ;;  %v4899_v56 = vunpack.c.h.bf16 %v4815_v21  ;;  %v3879_v21 = vunpack.c.h.bf16 %v12554_v32 }
 0x4f2   : > { %v5045_v9 = vmul.f32 1.442695, %v4898_v52  ;;  %v5047_v30 = vmul.f32 1.442695, %v4899_v56  ;;  %v3734_v56 = vunpack.c.h.bf16 %v12625_v4 }
 0x4f3   : > { %7934 = vadd.xlane.f32.xlu0 %v7933_v58  ;;  %7897 = vrot.lane.b32.xlu2 %v9239_v51, %s10248_s29  ;;  %v3313_v63 = vpop.f32.mrf.mxu2  ;;  %v4459_v51 = vand.u32 2147450879, %v12564_v59 }
 0x4f4   : > { %v3314_v33 = vadd.f32 %v3313_v63, %v12534_v49  ;;  %v9586_v63 = vpop.eup %9585  ;;  %9589 = vpow2.f32 %v5045_v9 }
 0x4f5   : > { %v3257_v61 = vpop.f32.mrf.mxu1  ;;  %v9588_v24 = vpop.eup %9587  ;;  %v4545_v5 = vunpack.c.l.bf16 %v4459_v51  ;;  %9591 = vpow2.f32 %v5047_v30 }
 0x4f6   : > { %v12576_v20 = vpack.c.bf16 %v3314_v33, %v3255_v12  ;;  %v3258_v19 = vadd.f32 %v3257_v61, %v12529_v28  ;;  %v3427_v12 = vadd.f32 %v3426_v0, %v12586_v29  ;;  %v5311_v18 = vpack.c.bf16 %v9588_v24, %v9586_v63 }
 0x4f7   : > { %v4685_v61 = vsub.f32 0.0, %v4545_v5 }
 0x4f8   : > { %3482 = vmatmul.bf16.vlgmr.msrb.gmra.mxu1 %v12281_v60  ;;  %3541 = vmatmul.bf16.vlgmr.msrb.gmra.mxu2 %v12281_v60  ;;  %v5391_v46 = vunpack.c.l.bf16 %v5311_v18  ;;  %v5392_v7 = vunpack.c.h.bf16 %v5311_v18 }
 0x4f9   : > { %3600 = vmatmul.bf16.vlgmr.msrb.gmra.mxu3 %v12281_v60  ;;  %v12582_v60 = vpop.f32.mrf.mxu3 }
 0x4fa   : > { %v5531_v52 = vadd.f32 1.0, %v5391_v46  ;;  %v5532_v0 = vadd.f32 1.0, %v5392_v7 }
 0x4fb   : > { %3468 = vmatmul.bf16.gmra.mxu0 %v12551_v14  ;;  %v3316_v48 = vpop.f32.mrf.mxu2 }
 0x4fc   : > { %v3317_v34 = vadd.f32 %v3316_v48, %v12534_v49 }
 0x4fd   : > { %v3259_v62 = vpop.f32.mrf.mxu1 }
 0x501   : > { %v12595_v13 = vpop.f32.mrf.mxu3 }
 0x507   : > { %7899 = vrot.lane.b32.xlu0 %v9240_v31, %s10248_s29  ;;  %v3872_v31 = vunpack.c.h.bf16 %v12543_v39 }
 0x508   : > { %3487 = vmatmul.bf16.gmra.mxu1 %v12319_v44  ;;  %3546 = vmatmul.bf16.gmra.mxu2 %v12319_v44 }
 0x509   : > { %3605 = vmatmul.bf16.gmra.mxu3 %v12319_v44  ;;  %v3425_v44 = vadd.f32 %v3424_v47, %v12586_v29  ;;  %v12606_v35 = vpop.f32.mrf.mxu3  ;;  %v3731_v47 = vunpack.c.l.bf16 %v383_v8  ;;  %v4232_v42 = vmax.f32 %v3872_v31, 0.0  ;;  %v4012_v50 = vmul.f32 %v3872_v31, %v3732_v11  ;;  %v12645_v8 = vpop.f32.mrf.mxu1 }
 0x50b   : > { %v12598_v54 = vpack.c.bf16 %v3425_v44, %v3366_v40  ;;  %v3368_v44 = vadd.f32 %v12582_v60, %v12589_v15  ;;  %v4011_v39 = vmul.f32 %v3871_v22, %v3731_v47  ;;  %v3318_v60 = vpop.f32.mrf.mxu2 }
 0x50d   : > { %v4452_v26 = vand.u32 2147450879, %v12598_v54 }
 0x50f   : > { %v4533_v17 = vunpack.c.l.bf16 %v4452_v26  ;;  %v4534_v1 = vunpack.c.h.bf16 %v4452_v26  ;;  %v387_v26 = vld [vmem:[%s10386_s25 + $0x1c] sm:$0xff] }
 0x510   : > { %v3738_v45 = vunpack.c.l.bf16 %v387_v26  ;;  %v3739_v36 = vunpack.c.h.bf16 %v387_v26 }
 0x511   : > { %v4673_v43 = vsub.f32 0.0, %v4533_v17  ;;  %v4674_v3 = vsub.f32 0.0, %v4534_v1  ;;  %v12612_v58 = vpop.f32.mrf.mxu3  ;;  %v12632_v17 = vld [vmem:[%s10386_s25 + $0x38] sm:$0xff] }
 0x512   : > { %v3745_v63 = vunpack.c.l.bf16 %v12632_v17  ;;  %v3746_v9 = vunpack.c.h.bf16 %v12632_v17  ;;  %v4019_v18 = vmul.f32 %v3879_v21, %v3739_v36  ;;  %v3874_v36 = vunpack.c.h.bf16 %v12598_v54 }
 0x513   : > { %v4812_v38 = vpack.c.bf16 %v4674_v3, %v4673_v43  ;;  %v3733_v43 = vunpack.c.l.bf16 %v12625_v4  ;;  %v12638_v3 = vpack.c.bf16 %v4012_v50, %v4011_v39  ;;  %v4463_v50 = vand.u32 2147450879, %v12576_v20  ;;  %v3321_v26 = vpop.f32.mrf.mxu2 }
 0x515   : > { %v4893_v53 = vunpack.c.l.bf16 %v4812_v38  ;;  %v4894_v33 = vunpack.c.h.bf16 %v4812_v38  ;;  %v3319_v38 = vadd.f32 %v3318_v60, %v12534_v49 }
 0x517   : > { %v5035_v10 = vmul.f32 1.442695, %v4893_v53  ;;  %v5037_v40 = vmul.f32 1.442695, %v4894_v33  ;;  %v12648_v33 = vld [vmem:[%s10386_s25 + $0x24] sm:$0xff] }
 0x518   : > { %3492 = vmatmul.bf16.gmra.mxu1 %v12360_v6  ;;  %3551 = vmatmul.bf16.gmra.mxu2 %v12360_v6  ;;  %v3741_v7 = vunpack.c.h.bf16 %v12648_v33 }
 0x519   : > { %3610 = vmatmul.bf16.gmra.mxu3 %v12360_v6  ;;  %v12603_v6 = vpack.c.bf16 %v3317_v34, %v3258_v19  ;;  %v12620_v19 = vpack.c.bf16 %v3427_v12, %v3368_v44  ;;  %v4231_v34 = vmax.f32 %v3871_v22, 0.0  ;;  %v12627_v57 = vpop.f32.mrf.mxu3  ;;  %9593 = vpow2.f32 %v5035_v10 }
 0x51a   : > { %9595 = vpow2.f32 %v5037_v40  ;;  %v3260_v12 = vadd.f32 %v3259_v62, %v12529_v28  ;;  %v5671_v40 = vpack.c.bf16 %v5532_v0, %v5531_v52 }
 0x51b   : > { %v4456_v55 = vand.u32 2147450879, %v12620_v19  ;;  %v12635_v2 = vpack.c.bf16 %v4232_v42, %v4231_v34 }
 0x51c   : > { %v12655_v10 = vpack.c.bf16 %v3319_v38, %v3260_v12  ;;  %v12666_v38 = vld [vmem:[%s10386_s25 + $0x54] sm:$0xff]  ;;  %v5752_v52 = vunpack.c.h.bf16 %v5671_v40 }
 0x51d   : > { %v4540_v5 = vunpack.c.l.bf16 %v4456_v55  ;;  %v6251_v22 = vunpack.c.l.bf16 %v12635_v2 }
 0x51f   : > { %v4680_v42 = vsub.f32 0.0, %v4540_v5  ;;  %v4553_v5 = vunpack.c.h.bf16 %v4463_v50 }
 0x528   : > { %3497 = vmatmul.bf16.gmra.mxu1 %v12395_v23  ;;  %3556 = vmatmul.bf16.gmra.mxu2 %v12395_v23 }
 0x529   : > { %3615 = vmatmul.bf16.gmra.mxu3 %v12395_v23  ;;  %v4546_v23 = vunpack.c.h.bf16 %v4459_v51  ;;  %v9590_v51 = vpop.eup %9589 }
 0x52a   : > { %v9592_v53 = vpop.eup %9591 }
 0x52b   : > { %v4686_v48 = vsub.f32 0.0, %v4546_v23  ;;  %v4541_v23 = vunpack.c.h.bf16 %v4456_v55  ;;  %v5315_v62 = vpack.c.bf16 %v9592_v53, %v9590_v51  ;;  %v4239_v55 = vmax.f32 %v3879_v21, 0.0  ;;  %v12669_v21 = vpop.f32.mrf.mxu1 }
 0x52c   : > { %v5751_v51 = vunpack.c.l.bf16 %v5671_v40 }
 0x52d   : > { %v4819_v1 = vpack.c.bf16 %v4686_v48, %v4685_v61  ;;  %v3740_v48 = vunpack.c.l.bf16 %v12648_v33  ;;  %v4681_v39 = vsub.f32 0.0, %v4541_v23  ;;  %v5398_v0 = vunpack.c.l.bf16 %v5315_v62 }
 0x52e   : > { %v5399_v53 = vunpack.c.h.bf16 %v5315_v62  ;;  %v4014_v62 = vmul.f32 %v3874_v36, %v3734_v56  ;;  %v3322_v56 = vadd.f32 %v3321_v26, %v12534_v49 }
 0x52f   : > { %v4905_v24 = vunpack.c.l.bf16 %v4819_v1  ;;  %v4906_v47 = vunpack.c.h.bf16 %v4819_v1 }
 0x530   : > { %v5539_v40 = vadd.f32 1.0, %v5399_v53 }
 0x531   : > { %v5059_v34 = vmul.f32 1.442695, %v4905_v24  ;;  %v5061_v46 = vmul.f32 1.442695, %v4906_v47  ;;  %v4816_v24 = vpack.c.bf16 %v4681_v39, %v4680_v42  ;;  %v4693_v39 = vsub.f32 0.0, %v4553_v5 }
 0x532   : > { %v4234_v47 = vmax.f32 %v3874_v36, 0.0 }
 0x533   : > { %9597 = vpow2.f32 %v5059_v34  ;;  %v4900_v34 = vunpack.c.l.bf16 %v4816_v24  ;;  %v4901_v30 = vunpack.c.h.bf16 %v4816_v24  ;;  %v3886_v24 = vunpack.c.h.bf16 %v12564_v59 }
 0x534   : > { %9599 = vpow2.f32 %v5061_v46 }
 0x535   : > { %9601 = vlog2.f32 %v5751_v51  ;;  %v3263_v51 = vadd.f32 %v12645_v8, %v12529_v28  ;;  %v5049_v5 = vmul.f32 1.442695, %v4900_v34  ;;  %v4246_v34 = vmax.f32 %v3886_v24, 0.0 }
 0x536   : > { %9603 = vlog2.f32 %v5752_v52  ;;  %v12682_v52 = vpop.f32.mrf.mxu2 }
 0x537   : > { %9605 = vpow2.f32 %v5049_v5 }
 0x538   : > { %3502 = vmatmul.bf16.gmra.mxu1 %v12421_v16  ;;  %3561 = vmatmul.bf16.gmra.mxu2 %v12421_v16 }
 0x539   : > { %3620 = vmatmul.bf16.gmra.mxu3 %v12421_v16  ;;  %v3878_v16 = vunpack.c.l.bf16 %v12554_v32  ;;  %v9594_v32 = vpop.eup %9593 }
 0x53a   : > { %v9596_v11 = vpop.eup %9595 }
 0x53b   : > { %v4018_v44 = vmul.f32 %v3878_v16, %v3738_v45  ;;  %v4238_v4 = vmax.f32 %v3878_v16, 0.0  ;;  %v5312_v60 = vpack.c.bf16 %v9596_v11, %v9594_v32  ;;  %v3873_v45 = vunpack.c.l.bf16 %v12598_v54 }
 0x53c   : > { %v4552_v16 = vunpack.c.l.bf16 %v4463_v50  ;;  %v3429_v50 = vpop.f32.mrf.mxu0  ;;  %v3371_v32 = vadd.f32 %v12595_v13, %v12589_v15 }
 0x53d   : > { %v12661_v1 = vpack.c.bf16 %v4019_v18, %v4018_v44  ;;  %v5393_v23 = vunpack.c.l.bf16 %v5312_v60  ;;  %v5394_v12 = vunpack.c.h.bf16 %v5312_v60  ;;  %v12672_v54 = vpack.c.bf16 %v4239_v55, %v4238_v4  ;;  %v12676_v4 = vpop.f32.mrf.mxu3  ;;  %v9598_v55 = vpop.eup %9597 }
 0x53e   : > { %v4013_v11 = vmul.f32 %v3873_v45, %v3733_v43  ;;  %v5538_v18 = vadd.f32 1.0, %v5398_v0  ;;  %v4692_v42 = vsub.f32 0.0, %v4552_v16  ;;  %v4233_v60 = vmax.f32 %v3873_v45, 0.0  ;;  %v9600_v0 = vpop.eup %9599 }
 0x53f   : > { %v5533_v46 = vadd.f32 1.0, %v5393_v23  ;;  %v5534_v61 = vadd.f32 1.0, %v5394_v12  ;;  %v3885_v43 = vunpack.c.l.bf16 %v12564_v59  ;;  %v3430_v16 = vadd.f32 %v3429_v50, %v12586_v29  ;;  %v9602_v8 = vpop.eup %9601 }
 0x540   : > { %v5675_v45 = vpack.c.bf16 %v5539_v40, %v5538_v18  ;;  %v4823_v23 = vpack.c.bf16 %v4693_v39, %v4692_v42  ;;  %v12689_v12 = vpack.c.bf16 %v3322_v56, %v3263_v51  ;;  %v6259_v26 = vunpack.c.h.bf16 %v12672_v54  ;;  %v9604_v40 = vpop.eup %9603 }
 0x541   : > { %v5672_v44 = vpack.c.bf16 %v5534_v61, %v5533_v46  ;;  %v5051_v18 = vmul.f32 1.442695, %v4901_v30  ;;  %v12694_v53 = vpack.c.bf16 %v4014_v62, %v4013_v11  ;;  %v12696_v59 = vpack.c.bf16 %v4234_v47, %v4233_v60 }
 0x542   : > { %v4245_v50 = vmax.f32 %v3885_v43, 0.0  ;;  %v5319_v31 = vpack.c.bf16 %v9600_v0, %v9598_v55  ;;  %v5758_v36 = vunpack.c.l.bf16 %v5675_v45  ;;  %v3880_v42 = vunpack.c.l.bf16 %v12620_v19 }
 0x543   : > { %15440 = vst [vmem:[#allocation13_spill] sm:$0xff] %v12694_v53  ;;  %v12699_v39 = vpack.c.bf16 %v3430_v16, %v3371_v32  ;;  %v5892_v51 = vmul.f32 0.6931472, %v9602_v8  ;;  %v5759_v56 = vunpack.c.h.bf16 %v5675_v45  ;;  %v4912_v61 = vunpack.c.l.bf16 %v4823_v23 }
 0x544   : > { %v5894_v46 = vmul.f32 0.6931472, %v9604_v40  ;;  %v5753_v13 = vunpack.c.l.bf16 %v5672_v44  ;;  %9607 = vpow2.f32 %v5051_v18  ;;  %v4913_v30 = vunpack.c.h.bf16 %v4823_v23 }
 0x545   : > { %v5754_v11 = vunpack.c.h.bf16 %v5672_v44  ;;  %v5405_v62 = vunpack.c.l.bf16 %v5319_v31  ;;  %v5406_v47 = vunpack.c.h.bf16 %v5319_v31  ;;  %v3881_v60 = vunpack.c.h.bf16 %v12620_v19  ;;  %v12707_v45 = vpop.f32.mrf.mxu3 }
 0x546   : > { %9609 = vlog2.f32 %v5758_v36  ;;  %v4025_v55 = vmul.f32 %v3885_v43, %v3745_v63  ;;  %v4026_v32 = vmul.f32 %v3886_v24, %v3746_v9  ;;  %v4460_v0 = vand.u32 2147450879, %v12699_v39  ;;  %v9606_v63 = vpop.eup %9605 }
 0x547   : > { %9611 = vlog2.f32 %v5759_v56  ;;  %v6253_v44 = vunpack.c.l.bf16 %v12696_v59  ;;  %v12711_v16 = vpack.c.bf16 %v4246_v34, %v4245_v50  ;;  %v5073_v31 = vmul.f32 1.442695, %v4912_v61 }
 0x548   : > { %3507 = vmatmul.bf16.gmra.mxu1 %v12441_v27  ;;  %3566 = vmatmul.bf16.gmra.mxu2 %v12441_v27  ;;  %v6171_v19 = vpack.c.bf16 %v5894_v46, %v5892_v51  ;;  %9613 = vlog2.f32 %v5753_v13  ;;  %v4240_v36 = vmax.f32 %v3880_v42, 0.0  ;;  %v5075_v5 = vmul.f32 1.442695, %v4913_v30 }
 0x549   : > { %3625 = vmatmul.bf16.gmra.mxu3 %v12441_v27  ;;  %9615 = vlog2.f32 %v5754_v11  ;;  %v5545_v17 = vadd.f32 1.0, %v5405_v62  ;;  %v5546_v9 = vadd.f32 1.0, %v5406_v47  ;;  %v4241_v43 = vmax.f32 %v3881_v60, 0.0 }
 0x54a   : > { %v9608_v24 = vpop.eup %9607  ;;  %v6254_v23 = vunpack.c.h.bf16 %v12696_v59  ;;  %v12714_v8 = vpack.c.bf16 %v4026_v32, %v4025_v55  ;;  %v4547_v27 = vunpack.c.l.bf16 %v4460_v0  ;;  %v4548_v18 = vunpack.c.h.bf16 %v4460_v0 }
 0x54b   : > { %v4020_v50 = vmul.f32 %v3880_v42, %v3740_v48  ;;  %v4021_v34 = vmul.f32 %v3881_v60, %v3741_v7  ;;  %9617 = vpow2.f32 %v5073_v31  ;;  %v6391_v56 = vunpack.c.l.bf16 %v6171_v19 }
 0x54c   : > { %v9610_v51 = vpop.eup %9609  ;;  %v6392_v61 = vunpack.c.h.bf16 %v6171_v19  ;;  %9619 = vpow2.f32 %v5075_v5  ;;  %v5679_v30 = vpack.c.bf16 %v5546_v9, %v5545_v17  ;;  %v12723_v62 = vpack.c.bf16 %v4241_v43, %v4240_v36 }
 0x54d   : > { %v9612_v13 = vpop.eup %9611  ;;  %v5316_v47 = vpack.c.bf16 %v9608_v24, %v9606_v63  ;;  %v4687_v7 = vsub.f32 0.0, %v4547_v27  ;;  %v4688_v42 = vsub.f32 0.0, %v4548_v18  ;;  %v12728_v0 = vpack.c.bf16 %v4021_v34, %v4020_v50 }
 0x54e   : > { %v9614_v55 = vpop.eup %9613  ;;  %v3892_v31 = vunpack.c.l.bf16 %v12576_v20  ;;  %v3893_v19 = vunpack.c.h.bf16 %v12576_v20  ;;  %v6531_v36 = vadd.f32 %v6391_v56, %v6251_v22  ;;  %v15442_v5 = vunpack.c.h.bf16 %v12635_v2  ;;  %v3431_v20 = vpop.f32.mrf.mxu0 }
 0x54f   : > { %v9616_v60 = vpop.eup %9615  ;;  %15441 = vst [vmem:[#allocation36_spill] sm:$0xff] %v12728_v0  ;;  %v5906_v17 = vmul.f32 0.6931472, %v9610_v51  ;;  %v5908_v9 = vmul.f32 0.6931472, %v9612_v13  ;;  %v5765_v24 = vunpack.c.l.bf16 %v5679_v30  ;;  %v5400_v27 = vunpack.c.l.bf16 %v5316_v47 }
 0x550   : > { %v6532_v63 = vadd.f32 %v6392_v61, %v15442_v5  ;;  %v5401_v18 = vunpack.c.h.bf16 %v5316_v47  ;;  %v5896_v34 = vmul.f32 0.6931472, %v9614_v55  ;;  %v5898_v32 = vmul.f32 0.6931472, %v9616_v60 }
 0x551   : > { %v9618_v43 = vpop.eup %9617  ;;  %v5766_v33 = vunpack.c.h.bf16 %v5679_v30  ;;  %v4820_v40 = vpack.c.bf16 %v4688_v42, %v4687_v7  ;;  %v4467_v51 = vand.u32 2147450879, %v12603_v6  ;;  %v6175_v61 = vpack.c.bf16 %v5908_v9, %v5906_v17 }
 0x552   : > { %v9620_v50 = vpop.eup %9619  ;;  %v6671_v56 = vpack.c.bf16 %v6532_v63, %v6531_v36  ;;  %v15443_v13 = vunpack.c.l.bf16 %v12666_v38  ;;  %v15444_v5 = vunpack.c.h.bf16 %v12666_v38  ;;  %9621 = vlog2.f32 %v5765_v24 }
 0x553   : > { %v5540_v55 = vadd.f32 1.0, %v5400_v27  ;;  %v5541_v30 = vadd.f32 1.0, %v5401_v18  ;;  %v5323_v7 = vpack.c.bf16 %v9620_v50, %v9618_v43  ;;  %v6172_v42 = vpack.c.bf16 %v5898_v32, %v5896_v34 }
 0x554   : > { %v4032_v47 = vmul.f32 %v3892_v31, %v15443_v13  ;;  %v4033_v46 = vmul.f32 %v3893_v19, %v15444_v5  ;;  %9623 = vlog2.f32 %v5766_v33  ;;  %v4252_v60 = vmax.f32 %v3892_v31, 0.0 }
 0x555   : > { %v4907_v22 = vunpack.c.l.bf16 %v4820_v40  ;;  %v4908_v2 = vunpack.c.h.bf16 %v4820_v40  ;;  %v4559_v48 = vunpack.c.l.bf16 %v4467_v51  ;;  %v4560_v11 = vunpack.c.h.bf16 %v4467_v51 }
 0x556   : > { %v3324_v36 = vadd.f32 %v12682_v52, %v12534_v49  ;;  %v6398_v63 = vunpack.c.l.bf16 %v6175_v61  ;;  %v6399_v17 = vunpack.c.h.bf16 %v6175_v61  ;;  %v4253_v9 = vmax.f32 %v3893_v19, 0.0 }
 0x557   : > { %v3265_v38 = vadd.f32 %v12669_v21, %v12529_v28  ;;  %v5676_v24 = vpack.c.bf16 %v5541_v30, %v5540_v55  ;;  %v5412_v27 = vunpack.c.l.bf16 %v5323_v7  ;;  %v5413_v43 = vunpack.c.h.bf16 %v5323_v7 }
 0x558   : > { %v3432_v33 = vadd.f32 %v3431_v20, %v12586_v29  ;;  %v6393_v32 = vunpack.c.l.bf16 %v6172_v42  ;;  %v3373_v40 = vadd.f32 %v12606_v35, %v12589_v15  ;;  %v5063_v31 = vmul.f32 1.442695, %v4907_v22  ;;  %v9622_v50 = vpop.eup %9621 }
 0x559   : > { %v12752_v18 = vpack.c.bf16 %v3324_v36, %v3265_v38  ;;  %v6394_v52 = vunpack.c.h.bf16 %v6172_v42  ;;  %v5065_v34 = vmul.f32 1.442695, %v4908_v2  ;;  %v4699_v51 = vsub.f32 0.0, %v4559_v48 }
 0x55a   : > { %v4700_v19 = vsub.f32 0.0, %v4560_v11  ;;  %v9624_v61 = vpop.eup %9623  ;;  %v6751_v13 = vunpack.c.l.bf16 %v6671_v56  ;;  %v6752_v21 = vunpack.c.h.bf16 %v6671_v56  ;;  %v15445_v5 = vunpack.c.l.bf16 %v12672_v54  ;;  %v12764_v11 = vpop.f32.mrf.mxu1 }
 0x55b   : > { %v6539_v20 = vadd.f32 %v6399_v17, %v6259_v26  ;;  %v5760_v30 = vunpack.c.l.bf16 %v5676_v24  ;;  %v5552_v7 = vadd.f32 1.0, %v5412_v27  ;;  %v5553_v35 = vadd.f32 1.0, %v5413_v43 }
 0x55c   : > { %v6538_v55 = vadd.f32 %v6398_v63, %v15445_v5  ;;  %v12758_v22 = vpack.c.bf16 %v3432_v33, %v3373_v40  ;;  %v5761_v36 = vunpack.c.h.bf16 %v5676_v24  ;;  %v12760_v38 = vpack.c.bf16 %v4033_v46, %v4032_v47  ;;  %v392_v33 = vld [vmem:[%s10386_s25 + $0x40] sm:$0xff] }
 0x55d   : > { %v12762_v2 = vpack.c.bf16 %v4253_v9, %v4252_v60  ;;  %9625 = vpow2.f32 %v5063_v31  ;;  %v6533_v48 = vadd.f32 %v6393_v32, %v6253_v44  ;;  %v6534_v54 = vadd.f32 %v6394_v52, %v6254_v23  ;;  %v399_v32 = vld [vmem:[%s10386_s25 + $0x70] sm:$0xff] }
 0x55e   : > { %9627 = vpow2.f32 %v5065_v34  ;;  %v4827_v26 = vpack.c.bf16 %v4700_v19, %v4699_v51  ;;  %v15446_v56 = vunpack.c.l.bf16 %v12638_v3  ;;  %v12774_v46 = vpack.c.bf16 %v6539_v20, %v6538_v55 }
 0x55f   : > { %v5920_v47 = vmul.f32 0.6931472, %v9622_v50  ;;  %v5922_v60 = vmul.f32 0.6931472, %v9624_v61  ;;  %v15448_v63 = vunpack.c.h.bf16 %v12638_v3  ;;  %9629 = vlog2.f32 %v5760_v30 }
 0x560   : > { %v12772_v42 = vsub.f32 %v6751_v13, %v15446_v56  ;;  %v5683_v44 = vpack.c.bf16 %v5553_v35, %v5552_v7  ;;  %v4464_v59 = vand.u32 2147450879, %v12758_v22  ;;  %9631 = vlog2.f32 %v5761_v36 }
 0x561   : > { %v12778_v17 = vsub.f32 %v6752_v21, %v15448_v63  ;;  %v12784_v27 = vpack.c.bf16 %v6534_v54, %v6533_v48  ;;  %v3887_v3 = vunpack.c.l.bf16 %v12699_v39  ;;  %v4919_v40 = vunpack.c.l.bf16 %v4827_v26 }
 0x562   : > { %15447 = vst [vmem:[#allocation14_spill] sm:$0xff] %v12772_v42  ;;  %v6758_v50 = vunpack.c.l.bf16 %v12774_v46  ;;  %v6179_v52 = vpack.c.bf16 %v5922_v60, %v5920_v47  ;;  %v3888_v34 = vunpack.c.h.bf16 %v12699_v39  ;;  %v4920_v51 = vunpack.c.h.bf16 %v4827_v26  ;;  %v12794_v43 = vpop.f32.mrf.mxu1  ;;  %3512 = vmatmul.bf16.gmra.mxu1 %v12463_v41 }
 0x563   : > { %15449 = vst [vmem:[#allocation15_spill] sm:$0xff] %v12778_v17  ;;  %v9626_v31 = vpop.eup %9625  ;;  %v6759_v61 = vunpack.c.h.bf16 %v12774_v46  ;;  %v5772_v13 = vunpack.c.l.bf16 %v5683_v44  ;;  %v4554_v21 = vunpack.c.l.bf16 %v4464_v59  ;;  %v4555_v5 = vunpack.c.h.bf16 %v4464_v59 }
 0x564   : > { %v9628_v19 = vpop.eup %9627  ;;  %v5773_v55 = vunpack.c.h.bf16 %v5683_v44  ;;  %v3747_v20 = vunpack.c.l.bf16 %v392_v33  ;;  %v3748_v30 = vunpack.c.h.bf16 %v392_v33  ;;  %v3759_v7 = vunpack.c.l.bf16 %v399_v32 }
 0x565   : > { %v9630_v35 = vpop.eup %9629  ;;  %v6753_v36 = vunpack.c.l.bf16 %v12784_v27  ;;  %v4247_v48 = vmax.f32 %v3887_v3, 0.0  ;;  %v3760_v54 = vunpack.c.h.bf16 %v399_v32  ;;  %v5087_v56 = vmul.f32 1.442695, %v4919_v40 }
 0x566   : > { %v9632_v47 = vpop.eup %9631  ;;  %v6405_v60 = vunpack.c.l.bf16 %v6179_v52  ;;  %v4248_v39 = vmax.f32 %v3888_v34, 0.0  ;;  %v5320_v26 = vpack.c.bf16 %v9628_v19, %v9626_v31  ;;  %v5089_v63 = vmul.f32 1.442695, %v4920_v51 }
 0x567   : > { %v6406_v46 = vunpack.c.h.bf16 %v6179_v52  ;;  %9633 = vlog2.f32 %v5772_v13  ;;  %v4694_v44 = vsub.f32 0.0, %v4554_v21  ;;  %v4695_v59 = vsub.f32 0.0, %v4555_v5 }
 0x568   : > { %9635 = vlog2.f32 %v5773_v55  ;;  %v4027_v33 = vmul.f32 %v3887_v3, %v3747_v20  ;;  %v4028_v24 = vmul.f32 %v3888_v34, %v3748_v30  ;;  %v3899_v9 = vunpack.c.l.bf16 %v12603_v6  ;;  %v3326_v20 = vpop.f32.mrf.mxu2 }
 0x569   : > { %v5910_v32 = vmul.f32 0.6931472, %v9630_v35  ;;  %v5912_v40 = vmul.f32 0.6931472, %v9632_v47  ;;  %v3900_v23 = vunpack.c.h.bf16 %v12603_v6  ;;  %9637 = vpow2.f32 %v5087_v56 }
 0x56a   : > { %v12799_v31 = vpack.c.bf16 %v4248_v39, %v4247_v48  ;;  %v5407_v51 = vunpack.c.l.bf16 %v5320_v26  ;;  %v5408_v19 = vunpack.c.h.bf16 %v5320_v26  ;;  %9639 = vpow2.f32 %v5089_v63 }
 0x56b   : > { %v15450_v52 = vunpack.c.l.bf16 %v12661_v1  ;;  %v15452_v21 = vunpack.c.l.bf16 %v12711_v16  ;;  %v15453_v34 = vunpack.c.h.bf16 %v12711_v16  ;;  %v4824_v55 = vpack.c.bf16 %v4695_v59, %v4694_v44 }
 0x56c   : > { %v15454_v6 = vunpack.c.h.bf16 %v12661_v1  ;;  %v12813_v35 = vpack.c.bf16 %v4028_v24, %v4027_v33  ;;  %v3376_v48 = vadd.f32 %v12612_v58, %v12589_v15  ;;  %v15457_v47 = vunpack.c.l.bf16 %v12694_v53 }
 0x56d   : > { %v12803_v13 = vsub.f32 %v6758_v50, %v15450_v52  ;;  %v6545_v3 = vadd.f32 %v6405_v60, %v15452_v21  ;;  %v6546_v5 = vadd.f32 %v6406_v46, %v15453_v34  ;;  %v4471_v50 = vand.u32 2147450879, %v12655_v10  ;;  %v9634_v56 = vpop.eup %9633  ;;  %v3434_v52 = vpop.f32.mrf.mxu0 }
 0x56e   : > { %v12811_v30 = vsub.f32 %v6759_v61, %v15454_v6  ;;  %15456 = vst [vmem:[#allocation17_spill] sm:$0xff] %v12813_v35  ;;  %v12820_v60 = vsub.f32 %v6753_v36, %v15457_v47  ;;  %v6176_v16 = vpack.c.bf16 %v5912_v40, %v5910_v32  ;;  %v4039_v39 = vmul.f32 %v3899_v9, %v3759_v7  ;;  %v9636_v63 = vpop.eup %9635 }
 0x56f   : > { %15451 = vst [vmem:[#allocation16_spill] sm:$0xff] %v12803_v13  ;;  %v4040_v26 = vmul.f32 %v3900_v23, %v3760_v54  ;;  %v5547_v46 = vadd.f32 1.0, %v5407_v51  ;;  %v5548_v1 = vadd.f32 1.0, %v5408_v19  ;;  %v3327_v24 = vadd.f32 %v3326_v20, %v12534_v49  ;;  %v9638_v44 = vpop.eup %9637 }
 0x570   : > { %15455 = vst [vmem:[#allocation44_spill] sm:$0xff] %v12811_v30  ;;  %v6679_v59 = vpack.c.bf16 %v6546_v5, %v6545_v3  ;;  %v4914_v33 = vunpack.c.l.bf16 %v4824_v55  ;;  %v3268_v36 = vadd.f32 %v12764_v11, %v12529_v28  ;;  %v9640_v21 = vpop.eup %9639  ;;  %v4915_v54 = vunpack.c.h.bf16 %v4824_v55 }
 0x571   : > { %15458 = vst [vmem:[#allocation18_spill] sm:$0xff] %v12820_v60  ;;  %v4566_v32 = vunpack.c.l.bf16 %v4471_v50  ;;  %v4567_v40 = vunpack.c.h.bf16 %v4471_v50  ;;  %v6400_v51 = vunpack.c.l.bf16 %v6176_v16  ;;  %v6401_v19 = vunpack.c.h.bf16 %v6176_v16 }
 0x572   : > { %v12829_v20 = vpack.c.bf16 %v3327_v24, %v3268_v36  ;;  %v5934_v3 = vmul.f32 0.6931472, %v9634_v56  ;;  %v5936_v5 = vmul.f32 0.6931472, %v9636_v63  ;;  %v5680_v6 = vpack.c.bf16 %v5548_v1, %v5547_v46 }
 0x573   : > { %v3435_v47 = vadd.f32 %v3434_v52, %v12586_v29  ;;  %v6765_v58 = vunpack.c.l.bf16 %v6679_v59  ;;  %v4259_v11 = vmax.f32 %v3899_v9, 0.0  ;;  %v5327_v61 = vpack.c.bf16 %v9640_v21, %v9638_v44  ;;  %v396_v52 = vld [vmem:[%s10386_s25 + $0x5c] sm:$0xff] }
 0x574   : > { %v5077_v60 = vmul.f32 1.442695, %v4914_v33  ;;  %v4260_v7 = vmax.f32 %v3900_v23, 0.0  ;;  %v5079_v55 = vmul.f32 1.442695, %v4915_v54  ;;  %v4706_v30 = vsub.f32 0.0, %v4566_v32 }
 0x575   : > { %v4707_v50 = vsub.f32 0.0, %v4567_v40  ;;  %v6766_v17 = vunpack.c.h.bf16 %v6679_v59  ;;  %v15459_v16 = vunpack.c.l.bf16 %v12723_v62  ;;  %v15460_v24 = vunpack.c.h.bf16 %v12723_v62 }
 0x576   : > { %v3894_v63 = vunpack.c.l.bf16 %v12758_v22  ;;  %v6183_v46 = vpack.c.bf16 %v5936_v5, %v5934_v3  ;;  %v5767_v1 = vunpack.c.l.bf16 %v5680_v6  ;;  %v3895_v9 = vunpack.c.h.bf16 %v12758_v22 }
 0x577   : > { %v6540_v34 = vadd.f32 %v6400_v51, %v15459_v16  ;;  %v6541_v56 = vadd.f32 %v6401_v19, %v15460_v24  ;;  %v12839_v44 = vpack.c.bf16 %v3435_v47, %v3376_v48  ;;  %v5768_v23 = vunpack.c.h.bf16 %v5680_v6  ;;  %v7872_v19 = vpop.permute.xlu1 %7871  ;;  %v403_v16 = vld [vmem:[%s10386_s25 + $0x8c] sm:$0xff] }
 0x578   : > { %v5419_v33 = vunpack.c.l.bf16 %v5327_v61  ;;  %v5420_v36 = vunpack.c.h.bf16 %v5327_v61  ;;  %9641 = vpow2.f32 %v5077_v60  ;;  %v12841_v59 = vpack.c.bf16 %v4040_v26, %v4039_v39 }
 0x579   : > { %v12843_v21 = vpack.c.bf16 %v4260_v7, %v4259_v11  ;;  %9643 = vpow2.f32 %v5079_v55  ;;  %v4831_v62 = vpack.c.bf16 %v4707_v50, %v4706_v30  ;;  %v12845_v54 = vpack.c.bf16 %v6541_v56, %v6540_v34 }
 0x57a   : > { %v3754_v32 = vunpack.c.l.bf16 %v396_v52  ;;  %v3755_v40 = vunpack.c.h.bf16 %v396_v52  ;;  %v4254_v51 = vmax.f32 %v3894_v63, 0.0  ;;  %v6412_v3 = vunpack.c.l.bf16 %v6183_v46 }
 0x57b   : > { %9645 = vlog2.f32 %v5767_v1  ;;  %v4255_v22 = vmax.f32 %v3895_v9, 0.0  ;;  %v4468_v48 = vand.u32 2147450879, %v12839_v44  ;;  %v6413_v61 = vunpack.c.h.bf16 %v6183_v46 }
 0x57c   : > { %9647 = vlog2.f32 %v5768_v23  ;;  %v5559_v60 = vadd.f32 1.0, %v5419_v33  ;;  %v5560_v39 = vadd.f32 1.0, %v5420_v36  ;;  %v15461_v26 = vunpack.c.l.bf16 %v12714_v8 }
 0x57d   : > { %v15463_v30 = vunpack.c.h.bf16 %v12714_v8  ;;  %v4926_v6 = vunpack.c.l.bf16 %v4831_v62  ;;  %v6760_v11 = vunpack.c.l.bf16 %v12845_v54  ;;  %v4034_v50 = vmul.f32 %v3894_v63, %v3754_v32 }
 0x57e   : > { %v12850_v7 = vsub.f32 %v6765_v58, %v15461_v26  ;;  %v9642_v47 = vpop.eup %9641  ;;  %v4927_v24 = vunpack.c.h.bf16 %v4831_v62  ;;  %v4035_v46 = vmul.f32 %v3895_v9, %v3755_v40  ;;  %v12860_v1 = vpack.c.bf16 %v4255_v22, %v4254_v51 }
 0x57f   : > { %v12854_v34 = vsub.f32 %v6766_v17, %v15463_v30  ;;  %v9644_v56 = vpop.eup %9643  ;;  %v4561_v58 = vunpack.c.l.bf16 %v4468_v48  ;;  %v4562_v52 = vunpack.c.h.bf16 %v4468_v48  ;;  %v15465_v8 = vunpack.c.l.bf16 %v12762_v2 }
 0x580   : > { %15462 = vst [vmem:[#allocation19_spill] sm:$0xff] %v12850_v7  ;;  %v15466_v23 = vunpack.c.h.bf16 %v12762_v2  ;;  %v5687_v36 = vpack.c.bf16 %v5560_v39, %v5559_v60  ;;  %v3766_v32 = vunpack.c.l.bf16 %v403_v16  ;;  %v3767_v62 = vunpack.c.h.bf16 %v403_v16 }
 0x581   : > { %15464 = vst [vmem:[#allocation41_spill] sm:$0xff] %v12854_v34  ;;  %v6552_v17 = vadd.f32 %v6412_v3, %v15465_v8  ;;  %v9646_v30 = vpop.eup %9645  ;;  %v5101_v9 = vmul.f32 1.442695, %v4926_v6  ;;  %v15467_v51 = vunpack.c.l.bf16 %v12728_v0  ;;  %v5324_v48 = vpack.c.bf16 %v9644_v56, %v9642_v47  ;;  %v7878_v47 = vpop.permute.xlu1 %7877 }
 0x582   : > { %v6553_v33 = vadd.f32 %v6413_v61, %v15466_v23  ;;  %v9648_v40 = vpop.eup %9647  ;;  %v5103_v3 = vmul.f32 1.442695, %v4927_v24  ;;  %v12874_v2 = vadd.f32 %v12627_v57, %v12589_v15  ;;  %v7876_v61 = vpop.permute.xlu0 %7875  ;;  %v12876_v60 = vpack.c.bf16 %v4035_v46, %v4034_v50 }
 0x583   : > { %v12870_v22 = vsub.f32 %v6760_v11, %v15467_v51  ;;  %v4701_v8 = vsub.f32 0.0, %v4561_v58  ;;  %v4702_v16 = vsub.f32 0.0, %v4562_v52  ;;  %v5779_v6 = vunpack.c.l.bf16 %v5687_v36  ;;  %v400_v51 = vld [vmem:[%s10386_s25 + $0x78] sm:$0xff]  ;;  %v3436_v46 = vpop.f32.mrf.mxu0 }
 0x584   : > { %15469 = vst [vmem:[#allocation21_spill] sm:$0xff] %v12876_v60  ;;  %v6683_v23 = vpack.c.bf16 %v6553_v33, %v6552_v17  ;;  %v3906_v55 = vunpack.c.l.bf16 %v12655_v10  ;;  %v3907_v11 = vunpack.c.h.bf16 %v12655_v10  ;;  %v5924_v24 = vmul.f32 0.6931472, %v9646_v30 }
 0x585   : > { %15468 = vst [vmem:[#allocation20_spill] sm:$0xff] %v12870_v22  ;;  %v5926_v56 = vmul.f32 0.6931472, %v9648_v40  ;;  %v5780_v5 = vunpack.c.h.bf16 %v5687_v36  ;;  %9649 = vpow2.f32 %v5101_v9  ;;  %v5414_v57 = vunpack.c.l.bf16 %v5324_v48 }
 0x586   : > { %v5415_v63 = vunpack.c.h.bf16 %v5324_v48  ;;  %9651 = vpow2.f32 %v5103_v3  ;;  %v7936_v50 = vsel %vm2746_vm2, %v7872_v19, 0.0  ;;  %v3761_v52 = vunpack.c.l.bf16 %v400_v51 }
 0x587   : > { %v4828_v17 = vpack.c.bf16 %v4702_v16, %v4701_v8  ;;  %7937 = vadd.xlane.f32.xlu2 %v7936_v50  ;;  %v6772_v33 = vunpack.c.l.bf16 %v6683_v23  ;;  %v6773_v10 = vunpack.c.h.bf16 %v6683_v23  ;;  %9653 = vlog2.f32 %v5779_v6 }
 0x588   : > { %v7942_v30 = vsel %vm2746_vm2, %v7876_v61, 0.0  ;;  %v6180_v40 = vpack.c.bf16 %v5926_v56, %v5924_v24  ;;  %9655 = vlog2.f32 %v5780_v5  ;;  %v4046_v36 = vmul.f32 %v3906_v55, %v3766_v32 }
 0x589   : > { %v4047_v9 = vmul.f32 %v3907_v11, %v3767_v62  ;;  %7943 = vadd.xlane.f32.xlu0 %v7942_v30  ;;  %v5554_v48 = vadd.f32 1.0, %v5414_v57  ;;  %v5555_v3 = vadd.f32 1.0, %v5415_v63  ;;  %v4266_v19 = vmax.f32 %v3906_v55, 0.0  ;;  %v7884_v5 = vpop.permute.xlu1 %7883 }
 0x58a   : > { %v4267_v39 = vmax.f32 %v3907_v11, 0.0  ;;  %v3762_v58 = vunpack.c.h.bf16 %v400_v51  ;;  %v3901_v8 = vunpack.c.l.bf16 %v12839_v44  ;;  %v3902_v16 = vunpack.c.h.bf16 %v12839_v44  ;;  %v7882_v55 = vpop.permute.xlu0 %7881 }
 0x58b   : > { %v9650_v26 = vpop.eup %9649  ;;  %v4921_v23 = vunpack.c.l.bf16 %v4828_v17  ;;  %v15470_v61 = vunpack.c.l.bf16 %v12760_v38  ;;  %v4922_v32 = vunpack.c.h.bf16 %v4828_v17  ;;  %v4475_v63 = vand.u32 2147450879, %v12689_v12 }
 0x58c   : > { %v9652_v6 = vpop.eup %9651  ;;  %v15472_v62 = vunpack.c.h.bf16 %v12760_v38  ;;  %v6407_v51 = vunpack.c.l.bf16 %v6180_v40  ;;  %v6408_v56 = vunpack.c.h.bf16 %v6180_v40  ;;  %v3437_v44 = vadd.f32 %v3436_v46, %v12586_v29 }
 0x58d   : > { %v12890_v24 = vsub.f32 %v6772_v33, %v15470_v61  ;;  %v9654_v57 = vpop.eup %9653  ;;  %v5684_v50 = vpack.c.bf16 %v5555_v3, %v5554_v48  ;;  %v12899_v30 = vpack.c.bf16 %v4047_v9, %v4046_v36  ;;  %v12901_v33 = vpack.c.bf16 %v4267_v39, %v4266_v19 }
 0x58e   : > { %v12896_v11 = vsub.f32 %v6773_v10, %v15472_v62  ;;  %v7945_v61 = vsel %vm2746_vm2, %v7878_v47, 0.0  ;;  %v9656_v17 = vpop.eup %9655  ;;  %v5331_v34 = vpack.c.bf16 %v9652_v6, %v9650_v26  ;;  %v4042_v7 = vmul.f32 %v3902_v16, %v3762_v58 }
 0x58f   : > { %15471 = vst [vmem:[#allocation22_spill] sm:$0xff] %v12890_v24  ;;  %v4041_v24 = vmul.f32 %v3901_v8, %v3761_v52  ;;  %v5091_v38 = vmul.f32 1.442695, %v4921_v23  ;;  %7946 = vadd.xlane.f32.xlu2 %v7945_v61  ;;  %v5093_v10 = vmul.f32 1.442695, %v4922_v32  ;;  %v4573_v62 = vunpack.c.l.bf16 %v4475_v63 }
 0x590   : > { %15473 = vst [vmem:[#allocation23_spill] sm:$0xff] %v12896_v11  ;;  %v4574_v40 = vunpack.c.h.bf16 %v4475_v63  ;;  %v7951_v46 = vsel %vm2746_vm2, %v7882_v55, 0.0  ;;  %v15474_v48 = vunpack.c.l.bf16 %v12799_v31  ;;  %v15475_v39 = vunpack.c.h.bf16 %v12799_v31 }
 0x591   : > { %v4261_v3 = vmax.f32 %v3901_v8, 0.0  ;;  %v12910_v47 = vpack.c.bf16 %v3437_v44, %v12874_v2  ;;  %7952 = vadd.xlane.f32.xlu0 %v7951_v46  ;;  %v5948_v26 = vmul.f32 0.6931472, %v9654_v57  ;;  %v5950_v58 = vmul.f32 0.6931472, %v9656_v17 }
 0x592   : > { %v6547_v36 = vadd.f32 %v6407_v51, %v15474_v48  ;;  %v6548_v9 = vadd.f32 %v6408_v56, %v15475_v39  ;;  %v5774_v52 = vunpack.c.l.bf16 %v5684_v50  ;;  %v4262_v19 = vmax.f32 %v3902_v16, 0.0  ;;  %v407_v56 = vld [vmem:[%s10386_s25 + $0xa8] sm:$0xff] }
 0x593   : > { %v5775_v23 = vunpack.c.h.bf16 %v5684_v50  ;;  %v5426_v6 = vunpack.c.l.bf16 %v5331_v34  ;;  %v5427_v32 = vunpack.c.h.bf16 %v5331_v34  ;;  %9657 = vpow2.f32 %v5091_v38 }
 0x594   : > { %9659 = vpow2.f32 %v5093_v10  ;;  %v4713_v55 = vsub.f32 0.0, %v4573_v62  ;;  %v4714_v31 = vsub.f32 0.0, %v4574_v40  ;;  %v12913_v51 = vpack.c.bf16 %v6548_v9, %v6547_v36  ;;  %v7890_v40 = vpop.permute.xlu1 %7889 }
 0x595   : > { %v12916_v8 = vpack.c.bf16 %v4042_v7, %v4041_v24  ;;  %v4472_v44 = vand.u32 2147450879, %v12910_v47  ;;  %9661 = vlog2.f32 %v5774_v52  ;;  %v12921_v57 = vpack.c.bf16 %v4262_v19, %v4261_v3  ;;  %v7888_v19 = vpop.permute.xlu0 %7887 }
 0x596   : > { %15476 = vst [vmem:[#allocation24_spill] sm:$0xff] %v12913_v51  ;;  %v7954_v34 = vsel %vm2746_vm2, %v7884_v5, 0.0  ;;  %v6187_v50 = vpack.c.bf16 %v5950_v58, %v5948_v26  ;;  %9663 = vlog2.f32 %v5775_v23  ;;  %v5566_v61 = vadd.f32 1.0, %v5426_v6  ;;  %v3439_v5 = vpop.f32.mrf.mxu0 }
 0x597   : > { %15477 = vst [vmem:[#allocation25_spill] sm:$0xff] %v12916_v8  ;;  %v5567_v17 = vadd.f32 1.0, %v5427_v32  ;;  %7955 = vadd.xlane.f32.xlu2 %v7954_v34  ;;  %v3773_v10 = vunpack.c.l.bf16 %v407_v56  ;;  %v3913_v7 = vunpack.c.l.bf16 %v12689_v12  ;;  %v4835_v24 = vpack.c.bf16 %v4714_v31, %v4713_v55 }
 0x598   : > { %v6767_v46 = vunpack.c.l.bf16 %v12913_v51  ;;  %v4568_v36 = vunpack.c.l.bf16 %v4472_v44  ;;  %v4569_v39 = vunpack.c.h.bf16 %v4472_v44  ;;  %v3774_v58 = vunpack.c.h.bf16 %v407_v56 }
 0x599   : > { %v9658_v62 = vpop.eup %9657  ;;  %v4479_v52 = vand.u32 2147450879, %v12752_v18  ;;  %v6419_v23 = vunpack.c.l.bf16 %v6187_v50  ;;  %v6420_v6 = vunpack.c.h.bf16 %v6187_v50  ;;  %v5691_v32 = vpack.c.bf16 %v5567_v17, %v5566_v61 }
 0x59a   : > { %v9660_v9 = vpop.eup %9659  ;;  %v3914_v55 = vunpack.c.h.bf16 %v12689_v12  ;;  %v4053_v34 = vmul.f32 %v3913_v7, %v3773_v10  ;;  %v4933_v48 = vunpack.c.l.bf16 %v4835_v24  ;;  %v3381_v44 = vadd.f32 %v12676_v4, %v12589_v15 }
 0x59b   : > { %v9662_v31 = vpop.eup %9661  ;;  %v3440_v2 = vadd.f32 %v3439_v5, %v12586_v29  ;;  %v5328_v3 = vpack.c.bf16 %v9660_v9, %v9658_v62  ;;  %v4934_v26 = vunpack.c.h.bf16 %v4835_v24  ;;  %v4708_v56 = vsub.f32 0.0, %v4568_v36 }
 0x59c   : > { %v9664_v63 = vpop.eup %9663  ;;  %v4709_v38 = vsub.f32 0.0, %v4569_v39  ;;  %v4580_v16 = vunpack.c.l.bf16 %v4479_v52  ;;  %v4581_v11 = vunpack.c.h.bf16 %v4479_v52  ;;  %v7963_v50 = vsel %vm2746_vm2, %v7890_v40, 0.0 }
 0x59d   : > { %v7960_v61 = vsel %vm2746_vm2, %v7888_v19, 0.0  ;;  %v15478_v12 = vunpack.c.l.bf16 %v12843_v21  ;;  %v15479_v10 = vunpack.c.h.bf16 %v12843_v21  ;;  %v5786_v4 = vunpack.c.l.bf16 %v5691_v32 }
 0x59e   : > { %v4054_v22 = vmul.f32 %v3914_v55, %v3774_v58  ;;  %7961 = vadd.xlane.f32.xlu0 %v7960_v61  ;;  %v5938_v62 = vmul.f32 0.6931472, %v9662_v31  ;;  %v5940_v24 = vmul.f32 0.6931472, %v9664_v63  ;;  %v5115_v36 = vmul.f32 1.442695, %v4933_v48 }
 0x59f   : > { %v6559_v17 = vadd.f32 %v6419_v23, %v15478_v12  ;;  %v6560_v51 = vadd.f32 %v6420_v6, %v15479_v10  ;;  %7964 = vadd.xlane.f32.xlu2 %v7963_v50  ;;  %v12941_v39 = vpack.c.bf16 %v3440_v2, %v3381_v44  ;;  %v5421_v5 = vunpack.c.l.bf16 %v5328_v3  ;;  %v7896_v12 = vpop.permute.xlu1 %7895 }
 0x5a0   : > { %v5422_v9 = vunpack.c.h.bf16 %v5328_v3  ;;  %v5117_v40 = vmul.f32 1.442695, %v4934_v26  ;;  %v4832_v52 = vpack.c.bf16 %v4709_v38, %v4708_v56  ;;  %v15480_v19 = vunpack.c.l.bf16 %v12813_v35 }
 0x5a1   : > { %v5787_v23 = vunpack.c.h.bf16 %v5691_v32  ;;  %v4720_v21 = vsub.f32 0.0, %v4580_v16  ;;  %v4721_v6 = vsub.f32 0.0, %v4581_v11  ;;  %v12947_v58 = vpack.c.bf16 %v6560_v51, %v6559_v17  ;;  %v3441_v32 = vpop.f32.mrf.mxu0 }
 0x5a2   : > { %v12945_v53 = vsub.f32 %v6767_v46, %v15480_v19  ;;  %9665 = vlog2.f32 %v5786_v4  ;;  %v12949_v31 = vpack.c.bf16 %v4054_v22, %v4053_v34  ;;  %v4273_v63 = vmax.f32 %v3913_v7, 0.0 }
 0x5a3   : > { %v6184_v2 = vpack.c.bf16 %v5940_v24, %v5938_v62  ;;  %v4274_v48 = vmax.f32 %v3914_v55, 0.0  ;;  %9667 = vpow2.f32 %v5115_v36  ;;  %v4476_v38 = vand.u32 2147450879, %v12941_v39  ;;  %v404_v55 = vld [vmem:[%s10386_s25 + $0x94] sm:$0xff] }
 0x5a4   : > { %15481 = vst [vmem:[#allocation26_spill] sm:$0xff] %v12945_v53  ;;  %v5561_v3 = vadd.f32 1.0, %v5421_v5  ;;  %v5562_v26 = vadd.f32 1.0, %v5422_v9  ;;  %9669 = vpow2.f32 %v5117_v40  ;;  %v4928_v46 = vunpack.c.l.bf16 %v4832_v52 }
 0x5a5   : > { %9671 = vlog2.f32 %v5787_v23  ;;  %v4929_v16 = vunpack.c.h.bf16 %v4832_v52  ;;  %v4839_v11 = vpack.c.bf16 %v4721_v6, %v4720_v21  ;;  %v7972_v51 = vsel %vm2746_vm2, %v7896_v12, 0.0 }
 0x5a6   : > { %v6779_v22 = vunpack.c.l.bf16 %v12947_v58  ;;  %v4483_v44 = vand.u32 2147450879, %v12829_v20  ;;  %v6780_v56 = vunpack.c.h.bf16 %v12947_v58  ;;  %v6414_v50 = vunpack.c.l.bf16 %v6184_v2 }
 0x5a7   : > { %7973 = vadd.xlane.f32.xlu2 %v7972_v51  ;;  %v4575_v61 = vunpack.c.l.bf16 %v4476_v38  ;;  %v4576_v17 = vunpack.c.h.bf16 %v4476_v38  ;;  %v6415_v4 = vunpack.c.h.bf16 %v6184_v2  ;;  %v5688_v62 = vpack.c.bf16 %v5562_v26, %v5561_v3  ;;  %v12966_v51 = vpop.f32.mrf.mxu2  ;;  %3571 = vmatmul.bf16.gmra.mxu2 %v12463_v41 }
 0x5a8   : > { %v9666_v10 = vpop.eup %9665  ;;  %v5105_v24 = vmul.f32 1.442695, %v4928_v46  ;;  %v3442_v36 = vadd.f32 %v3441_v32, %v12586_v29  ;;  %v12960_v9 = vpack.c.bf16 %v4274_v48, %v4273_v63  ;;  %v3768_v40 = vunpack.c.l.bf16 %v404_v55 }
 0x5a9   : > { %v9668_v5 = vpop.eup %9667  ;;  %v5107_v52 = vmul.f32 1.442695, %v4929_v16  ;;  %v4940_v19 = vunpack.c.l.bf16 %v4839_v11  ;;  %v4941_v21 = vunpack.c.h.bf16 %v4839_v11  ;;  %v3383_v6 = vadd.f32 %v12707_v45, %v12589_v15 }
 0x5aa   : > { %v9670_v23 = vpop.eup %9669  ;;  %v4587_v12 = vunpack.c.l.bf16 %v4483_v44  ;;  %v4588_v58 = vunpack.c.h.bf16 %v4483_v44  ;;  %v15482_v2 = vunpack.c.l.bf16 %v12860_v1  ;;  %v3769_v26 = vunpack.c.h.bf16 %v404_v55 }
 0x5ab   : > { %v9672_v38 = vpop.eup %9671  ;;  %v4715_v46 = vsub.f32 0.0, %v4575_v61  ;;  %v4716_v32 = vsub.f32 0.0, %v4576_v17  ;;  %v15483_v63 = vunpack.c.h.bf16 %v12860_v1  ;;  %v5781_v16 = vunpack.c.l.bf16 %v5688_v62 }
 0x5ac   : > { %v6554_v3 = vadd.f32 %v6414_v50, %v15482_v2  ;;  %9673 = vpow2.f32 %v5105_v24  ;;  %v12971_v11 = vpack.c.bf16 %v3442_v36, %v3383_v6  ;;  %v5962_v45 = vmul.f32 0.6931472, %v9666_v10 }
 0x5ad   : > { %v6555_v48 = vadd.f32 %v6415_v4, %v15483_v63  ;;  %v5335_v44 = vpack.c.bf16 %v9670_v23, %v9668_v5  ;;  %9675 = vpow2.f32 %v5107_v52  ;;  %v5129_v34 = vmul.f32 1.442695, %v4940_v19 }
 0x5ae   : > { %v5964_v7 = vmul.f32 0.6931472, %v9672_v38  ;;  %v5131_v50 = vmul.f32 1.442695, %v4941_v21  ;;  %v4727_v55 = vsub.f32 0.0, %v4587_v12  ;;  %v4728_v61 = vsub.f32 0.0, %v4588_v58  ;;  %v12987_v38 = vpop.f32.mrf.mxu3 }
 0x5af   : > { %v5782_v17 = vunpack.c.h.bf16 %v5688_v62  ;;  %v3908_v2 = vunpack.c.l.bf16 %v12910_v47  ;;  %v3909_v53 = vunpack.c.h.bf16 %v12910_v47  ;;  %v4836_v35 = vpack.c.bf16 %v4716_v32, %v4715_v46 }
 0x5b0   : > { %v15484_v1 = vunpack.c.l.bf16 %v12841_v59  ;;  %v12979_v24 = vpack.c.bf16 %v6555_v48, %v6554_v3  ;;  %9677 = vlog2.f32 %v5781_v16  ;;  %v4480_v10 = vand.u32 2147450879, %v12971_v11 }
 0x5b1   : > { %v15487_v36 = vunpack.c.h.bf16 %v12841_v59  ;;  %v5433_v52 = vunpack.c.l.bf16 %v5335_v44  ;;  %v5434_v62 = vunpack.c.h.bf16 %v5335_v44  ;;  %9679 = vpow2.f32 %v5129_v34 }
 0x5b2   : > { %v12977_v4 = vsub.f32 %v6779_v22, %v15484_v1  ;;  %15486 = vst [vmem:[#allocation28_spill] sm:$0xff] %v12979_v24  ;;  %v9674_v19 = vpop.eup %9673  ;;  %v6191_v23 = vpack.c.bf16 %v5964_v7, %v5962_v45  ;;  %9681 = vpow2.f32 %v5131_v50  ;;  %v4843_v21 = vpack.c.bf16 %v4728_v61, %v4727_v55 }
 0x5b3   : > { %v12984_v5 = vsub.f32 %v6780_v56, %v15487_v36  ;;  %v9676_v22 = vpop.eup %9675  ;;  %9683 = vlog2.f32 %v5782_v17  ;;  %v4048_v6 = vmul.f32 %v3908_v2, %v3768_v40  ;;  %v4049_v12 = vmul.f32 %v3909_v53, %v3769_v26  ;;  %v12992_v40 = vld [vmem:[%s10386_s25 + $0xc4] sm:$0xff] }
 0x5b4   : > { %15485 = vst [vmem:[#allocation27_spill] sm:$0xff] %v12977_v4  ;;  %v4935_v58 = vunpack.c.l.bf16 %v4836_v35  ;;  %v6774_v59 = vunpack.c.l.bf16 %v12979_v24  ;;  %v4936_v56 = vunpack.c.h.bf16 %v4836_v35  ;;  %v4582_v3 = vunpack.c.l.bf16 %v4480_v10 }
 0x5b5   : > { %15488 = vst [vmem:[#allocation29_spill] sm:$0xff] %v12984_v5  ;;  %v4583_v46 = vunpack.c.h.bf16 %v4480_v10  ;;  %v5573_v34 = vadd.f32 1.0, %v5433_v52  ;;  %v5574_v32 = vadd.f32 1.0, %v5434_v62  ;;  %v4268_v7 = vmax.f32 %v3908_v2, 0.0 }
 0x5b6   : > { %v4269_v63 = vmax.f32 %v3909_v53, 0.0  ;;  %v9678_v48 = vpop.eup %9677  ;;  %v6426_v16 = vunpack.c.l.bf16 %v6191_v23  ;;  %v5332_v44 = vpack.c.bf16 %v9676_v22, %v9674_v19  ;;  %v4947_v26 = vunpack.c.l.bf16 %v4843_v21 }
 0x5b7   : > { %v9680_v50 = vpop.eup %9679  ;;  %v6427_v55 = vunpack.c.h.bf16 %v6191_v23  ;;  %v5119_v17 = vmul.f32 1.442695, %v4935_v58  ;;  %v4948_v35 = vunpack.c.h.bf16 %v4843_v21  ;;  %v15489_v10 = vunpack.c.l.bf16 %v12876_v60 }
 0x5b8   : > { %v9682_v1 = vpop.eup %9681  ;;  %v5121_v53 = vmul.f32 1.442695, %v4936_v56  ;;  %v4722_v2 = vsub.f32 0.0, %v4582_v3  ;;  %v4723_v52 = vsub.f32 0.0, %v4583_v46  ;;  %v5695_v45 = vpack.c.bf16 %v5574_v32, %v5573_v34 }
 0x5b9   : > { %v12997_v36 = vsub.f32 %v6774_v59, %v15489_v10  ;;  %v9684_v62 = vpop.eup %9683  ;;  %v12999_v19 = vpack.c.bf16 %v4049_v12, %v4048_v6  ;;  %v13001_v22 = vpack.c.bf16 %v4269_v63, %v4268_v7  ;;  %v3780_v23 = vunpack.c.l.bf16 %v12992_v40 }
 0x5ba   : > { %v15491_v61 = vunpack.c.l.bf16 %v12901_v33  ;;  %v5428_v21 = vunpack.c.l.bf16 %v5332_v44  ;;  %v5429_v47 = vunpack.c.h.bf16 %v5332_v44  ;;  %v5143_v5 = vmul.f32 1.442695, %v4947_v26 }
 0x5bb   : > { %15490 = vst [vmem:[#allocation30_spill] sm:$0xff] %v12997_v36  ;;  %v15492_v59 = vunpack.c.h.bf16 %v12901_v33  ;;  %v5339_v56 = vpack.c.bf16 %v9682_v1, %v9680_v50  ;;  %9685 = vpow2.f32 %v5119_v17  ;;  %v5145_v3 = vmul.f32 1.442695, %v4948_v35 }
 0x5bc   : > { %v6566_v58 = vadd.f32 %v6426_v16, %v15491_v61  ;;  %v5952_v46 = vmul.f32 0.6931472, %v9678_v48  ;;  %v5954_v34 = vmul.f32 0.6931472, %v9684_v62  ;;  %9687 = vpow2.f32 %v5121_v53  ;;  %v13010_v16 = vpop.f32.mrf.mxu3  ;;  %3630 = vmatmul.bf16.gmra.mxu3 %v12463_v41 }
 0x5bd   : > { %v6567_v10 = vadd.f32 %v6427_v55, %v15492_v59  ;;  %v4840_v6 = vpack.c.bf16 %v4723_v52, %v4722_v2  ;;  %v5793_v12 = vunpack.c.l.bf16 %v5695_v45  ;;  %v5794_v32 = vunpack.c.h.bf16 %v5695_v45  ;;  %v3272_v45 = vpop.f32.mrf.mxu1 }
 0x5be   : > { %v5568_v44 = vadd.f32 1.0, %v5428_v21  ;;  %v5569_v33 = vadd.f32 1.0, %v5429_v47  ;;  %9689 = vpow2.f32 %v5143_v5  ;;  %v3329_v26 = vadd.f32 %v12966_v51, %v12534_v49 }
 0x5bf   : > { %v3920_v48 = vunpack.c.l.bf16 %v12752_v18  ;;  %v5440_v50 = vunpack.c.l.bf16 %v5339_v56  ;;  %v5441_v55 = vunpack.c.h.bf16 %v5339_v56  ;;  %9691 = vpow2.f32 %v5145_v3 }
 0x5c0   : > { %v13016_v61 = vpack.c.bf16 %v6567_v10, %v6566_v58  ;;  %v6188_v17 = vpack.c.bf16 %v5954_v34, %v5952_v46  ;;  %v3270_v35 = vadd.f32 %v12794_v43, %v12529_v28  ;;  %v4942_v1 = vunpack.c.l.bf16 %v4840_v6  ;;  %v13029_v46 = vld [vmem:[%s10386_s25 + $0xb0] sm:$0xff] }
 0x5c1   : > { %v9686_v41 = vpop.eup %9685  ;;  %9693 = vlog2.f32 %v5793_v12  ;;  %v3781_v5 = vunpack.c.h.bf16 %v12992_v40  ;;  %v3921_v51 = vunpack.c.h.bf16 %v12752_v18  ;;  %v4943_v47 = vunpack.c.h.bf16 %v4840_v6 }
 0x5c2   : > { %v9688_v53 = vpop.eup %9687  ;;  %9695 = vlog2.f32 %v5794_v32  ;;  %v5692_v2 = vpack.c.bf16 %v5569_v33, %v5568_v44  ;;  %v13023_v62 = vpack.c.bf16 %v3329_v26, %v3270_v35  ;;  %v13025_v58 = vmul.f32 %v3920_v48, %v3780_v23  ;;  %v3331_v33 = vpop.f32.mrf.mxu2 }
 0x5c3   : > { %v4280_v21 = vmax.f32 %v3920_v48, 0.0  ;;  %v5580_v43 = vadd.f32 1.0, %v5440_v50  ;;  %v5581_v59 = vadd.f32 1.0, %v5441_v55  ;;  %v6786_v56 = vunpack.c.l.bf16 %v13016_v61 }
 0x5c4   : > { %v9690_v10 = vpop.eup %9689  ;;  %v6421_v40 = vunpack.c.l.bf16 %v6188_v17  ;;  %v6422_v3 = vunpack.c.h.bf16 %v6188_v17  ;;  %v5133_v18 = vmul.f32 1.442695, %v4942_v1  ;;  %v6787_v6 = vunpack.c.h.bf16 %v13016_v61  ;;  %v13032_v23 = vpop.f32.mrf.mxu3 }
 0x5c5   : > { %v9692_v34 = vpop.eup %9691  ;;  %v4061_v12 = vmul.f32 %v3921_v51, %v3781_v5  ;;  %v5336_v32 = vpack.c.bf16 %v9688_v53, %v9686_v41  ;;  %v5135_v44 = vmul.f32 1.442695, %v4943_v47  ;;  %v5788_v26 = vunpack.c.l.bf16 %v5692_v2  ;;  %v13038_v61 = vpop.f32.mrf.mxu1  ;;  %3517 = vmatmul.bf16.gmra.mxu1 %v12487_v37 }
 0x5c6   : > { %v4281_v48 = vmax.f32 %v3921_v51, 0.0  ;;  %v4487_v50 = vand.u32 2147450879, %v13023_v62  ;;  %v3332_v55 = vadd.f32 %v3331_v33, %v12534_v49  ;;  %v5789_v17 = vunpack.c.h.bf16 %v5692_v2 }
 0x5c7   : > { %v9694_v35 = vpop.eup %9693  ;;  %v5699_v63 = vpack.c.bf16 %v5581_v59, %v5580_v43  ;;  %v3775_v1 = vunpack.c.l.bf16 %v13029_v46  ;;  %v3273_v7 = vadd.f32 %v3272_v45, %v12529_v28  ;;  %v15493_v5 = vunpack.c.l.bf16 %v12921_v57 }
 0x5c8   : > { %v9696_v41 = vpop.eup %9695  ;;  %v15494_v51 = vunpack.c.h.bf16 %v12921_v57  ;;  %v5343_v52 = vpack.c.bf16 %v9692_v34, %v9690_v10  ;;  %9697 = vpow2.f32 %v5133_v18  ;;  %v5435_v33 = vunpack.c.l.bf16 %v5336_v32 }
 0x5c9   : > { %v6561_v47 = vadd.f32 %v6421_v40, %v15493_v5  ;;  %v5436_v2 = vunpack.c.h.bf16 %v5336_v32  ;;  %9699 = vpow2.f32 %v5135_v44  ;;  %v13045_v43 = vpack.c.bf16 %v3332_v55, %v3273_v7 }
 0x5ca   : > { %v6562_v53 = vadd.f32 %v6422_v3, %v15494_v51  ;;  %9701 = vlog2.f32 %v5788_v26  ;;  %v3776_v45 = vunpack.c.h.bf16 %v13029_v46  ;;  %v4594_v59 = vunpack.c.l.bf16 %v4487_v50  ;;  %v13052_v44 = vpop.f32.mrf.mxu2  ;;  %3576 = vmatmul.bf16.gmra.mxu2 %v12487_v37 }
 0x5cb   : > { %v4595_v4 = vunpack.c.h.bf16 %v4487_v50  ;;  %v5976_v36 = vmul.f32 0.6931472, %v9694_v35  ;;  %v5978_v60 = vmul.f32 0.6931472, %v9696_v41  ;;  %9703 = vlog2.f32 %v5789_v17 }
 0x5cc   : > { %v5800_v24 = vunpack.c.l.bf16 %v5699_v63  ;;  %v5801_v40 = vunpack.c.h.bf16 %v5699_v63  ;;  %v3915_v57 = vunpack.c.l.bf16 %v12941_v39  ;;  %v5447_v3 = vunpack.c.l.bf16 %v5343_v52  ;;  %v13054_v46 = vpop.f32.mrf.mxu3  ;;  %3635 = vmatmul.bf16.gmra.mxu3 %v12487_v37 }
 0x5cd   : > { %v5448_v10 = vunpack.c.h.bf16 %v5343_v52  ;;  %v13049_v18 = vpack.c.bf16 %v6562_v53, %v6561_v47  ;;  %v3916_v34 = vunpack.c.h.bf16 %v12941_v39  ;;  %v5575_v7 = vadd.f32 1.0, %v5435_v33 }
 0x5ce   : > { %v5576_v32 = vadd.f32 1.0, %v5436_v2  ;;  %v9698_v26 = vpop.eup %9697  ;;  %v13059_v50 = vpack.c.bf16 %v4281_v48, %v4280_v21  ;;  %v4734_v52 = vsub.f32 0.0, %v4594_v59  ;;  %v4735_v55 = vsub.f32 0.0, %v4595_v4 }
 0x5cf   : > { %15495 = vst [vmem:[#allocation31_spill] sm:$0xff] %v13049_v18  ;;  %v9700_v35 = vpop.eup %9699  ;;  %v15496_v39 = vunpack.c.l.bf16 %v12899_v30  ;;  %v6195_v41 = vpack.c.bf16 %v5978_v60, %v5976_v36  ;;  %v13066_v5 = vpack.c.bf16 %v4061_v12, %v13025_v58  ;;  %9705 = vlog2.f32 %v5800_v24 }
 0x5d0   : > { %v9702_v47 = vpop.eup %9701  ;;  %v15498_v37 = vunpack.c.h.bf16 %v12899_v30  ;;  %9707 = vlog2.f32 %v5801_v40  ;;  %v5587_v21 = vadd.f32 1.0, %v5447_v3  ;;  %v5588_v48 = vadd.f32 1.0, %v5448_v10 }
 0x5d1   : > { %v13063_v17 = vsub.f32 %v6786_v56, %v15496_v39  ;;  %v9704_v53 = vpop.eup %9703  ;;  %v6781_v4 = vunpack.c.l.bf16 %v13049_v18  ;;  %v4055_v33 = vmul.f32 %v3915_v57, %v3775_v1  ;;  %v4056_v56 = vmul.f32 %v3916_v34, %v3776_v45  ;;  %v13078_v39 = vld [vmem:[%s10386_s25 + $0xe0] sm:$0xff] }
 0x5d2   : > { %v13070_v51 = vsub.f32 %v6787_v6, %v15498_v37  ;;  %v5696_v2 = vpack.c.bf16 %v5576_v32, %v5575_v7  ;;  %v5340_v24 = vpack.c.bf16 %v9700_v35, %v9698_v26  ;;  %v4847_v58 = vpack.c.bf16 %v4735_v55, %v4734_v52 }
 0x5d3   : > { %15497 = vst [vmem:[#allocation32_spill] sm:$0xff] %v13063_v17  ;;  %v6433_v12 = vunpack.c.l.bf16 %v6195_v41  ;;  %v6434_v30 = vunpack.c.h.bf16 %v6195_v41  ;;  %v5966_v40 = vmul.f32 0.6931472, %v9702_v47  ;;  %v5968_v3 = vmul.f32 0.6931472, %v9704_v53  ;;  %v3444_v47 = vpop.f32.mrf.mxu0 }
 0x5d4   : > { %15499 = vst [vmem:[#allocation33_spill] sm:$0xff] %v13070_v51  ;;  %v4275_v10 = vmax.f32 %v3915_v57, 0.0  ;;  %v5703_v1 = vpack.c.bf16 %v5588_v48, %v5587_v21  ;;  %v15500_v7 = vunpack.c.l.bf16 %v12916_v8  ;;  %v13084_v37 = vpack.c.bf16 %v4056_v56, %v4055_v33 }
 0x5d5   : > { %v9706_v45 = vpop.eup %9705  ;;  %v4276_v26 = vmax.f32 %v3916_v34, 0.0  ;;  %v5795_v52 = vunpack.c.l.bf16 %v5696_v2  ;;  %v5796_v35 = vunpack.c.h.bf16 %v5696_v2  ;;  %v5442_v41 = vunpack.c.l.bf16 %v5340_v24 }
 0x5d6   : > { %v13082_v32 = vsub.f32 %v6781_v4, %v15500_v7  ;;  %15502 = vst [vmem:[#allocation35_spill] sm:$0xff] %v13084_v37  ;;  %v9708_v55 = vpop.eup %9707  ;;  %v5443_v6 = vunpack.c.h.bf16 %v5340_v24  ;;  %v4954_v59 = vunpack.c.l.bf16 %v4847_v58  ;;  %v15503_v57 = vunpack.c.l.bf16 %v12960_v9 }
 0x5d7   : > { %v15504_v21 = vunpack.c.h.bf16 %v12960_v9  ;;  %v3787_v36 = vunpack.c.l.bf16 %v13078_v39  ;;  %v4955_v4 = vunpack.c.h.bf16 %v4847_v58  ;;  %v6192_v7 = vpack.c.bf16 %v5968_v3, %v5966_v40 }
 0x5d8   : > { %15501 = vst [vmem:[#allocation34_spill] sm:$0xff] %v13082_v32  ;;  %v6573_v53 = vadd.f32 %v6433_v12, %v15503_v57  ;;  %v5990_v33 = vmul.f32 0.6931472, %v9706_v45  ;;  %v3927_v34 = vunpack.c.l.bf16 %v12829_v20  ;;  %v5807_v56 = vunpack.c.l.bf16 %v5703_v1 }
 0x5d9   : > { %v6574_v48 = vadd.f32 %v6434_v30, %v15504_v21  ;;  %v5992_v60 = vmul.f32 0.6931472, %v9708_v55  ;;  %9709 = vlog2.f32 %v5795_v52  ;;  %v5808_v2 = vunpack.c.h.bf16 %v5703_v1 }
 0x5da   : > { %v3445_v24 = vadd.f32 %v3444_v47, %v12586_v29  ;;  %9711 = vlog2.f32 %v5796_v35  ;;  %v5582_v63 = vadd.f32 1.0, %v5442_v41  ;;  %v5583_v32 = vadd.f32 1.0, %v5443_v6 }
 0x5db   : > { %v5157_v12 = vmul.f32 1.442695, %v4954_v59  ;;  %v3928_v9 = vunpack.c.h.bf16 %v12829_v20  ;;  %v3386_v30 = vadd.f32 %v12987_v38, %v12589_v15  ;;  %v5159_v58 = vmul.f32 1.442695, %v4955_v4  ;;  %v13102_v59 = vpop.f32.mrf.mxu1 }
 0x5dc   : > { %v3334_v40 = vadd.f32 %v13052_v44, %v12534_v49  ;;  %v6695_v3 = vpack.c.bf16 %v6574_v48, %v6573_v53  ;;  %v6428_v45 = vunpack.c.l.bf16 %v6192_v7  ;;  %v6429_v55 = vunpack.c.h.bf16 %v6192_v7 }
 0x5dd   : > { %9713 = vlog2.f32 %v5807_v56  ;;  %v6199_v1 = vpack.c.bf16 %v5992_v60, %v5990_v33  ;;  %v13098_v52 = vpack.c.bf16 %v3445_v24, %v3386_v30  ;;  %v3275_v6 = vadd.f32 %v13038_v61, %v12529_v28 }
 0x5de   : > { %9715 = vlog2.f32 %v5808_v2  ;;  %v13104_v20 = vpack.c.bf16 %v4276_v26, %v4275_v10  ;;  %v5700_v35 = vpack.c.bf16 %v5583_v32, %v5582_v63  ;;  %v3788_v41 = vunpack.c.h.bf16 %v13078_v39  ;;  %v412_v63 = vld [vmem:[%s10386_s25 + $0xcc] sm:$0xff] }
 0x5df   : > { %9717 = vpow2.f32 %v5157_v12  ;;  %v9710_v44 = vpop.eup %9709  ;;  %v4287_v47 = vmax.f32 %v3927_v34, 0.0  ;;  %v13108_v60 = vpack.c.bf16 %v3334_v40, %v3275_v6  ;;  %v6793_v53 = vunpack.c.l.bf16 %v6695_v3 }
 0x5e0   : > { %9719 = vpow2.f32 %v5159_v58  ;;  %v9712_v57 = vpop.eup %9711  ;;  %v15505_v21 = vunpack.c.l.bf16 %v13001_v22  ;;  %v15506_v48 = vunpack.c.h.bf16 %v13001_v22  ;;  %v4288_v26 = vmax.f32 %v3928_v9, 0.0 }
 0x5e1   : > { %v6794_v4 = vunpack.c.h.bf16 %v6695_v3  ;;  %v6440_v7 = vunpack.c.l.bf16 %v6199_v1  ;;  %v4484_v32 = vand.u32 2147450879, %v13098_v52  ;;  %v6441_v33 = vunpack.c.h.bf16 %v6199_v1 }
 0x5e2   : > { %v6568_v61 = vadd.f32 %v6428_v45, %v15505_v21  ;;  %v6569_v10 = vadd.f32 %v6429_v55, %v15506_v48  ;;  %v4067_v2 = vmul.f32 %v3927_v34, %v3787_v36  ;;  %v5802_v24 = vunpack.c.l.bf16 %v5700_v35  ;;  %v3336_v48 = vpop.f32.mrf.mxu2 }
 0x5e3   : > { %v9714_v39 = vpop.eup %9713  ;;  %v5980_v30 = vmul.f32 0.6931472, %v9710_v44  ;;  %v5982_v58 = vmul.f32 0.6931472, %v9712_v57  ;;  %v4068_v40 = vmul.f32 %v3928_v9, %v3788_v41  ;;  %v5803_v22 = vunpack.c.h.bf16 %v5700_v35 }
 0x5e4   : > { %v9716_v12 = vpop.eup %9715  ;;  %v15507_v3 = vunpack.c.l.bf16 %v12949_v31  ;;  %v13121_v6 = vpack.c.bf16 %v6569_v10, %v6568_v61  ;;  %v6296_v21 = vunpack.c.h.bf16 %v13104_v20  ;;  %v13124_v1 = vpack.c.bf16 %v4288_v26, %v4287_v47 }
 0x5e5   : > { %v9718_v45 = vpop.eup %9717  ;;  %v15510_v34 = vunpack.c.h.bf16 %v12949_v31  ;;  %v15512_v9 = vunpack.c.l.bf16 %v13059_v50  ;;  %v4589_v41 = vunpack.c.l.bf16 %v4484_v32  ;;  %v4590_v57 = vunpack.c.h.bf16 %v4484_v32  ;;  %v13138_v31 = vpop.f32.mrf.mxu1  ;;  %3522 = vmatmul.bf16.gmra.mxu1 %v12503_v25 }
 0x5e6   : > { %v13119_v55 = vsub.f32 %v6793_v53, %v15507_v3  ;;  %15509 = vst [vmem:[#allocation38_spill] sm:$0xff] %v13121_v6  ;;  %v9720_v36 = vpop.eup %9719  ;;  %v15513_v53 = vunpack.c.h.bf16 %v13059_v50  ;;  %v6004_v61 = vmul.f32 0.6931472, %v9714_v39  ;;  %v6006_v10 = vmul.f32 0.6931472, %v9716_v12  ;;  %v3446_v39 = vpop.f32.mrf.mxu0 }
 0x5e7   : > { %v13128_v44 = vsub.f32 %v6794_v4, %v15510_v34  ;;  %v6580_v35 = vadd.f32 %v6440_v7, %v15512_v9  ;;  %9721 = vlog2.f32 %v5802_v24  ;;  %v6196_v47 = vpack.c.bf16 %v5982_v58, %v5980_v30 }
 0x5e8   : > { %15508 = vst [vmem:[#allocation37_spill] sm:$0xff] %v13119_v55  ;;  %v6581_v3 = vadd.f32 %v6441_v33, %v15513_v53  ;;  %v13135_v26 = vpack.c.bf16 %v4068_v40, %v4067_v2  ;;  %v3922_v38 = vunpack.c.l.bf16 %v12971_v11  ;;  %9723 = vlog2.f32 %v5803_v22 }
 0x5e9   : > { %15511 = vst [vmem:[#allocation39_spill] sm:$0xff] %v13128_v44  ;;  %v6788_v4 = vunpack.c.l.bf16 %v13121_v6  ;;  %v6307_v7 = vunpack.c.l.bf16 %v13124_v1  ;;  %v6308_v50 = vunpack.c.h.bf16 %v13124_v1  ;;  %v5347_v32 = vpack.c.bf16 %v9720_v36, %v9718_v45 }
 0x5ea   : > { %v3782_v33 = vunpack.c.l.bf16 %v412_v63  ;;  %v4729_v24 = vsub.f32 0.0, %v4589_v41  ;;  %v4730_v12 = vsub.f32 0.0, %v4590_v57  ;;  %v4491_v2 = vand.u32 2147450879, %v13045_v43  ;;  %v13154_v41 = vpop.f32.mrf.mxu3  ;;  %v13158_v8 = vpop.f32.mrf.mxu2  ;;  %3581 = vmatmul.bf16.gmra.mxu2 %v12503_v25 }
 0x5eb   : > { %v13145_v30 = vpack.c.bf16 %v6581_v3, %v6580_v35  ;;  %v6203_v58 = vpack.c.bf16 %v6006_v10, %v6004_v61  ;;  %v3783_v40 = vunpack.c.h.bf16 %v412_v63  ;;  %v3923_v22 = vunpack.c.h.bf16 %v12971_v11 }
 0x5ec   : > { %v6435_v34 = vunpack.c.l.bf16 %v6196_v47  ;;  %v6436_v9 = vunpack.c.h.bf16 %v6196_v47  ;;  %v4282_v53 = vmax.f32 %v3922_v38, 0.0  ;;  %v3447_v56 = vadd.f32 %v3446_v39, %v12586_v29 }
 0x5ed   : > { %v9722_v44 = vpop.eup %9721  ;;  %v5454_v1 = vunpack.c.l.bf16 %v5347_v32  ;;  %v3388_v45 = vadd.f32 %v13010_v16, %v12589_v15  ;;  %v3278_v36 = vadd.f32 %v13102_v59, %v12529_v28  ;;  %v3337_v35 = vadd.f32 %v3336_v48, %v12534_v49 }
 0x5ee   : > { %v9724_v63 = vpop.eup %9723  ;;  %v5455_v57 = vunpack.c.h.bf16 %v5347_v32  ;;  %v4844_v11 = vpack.c.bf16 %v4730_v12, %v4729_v24  ;;  %v4601_v3 = vunpack.c.l.bf16 %v4491_v2  ;;  %v4602_v61 = vunpack.c.h.bf16 %v4491_v2 }
 0x5ef   : > { %v6447_v10 = vunpack.c.l.bf16 %v6203_v58  ;;  %v6448_v47 = vunpack.c.h.bf16 %v6203_v58  ;;  %v4283_v39 = vmax.f32 %v3923_v22, 0.0  ;;  %v13156_v55 = vpack.c.bf16 %v3337_v35, %v3278_v36 }
 0x5f0   : > { %v15514_v16 = vunpack.c.l.bf16 %v13104_v20  ;;  %v4062_v48 = vmul.f32 %v3922_v38, %v3782_v33  ;;  %v4063_v51 = vmul.f32 %v3923_v22, %v3783_v40  ;;  %v13163_v17 = vpack.c.bf16 %v3447_v56, %v3388_v45  ;;  %v419_v22 = vld [vmem:[%s10386_s25 + $0xfc] sm:$0xff] }
 0x5f1   : > { %v6576_v32 = vadd.f32 %v6436_v9, %v6296_v21  ;;  %v5994_v24 = vmul.f32 0.6931472, %v9722_v44  ;;  %v5996_v12 = vmul.f32 0.6931472, %v9724_v63  ;;  %v5594_v2 = vadd.f32 1.0, %v5454_v1 }
 0x5f2   : > { %v6575_v59 = vadd.f32 %v6435_v34, %v15514_v16  ;;  %v5595_v6 = vadd.f32 1.0, %v5455_v57  ;;  %v4949_v58 = vunpack.c.l.bf16 %v4844_v11  ;;  %v4741_v36 = vsub.f32 0.0, %v4601_v3 }
 0x5f3   : > { %v4742_v35 = vsub.f32 0.0, %v4602_v61  ;;  %v6587_v18 = vadd.f32 %v6447_v10, %v6307_v7  ;;  %v6588_v13 = vadd.f32 %v6448_v47, %v6308_v50  ;;  %v4400_v42 = vpack.c.bf16 %v4283_v39, %v4282_v53 }
 0x5f4   : > { %v4950_v0 = vunpack.c.h.bf16 %v4844_v11  ;;  %v15515_v20 = vunpack.c.l.bf16 %v12999_v19  ;;  %v6947_v38 = vunpack.c.l.bf16 %v13135_v26  ;;  %v6948_v56 = vunpack.c.h.bf16 %v13135_v26  ;;  %v13179_v11 = vpop.f32.mrf.mxu3  ;;  %3640 = vmatmul.bf16.gmra.mxu3 %v12503_v25 }
 0x5f5   : > { %v4488_v21 = vand.u32 2147450879, %v13163_v17  ;;  %v6800_v44 = vunpack.c.l.bf16 %v13145_v30  ;;  %v6801_v33 = vunpack.c.h.bf16 %v13145_v30  ;;  %v13174_v40 = vpack.c.bf16 %v4063_v51, %v4062_v48 }
 0x5f6   : > { %v13167_v34 = vsub.f32 %v6788_v4, %v15515_v20  ;;  %v6200_v7 = vpack.c.bf16 %v5996_v12, %v5994_v24  ;;  %v13176_v50 = vpack.c.bf16 %v6576_v32, %v6575_v59  ;;  %v5707_v9 = vpack.c.bf16 %v5595_v6, %v5594_v2  ;;  %v416_v59 = vld [vmem:[%s10386_s25 + $0xe8] sm:$0xff] }
 0x5f7   : > { %15516 = vst [vmem:[#allocation40_spill] sm:$0xff] %v13174_v40  ;;  %v5147_v53 = vmul.f32 1.442695, %v4949_v58  ;;  %v4851_v4 = vpack.c.bf16 %v4742_v35, %v4741_v36  ;;  %v6703_v1 = vpack.c.bf16 %v6588_v13, %v6587_v18  ;;  %v6302_v45 = vunpack.c.l.bf16 %v4400_v42 }
 0x5f8   : > { %v6303_v63 = vunpack.c.h.bf16 %v4400_v42  ;;  %v5149_v57 = vmul.f32 1.442695, %v4950_v0  ;;  %v3934_v30 = vunpack.c.l.bf16 %v13023_v62  ;;  %v3935_v51 = vunpack.c.h.bf16 %v13023_v62 }
 0x5f9   : > { %v4596_v3 = vunpack.c.l.bf16 %v4488_v21  ;;  %v4597_v61 = vunpack.c.h.bf16 %v4488_v21  ;;  %v6442_v10 = vunpack.c.l.bf16 %v6200_v7  ;;  %v6443_v47 = vunpack.c.h.bf16 %v6200_v7 }
 0x5fa   : > { %v3794_v6 = vunpack.c.l.bf16 %v419_v22  ;;  %v3795_v39 = vunpack.c.h.bf16 %v419_v22  ;;  %v6795_v13 = vunpack.c.l.bf16 %v13176_v50  ;;  %v5814_v18 = vunpack.c.l.bf16 %v5707_v9 }
 0x5fb   : > { %9725 = vpow2.f32 %v5147_v53  ;;  %v4961_v0 = vunpack.c.l.bf16 %v4851_v4  ;;  %v6807_v42 = vunpack.c.l.bf16 %v6703_v1  ;;  %v5815_v16 = vunpack.c.h.bf16 %v5707_v9 }
 0x5fc   : > { %9727 = vpow2.f32 %v5149_v57  ;;  %v4962_v25 = vunpack.c.h.bf16 %v4851_v4  ;;  %v4294_v48 = vmax.f32 %v3934_v30, 0.0  ;;  %v4295_v32 = vmax.f32 %v3935_v51, 0.0 }
 0x5fd   : > { %v4736_v24 = vsub.f32 0.0, %v4596_v3  ;;  %v4737_v62 = vsub.f32 0.0, %v4597_v61  ;;  %v6582_v12 = vadd.f32 %v6442_v10, %v6302_v45  ;;  %v6583_v2 = vadd.f32 %v6443_v47, %v6303_v63 }
 0x5fe   : > { %v4074_v58 = vmul.f32 %v3934_v30, %v3794_v6  ;;  %v4075_v36 = vmul.f32 %v3935_v51, %v3795_v39  ;;  %9729 = vlog2.f32 %v5814_v18  ;;  %v3789_v35 = vunpack.c.l.bf16 %v416_v59 }
 0x5ff   : > { %v3790_v20 = vunpack.c.h.bf16 %v416_v59  ;;  %v5171_v21 = vmul.f32 1.442695, %v4961_v0  ;;  %9731 = vlog2.f32 %v5815_v16  ;;  %v3929_v7 = vunpack.c.l.bf16 %v13098_v52 }
 0x600   : > { %v3930_v22 = vunpack.c.h.bf16 %v13098_v52  ;;  %v5173_v9 = vmul.f32 1.442695, %v4962_v25  ;;  %v15517_v4 = vunpack.c.l.bf16 %v13066_v5  ;;  %v6808_v3 = vunpack.c.h.bf16 %v6703_v1  ;;  %v420_v1 = vld [vmem:[%s10386_s25 + $0x104] sm:$0xff] }
 0x601   : > { %v9726_v53 = vpop.eup %9725  ;;  %v13192_v45 = vpack.c.bf16 %v4295_v32, %v4294_v48  ;;  %v4848_v63 = vpack.c.bf16 %v4737_v62, %v4736_v24  ;;  %v15519_v51 = vunpack.c.h.bf16 %v13066_v5  ;;  %v15521_v10 = vunpack.c.l.bf16 %v13084_v37  ;;  %v423_v48 = vld [vmem:[%s10386_s25 + $0x118] sm:$0xff] }
 0x602   : > { %v13190_v57 = vsub.f32 %v6800_v44, %v15517_v4  ;;  %v9728_v30 = vpop.eup %9727  ;;  %v6942_v52 = vunpack.c.l.bf16 %v13174_v40  ;;  %v13203_v6 = vpack.c.bf16 %v4075_v36, %v4074_v58  ;;  %v13205_v44 = vpack.c.bf16 %v6583_v2, %v6582_v12 }
 0x603   : > { %v13196_v61 = vsub.f32 %v6801_v33, %v15519_v51  ;;  %v13200_v47 = vsub.f32 %v6795_v13, %v15521_v10  ;;  %9733 = vpow2.f32 %v5171_v21  ;;  %v4495_v39 = vand.u32 2147450879, %v13108_v60  ;;  %v3449_v13 = vpop.f32.mrf.mxu0 }
 0x604   : > { %15518 = vst [vmem:[#allocation42_spill] sm:$0xff] %v13190_v57  ;;  %v13211_v5 = vsub.f32 %v6807_v42, %v6947_v38  ;;  %v4069_v33 = vmul.f32 %v3929_v7, %v3789_v35  ;;  %v4070_v18 = vmul.f32 %v3930_v22, %v3790_v20  ;;  %9735 = vpow2.f32 %v5173_v9  ;;  %v9730_v0 = vpop.eup %9729 }
 0x605   : > { %15520 = vst [vmem:[#allocation43_spill] sm:$0xff] %v13196_v61  ;;  %v13215_v16 = vsub.f32 %v6808_v3, %v6948_v56  ;;  %v6314_v59 = vunpack.c.l.bf16 %v13192_v45  ;;  %v5344_v25 = vpack.c.bf16 %v9728_v30, %v9726_v53  ;;  %v4956_v32 = vunpack.c.l.bf16 %v4848_v63  ;;  %v9732_v24 = vpop.eup %9731 }
 0x606   : > { %15522 = vst [vmem:[#allocation45_spill] sm:$0xff] %v13200_v47  ;;  %v6315_v62 = vunpack.c.h.bf16 %v13192_v45  ;;  %v3391_v42 = vadd.f32 %v13032_v23, %v12589_v15  ;;  %v4957_v12 = vunpack.c.h.bf16 %v4848_v63  ;;  %v6802_v2 = vunpack.c.l.bf16 %v13205_v44 }
 0x607   : > { %15523 = vst [vmem:[#allocation46_spill] sm:$0xff] %v13205_v44  ;;  %v4608_v58 = vunpack.c.l.bf16 %v4495_v39  ;;  %v4609_v26 = vunpack.c.h.bf16 %v4495_v39  ;;  %v3450_v56 = vadd.f32 %v3449_v13, %v12586_v29  ;;  %v13225_v36 = vpack.c.bf16 %v4070_v18, %v4069_v33  ;;  %v3341_v13 = vpop.f32.mrf.mxu2 }
 0x608   : > { %15524 = vst [vmem:[#allocation47_spill] sm:$0xff] %v13211_v5  ;;  %v4289_v35 = vmax.f32 %v3929_v7, 0.0  ;;  %v4290_v20 = vmax.f32 %v3930_v22, 0.0  ;;  %v3801_v21 = vunpack.c.l.bf16 %v423_v48  ;;  %v6018_v53 = vmul.f32 0.6931472, %v9730_v0 }
 0x609   : > { %15525 = vst [vmem:[#allocation48_spill] sm:$0xff] %v13215_v16  ;;  %v9734_v9 = vpop.eup %9733  ;;  %v6020_v4 = vmul.f32 0.6931472, %v9732_v24  ;;  %v5449_v3 = vunpack.c.l.bf16 %v5344_v25  ;;  %v5161_v30 = vmul.f32 1.442695, %v4956_v32  ;;  %v5450_v23 = vunpack.c.h.bf16 %v5344_v25 }
 0x60a   : > { %15526 = vst [vmem:[#allocation49_spill] sm:$0xff] %v13225_v36  ;;  %v9736_v51 = vpop.eup %9735  ;;  %v5163_v63 = vmul.f32 1.442695, %v4957_v12  ;;  %v3280_v10 = vadd.f32 %v13138_v31, %v12529_v28  ;;  %v3339_v39 = vadd.f32 %v13158_v8, %v12534_v49  ;;  %v3941_v33 = vunpack.c.l.bf16 %v13045_v43 }
 0x60b   : > { %v4748_v7 = vsub.f32 0.0, %v4608_v58  ;;  %v4749_v22 = vsub.f32 0.0, %v4609_v26  ;;  %v13232_v18 = vpack.c.bf16 %v3450_v56, %v3391_v42  ;;  %v3802_v0 = vunpack.c.h.bf16 %v423_v48  ;;  %v13255_v42 = vpop.xlane.xlu0 %7922 }
 0x60c   : > { %v3942_v32 = vunpack.c.h.bf16 %v13045_v43  ;;  %v13236_v24 = vpack.c.bf16 %v3339_v39, %v3280_v10  ;;  %v13238_v25 = vsub.f32 %v6802_v2, %v6942_v52  ;;  %v13240_v12 = vpack.c.bf16 %v4290_v20, %v4289_v35  ;;  %v13245_v43 = vpop.f32.mrf.mxu1  ;;  %15528 = vst [vmem:[#allocation51_spill] sm:$0xff] %v13255_v42 }
 0x60d   : > { %v5351_v31 = vpack.c.bf16 %v9736_v51, %v9734_v9  ;;  %9737 = vpow2.f32 %v5161_v30  ;;  %v6207_v8 = vpack.c.bf16 %v6020_v4, %v6018_v53  ;;  %v5589_v38 = vadd.f32 1.0, %v5449_v3 }
 0x60e   : > { %15527 = vst [vmem:[#allocation50_spill] sm:$0xff] %v13238_v25  ;;  %v5590_v58 = vadd.f32 1.0, %v5450_v23  ;;  %9739 = vpow2.f32 %v5163_v63  ;;  %v4081_v26 = vmul.f32 %v3941_v33, %v3801_v21  ;;  %v4855_v56 = vpack.c.bf16 %v4749_v22, %v4748_v7 }
 0x60f   : > { %v4492_v48 = vand.u32 2147450879, %v13232_v18  ;;  %v4082_v10 = vmul.f32 %v3942_v32, %v3802_v0  ;;  %v4301_v52 = vmax.f32 %v3941_v33, 0.0  ;;  %v4302_v2 = vmax.f32 %v3942_v32, 0.0 }
 0x610   : > { %v3796_v35 = vunpack.c.l.bf16 %v420_v1  ;;  %v5461_v20 = vunpack.c.l.bf16 %v5351_v31  ;;  %v5462_v9 = vunpack.c.h.bf16 %v5351_v31  ;;  %v3797_v51 = vunpack.c.h.bf16 %v420_v1 }
 0x611   : > { %v3936_v53 = vunpack.c.l.bf16 %v13163_v17  ;;  %v6454_v4 = vunpack.c.l.bf16 %v6207_v8  ;;  %v6455_v3 = vunpack.c.h.bf16 %v6207_v8  ;;  %v5704_v30 = vpack.c.bf16 %v5590_v58, %v5589_v38 }
 0x612   : > { %v3937_v23 = vunpack.c.h.bf16 %v13163_v17  ;;  %v4968_v39 = vunpack.c.l.bf16 %v4855_v56  ;;  %v4603_v7 = vunpack.c.l.bf16 %v4492_v48  ;;  %v4604_v22 = vunpack.c.h.bf16 %v4492_v48 }
 0x613   : > { %v9738_v21 = vpop.eup %9737  ;;  %v13251_v32 = vpack.c.bf16 %v4082_v10, %v4081_v26  ;;  %v13253_v31 = vpack.c.bf16 %v4302_v2, %v4301_v52  ;;  %v4969_v1 = vunpack.c.h.bf16 %v4855_v56  ;;  %v5601_v8 = vadd.f32 1.0, %v5461_v20 }
 0x614   : > { %v9740_v0 = vpop.eup %9739  ;;  %v5602_v17 = vadd.f32 1.0, %v5462_v9  ;;  %v4076_v58 = vmul.f32 %v3936_v53, %v3796_v35  ;;  %v6594_v63 = vadd.f32 %v6454_v4, %v6314_v59  ;;  %v6595_v48 = vadd.f32 %v6455_v3, %v6315_v62  ;;  %v427_v4 = vld [vmem:[%s10386_s25 + $0x134] sm:$0xff]  ;;  %v13267_v3 = vpop.f32.mrf.mxu1  ;;  %3527 = vmatmul.bf16.gmra.mxu1 %v12551_v14 }
 0x615   : > { %v5809_v33 = vunpack.c.l.bf16 %v5704_v30  ;;  %v4077_v26 = vmul.f32 %v3937_v23, %v3797_v51  ;;  %v5348_v10 = vpack.c.bf16 %v9740_v0, %v9738_v21  ;;  %v5185_v52 = vmul.f32 1.442695, %v4968_v39 }
 0x616   : > { %v4743_v2 = vsub.f32 0.0, %v4603_v7  ;;  %v4744_v56 = vsub.f32 0.0, %v4604_v22  ;;  %v5187_v9 = vmul.f32 1.442695, %v4969_v1  ;;  %v5810_v38 = vunpack.c.h.bf16 %v5704_v30 }
 0x617   : > { %v5711_v59 = vpack.c.bf16 %v5602_v17, %v5601_v8  ;;  %v4296_v62 = vmax.f32 %v3936_v53, 0.0  ;;  %v13270_v51 = vpack.c.bf16 %v6595_v48, %v6594_v63  ;;  %9741 = vlog2.f32 %v5809_v33  ;;  %v7894_v48 = vpop.permute.xlu0 %7893  ;;  %v3451_v33 = vpop.f32.mrf.mxu0 }
 0x618   : > { %v13272_v21 = vpack.c.bf16 %v4077_v26, %v4076_v58  ;;  %v4297_v39 = vmax.f32 %v3937_v23, 0.0  ;;  %v5456_v7 = vunpack.c.l.bf16 %v5348_v10  ;;  %v5457_v22 = vunpack.c.h.bf16 %v5348_v10 }
 0x619   : > { %9743 = vpow2.f32 %v5185_v52  ;;  %v4852_v0 = vpack.c.bf16 %v4744_v56, %v4743_v2  ;;  %v3808_v30 = vunpack.c.l.bf16 %v427_v4  ;;  %v3809_v1 = vunpack.c.h.bf16 %v427_v4 }
 0x61a   : > { %15529 = vst [vmem:[#allocation52_spill] sm:$0xff] %v13272_v21  ;;  %9745 = vpow2.f32 %v5187_v9  ;;  %v4499_v53 = vand.u32 2147450879, %v13156_v55  ;;  %v5821_v8 = vunpack.c.l.bf16 %v5711_v59  ;;  %v3948_v17 = vunpack.c.l.bf16 %v13108_v60 }
 0x61b   : > { %9747 = vlog2.f32 %v5810_v38  ;;  %v3949_v63 = vunpack.c.h.bf16 %v13108_v60  ;;  %v6814_v58 = vunpack.c.l.bf16 %v13270_v51  ;;  %v6815_v23 = vunpack.c.h.bf16 %v13270_v51 }
 0x61c   : > { %v5822_v26 = vunpack.c.h.bf16 %v5711_v59  ;;  %v13279_v10 = vpack.c.bf16 %v4297_v39, %v4296_v62  ;;  %v5596_v52 = vadd.f32 1.0, %v5456_v7  ;;  %v5597_v2 = vadd.f32 1.0, %v5457_v22  ;;  %v13283_v59 = vpop.f32.mrf.mxu3  ;;  %v13285_v62 = vpop.f32.mrf.mxu2  ;;  %3586 = vmatmul.bf16.gmra.mxu2 %v12551_v14 }
 0x61d   : > { %v4963_v56 = vunpack.c.l.bf16 %v4852_v0  ;;  %v4964_v9 = vunpack.c.h.bf16 %v4852_v0  ;;  %v9742_v4 = vpop.eup %9741  ;;  %v4615_v38 = vunpack.c.l.bf16 %v4499_v53  ;;  %v4616_v45 = vunpack.c.h.bf16 %v4499_v53 }
 0x61e   : > { %v3452_v35 = vadd.f32 %v3451_v33, %v12586_v29  ;;  %v7969_v60 = vsel %vm2746_vm2, %v7894_v48, 0.0  ;;  %9749 = vlog2.f32 %v5821_v8  ;;  %v4088_v42 = vmul.f32 %v3948_v17, %v3808_v30 }
 0x61f   : > { %v9744_v20 = vpop.eup %9743  ;;  %v4089_v16 = vmul.f32 %v3949_v63, %v3809_v1  ;;  %v4308_v5 = vmax.f32 %v3948_v17, 0.0  ;;  %7970 = vadd.xlane.f32.xlu0 %v7969_v60  ;;  %9751 = vlog2.f32 %v5822_v26  ;;  %v3393_v39 = vadd.f32 %v13054_v46, %v12589_v15  ;;  %v3454_v61 = vpop.f32.mrf.mxu0 }
 0x620   : > { %v9746_v51 = vpop.eup %9745  ;;  %v3283_v7 = vadd.f32 %v13245_v43, %v12529_v28  ;;  %v3342_v22 = vadd.f32 %v3341_v13, %v12534_v49  ;;  %v5708_v30 = vpack.c.bf16 %v5597_v2, %v5596_v52  ;;  %v4309_v1 = vmax.f32 %v3949_v63, 0.0 }
 0x621   : > { %v9748_v0 = vpop.eup %9747  ;;  %v5175_v53 = vmul.f32 1.442695, %v4963_v56  ;;  %v5177_v8 = vmul.f32 1.442695, %v4964_v9  ;;  %v4755_v17 = vsub.f32 0.0, %v4615_v38  ;;  %v4756_v48 = vsub.f32 0.0, %v4616_v45 }
 0x622   : > { %v13293_v33 = vpack.c.bf16 %v3452_v35, %v3393_v39  ;;  %v13295_v60 = vpack.c.bf16 %v3342_v22, %v3283_v7  ;;  %v5355_v25 = vpack.c.bf16 %v9746_v51, %v9744_v20  ;;  %v15530_v13 = vunpack.c.l.bf16 %v13203_v6  ;;  %v424_v45 = vld [vmem:[%s10386_s25 + $0x120] sm:$0xff] }
 0x623   : > { %v6008_v63 = vmul.f32 0.6931472, %v9742_v4  ;;  %v6010_v2 = vmul.f32 0.6931472, %v9748_v0  ;;  %v15532_v9 = vunpack.c.h.bf16 %v13203_v6  ;;  %v13310_v39 = vpack.c.bf16 %v4089_v16, %v4088_v42 }
 0x624   : > { %v13302_v52 = vsub.f32 %v6814_v58, %v15530_v13  ;;  %v9750_v35 = vpop.eup %9749  ;;  %v13312_v7 = vpack.c.bf16 %v4309_v1, %v4308_v5  ;;  %9753 = vpow2.f32 %v5175_v53  ;;  %v5816_v51 = vunpack.c.l.bf16 %v5708_v30  ;;  %v13319_v53 = vpop.f32.mrf.mxu3  ;;  %3645 = vmatmul.bf16.gmra.mxu3 %v12551_v14  ;;  %v431_v1 = vld [vmem:[%s10386_s25 + $0x150] sm:$0xff] }
 0x625   : > { %v13308_v38 = vsub.f32 %v6815_v23, %v15532_v9  ;;  %v9752_v20 = vpop.eup %9751  ;;  %9755 = vpow2.f32 %v5177_v8  ;;  %v4859_v58 = vpack.c.bf16 %v4756_v48, %v4755_v17  ;;  %v4496_v4 = vand.u32 2147450879, %v13293_v33 }
 0x626   : > { %15531 = vst [vmem:[#allocation53_spill] sm:$0xff] %v13302_v52  ;;  %v5817_v22 = vunpack.c.h.bf16 %v5708_v30  ;;  %v5468_v0 = vunpack.c.l.bf16 %v5355_v25  ;;  %v5469_v13 = vunpack.c.h.bf16 %v5355_v25  ;;  %v3803_v56 = vunpack.c.l.bf16 %v424_v45 }
 0x627   : > { %15533 = vst [vmem:[#allocation54_spill] sm:$0xff] %v13308_v38  ;;  %v6204_v43 = vpack.c.bf16 %v6010_v2, %v6008_v63  ;;  %v3804_v46 = vunpack.c.h.bf16 %v424_v45  ;;  %v3943_v6 = vunpack.c.l.bf16 %v13232_v18  ;;  %v3944_v16 = vunpack.c.h.bf16 %v13232_v18 }
 0x628   : > { %v6032_v42 = vmul.f32 0.6931472, %v9750_v35  ;;  %v6034_v5 = vmul.f32 0.6931472, %v9752_v20  ;;  %9757 = vlog2.f32 %v5816_v51  ;;  %v4975_v25 = vunpack.c.l.bf16 %v4859_v58 }
 0x629   : > { %v4610_v30 = vunpack.c.l.bf16 %v4496_v4  ;;  %v4611_v8 = vunpack.c.h.bf16 %v4496_v4  ;;  %9759 = vlog2.f32 %v5817_v22  ;;  %v5608_v48 = vadd.f32 1.0, %v5468_v0 }
 0x62a   : > { %v9754_v17 = vpop.eup %9753  ;;  %v5609_v63 = vadd.f32 1.0, %v5469_v13  ;;  %v4976_v18 = vunpack.c.h.bf16 %v4859_v58  ;;  %v6449_v45 = vunpack.c.l.bf16 %v6204_v43  ;;  %v4083_v9 = vmul.f32 %v3943_v6, %v3803_v56 }
 0x62b   : > { %v9756_v2 = vpop.eup %9755  ;;  %v4084_v20 = vmul.f32 %v3944_v16, %v3804_v46  ;;  %v6450_v23 = vunpack.c.h.bf16 %v6204_v43  ;;  %v6211_v26 = vpack.c.bf16 %v6034_v5, %v6032_v42  ;;  %v4303_v38 = vmax.f32 %v3943_v6, 0.0 }
 0x62c   : > { %v4304_v14 = vmax.f32 %v3944_v16, 0.0  ;;  %v6329_v51 = vunpack.c.h.bf16 %v13312_v7  ;;  %v5199_v52 = vmul.f32 1.442695, %v4975_v25  ;;  %v4750_v4 = vsub.f32 0.0, %v4610_v30 }
 0x62d   : > { %v4751_v47 = vsub.f32 0.0, %v4611_v8  ;;  %v5715_v22 = vpack.c.bf16 %v5609_v63, %v5608_v48  ;;  %v5352_v0 = vpack.c.bf16 %v9756_v2, %v9754_v17  ;;  %v3815_v13 = vunpack.c.l.bf16 %v431_v1 }
 0x62e   : > { %v5201_v58 = vmul.f32 1.442695, %v4976_v18  ;;  %v9758_v57 = vpop.eup %9757  ;;  %v15534_v35 = vunpack.c.l.bf16 %v13240_v12  ;;  %v13327_v46 = vpack.c.bf16 %v4084_v20, %v4083_v9  ;;  %v3816_v43 = vunpack.c.h.bf16 %v431_v1 }
 0x62f   : > { %v3955_v6 = vunpack.c.l.bf16 %v13156_v55  ;;  %v9760_v16 = vpop.eup %9759  ;;  %v15536_v42 = vunpack.c.h.bf16 %v13240_v12  ;;  %v6461_v25 = vunpack.c.l.bf16 %v6211_v26  ;;  %v13332_v30 = vpack.c.bf16 %v4304_v14, %v4303_v38 }
 0x630   : > { %v6589_v56 = vadd.f32 %v6449_v45, %v15534_v35  ;;  %15535 = vst [vmem:[#allocation55_spill] sm:$0xff] %v13327_v46  ;;  %v4503_v8 = vand.u32 2147450879, %v13236_v24  ;;  %v6462_v17 = vunpack.c.h.bf16 %v6211_v26  ;;  %9761 = vpow2.f32 %v5199_v52 }
 0x631   : > { %v6590_v5 = vadd.f32 %v6450_v23, %v15536_v42  ;;  %v4856_v48 = vpack.c.bf16 %v4751_v47, %v4750_v4  ;;  %v3455_v63 = vadd.f32 %v3454_v61, %v12586_v29  ;;  %v5828_v18 = vunpack.c.l.bf16 %v5715_v22 }
 0x632   : > { %v5463_v2 = vunpack.c.l.bf16 %v5352_v0  ;;  %v5464_v45 = vunpack.c.h.bf16 %v5352_v0  ;;  %9763 = vpow2.f32 %v5201_v58  ;;  %v6022_v1 = vmul.f32 0.6931472, %v9758_v57 }
 0x633   : > { %v6024_v35 = vmul.f32 0.6931472, %v9760_v16  ;;  %v5829_v9 = vunpack.c.h.bf16 %v5715_v22  ;;  %v3396_v12 = vadd.f32 %v13154_v41, %v12589_v15  ;;  %v13338_v23 = vpack.c.bf16 %v6590_v5, %v6589_v56 }
 0x634   : > { %v3956_v38 = vunpack.c.h.bf16 %v13156_v55  ;;  %v4622_v20 = vunpack.c.l.bf16 %v4503_v8  ;;  %v4623_v26 = vunpack.c.h.bf16 %v4503_v8  ;;  %v15538_v47 = vunpack.c.l.bf16 %v13253_v31  ;;  %v3346_v55 = vpop.f32.mrf.mxu2 }
 0x635   : > { %15537 = vst [vmem:[#allocation56_spill] sm:$0xff] %v13338_v23  ;;  %v15539_v61 = vunpack.c.h.bf16 %v13253_v31  ;;  %v4970_v4 = vunpack.c.l.bf16 %v4856_v48  ;;  %v13345_v0 = vpack.c.bf16 %v3455_v63, %v3396_v12  ;;  %9765 = vlog2.f32 %v5828_v18 }
 0x636   : > { %v6601_v52 = vadd.f32 %v6461_v25, %v15538_v47  ;;  %v5603_v57 = vadd.f32 1.0, %v5463_v2  ;;  %v5604_v22 = vadd.f32 1.0, %v5464_v45  ;;  %v4971_v58 = vunpack.c.h.bf16 %v4856_v48  ;;  %v9762_v41 = vpop.eup %9761 }
 0x637   : > { %v6602_v14 = vadd.f32 %v6462_v17, %v15539_v61  ;;  %v6208_v56 = vpack.c.bf16 %v6024_v35, %v6022_v1  ;;  %9767 = vlog2.f32 %v5829_v9  ;;  %v4762_v5 = vsub.f32 0.0, %v4622_v20 }
 0x638   : > { %v9764_v42 = vpop.eup %9763  ;;  %v4763_v25 = vsub.f32 0.0, %v4623_v26  ;;  %v3285_v31 = vadd.f32 %v13267_v3, %v12529_v28  ;;  %v3344_v8 = vadd.f32 %v13285_v62, %v12534_v49  ;;  %v4095_v17 = vmul.f32 %v3955_v6, %v3815_v13 }
 0x639   : > { %v4096_v63 = vmul.f32 %v3956_v38, %v3816_v43  ;;  %v5189_v18 = vmul.f32 1.442695, %v4970_v4  ;;  %v4500_v48 = vand.u32 2147450879, %v13345_v0  ;;  %v6711_v2 = vpack.c.bf16 %v6602_v14, %v6601_v52 }
 0x63a   : > { %v5712_v45 = vpack.c.bf16 %v5604_v22, %v5603_v57  ;;  %v5191_v1 = vmul.f32 1.442695, %v4971_v58  ;;  %v13354_v35 = vpack.c.bf16 %v3344_v8, %v3285_v31  ;;  %v6809_v9 = vunpack.c.l.bf16 %v13338_v23 }
 0x63b   : > { %v5359_v3 = vpack.c.bf16 %v9764_v42, %v9762_v41  ;;  %v9766_v26 = vpop.eup %9765  ;;  %v6456_v47 = vunpack.c.l.bf16 %v6208_v56  ;;  %v6457_v62 = vunpack.c.h.bf16 %v6208_v56  ;;  %v4315_v13 = vmax.f32 %v3955_v6, 0.0 }
 0x63c   : > { %v4863_v43 = vpack.c.bf16 %v4763_v25, %v4762_v5  ;;  %v13359_v4 = vpack.c.bf16 %v4096_v63, %v4095_v17  ;;  %9769 = vpow2.f32 %v5189_v18  ;;  %v4617_v52 = vunpack.c.l.bf16 %v4500_v48  ;;  %v428_v18 = vld [vmem:[%s10386_s25 + $0x13c] sm:$0xff] }
 0x63d   : > { %v9768_v61 = vpop.eup %9767  ;;  %v4618_v14 = vunpack.c.h.bf16 %v4500_v48  ;;  %v6821_v57 = vunpack.c.l.bf16 %v6711_v2  ;;  %v5823_v22 = vunpack.c.l.bf16 %v5712_v45  ;;  %v4316_v58 = vmax.f32 %v3956_v38, 0.0 }
 0x63e   : > { %9771 = vpow2.f32 %v5191_v1  ;;  %v6822_v31 = vunpack.c.h.bf16 %v6711_v2  ;;  %v5824_v8 = vunpack.c.h.bf16 %v5712_v45  ;;  %v5475_v20 = vunpack.c.l.bf16 %v5359_v3 }
 0x63f   : > { %v5476_v41 = vunpack.c.h.bf16 %v5359_v3  ;;  %v15540_v42 = vunpack.c.l.bf16 %v13279_v10  ;;  %v15541_v6 = vunpack.c.h.bf16 %v13279_v10  ;;  %v6046_v25 = vmul.f32 0.6931472, %v9766_v26 }
 0x640   : > { %v4982_v17 = vunpack.c.l.bf16 %v4863_v43  ;;  %v6048_v63 = vmul.f32 0.6931472, %v9768_v61  ;;  %v4983_v12 = vunpack.c.h.bf16 %v4863_v43  ;;  %v4757_v48 = vsub.f32 0.0, %v4617_v52 }
 0x641   : > { %v6596_v56 = vadd.f32 %v6456_v47, %v15540_v42  ;;  %v6597_v5 = vadd.f32 %v6457_v62, %v15541_v6  ;;  %v4758_v16 = vsub.f32 0.0, %v4618_v14  ;;  %v15542_v38 = vunpack.c.l.bf16 %v13225_v36  ;;  %v13381_v14 = vld [vmem:[%s10386_s25 + $0x16c] sm:$0xff] }
 0x642   : > { %9773 = vlog2.f32 %v5823_v22  ;;  %v13370_v45 = vpack.c.bf16 %v4316_v58, %v4315_v13  ;;  %v9770_v3 = vpop.eup %9769  ;;  %v15544_v10 = vunpack.c.l.bf16 %v13251_v32  ;;  %v5615_v47 = vadd.f32 1.0, %v5475_v20 }
 0x643   : > { %v13368_v2 = vsub.f32 %v6809_v9, %v15542_v38  ;;  %9775 = vlog2.f32 %v5824_v8  ;;  %v5616_v62 = vadd.f32 1.0, %v5476_v41  ;;  %v13377_v61 = vpack.c.bf16 %v6597_v5, %v6596_v56 }
 0x644   : > { %v13375_v26 = vsub.f32 %v6821_v57, %v15544_v10  ;;  %v9772_v43 = vpop.eup %9771  ;;  %v3810_v52 = vunpack.c.l.bf16 %v428_v18  ;;  %v3950_v9 = vunpack.c.l.bf16 %v13293_v33  ;;  %v5213_v13 = vmul.f32 1.442695, %v4982_v17 }
 0x645   : > { %15543 = vst [vmem:[#allocation57_spill] sm:$0xff] %v13368_v2  ;;  %v15547_v22 = vunpack.c.h.bf16 %v13251_v32  ;;  %v6215_v42 = vpack.c.bf16 %v6048_v63, %v6046_v25  ;;  %v5215_v6 = vmul.f32 1.442695, %v4983_v12  ;;  %v4860_v57 = vpack.c.bf16 %v4758_v16, %v4757_v48 }
 0x646   : > { %15545 = vst [vmem:[#allocation58_spill] sm:$0xff] %v13375_v26  ;;  %v3811_v41 = vunpack.c.h.bf16 %v428_v18  ;;  %v3951_v56 = vunpack.c.h.bf16 %v13293_v33  ;;  %v5719_v5 = vpack.c.bf16 %v5616_v62, %v5615_v47  ;;  %v5356_v10 = vpack.c.bf16 %v9772_v43, %v9770_v3 }
 0x647   : > { %15546 = vst [vmem:[#allocation59_spill] sm:$0xff] %v13377_v61  ;;  %v13385_v58 = vsub.f32 %v6822_v31, %v15547_v22  ;;  %v3822_v17 = vunpack.c.l.bf16 %v13381_v14  ;;  %v6816_v32 = vunpack.c.l.bf16 %v13377_v61  ;;  %v4090_v31 = vmul.f32 %v3950_v9, %v3810_v52 }
 0x648   : > { %v9774_v1 = vpop.eup %9773  ;;  %v3823_v12 = vunpack.c.h.bf16 %v13381_v14  ;;  %9777 = vpow2.f32 %v5213_v13  ;;  %v6468_v25 = vunpack.c.l.bf16 %v6215_v42  ;;  %v6469_v63 = vunpack.c.h.bf16 %v6215_v42 }
 0x649   : > { %15548 = vst [vmem:[#allocation60_spill] sm:$0xff] %v13385_v58  ;;  %v9776_v16 = vpop.eup %9775  ;;  %9779 = vpow2.f32 %v5215_v6  ;;  %v4977_v18 = vunpack.c.l.bf16 %v4860_v57  ;;  %v4091_v48 = vmul.f32 %v3951_v56, %v3811_v41  ;;  %v4310_v33 = vmax.f32 %v3950_v9, 0.0 }
 0x64a   : > { %v4311_v47 = vmax.f32 %v3951_v56, 0.0  ;;  %v4978_v62 = vunpack.c.h.bf16 %v4860_v57  ;;  %v5835_v22 = vunpack.c.l.bf16 %v5719_v5  ;;  %v5470_v3 = vunpack.c.l.bf16 %v5356_v10 }
 0x64b   : > { %v5471_v43 = vunpack.c.h.bf16 %v5356_v10  ;;  %v3398_v38 = vadd.f32 %v13179_v11, %v12589_v15  ;;  %v6036_v20 = vmul.f32 0.6931472, %v9774_v1  ;;  %v6038_v52 = vmul.f32 0.6931472, %v9776_v16  ;;  %v3287_v16 = vpop.f32.mrf.mxu1 }
 0x64c   : > { %v5836_v8 = vunpack.c.h.bf16 %v5719_v5  ;;  %v4507_v14 = vand.u32 2147450879, %v13295_v60  ;;  %v15549_v13 = vunpack.c.l.bf16 %v13272_v21  ;;  %v15551_v6 = vunpack.c.l.bf16 %v13312_v7 }
 0x64d   : > { %v6609_v57 = vadd.f32 %v6469_v63, %v6329_v51  ;;  %v5203_v41 = vmul.f32 1.442695, %v4977_v18  ;;  %v13405_v10 = vpack.c.bf16 %v4091_v48, %v4090_v31  ;;  %v13407_v11 = vpack.c.bf16 %v4311_v47, %v4310_v33 }
 0x64e   : > { %v13399_v42 = vsub.f32 %v6816_v32, %v15549_v13  ;;  %v6608_v9 = vadd.f32 %v6468_v25, %v15551_v6  ;;  %v9778_v56 = vpop.eup %9777  ;;  %v3962_v1 = vunpack.c.l.bf16 %v13236_v24  ;;  %v5205_v5 = vmul.f32 1.442695, %v4978_v62  ;;  %v3456_v6 = vpop.f32.mrf.mxu0 }
 0x64f   : > { %15552 = vst [vmem:[#allocation62_spill] sm:$0xff] %v13405_v10  ;;  %v9780_v58 = vpop.eup %9779  ;;  %9781 = vlog2.f32 %v5835_v22  ;;  %v5610_v32 = vadd.f32 1.0, %v5470_v3  ;;  %v5611_v13 = vadd.f32 1.0, %v5471_v43  ;;  %v3963_v25 = vunpack.c.h.bf16 %v13236_v24 }
 0x650   : > { %15550 = vst [vmem:[#allocation61_spill] sm:$0xff] %v13399_v42  ;;  %v6212_v7 = vpack.c.bf16 %v6038_v52, %v6036_v20  ;;  %9783 = vlog2.f32 %v5836_v8  ;;  %v4629_v51 = vunpack.c.l.bf16 %v4507_v14  ;;  %v4630_v63 = vunpack.c.h.bf16 %v4507_v14 }
 0x651   : > { %v6715_v31 = vpack.c.bf16 %v6609_v57, %v6608_v9  ;;  %9785 = vpow2.f32 %v5203_v41  ;;  %v3288_v18 = vadd.f32 %v3287_v16, %v12529_v28  ;;  %v3347_v48 = vadd.f32 %v3346_v55, %v12534_v49  ;;  %v432_v55 = vld [vmem:[%s10386_s25 + $0x158] sm:$0xff] }
 0x652   : > { %v5363_v47 = vpack.c.bf16 %v9780_v58, %v9778_v56  ;;  %9787 = vpow2.f32 %v5205_v5  ;;  %v3457_v62 = vadd.f32 %v3456_v6, %v12586_v29  ;;  %v5716_v22 = vpack.c.bf16 %v5611_v13, %v5610_v32 }
 0x653   : > { %v4102_v3 = vmul.f32 %v3962_v1, %v3822_v17  ;;  %v4103_v24 = vmul.f32 %v3963_v25, %v3823_v12  ;;  %v13415_v43 = vpack.c.bf16 %v3347_v48, %v3288_v18  ;;  %v6463_v8 = vunpack.c.l.bf16 %v6212_v7 }
 0x654   : > { %v6464_v20 = vunpack.c.h.bf16 %v6212_v7  ;;  %v4769_v52 = vsub.f32 0.0, %v4629_v51  ;;  %v4770_v14 = vsub.f32 0.0, %v4630_v63  ;;  %v6828_v57 = vunpack.c.l.bf16 %v6715_v31 }
 0x655   : > { %v9782_v9 = vpop.eup %9781  ;;  %v6829_v41 = vunpack.c.h.bf16 %v6715_v31  ;;  %v4322_v16 = vmax.f32 %v3962_v1, 0.0  ;;  %v4323_v56 = vmax.f32 %v3963_v25, 0.0  ;;  %v5482_v5 = vunpack.c.l.bf16 %v5363_v47 }
 0x656   : > { %v9784_v58 = vpop.eup %9783  ;;  %v5483_v6 = vunpack.c.h.bf16 %v5363_v47  ;;  %v13418_v32 = vpack.c.bf16 %v3457_v62, %v3398_v38  ;;  %v5830_v12 = vunpack.c.l.bf16 %v5716_v22  ;;  %v13422_v51 = vpack.c.bf16 %v4103_v24, %v4102_v3 }
 0x657   : > { %v9786_v17 = vpop.eup %9785  ;;  %v15553_v31 = vunpack.c.l.bf16 %v13332_v30  ;;  %v15554_v1 = vunpack.c.h.bf16 %v13332_v30  ;;  %v5831_v25 = vunpack.c.h.bf16 %v5716_v22  ;;  %v4867_v47 = vpack.c.bf16 %v4770_v14, %v4769_v52 }
 0x658   : > { %v9788_v63 = vpop.eup %9787  ;;  %v15555_v38 = vunpack.c.l.bf16 %v13310_v39  ;;  %v15557_v13 = vunpack.c.h.bf16 %v13310_v39  ;;  %v6060_v3 = vmul.f32 0.6931472, %v9782_v9  ;;  %v6062_v24 = vmul.f32 0.6931472, %v9784_v58 }
 0x659   : > { %v6603_v18 = vadd.f32 %v6463_v8, %v15553_v31  ;;  %v6604_v48 = vadd.f32 %v6464_v20, %v15554_v1  ;;  %v13437_v33 = vpack.c.bf16 %v4323_v56, %v4322_v16  ;;  %v5622_v8 = vadd.f32 1.0, %v5482_v5 }
 0x65a   : > { %v13431_v62 = vsub.f32 %v6828_v57, %v15555_v38  ;;  %v13435_v7 = vsub.f32 %v6829_v41, %v15557_v13  ;;  %v5623_v31 = vadd.f32 1.0, %v5483_v6  ;;  %v4504_v30 = vand.u32 2147450879, %v13418_v32  ;;  %v439_v57 = vld [vmem:[%s10386_s25 + $0x188] sm:$0xff] }
 0x65b   : > { %9789 = vlog2.f32 %v5830_v12  ;;  %v3817_v20 = vunpack.c.l.bf16 %v432_v55  ;;  %v5360_v52 = vpack.c.bf16 %v9788_v63, %v9786_v17  ;;  %v13441_v14 = vpack.c.bf16 %v6604_v48, %v6603_v18 }
 0x65c   : > { %15556 = vst [vmem:[#allocation63_spill] sm:$0xff] %v13431_v62  ;;  %9791 = vlog2.f32 %v5831_v25  ;;  %v3957_v39 = vunpack.c.l.bf16 %v13345_v0  ;;  %v4989_v41 = vunpack.c.l.bf16 %v4867_v47  ;;  %v6219_v9 = vpack.c.bf16 %v6062_v24, %v6060_v3 }
 0x65d   : > { %15558 = vst [vmem:[#allocation64_spill] sm:$0xff] %v13435_v7  ;;  %v3818_v58 = vunpack.c.h.bf16 %v432_v55  ;;  %v3958_v16 = vunpack.c.h.bf16 %v13345_v0  ;;  %v4990_v56 = vunpack.c.h.bf16 %v4867_v47  ;;  %v5723_v5 = vpack.c.bf16 %v5623_v31, %v5622_v8 }
 0x65e   : > { %15559 = vst [vmem:[#allocation65_spill] sm:$0xff] %v13441_v14  ;;  %v4624_v12 = vunpack.c.l.bf16 %v4504_v30  ;;  %v4625_v13 = vunpack.c.h.bf16 %v4504_v30  ;;  %v5477_v17 = vunpack.c.l.bf16 %v5360_v52  ;;  %v5478_v63 = vunpack.c.h.bf16 %v5360_v52 }
 0x65f   : > { %v3829_v18 = vunpack.c.l.bf16 %v439_v57  ;;  %v6823_v48 = vunpack.c.l.bf16 %v13441_v14  ;;  %v4097_v25 = vmul.f32 %v3957_v39, %v3817_v20  ;;  %v3830_v38 = vunpack.c.h.bf16 %v439_v57 }
 0x660   : > { %v5227_v22 = vmul.f32 1.442695, %v4989_v41  ;;  %v6475_v55 = vunpack.c.l.bf16 %v6219_v9  ;;  %v4098_v24 = vmul.f32 %v3958_v16, %v3818_v58  ;;  %v4317_v0 = vmax.f32 %v3957_v39, 0.0 }
 0x661   : > { %v9790_v3 = vpop.eup %9789  ;;  %v5229_v47 = vmul.f32 1.442695, %v4990_v56  ;;  %v6476_v31 = vunpack.c.h.bf16 %v6219_v9  ;;  %v5842_v6 = vunpack.c.l.bf16 %v5723_v5  ;;  %v4764_v7 = vsub.f32 0.0, %v4624_v12 }
 0x662   : > { %v9792_v8 = vpop.eup %9791  ;;  %v4765_v30 = vsub.f32 0.0, %v4625_v13  ;;  %v5843_v62 = vunpack.c.h.bf16 %v5723_v5  ;;  %v5617_v1 = vadd.f32 1.0, %v5477_v17  ;;  %v5618_v26 = vadd.f32 1.0, %v5478_v63  ;;  %v3459_v17 = vpop.f32.mrf.mxu0 }
 0x663   : > { %v4511_v52 = vand.u32 2147450879, %v13354_v35  ;;  %v4318_v42 = vmax.f32 %v3958_v16, 0.0  ;;  %v3969_v20 = vunpack.c.l.bf16 %v13295_v60  ;;  %v3970_v57 = vunpack.c.h.bf16 %v13295_v60 }
 0x664   : > { %9793 = vpow2.f32 %v5227_v22  ;;  %v6050_v41 = vmul.f32 0.6931472, %v9790_v3  ;;  %v6052_v58 = vmul.f32 0.6931472, %v9792_v8  ;;  %v13452_v39 = vpack.c.bf16 %v4098_v24, %v4097_v25 }
 0x665   : > { %9795 = vpow2.f32 %v5229_v47  ;;  %v15561_v9 = vunpack.c.l.bf16 %v13370_v45  ;;  %v15562_v5 = vunpack.c.h.bf16 %v13370_v45  ;;  %v4864_v13 = vpack.c.bf16 %v4765_v30, %v4764_v7 }
 0x666   : > { %15560 = vst [vmem:[#allocation66_spill] sm:$0xff] %v13452_v39  ;;  %9797 = vlog2.f32 %v5842_v6  ;;  %v5720_v16 = vpack.c.bf16 %v5618_v26, %v5617_v1  ;;  %v4636_v63 = vunpack.c.l.bf16 %v4511_v52  ;;  %v4637_v14 = vunpack.c.h.bf16 %v4511_v52 }
 0x667   : > { %v6615_v56 = vadd.f32 %v6475_v55, %v15561_v9  ;;  %v6616_v12 = vadd.f32 %v6476_v31, %v15562_v5  ;;  %9799 = vlog2.f32 %v5843_v62  ;;  %v13459_v22 = vpack.c.bf16 %v4318_v42, %v4317_v0  ;;  %v3348_v9 = vpop.f32.mrf.mxu2 }
 0x668   : > { %v4109_v25 = vmul.f32 %v3969_v20, %v3829_v18  ;;  %v4110_v3 = vmul.f32 %v3970_v57, %v3830_v38  ;;  %v15563_v24 = vunpack.c.l.bf16 %v13327_v46  ;;  %v6216_v55 = vpack.c.bf16 %v6052_v58, %v6050_v41 }
 0x669   : > { %v3460_v7 = vadd.f32 %v3459_v17, %v12586_v29  ;;  %v6719_v62 = vpack.c.bf16 %v6616_v12, %v6615_v56  ;;  %v3401_v1 = vadd.f32 %v13283_v59, %v12589_v15  ;;  %v4984_v42 = vunpack.c.l.bf16 %v4864_v13 }
 0x66a   : > { %v13463_v47 = vsub.f32 %v6823_v48, %v15563_v24  ;;  %v9794_v6 = vpop.eup %9793  ;;  %v5837_v18 = vunpack.c.l.bf16 %v5720_v16  ;;  %v4985_v38 = vunpack.c.h.bf16 %v4864_v13  ;;  %v4776_v8 = vsub.f32 0.0, %v4636_v63 }
 0x66b   : > { %v9796_v0 = vpop.eup %9795  ;;  %v4777_v31 = vsub.f32 0.0, %v4637_v14  ;;  %v5838_v30 = vunpack.c.h.bf16 %v5720_v16  ;;  %v13472_v58 = vpack.c.bf16 %v4110_v3, %v4109_v25  ;;  %v6470_v5 = vunpack.c.l.bf16 %v6216_v55  ;;  %v3289_v14 = vpop.f32.mrf.mxu1 }
 0x66c   : > { %15564 = vst [vmem:[#allocation67_spill] sm:$0xff] %v13463_v47  ;;  %v9798_v48 = vpop.eup %9797  ;;  %v4329_v12 = vmax.f32 %v3969_v20, 0.0  ;;  %v4330_v17 = vmax.f32 %v3970_v57, 0.0  ;;  %v13474_v59 = vpack.c.bf16 %v3460_v7, %v3401_v1  ;;  %v6835_v24 = vunpack.c.l.bf16 %v6719_v62 }
 0x66d   : > { %v9800_v56 = vpop.eup %9799  ;;  %v6471_v26 = vunpack.c.h.bf16 %v6216_v55  ;;  %v5367_v13 = vpack.c.bf16 %v9796_v0, %v9794_v6  ;;  %v5217_v63 = vmul.f32 1.442695, %v4984_v42  ;;  %9801 = vlog2.f32 %v5837_v18 }
 0x66e   : > { %v5219_v16 = vmul.f32 1.442695, %v4985_v38  ;;  %v4871_v45 = vpack.c.bf16 %v4777_v31, %v4776_v8  ;;  %v3349_v60 = vadd.f32 %v3348_v9, %v12534_v49  ;;  %v6836_v25 = vunpack.c.h.bf16 %v6719_v62  ;;  %v436_v38 = vld [vmem:[%s10386_s25 + $0x174] sm:$0xff] }
 0x66f   : > { %v6074_v3 = vmul.f32 0.6931472, %v9798_v48  ;;  %v6076_v41 = vmul.f32 0.6931472, %v9800_v56  ;;  %9803 = vlog2.f32 %v5838_v30  ;;  %v15565_v20 = vunpack.c.l.bf16 %v13407_v11 }
 0x670   : > { %v13479_v7 = vpack.c.bf16 %v4330_v17, %v4329_v12  ;;  %v4508_v55 = vand.u32 2147450879, %v13474_v59  ;;  %v3290_v6 = vadd.f32 %v3289_v14, %v12529_v28  ;;  %v15566_v1 = vunpack.c.h.bf16 %v13407_v11 }
 0x671   : > { %v6610_v57 = vadd.f32 %v6470_v5, %v15565_v20  ;;  %v5489_v0 = vunpack.c.l.bf16 %v5367_v13  ;;  %v5490_v18 = vunpack.c.h.bf16 %v5367_v13  ;;  %9805 = vpow2.f32 %v5217_v63 }
 0x672   : > { %v6611_v42 = vadd.f32 %v6471_v26, %v15566_v1  ;;  %9807 = vpow2.f32 %v5219_v16  ;;  %v4996_v8 = vunpack.c.l.bf16 %v4871_v45  ;;  %v13487_v31 = vpack.c.bf16 %v3349_v60, %v3290_v6 }
 0x673   : > { %v15567_v48 = vunpack.c.l.bf16 %v13359_v4  ;;  %v6223_v9 = vpack.c.bf16 %v6076_v41, %v6074_v3  ;;  %v4997_v5 = vunpack.c.h.bf16 %v4871_v45  ;;  %v9802_v11 = vpop.eup %9801  ;;  %v15569_v26 = vunpack.c.h.bf16 %v13359_v4 }
 0x674   : > { %v3824_v17 = vunpack.c.l.bf16 %v436_v38  ;;  %v4631_v13 = vunpack.c.l.bf16 %v4508_v55  ;;  %v4632_v63 = vunpack.c.h.bf16 %v4508_v55  ;;  %v13498_v16 = vpack.c.bf16 %v6611_v42, %v6610_v57 }
 0x675   : > { %v13491_v30 = vsub.f32 %v6835_v24, %v15567_v48  ;;  %v13496_v12 = vsub.f32 %v6836_v25, %v15569_v26  ;;  %v9804_v14 = vpop.eup %9803  ;;  %v5629_v60 = vadd.f32 1.0, %v5489_v0  ;;  %v5630_v20 = vadd.f32 1.0, %v5490_v18 }
 0x676   : > { %15571 = vst [vmem:[#allocation70_spill] sm:$0xff] %v13498_v16  ;;  %v3964_v24 = vunpack.c.l.bf16 %v13418_v32  ;;  %v3825_v3 = vunpack.c.h.bf16 %v436_v38  ;;  %v3965_v45 = vunpack.c.h.bf16 %v13418_v32  ;;  %v5241_v6 = vmul.f32 1.442695, %v4996_v8  ;;  %v443_v38 = vld [vmem:[%s10386_s25 + $0x1a4] sm:$0xff] }
 0x677   : > { %15568 = vst [vmem:[#allocation68_spill] sm:$0xff] %v13491_v30  ;;  %v9806_v4 = vpop.eup %9805  ;;  %v6482_v25 = vunpack.c.l.bf16 %v6223_v9  ;;  %v6483_v1 = vunpack.c.h.bf16 %v6223_v9  ;;  %v5243_v55 = vmul.f32 1.442695, %v4997_v5  ;;  %v6064_v57 = vmul.f32 0.6931472, %v9802_v11 }
 0x678   : > { %15570 = vst [vmem:[#allocation69_spill] sm:$0xff] %v13496_v12  ;;  %v9808_v26 = vpop.eup %9807  ;;  %v6066_v42 = vmul.f32 0.6931472, %v9804_v14  ;;  %v4771_v0 = vsub.f32 0.0, %v4631_v13  ;;  %v4772_v18 = vsub.f32 0.0, %v4632_v63  ;;  %v6830_v56 = vunpack.c.l.bf16 %v13498_v16 }
 0x679   : > { %v5727_v62 = vpack.c.bf16 %v5630_v20, %v5629_v60  ;;  %v4104_v41 = vmul.f32 %v3964_v24, %v3824_v17  ;;  %v4515_v52 = vand.u32 2147450879, %v13415_v43  ;;  %v4105_v32 = vmul.f32 %v3965_v45, %v3825_v3  ;;  %v3461_v17 = vpop.f32.mrf.mxu0 }
 0x67a   : > { %v4324_v8 = vmax.f32 %v3964_v24, 0.0  ;;  %v4325_v12 = vmax.f32 %v3965_v45, 0.0  ;;  %9809 = vpow2.f32 %v5241_v6  ;;  %v15572_v9 = vunpack.c.l.bf16 %v13437_v33 }
 0x67b   : > { %v15573_v5 = vunpack.c.h.bf16 %v13437_v33  ;;  %v5364_v14 = vpack.c.bf16 %v9808_v26, %v9806_v4  ;;  %9811 = vpow2.f32 %v5243_v55  ;;  %v6220_v13 = vpack.c.bf16 %v6066_v42, %v6064_v57 }
 0x67c   : > { %v6622_v48 = vadd.f32 %v6482_v25, %v15572_v9  ;;  %v3836_v63 = vunpack.c.l.bf16 %v443_v38  ;;  %v3837_v30 = vunpack.c.h.bf16 %v443_v38  ;;  %v4868_v60 = vpack.c.bf16 %v4772_v18, %v4771_v0 }
 0x67d   : > { %v6623_v11 = vadd.f32 %v6483_v1, %v15573_v5  ;;  %v15574_v20 = vunpack.c.l.bf16 %v13405_v10  ;;  %v5849_v24 = vunpack.c.l.bf16 %v5727_v62  ;;  %v4643_v3 = vunpack.c.l.bf16 %v4515_v52 }
 0x67e   : > { %v4644_v45 = vunpack.c.h.bf16 %v4515_v52  ;;  %v5850_v6 = vunpack.c.h.bf16 %v5727_v62  ;;  %v13515_v46 = vpack.c.bf16 %v4105_v32, %v4104_v41  ;;  %v13517_v25 = vpack.c.bf16 %v4325_v12, %v4324_v8 }
 0x67f   : > { %v13513_v47 = vsub.f32 %v6830_v56, %v15574_v20  ;;  %v3976_v33 = vunpack.c.l.bf16 %v13354_v35  ;;  %v13520_v4 = vpack.c.bf16 %v6623_v11, %v6622_v48  ;;  %v5484_v1 = vunpack.c.l.bf16 %v5364_v14 }
 0x680   : > { %15576 = vst [vmem:[#allocation72_spill] sm:$0xff] %v13515_v46  ;;  %v5485_v55 = vunpack.c.h.bf16 %v5364_v14  ;;  %v3462_v26 = vadd.f32 %v3461_v17, %v12586_v29  ;;  %v9810_v57 = vpop.eup %9809  ;;  %v6477_v42 = vunpack.c.l.bf16 %v6220_v13  ;;  %v6478_v56 = vunpack.c.h.bf16 %v6220_v13  ;;  %v440_v17 = vld [vmem:[%s10386_s25 + $0x190] sm:$0xff] }
 0x681   : > { %15575 = vst [vmem:[#allocation71_spill] sm:$0xff] %v13513_v47  ;;  %v3403_v0 = vadd.f32 %v13319_v53, %v12589_v15  ;;  %v4991_v52 = vunpack.c.l.bf16 %v4868_v60  ;;  %v9812_v62 = vpop.eup %9811  ;;  %9813 = vlog2.f32 %v5849_v24  ;;  %v4992_v12 = vunpack.c.h.bf16 %v4868_v60  ;;  %v3351_v53 = vpop.f32.mrf.mxu2 }
 0x682   : > { %v4783_v41 = vsub.f32 0.0, %v4643_v3  ;;  %v4784_v18 = vsub.f32 0.0, %v4644_v45  ;;  %9815 = vlog2.f32 %v5850_v6  ;;  %v3977_v32 = vunpack.c.h.bf16 %v13354_v35 }
 0x683   : > { %v5624_v8 = vadd.f32 1.0, %v5484_v1  ;;  %v5625_v9 = vadd.f32 1.0, %v5485_v55  ;;  %v13529_v11 = vpack.c.bf16 %v3462_v26, %v3403_v0  ;;  %v6842_v14 = vunpack.c.l.bf16 %v13520_v4  ;;  %v3292_v55 = vpop.f32.mrf.mxu1 }
 0x684   : > { %v4116_v13 = vmul.f32 %v3976_v33, %v3836_v63  ;;  %v5371_v60 = vpack.c.bf16 %v9812_v62, %v9810_v57  ;;  %v5231_v20 = vmul.f32 1.442695, %v4991_v52  ;;  %v15577_v24 = vunpack.c.l.bf16 %v13459_v22 }
 0x685   : > { %v15578_v45 = vunpack.c.h.bf16 %v13459_v22  ;;  %v5233_v35 = vmul.f32 1.442695, %v4992_v12  ;;  %v4875_v1 = vpack.c.bf16 %v4784_v18, %v4783_v41  ;;  %v6843_v5 = vunpack.c.h.bf16 %v13520_v4 }
 0x686   : > { %v6617_v3 = vadd.f32 %v6477_v42, %v15577_v24  ;;  %v4117_v26 = vmul.f32 %v3977_v32, %v3837_v30  ;;  %v4336_v0 = vmax.f32 %v3976_v33, 0.0  ;;  %v3352_v38 = vadd.f32 %v3351_v53, %v12534_v49 }
 0x687   : > { %v6618_v6 = vadd.f32 %v6478_v56, %v15578_v45  ;;  %v9814_v48 = vpop.eup %9813  ;;  %v5724_v63 = vpack.c.bf16 %v5625_v9, %v5624_v8  ;;  %v4337_v57 = vmax.f32 %v3977_v32, 0.0  ;;  %v3831_v62 = vunpack.c.l.bf16 %v440_v17 }
 0x688   : > { %v4512_v52 = vand.u32 2147450879, %v13529_v11  ;;  %v9816_v47 = vpop.eup %9815  ;;  %v5496_v42 = vunpack.c.l.bf16 %v5371_v60  ;;  %v5497_v24 = vunpack.c.h.bf16 %v5371_v60  ;;  %9817 = vpow2.f32 %v5231_v20 }
 0x689   : > { %v3293_v22 = vadd.f32 %v3292_v55, %v12529_v28  ;;  %v13541_v56 = vpack.c.bf16 %v6618_v6, %v6617_v3  ;;  %v3832_v12 = vunpack.c.h.bf16 %v440_v17  ;;  %9819 = vpow2.f32 %v5233_v35 }
 0x68a   : > { %v5003_v30 = vunpack.c.l.bf16 %v4875_v1  ;;  %v6088_v33 = vmul.f32 0.6931472, %v9814_v48  ;;  %v3971_v4 = vunpack.c.l.bf16 %v13474_v59  ;;  %v5004_v41 = vunpack.c.h.bf16 %v4875_v1 }
 0x68b   : > { %15579 = vst [vmem:[#allocation73_spill] sm:$0xff] %v13541_v56  ;;  %v13544_v18 = vpack.c.bf16 %v3352_v38, %v3293_v22  ;;  %v6090_v32 = vmul.f32 0.6931472, %v9816_v47  ;;  %v5844_v8 = vunpack.c.l.bf16 %v5724_v63  ;;  %v4638_v9 = vunpack.c.l.bf16 %v4512_v52 }
 0x68c   : > { %v4639_v53 = vunpack.c.h.bf16 %v4512_v52  ;;  %v5845_v45 = vunpack.c.h.bf16 %v5724_v63  ;;  %v5636_v60 = vadd.f32 1.0, %v5496_v42  ;;  %v5637_v20 = vadd.f32 1.0, %v5497_v24 }
 0x68d   : > { %v3972_v55 = vunpack.c.h.bf16 %v13474_v59  ;;  %v15580_v3 = vunpack.c.l.bf16 %v13422_v51  ;;  %v13552_v6 = vpack.c.bf16 %v4117_v26, %v4116_v13  ;;  %v5255_v35 = vmul.f32 1.442695, %v5003_v30 }
 0x68e   : > { %v9818_v38 = vpop.eup %9817  ;;  %v15582_v47 = vunpack.c.h.bf16 %v13422_v51  ;;  %v6837_v63 = vunpack.c.l.bf16 %v13541_v56  ;;  %v13559_v52 = vpack.c.bf16 %v4337_v57, %v4336_v0  ;;  %v5257_v42 = vmul.f32 1.442695, %v5004_v41  ;;  %v447_v41 = vld [vmem:[%s10386_s25 + $0x1c0] sm:$0xff] }
 0x68f   : > { %v13549_v17 = vsub.f32 %v6842_v14, %v15580_v3  ;;  %v9820_v59 = vpop.eup %9819  ;;  %v6227_v24 = vpack.c.bf16 %v6090_v32, %v6088_v33  ;;  %9821 = vlog2.f32 %v5844_v8  ;;  %v4778_v14 = vsub.f32 0.0, %v4638_v9 }
 0x690   : > { %v13556_v1 = vsub.f32 %v6843_v5, %v15582_v47  ;;  %v4779_v22 = vsub.f32 0.0, %v4639_v53  ;;  %9823 = vlog2.f32 %v5845_v45  ;;  %v5731_v13 = vpack.c.bf16 %v5637_v20, %v5636_v60  ;;  %v3464_v60 = vpop.f32.mrf.mxu0 }
 0x691   : > { %15581 = vst [vmem:[#allocation74_spill] sm:$0xff] %v13549_v17  ;;  %v4111_v26 = vmul.f32 %v3971_v4, %v3831_v62  ;;  %v4112_v30 = vmul.f32 %v3972_v55, %v3832_v12  ;;  %v4331_v51 = vmax.f32 %v3971_v4, 0.0  ;;  %v4332_v5 = vmax.f32 %v3972_v55, 0.0 }
 0x692   : > { %15583 = vst [vmem:[#allocation75_spill] sm:$0xff] %v13556_v1  ;;  %9825 = vpow2.f32 %v5255_v35  ;;  %v5368_v57 = vpack.c.bf16 %v9820_v59, %v9818_v38  ;;  %v6489_v33 = vunpack.c.l.bf16 %v6227_v24  ;;  %v6490_v32 = vunpack.c.h.bf16 %v6227_v24 }
 0x693   : > { %9827 = vpow2.f32 %v5257_v42  ;;  %v4872_v9 = vpack.c.bf16 %v4779_v22, %v4778_v14  ;;  %v15584_v62 = vunpack.c.l.bf16 %v13452_v39  ;;  %v5856_v53 = vunpack.c.l.bf16 %v5731_v13  ;;  %v3405_v22 = vpop.f32.mrf.mxu3 }
 0x694   : > { %v13570_v4 = vpack.c.bf16 %v4112_v30, %v4111_v26  ;;  %v4519_v45 = vand.u32 2147450879, %v13487_v31  ;;  %v5857_v55 = vunpack.c.h.bf16 %v5731_v13  ;;  %v13573_v35 = vpack.c.bf16 %v4332_v5, %v4331_v51 }
 0x695   : > { %v13568_v12 = vsub.f32 %v6837_v63, %v15584_v62  ;;  %v9822_v20 = vpop.eup %9821  ;;  %v3843_v38 = vunpack.c.l.bf16 %v447_v41  ;;  %v3844_v42 = vunpack.c.h.bf16 %v447_v41  ;;  %v5491_v24 = vunpack.c.l.bf16 %v5368_v57 }
 0x696   : > { %15586 = vst [vmem:[#allocation77_spill] sm:$0xff] %v13570_v4  ;;  %v9824_v59 = vpop.eup %9823  ;;  %v5492_v48 = vunpack.c.h.bf16 %v5368_v57  ;;  %v3983_v14 = vunpack.c.l.bf16 %v13415_v43  ;;  %v3984_v63 = vunpack.c.h.bf16 %v13415_v43  ;;  %v15587_v26 = vunpack.c.l.bf16 %v13479_v7 }
 0x697   : > { %15585 = vst [vmem:[#allocation76_spill] sm:$0xff] %v13568_v12  ;;  %v15588_v0 = vunpack.c.h.bf16 %v13479_v7  ;;  %v4998_v13 = vunpack.c.l.bf16 %v4872_v9  ;;  %v3465_v51 = vadd.f32 %v3464_v60, %v12586_v29  ;;  %9829 = vlog2.f32 %v5856_v53 }
 0x698   : > { %v9826_v62 = vpop.eup %9825  ;;  %v6629_v30 = vadd.f32 %v6489_v33, %v15587_v26  ;;  %v4999_v41 = vunpack.c.h.bf16 %v4872_v9  ;;  %v4650_v8 = vunpack.c.l.bf16 %v4519_v45  ;;  %v4651_v57 = vunpack.c.h.bf16 %v4519_v45  ;;  %v3294_v9 = vpop.f32.mrf.mxu1 }
 0x699   : > { %v6630_v3 = vadd.f32 %v6490_v32, %v15588_v0  ;;  %v9828_v5 = vpop.eup %9827  ;;  %v6078_v47 = vmul.f32 0.6931472, %v9822_v20  ;;  %v6080_v39 = vmul.f32 0.6931472, %v9824_v59  ;;  %9831 = vlog2.f32 %v5857_v55  ;;  %v3353_v0 = vpop.f32.mrf.mxu2 }
 0x69a   : > { %v3406_v43 = vadd.f32 %v3405_v22, %v12589_v15  ;;  %v5631_v56 = vadd.f32 1.0, %v5491_v24  ;;  %v5632_v12 = vadd.f32 1.0, %v5492_v48  ;;  %v5375_v26 = vpack.c.bf16 %v9828_v5, %v9826_v62  ;;  %v444_v5 = vld [vmem:[%s10386_s25 + $0x1ac] sm:$0xff] }
 0x69b   : > { %v6727_v32 = vpack.c.bf16 %v6630_v3, %v6629_v30  ;;  %v5245_v60 = vmul.f32 1.442695, %v4998_v13  ;;  %v5247_v45 = vmul.f32 1.442695, %v4999_v41  ;;  %v4790_v20 = vsub.f32 0.0, %v4650_v8 }
 0x69c   : > { %v13585_v1 = vpack.c.bf16 %v3465_v51, %v3406_v43  ;;  %v4791_v55 = vsub.f32 0.0, %v4651_v57  ;;  %v6224_v59 = vpack.c.bf16 %v6080_v39, %v6078_v47  ;;  %v4123_v22 = vmul.f32 %v3983_v14, %v3843_v38 }
 0x69d   : > { %v4124_v24 = vmul.f32 %v3984_v63, %v3844_v42  ;;  %v3354_v48 = vadd.f32 %v3353_v0, %v12534_v49  ;;  %v9830_v33 = vpop.eup %9829  ;;  %v5728_v17 = vpack.c.bf16 %v5632_v12, %v5631_v56  ;;  %v4343_v7 = vmax.f32 %v3983_v14, 0.0 }
 0x69e   : > { %v4344_v10 = vmax.f32 %v3984_v63, 0.0  ;;  %v3295_v3 = vadd.f32 %v3294_v9, %v12529_v28  ;;  %v6849_v30 = vunpack.c.l.bf16 %v6727_v32  ;;  %v5503_v13 = vunpack.c.l.bf16 %v5375_v26 }
 0x69f   : > { %v9832_v62 = vpop.eup %9831  ;;  %9833 = vpow2.f32 %v5245_v60  ;;  %v4516_v51 = vand.u32 2147450879, %v13585_v1  ;;  %v5504_v8 = vunpack.c.h.bf16 %v5375_v26  ;;  %v4879_v39 = vpack.c.bf16 %v4791_v55, %v4790_v20 }
 0x6a0   : > { %9835 = vpow2.f32 %v5247_v45  ;;  %v13591_v47 = vpack.c.bf16 %v3354_v48, %v3295_v3  ;;  %v6484_v38 = vunpack.c.l.bf16 %v6224_v59  ;;  %v6485_v49 = vunpack.c.h.bf16 %v6224_v59 }
 0x6a1   : > { %v13594_v12 = vpack.c.bf16 %v4124_v24, %v4123_v22  ;;  %v6850_v42 = vunpack.c.h.bf16 %v6727_v32  ;;  %v6102_v28 = vmul.f32 0.6931472, %v9830_v33  ;;  %v6104_v14 = vmul.f32 0.6931472, %v9832_v62 }
 0x6a2   : > { %v5851_v63 = vunpack.c.l.bf16 %v5728_v17  ;;  %v5852_v41 = vunpack.c.h.bf16 %v5728_v17  ;;  %v13597_v57 = vpack.c.bf16 %v4344_v10, %v4343_v7  ;;  %v4645_v43 = vunpack.c.l.bf16 %v4516_v51 }
 0x6a3   : > { %v4646_v0 = vunpack.c.h.bf16 %v4516_v51  ;;  %v15589_v26 = vunpack.c.l.bf16 %v13472_v58  ;;  %v5643_v9 = vadd.f32 1.0, %v5503_v13  ;;  %v5644_v45 = vadd.f32 1.0, %v5504_v8 }
 0x6a4   : > { %v5010_v20 = vunpack.c.l.bf16 %v4879_v39  ;;  %v15591_v59 = vunpack.c.l.bf16 %v13517_v25  ;;  %v15592_v33 = vunpack.c.h.bf16 %v13517_v25  ;;  %v3838_v17 = vunpack.c.l.bf16 %v444_v5 }
 0x6a5   : > { %v13601_v60 = vsub.f32 %v6849_v30, %v15589_v26  ;;  %v9834_v55 = vpop.eup %9833  ;;  %v5011_v10 = vunpack.c.h.bf16 %v4879_v39  ;;  %v6231_v24 = vpack.c.bf16 %v6104_v14, %v6102_v28  ;;  %9837 = vlog2.f32 %v5851_v63  ;;  %v3466_v14 = vpop.f32.mrf.mxu0 }
 0x6a6   : > { %v6624_v32 = vadd.f32 %v6484_v38, %v15591_v59  ;;  %v6625_v22 = vadd.f32 %v6485_v49, %v15592_v33  ;;  %v9836_v7 = vpop.eup %9835  ;;  %v3839_v48 = vunpack.c.h.bf16 %v444_v5  ;;  %v3978_v3 = vunpack.c.l.bf16 %v13529_v11  ;;  %v13615_v49 = vld [vmem:[%s10386_s25 + $0x1dc] sm:$0xff] }
 0x6a7   : > { %15590 = vst [vmem:[#allocation78_spill] sm:$0xff] %v13601_v60  ;;  %9839 = vlog2.f32 %v5852_v41  ;;  %v3979_v62 = vunpack.c.h.bf16 %v13529_v11  ;;  %v4785_v30 = vsub.f32 0.0, %v4645_v43  ;;  %v4786_v13 = vsub.f32 0.0, %v4646_v0 }
 0x6a8   : > { %v15593_v51 = vunpack.c.h.bf16 %v13472_v58  ;;  %v5735_v25 = vpack.c.bf16 %v5644_v45, %v5643_v9  ;;  %v5269_v39 = vmul.f32 1.442695, %v5010_v20  ;;  %v5372_v63 = vpack.c.bf16 %v9836_v7, %v9834_v55 }
 0x6a9   : > { %v5271_v5 = vmul.f32 1.442695, %v5011_v10  ;;  %v13619_v41 = vpack.c.bf16 %v6625_v22, %v6624_v32  ;;  %v6496_v11 = vunpack.c.l.bf16 %v6231_v24  ;;  %v6497_v43 = vunpack.c.h.bf16 %v6231_v24 }
 0x6aa   : > { %v13611_v8 = vsub.f32 %v6850_v42, %v15593_v51  ;;  %v4118_v42 = vmul.f32 %v3978_v3, %v3838_v17  ;;  %v4119_v0 = vmul.f32 %v3979_v62, %v3839_v48  ;;  %v3850_v26 = vunpack.c.l.bf16 %v13615_v49  ;;  %v3407_v51 = vpop.f32.mrf.mxu3 }
 0x6ab   : > { %15595 = vst [vmem:[#allocation80_spill] sm:$0xff] %v13619_v41  ;;  %v4876_v9 = vpack.c.bf16 %v4786_v13, %v4785_v30  ;;  %v9838_v45 = vpop.eup %9837  ;;  %v5863_v59 = vunpack.c.l.bf16 %v5735_v25  ;;  %v4338_v20 = vmax.f32 %v3978_v3, 0.0  ;;  %v4339_v33 = vmax.f32 %v3979_v62, 0.0 }
 0x6ac   : > { %15594 = vst [vmem:[#allocation79_spill] sm:$0xff] %v13611_v8  ;;  %9841 = vpow2.f32 %v5269_v39  ;;  %v5864_v10 = vunpack.c.h.bf16 %v5735_v25  ;;  %v5498_v32 = vunpack.c.l.bf16 %v5372_v63  ;;  %v5499_v22 = vunpack.c.h.bf16 %v5372_v63 }
 0x6ad   : > { %v9840_v55 = vpop.eup %9839  ;;  %9843 = vpow2.f32 %v5271_v5  ;;  %v6844_v7 = vunpack.c.l.bf16 %v13619_v41  ;;  %v15596_v17 = vunpack.c.l.bf16 %v13559_v52  ;;  %v15597_v48 = vunpack.c.h.bf16 %v13559_v52 }
 0x6ae   : > { %v4523_v13 = vand.u32 2147450879, %v13544_v18  ;;  %v13629_v3 = vpack.c.bf16 %v4119_v0, %v4118_v42  ;;  %v3408_v62 = vadd.f32 %v3407_v51, %v12589_v15  ;;  %v5005_v39 = vunpack.c.l.bf16 %v4876_v9 }
 0x6af   : > { %v6636_v24 = vadd.f32 %v6496_v11, %v15596_v17  ;;  %v6637_v30 = vadd.f32 %v6497_v43, %v15597_v48  ;;  %v3467_v25 = vadd.f32 %v3466_v14, %v12586_v29  ;;  %v6092_v58 = vmul.f32 0.6931472, %v9838_v45 }
 0x6b0   : > { %15598 = vst [vmem:[#allocation81_spill] sm:$0xff] %v13629_v3  ;;  %v6094_v63 = vmul.f32 0.6931472, %v9840_v55  ;;  %9845 = vlog2.f32 %v5863_v59  ;;  %v5006_v5 = vunpack.c.h.bf16 %v4876_v9  ;;  %v13633_v28 = vpack.c.bf16 %v4339_v33, %v4338_v20 }
 0x6b1   : > { %9847 = vlog2.f32 %v5864_v10  ;;  %v5638_v11 = vadd.f32 1.0, %v5498_v32  ;;  %v5639_v17 = vadd.f32 1.0, %v5499_v22  ;;  %v13635_v43 = vpack.c.bf16 %v6637_v30, %v6636_v24 }
 0x6b2   : > { %v9842_v52 = vpop.eup %9841  ;;  %v3851_v42 = vunpack.c.h.bf16 %v13615_v49  ;;  %v4657_v0 = vunpack.c.l.bf16 %v4523_v13  ;;  %v4658_v48 = vunpack.c.h.bf16 %v4523_v13  ;;  %v3990_v14 = vunpack.c.l.bf16 %v13487_v31 }
 0x6b3   : > { %v9844_v51 = vpop.eup %9843  ;;  %v3991_v45 = vunpack.c.h.bf16 %v13487_v31  ;;  %v5259_v59 = vmul.f32 1.442695, %v5005_v39  ;;  %v13640_v9 = vpack.c.bf16 %v3467_v25, %v3408_v62  ;;  %v15599_v20 = vunpack.c.l.bf16 %v13515_v46  ;;  %v448_v39 = vld [vmem:[%s10386_s25 + $0x1c8] sm:$0xff] }
 0x6b4   : > { %v6228_v55 = vpack.c.bf16 %v6094_v63, %v6092_v58  ;;  %v5261_v32 = vmul.f32 1.442695, %v5006_v5  ;;  %v5732_v49 = vpack.c.bf16 %v5639_v17, %v5638_v11  ;;  %v6856_v31 = vunpack.c.l.bf16 %v13635_v43 }
 0x6b5   : > { %v13644_v33 = vsub.f32 %v6844_v7, %v15599_v20  ;;  %v5379_v62 = vpack.c.bf16 %v9844_v51, %v9842_v52  ;;  %v4797_v25 = vsub.f32 0.0, %v4657_v0  ;;  %v4798_v38 = vsub.f32 0.0, %v4658_v48 }
 0x6b6   : > { %v9846_v13 = vpop.eup %9845  ;;  %v4130_v20 = vmul.f32 %v3990_v14, %v3850_v26  ;;  %v4131_v58 = vmul.f32 %v3991_v45, %v3851_v42  ;;  %9849 = vpow2.f32 %v5259_v59  ;;  %v4520_v63 = vand.u32 2147450879, %v13640_v9 }
 0x6b7   : > { %15600 = vst [vmem:[#allocation82_spill] sm:$0xff] %v13644_v33  ;;  %v9848_v7 = vpop.eup %9847  ;;  %v6491_v5 = vunpack.c.l.bf16 %v6228_v55  ;;  %v6492_v11 = vunpack.c.h.bf16 %v6228_v55  ;;  %v4350_v17 = vmax.f32 %v3990_v14, 0.0  ;;  %9851 = vpow2.f32 %v5261_v32 }
 0x6b8   : > { %v6116_v10 = vmul.f32 0.6931472, %v9846_v13  ;;  %v5858_v24 = vunpack.c.l.bf16 %v5732_v49  ;;  %v4351_v30 = vmax.f32 %v3991_v45, 0.0  ;;  %v3845_v22 = vunpack.c.l.bf16 %v448_v39 }
 0x6b9   : > { %v6118_v56 = vmul.f32 0.6931472, %v9848_v7  ;;  %v5859_v53 = vunpack.c.h.bf16 %v5732_v49  ;;  %v5510_v52 = vunpack.c.l.bf16 %v5379_v62  ;;  %v4883_v51 = vpack.c.bf16 %v4798_v38, %v4797_v25 }
 0x6ba   : > { %v5511_v0 = vunpack.c.h.bf16 %v5379_v62  ;;  %v3846_v48 = vunpack.c.h.bf16 %v448_v39  ;;  %v4652_v8 = vunpack.c.l.bf16 %v4520_v63  ;;  %v4653_v26 = vunpack.c.h.bf16 %v4520_v63 }
 0x6bb   : > { %v15601_v42 = vunpack.c.l.bf16 %v13573_v35  ;;  %v15602_v60 = vunpack.c.h.bf16 %v13573_v35  ;;  %v3985_v14 = vunpack.c.l.bf16 %v13585_v1  ;;  %v3986_v32 = vunpack.c.h.bf16 %v13585_v1 }
 0x6bc   : > { %v9850_v45 = vpop.eup %9849  ;;  %v6857_v13 = vunpack.c.h.bf16 %v13635_v43  ;;  %9853 = vlog2.f32 %v5858_v24  ;;  %v13660_v49 = vpack.c.bf16 %v4131_v58, %v4130_v20  ;;  %v13662_v38 = vpack.c.bf16 %v4351_v30, %v4350_v17 }
 0x6bd   : > { %v6631_v59 = vadd.f32 %v6491_v5, %v15601_v42  ;;  %v6632_v55 = vadd.f32 %v6492_v11, %v15602_v60  ;;  %v9852_v62 = vpop.eup %9851  ;;  %v6235_v39 = vpack.c.bf16 %v6118_v56, %v6116_v10  ;;  %9855 = vlog2.f32 %v5859_v53 }
 0x6be   : > { %v5650_v25 = vadd.f32 1.0, %v5510_v52  ;;  %v5017_v7 = vunpack.c.l.bf16 %v4883_v51  ;;  %v5651_v63 = vadd.f32 1.0, %v5511_v0  ;;  %v5018_v35 = vunpack.c.h.bf16 %v4883_v51 }
 0x6bf   : > { %v4792_v60 = vsub.f32 0.0, %v4652_v8  ;;  %v4793_v5 = vsub.f32 0.0, %v4653_v26  ;;  %v15603_v11 = vunpack.c.l.bf16 %v13552_v6  ;;  %v13668_v42 = vpack.c.bf16 %v6632_v55, %v6631_v59  ;;  %v3469_v26 = vpop.f32.mrf.mxu0 }
 0x6c0   : > { %v4125_v43 = vmul.f32 %v3985_v14, %v3845_v22  ;;  %v4126_v24 = vmul.f32 %v3986_v32, %v3846_v48  ;;  %v15606_v30 = vunpack.c.h.bf16 %v13552_v6  ;;  %v5376_v56 = vpack.c.bf16 %v9852_v62, %v9850_v45 }
 0x6c1   : > { %v13666_v1 = vsub.f32 %v6856_v31, %v15603_v11  ;;  %15605 = vst [vmem:[#allocation84_spill] sm:$0xff] %v13668_v42  ;;  %v4527_v10 = vand.u32 2147450879, %v13591_v47  ;;  %v6503_v58 = vunpack.c.l.bf16 %v6235_v39  ;;  %v6504_v8 = vunpack.c.h.bf16 %v6235_v39  ;;  %v3410_v39 = vpop.f32.mrf.mxu3 }
 0x6c2   : > { %v13672_v20 = vsub.f32 %v6857_v13, %v15606_v30  ;;  %v5283_v52 = vmul.f32 1.442695, %v5017_v7  ;;  %v9854_v31 = vpop.eup %9853  ;;  %v5739_v51 = vpack.c.bf16 %v5651_v63, %v5650_v25  ;;  %v5285_v22 = vmul.f32 1.442695, %v5018_v35 }
 0x6c3   : > { %15604 = vst [vmem:[#allocation83_spill] sm:$0xff] %v13666_v1  ;;  %v4880_v48 = vpack.c.bf16 %v4793_v5, %v4792_v60  ;;  %v9856_v6 = vpop.eup %9855  ;;  %v6851_v59 = vunpack.c.l.bf16 %v13668_v42  ;;  %v13679_v55 = vpack.c.bf16 %v4126_v24, %v4125_v43  ;;  %v4345_v45 = vmax.f32 %v3985_v14, 0.0 }
 0x6c4   : > { %15607 = vst [vmem:[#allocation85_spill] sm:$0xff] %v13672_v20  ;;  %v4346_v13 = vmax.f32 %v3986_v32, 0.0  ;;  %v5505_v62 = vunpack.c.l.bf16 %v5376_v56  ;;  %v5506_v11 = vunpack.c.h.bf16 %v5376_v56  ;;  %v4664_v30 = vunpack.c.l.bf16 %v4527_v10  ;;  %v455_v20 = vld [vmem:[%s10386_s25 + $0x1f8] sm:$0xff] }
 0x6c5   : > { %15608 = vst [vmem:[#allocation86_spill] sm:$0xff] %v13679_v55  ;;  %v4665_v7 = vunpack.c.h.bf16 %v4527_v10  ;;  %v15609_v25 = vunpack.c.l.bf16 %v13597_v57  ;;  %v15610_v35 = vunpack.c.h.bf16 %v13597_v57  ;;  %9857 = vpow2.f32 %v5283_v52 }
 0x6c6   : > { %v3470_v5 = vadd.f32 %v3469_v26, %v12586_v29  ;;  %v6106_v17 = vmul.f32 0.6931472, %v9854_v31  ;;  %v5870_v43 = vunpack.c.l.bf16 %v5739_v51  ;;  %9859 = vpow2.f32 %v5285_v22 }
 0x6c7   : > { %v6643_v63 = vadd.f32 %v6503_v58, %v15609_v25  ;;  %v6644_v60 = vadd.f32 %v6504_v8, %v15610_v35  ;;  %v5012_v14 = vunpack.c.l.bf16 %v4880_v48  ;;  %v6108_v32 = vmul.f32 0.6931472, %v9856_v6 }
 0x6c8   : > { %v5871_v24 = vunpack.c.h.bf16 %v5739_v51  ;;  %v3411_v56 = vadd.f32 %v3410_v39, %v12589_v15  ;;  %v5013_v53 = vunpack.c.h.bf16 %v4880_v48  ;;  %v5645_v0 = vadd.f32 1.0, %v5505_v62 }
 0x6c9   : > { %v5646_v10 = vadd.f32 1.0, %v5506_v11  ;;  %v4804_v1 = vsub.f32 0.0, %v4664_v30  ;;  %v4805_v58 = vsub.f32 0.0, %v4665_v7  ;;  %v6735_v25 = vpack.c.bf16 %v6644_v60, %v6643_v63 }
 0x6ca   : > { %v13689_v8 = vpack.c.bf16 %v4346_v13, %v4345_v45  ;;  %v13691_v52 = vpack.c.bf16 %v3470_v5, %v3411_v56  ;;  %9861 = vlog2.f32 %v5870_v43  ;;  %v3997_v31 = vunpack.c.l.bf16 %v13544_v18 }
 0x6cb   : > { %v3998_v51 = vunpack.c.h.bf16 %v13544_v18  ;;  %v5273_v22 = vmul.f32 1.442695, %v5012_v14  ;;  %v9858_v26 = vpop.eup %9857  ;;  %v6232_v48 = vpack.c.bf16 %v6108_v32, %v6106_v17  ;;  %9863 = vlog2.f32 %v5871_v24 }
 0x6cc   : > { %v3857_v6 = vunpack.c.l.bf16 %v455_v20  ;;  %v5275_v62 = vmul.f32 1.442695, %v5013_v53  ;;  %v9860_v11 = vpop.eup %9859  ;;  %v15611_v39 = vunpack.c.l.bf16 %v13570_v4  ;;  %v5736_v45 = vpack.c.bf16 %v5646_v10, %v5645_v0 }
 0x6cd   : > { %v4887_v7 = vpack.c.bf16 %v4805_v58, %v4804_v1  ;;  %v3858_v18 = vunpack.c.h.bf16 %v455_v20  ;;  %v4524_v60 = vand.u32 2147450879, %v13691_v52  ;;  %v6863_v17 = vunpack.c.l.bf16 %v6735_v25 }
 0x6ce   : > { %v13697_v30 = vsub.f32 %v6851_v59, %v15611_v39  ;;  %v4357_v5 = vmax.f32 %v3997_v31, 0.0  ;;  %v4358_v43 = vmax.f32 %v3998_v51, 0.0  ;;  %9865 = vpow2.f32 %v5273_v22 }
 0x6cf   : > { %v6498_v53 = vunpack.c.l.bf16 %v6232_v48  ;;  %v6499_v14 = vunpack.c.h.bf16 %v6232_v48  ;;  %v5383_v32 = vpack.c.bf16 %v9860_v11, %v9858_v26  ;;  %9867 = vpow2.f32 %v5275_v62 }
 0x6d0   : > { %15612 = vst [vmem:[#allocation87_spill] sm:$0xff] %v13697_v30  ;;  %v9862_v59 = vpop.eup %9861  ;;  %v6864_v0 = vunpack.c.h.bf16 %v6735_v25  ;;  %v5865_v24 = vunpack.c.l.bf16 %v5736_v45  ;;  %v5024_v56 = vunpack.c.l.bf16 %v4887_v7  ;;  %v5866_v58 = vunpack.c.h.bf16 %v5736_v45 }
 0x6d1   : > { %v9864_v10 = vpop.eup %9863  ;;  %v5025_v39 = vunpack.c.h.bf16 %v4887_v7  ;;  %v4659_v20 = vunpack.c.l.bf16 %v4524_v60  ;;  %v4660_v35 = vunpack.c.h.bf16 %v4524_v60  ;;  %v15613_v13 = vunpack.c.l.bf16 %v13594_v12 }
 0x6d2   : > { %v4137_v22 = vmul.f32 %v3997_v31, %v3857_v6  ;;  %v4138_v57 = vmul.f32 %v3998_v51, %v3858_v18  ;;  %v13708_v48 = vpack.c.bf16 %v4358_v43, %v4357_v5  ;;  %v15615_v26 = vunpack.c.l.bf16 %v13633_v28 }
 0x6d3   : > { %v13706_v63 = vsub.f32 %v6863_v17, %v15613_v13  ;;  %v15616_v62 = vunpack.c.h.bf16 %v13633_v28  ;;  %v5517_v1 = vunpack.c.l.bf16 %v5383_v32  ;;  %v5518_v30 = vunpack.c.h.bf16 %v5383_v32 }
 0x6d4   : > { %v6638_v25 = vadd.f32 %v6498_v53, %v15615_v26  ;;  %v9866_v45 = vpop.eup %9865  ;;  %v6130_v7 = vmul.f32 0.6931472, %v9862_v59  ;;  %v6132_v4 = vmul.f32 0.6931472, %v9864_v10  ;;  %9869 = vlog2.f32 %v5865_v24  ;;  %v13722_v53 = vpop.f32.mrf.mxu3  ;;  %v452_v24 = vld [vmem:[%s10386_s25 + $0x1e4] sm:$0xff]  ;;  %v13735_v10 = vld [vmem:[%s10386_s25 + $0x214] sm:$0xff] }
 0x6d5   : > { %15614 = vst [vmem:[#allocation88_spill] sm:$0xff] %v13706_v63  ;;  %v6639_v11 = vadd.f32 %v6499_v14, %v15616_v62  ;;  %v5297_v60 = vmul.f32 1.442695, %v5024_v56  ;;  %v9868_v13 = vpop.eup %9867  ;;  %9871 = vlog2.f32 %v5866_v58  ;;  %v5299_v31 = vmul.f32 1.442695, %v5025_v39  ;;  %v3542_v58 = vpop.f32.mrf.mxu2 }
 0x6d6   : > { %v4799_v51 = vsub.f32 0.0, %v4659_v20  ;;  %v4800_v6 = vsub.f32 0.0, %v4660_v35  ;;  %v15617_v18 = vunpack.c.h.bf16 %v13594_v12  ;;  %v13718_v28 = vpack.c.bf16 %v4138_v57, %v4137_v22  ;;  %v10146_v35 = vld [vmem:[%s15240_s9] sm:$0x7f] }
 0x6d7   : > { %v13724_v14 = vpack.c.bf16 %v6639_v11, %v6638_v25  ;;  %v5657_v32 = vadd.f32 1.0, %v5517_v1  ;;  %v5658_v59 = vadd.f32 1.0, %v5518_v30  ;;  %v13730_v12 = vperm.slane %v10146_v35, 5  ;;  %v3483_v11 = vpop.f32.mrf.mxu1 }
 0x6d8   : > { %v13716_v17 = vsub.f32 %v6864_v0, %v15617_v18  ;;  %v3992_v57 = vunpack.c.l.bf16 %v13640_v9  ;;  %v3993_v0 = vunpack.c.h.bf16 %v13640_v9  ;;  %v5380_v56 = vpack.c.bf16 %v9868_v13, %v9866_v45 }
 0x6d9   : > { %15619 = vst [vmem:[#allocation90_spill] sm:$0xff] %v13724_v14  ;;  %9873 = vpow2.f32 %v5297_v60  ;;  %v6239_v39 = vpack.c.bf16 %v6132_v4, %v6130_v7  ;;  %v13737_v1 = vperm.slane %v10146_v35, 4  ;;  %v4884_v30 = vpack.c.bf16 %v4800_v6, %v4799_v51 }
 0x6da   : > { %15618 = vst [vmem:[#allocation89_spill] sm:$0xff] %v13716_v17  ;;  %9875 = vpow2.f32 %v5299_v31  ;;  %v9870_v20 = vpop.eup %9869  ;;  %v3852_v25 = vunpack.c.l.bf16 %v452_v24  ;;  %v3853_v62 = vunpack.c.h.bf16 %v452_v24  ;;  %v6858_v9 = vunpack.c.l.bf16 %v13724_v14 }
 0x6db   : > { %v9872_v18 = vpop.eup %9871  ;;  %v5743_v45 = vpack.c.bf16 %v5658_v59, %v5657_v32  ;;  %v3864_v60 = vunpack.c.l.bf16 %v13735_v10  ;;  %v3543_v4 = vadd.f32 %v3542_v58, %v13730_v12  ;;  %v4352_v7 = vmax.f32 %v3992_v57, 0.0 }
 0x6dc   : > { %v4353_v13 = vmax.f32 %v3993_v0, 0.0  ;;  %v5512_v31 = vunpack.c.l.bf16 %v5380_v56  ;;  %v5513_v51 = vunpack.c.h.bf16 %v5380_v56  ;;  %v6510_v6 = vunpack.c.l.bf16 %v6239_v39  ;;  %v3601_v16 = vpop.f32.mrf.mxu3 }
 0x6dd   : > { %v6511_v43 = vunpack.c.h.bf16 %v6239_v39  ;;  %v3484_v22 = vadd.f32 %v3483_v11, %v13737_v1  ;;  %v5019_v26 = vunpack.c.l.bf16 %v4884_v30  ;;  %v6120_v24 = vmul.f32 0.6931472, %v9870_v20 }
 0x6de   : > { %v6122_v17 = vmul.f32 0.6931472, %v9872_v18  ;;  %v4132_v63 = vmul.f32 %v3992_v57, %v3852_v25  ;;  %v5020_v42 = vunpack.c.h.bf16 %v4884_v30  ;;  %v5877_v32 = vunpack.c.l.bf16 %v5743_v45 }
 0x6df   : > { %v9874_v5 = vpop.eup %9873  ;;  %v4133_v59 = vmul.f32 %v3993_v0, %v3853_v62  ;;  %v13745_v46 = vpack.c.bf16 %v3543_v4, %v3484_v22  ;;  %v13747_v58 = vperm.slane %v10146_v35, 6  ;;  %v5878_v41 = vunpack.c.h.bf16 %v5743_v45 }
 0x6e0   : > { %v9876_v14 = vpop.eup %9875  ;;  %v5652_v33 = vadd.f32 1.0, %v5512_v31  ;;  %v5653_v56 = vadd.f32 1.0, %v5513_v51  ;;  %v3865_v39 = vunpack.c.h.bf16 %v13735_v10  ;;  %v15620_v11 = vunpack.c.l.bf16 %v13662_v38 }
 0x6e1   : > { %v15621_v20 = vunpack.c.h.bf16 %v13662_v38  ;;  %v13754_v30 = vpack.c.bf16 %v4353_v13, %v4352_v7  ;;  %v5287_v25 = vmul.f32 1.442695, %v5019_v26  ;;  %v15622_v0 = vunpack.c.l.bf16 %v13629_v3 }
 0x6e2   : > { %v6650_v2 = vadd.f32 %v6510_v6, %v15620_v11  ;;  %v6236_v35 = vpack.c.bf16 %v6122_v17, %v6120_v24  ;;  %v5387_v62 = vpack.c.bf16 %v9876_v14, %v9874_v5  ;;  %v5289_v18 = vmul.f32 1.442695, %v5020_v42  ;;  %v3471_v42 = vpop.f32.mrf.mxu0 }
 0x6e3   : > { %v6651_v57 = vadd.f32 %v6511_v43, %v15621_v20  ;;  %v13758_v22 = vsub.f32 %v6858_v9, %v15622_v0  ;;  %9877 = vlog2.f32 %v5877_v32  ;;  %v13760_v45 = vpack.c.bf16 %v4133_v59, %v4132_v63 }
 0x6e4   : > { %v4453_v10 = vand.u32 2147450879, %v13745_v46  ;;  %v3602_v4 = vadd.f32 %v3601_v16, %v13747_v58  ;;  %9879 = vlog2.f32 %v5878_v41  ;;  %v5740_v38 = vpack.c.bf16 %v5653_v56, %v5652_v33 }
 0x6e5   : > { %15623 = vst [vmem:[#allocation91_spill] sm:$0xff] %v13758_v22  ;;  %v4004_v43 = vunpack.c.l.bf16 %v13591_v47  ;;  %v4005_v26 = vunpack.c.h.bf16 %v13591_v47  ;;  %v6739_v7 = vpack.c.bf16 %v6651_v57, %v6650_v2  ;;  %9881 = vpow2.f32 %v5287_v25 }
 0x6e6   : > { %15624 = vst [vmem:[#allocation92_spill] sm:$0xff] %v13760_v45  ;;  %v6505_v5 = vunpack.c.l.bf16 %v6236_v35  ;;  %v6506_v63 = vunpack.c.h.bf16 %v6236_v35  ;;  %v5524_v14 = vunpack.c.l.bf16 %v5387_v62  ;;  %9883 = vpow2.f32 %v5289_v18 }
 0x6e7   : > { %v5525_v13 = vunpack.c.h.bf16 %v5387_v62  ;;  %v4535_v31 = vunpack.c.l.bf16 %v4453_v10  ;;  %v4536_v16 = vunpack.c.h.bf16 %v4453_v10  ;;  %v13768_v41 = vpack.c.bf16 %v3602_v4, %v3602_v4 }
 0x6e8   : > { %v5872_v33 = vunpack.c.l.bf16 %v5740_v38  ;;  %v4144_v51 = vmul.f32 %v4004_v43, %v3864_v60  ;;  %v4145_v6 = vmul.f32 %v4005_v26, %v3865_v39  ;;  %v3472_v2 = vadd.f32 %v3471_v42, %v12586_v29 }
 0x6e9   : > { %v9878_v47 = vpop.eup %9877  ;;  %v6870_v24 = vunpack.c.l.bf16 %v6739_v7  ;;  %v5873_v32 = vunpack.c.h.bf16 %v5740_v38  ;;  %v4364_v59 = vmax.f32 %v4004_v43, 0.0  ;;  %v4365_v56 = vmax.f32 %v4005_v26, 0.0 }
 0x6ea   : > { %v9880_v11 = vpop.eup %9879  ;;  %v15625_v20 = vunpack.c.l.bf16 %v13689_v8  ;;  %v15626_v25 = vunpack.c.h.bf16 %v13689_v8  ;;  %v5664_v35 = vadd.f32 1.0, %v5524_v14  ;;  %v3413_v62 = vadd.f32 %v13722_v53, %v12589_v15 }
 0x6eb   : > { %v9882_v60 = vpop.eup %9881  ;;  %v5665_v39 = vadd.f32 1.0, %v5525_v13  ;;  %v4675_v18 = vsub.f32 0.0, %v4535_v31  ;;  %v4676_v29 = vsub.f32 0.0, %v4536_v16  ;;  %v4454_v10 = vand.u32 2147450879, %v13768_v41 }
 0x6ec   : > { %v6645_v57 = vadd.f32 %v6505_v5, %v15625_v20  ;;  %v6646_v0 = vadd.f32 %v6506_v63, %v15626_v25  ;;  %v9884_v4 = vpop.eup %9883  ;;  %v6871_v38 = vunpack.c.h.bf16 %v6739_v7  ;;  %9885 = vlog2.f32 %v5872_v33  ;;  %v456_v7 = vld [vmem:[%s10386_s25 + $0x200] sm:$0xff] }
 0x6ed   : > { %v13778_v43 = vpack.c.bf16 %v4145_v6, %v4144_v51  ;;  %v13780_v26 = vpack.c.bf16 %v3472_v2, %v3413_v62  ;;  %v6144_v8 = vmul.f32 0.6931472, %v9878_v47  ;;  %v6146_v42 = vmul.f32 0.6931472, %v9880_v11 }
 0x6ee   : > { %9887 = vlog2.f32 %v5873_v32  ;;  %v13782_v5 = vpack.c.bf16 %v4365_v56, %v4364_v59  ;;  %v13784_v15 = vpack.c.bf16 %v6646_v0, %v6645_v57  ;;  %v3999_v14 = vunpack.c.l.bf16 %v13691_v52 }
 0x6ef   : > { %v5747_v13 = vpack.c.bf16 %v5665_v39, %v5664_v35  ;;  %v5384_v31 = vpack.c.bf16 %v9884_v4, %v9882_v60  ;;  %v4813_v16 = vpack.c.bf16 %v4676_v29, %v4675_v18  ;;  %v4537_v33 = vunpack.c.l.bf16 %v4454_v10 }
 0x6f0   : > { %15627 = vst [vmem:[#allocation93_spill] sm:$0xff] %v13784_v15  ;;  %v15628_v51 = vunpack.c.l.bf16 %v13660_v49  ;;  %v15630_v2 = vunpack.c.h.bf16 %v13660_v49  ;;  %v4528_v59 = vand.u32 2147450879, %v13780_v26  ;;  %v6243_v56 = vpack.c.bf16 %v6146_v42, %v6144_v8 }
 0x6f1   : > { %v4000_v57 = vunpack.c.h.bf16 %v13691_v52  ;;  %v6865_v0 = vunpack.c.l.bf16 %v13784_v15  ;;  %v3860_v35 = vunpack.c.h.bf16 %v456_v7  ;;  %v4359_v62 = vmax.f32 %v3999_v14, 0.0  ;;  %v394_v15 = vld [vmem:[%s10386_s25 + $0x50] sm:$0xf] }
 0x6f2   : > { %v13792_v6 = vsub.f32 %v6870_v24, %v15628_v51  ;;  %v13796_v47 = vsub.f32 %v6871_v38, %v15630_v2  ;;  %v9886_v25 = vpop.eup %9885  ;;  %v3859_v24 = vunpack.c.l.bf16 %v456_v7  ;;  %v5884_v60 = vunpack.c.l.bf16 %v5747_v13 }
 0x6f3   : > { %v5519_v39 = vunpack.c.l.bf16 %v5384_v31  ;;  %v4895_v18 = vunpack.c.l.bf16 %v4813_v16  ;;  %v4677_v29 = vsub.f32 0.0, %v4537_v33  ;;  %v5520_v10 = vunpack.c.h.bf16 %v5384_v31  ;;  %v3544_v31 = vpop.f32.mrf.mxu2 }
 0x6f4   : > { %15629 = vst [vmem:[#allocation94_spill] sm:$0xff] %v13792_v6  ;;  %v9888_v49 = vpop.eup %9887  ;;  %v4896_v4 = vunpack.c.h.bf16 %v4813_v16  ;;  %v4666_v38 = vunpack.c.l.bf16 %v4528_v59  ;;  %v4667_v8 = vunpack.c.h.bf16 %v4528_v59  ;;  %v6517_v42 = vunpack.c.l.bf16 %v6243_v56 }
 0x6f5   : > { %15631 = vst [vmem:[#allocation95_spill] sm:$0xff] %v13796_v47  ;;  %v6518_v51 = vunpack.c.h.bf16 %v6243_v56  ;;  %v5885_v2 = vunpack.c.h.bf16 %v5747_v13  ;;  %v4360_v63 = vmax.f32 %v4000_v57, 0.0  ;;  %v6134_v52 = vmul.f32 0.6931472, %v9886_v25 }
 0x6f6   : > { %v6136_v32 = vmul.f32 0.6931472, %v9888_v49  ;;  %v4139_v53 = vmul.f32 %v3999_v14, %v3859_v24  ;;  %v4140_v20 = vmul.f32 %v4000_v57, %v3860_v35  ;;  %9889 = vlog2.f32 %v5884_v60  ;;  %v3485_v60 = vpop.f32.mrf.mxu1  ;;  %v386_v35 = vld [vmem:[%s10386_s25 + $0x18] sm:$0xf] }
 0x6f7   : > { %v5659_v7 = vadd.f32 1.0, %v5519_v39  ;;  %v5039_v11 = vmul.f32 1.442695, %v4895_v18  ;;  %v4814_v17 = vpack.c.bf16 %v4677_v29, %v4677_v29  ;;  %v5660_v9 = vadd.f32 1.0, %v5520_v10  ;;  %v3603_v39 = vpop.f32.mrf.mxu3 }
 0x6f8   : > { %v5041_v47 = vmul.f32 1.442695, %v4896_v4  ;;  %v4806_v6 = vsub.f32 0.0, %v4666_v38  ;;  %v4807_v33 = vsub.f32 0.0, %v4667_v8  ;;  %v15632_v16 = vunpack.c.l.bf16 %v13708_v48 }
 0x6f9   : > { %v15633_v13 = vunpack.c.h.bf16 %v13708_v48  ;;  %9891 = vlog2.f32 %v5885_v2  ;;  %v13808_v25 = vpack.c.bf16 %v4360_v63, %v4359_v62  ;;  %v15634_v14 = vunpack.c.l.bf16 %v13679_v55  ;;  %v385_v63 = vld [vmem:[%s10386_s25 + $0x10] sm:$0xff] }
 0x6fa   : > { %v6657_v59 = vadd.f32 %v6517_v42, %v15632_v16  ;;  %v6240_v24 = vpack.c.bf16 %v6136_v32, %v6134_v52  ;;  %v13815_v49 = vpack.c.bf16 %v4140_v20, %v4139_v53  ;;  %v3875_v18 = vunpack.c.l.bf16 %v13745_v46 }
 0x6fb   : > { %v6658_v56 = vadd.f32 %v6518_v51, %v15633_v13  ;;  %v13812_v57 = vsub.f32 %v6865_v0, %v15634_v14  ;;  %9893 = vpow2.f32 %v5039_v11  ;;  %v4897_v29 = vunpack.c.l.bf16 %v4814_v17 }
 0x6fc   : > { %15636 = vst [vmem:[#allocation97_spill] sm:$0xff] %v13815_v49  ;;  %v3545_v48 = vadd.f32 %v3544_v31, %v13730_v12  ;;  %v5744_v10 = vpack.c.bf16 %v5660_v9, %v5659_v7  ;;  %v3876_v62 = vunpack.c.h.bf16 %v13745_v46  ;;  %9895 = vpow2.f32 %v5041_v47  ;;  %v9890_v4 = vpop.eup %9889 }
 0x6fd   : > { %15635 = vst [vmem:[#allocation96_spill] sm:$0xff] %v13812_v57  ;;  %v4888_v0 = vpack.c.bf16 %v4807_v33, %v4806_v6  ;;  %v6743_v32 = vpack.c.bf16 %v6658_v56, %v6657_v59  ;;  %v3486_v53 = vadd.f32 %v3485_v60, %v13737_v1  ;;  %v3604_v20 = vadd.f32 %v3603_v39, %v13747_v58 }
 0x6fe   : > { %v6512_v8 = vunpack.c.l.bf16 %v6240_v24  ;;  %v6513_v42 = vunpack.c.h.bf16 %v6240_v24  ;;  %v3735_v51 = vunpack.c.l.bf16 %v385_v63  ;;  %v3736_v2 = vunpack.c.h.bf16 %v385_v63 }
 0x6ff   : > { %v9892_v9 = vpop.eup %9891  ;;  %v5043_v46 = vmul.f32 1.442695, %v4897_v29  ;;  %v13826_v47 = vpack.c.bf16 %v3545_v48, %v3486_v53  ;;  %v5879_v6 = vunpack.c.l.bf16 %v5744_v10  ;;  %v4235_v52 = vmax.f32 %v3875_v18, 0.0 }
 0x700   : > { %v4236_v7 = vmax.f32 %v3876_v62, 0.0  ;;  %v5026_v33 = vunpack.c.l.bf16 %v4888_v0  ;;  %v6877_v16 = vunpack.c.l.bf16 %v6743_v32  ;;  %v5880_v59 = vunpack.c.h.bf16 %v5744_v10 }
 0x701   : > { %v9894_v31 = vpop.eup %9893  ;;  %v5027_v13 = vunpack.c.h.bf16 %v4888_v0  ;;  %v13828_v56 = vpack.c.bf16 %v3604_v20, %v3604_v20  ;;  %v15637_v24 = vunpack.c.l.bf16 %v13754_v30  ;;  %v15638_v39 = vunpack.c.h.bf16 %v13754_v30 }
 0x702   : > { %v9896_v14 = vpop.eup %9895  ;;  %v6158_v48 = vmul.f32 0.6931472, %v9890_v4  ;;  %v6160_v63 = vmul.f32 0.6931472, %v9892_v9  ;;  %v6878_v53 = vunpack.c.h.bf16 %v6743_v32  ;;  %v4015_v11 = vmul.f32 %v3875_v18, %v3735_v51 }
 0x703   : > { %v6652_v60 = vadd.f32 %v6512_v8, %v15637_v24  ;;  %v6653_v29 = vadd.f32 %v6513_v42, %v15638_v39  ;;  %9897 = vpow2.f32 %v5043_v46  ;;  %v4457_v17 = vand.u32 2147450879, %v13826_v47 }
 0x704   : > { %9899 = vlog2.f32 %v5879_v6  ;;  %v4016_v10 = vmul.f32 %v3876_v62, %v3736_v2  ;;  %v13836_v0 = vpack.c.bf16 %v4236_v7, %v4235_v52  ;;  %v5301_v20 = vmul.f32 1.442695, %v5026_v33 }
 0x705   : > { %9901 = vlog2.f32 %v5880_v59  ;;  %v5313_v38 = vpack.c.bf16 %v9896_v14, %v9894_v31  ;;  %v5303_v8 = vmul.f32 1.442695, %v5027_v13  ;;  %v4458_v30 = vand.u32 2147450879, %v13828_v56  ;;  %v460_v31 = vld [vmem:[%s10386_s25 + $0x21c] sm:$0xff] }
 0x706   : > { %v13839_v42 = vpack.c.bf16 %v6653_v29, %v6652_v60  ;;  %v6247_v4 = vpack.c.bf16 %v6160_v63, %v6158_v48  ;;  %v3737_v32 = vunpack.c.l.bf16 %v386_v35  ;;  %v3877_v18 = vunpack.c.l.bf16 %v13768_v41 }
 0x707   : > { %v15640_v9 = vunpack.c.l.bf16 %v13718_v28  ;;  %v4542_v2 = vunpack.c.l.bf16 %v4457_v17  ;;  %v4543_v46 = vunpack.c.h.bf16 %v4457_v17  ;;  %v15642_v6 = vunpack.c.h.bf16 %v13718_v28 }
 0x708   : > { %15639 = vst [vmem:[#allocation98_spill] sm:$0xff] %v13839_v42  ;;  %v13851_v7 = vpack.c.bf16 %v4016_v10, %v4015_v11  ;;  %9903 = vpow2.f32 %v5301_v20  ;;  %v5395_v41 = vunpack.c.l.bf16 %v5313_v38  ;;  %v5396_v59 = vunpack.c.h.bf16 %v5313_v38  ;;  %v3606_v20 = vpop.f32.mrf.mxu3 }
 0x709   : > { %v13844_v51 = vsub.f32 %v6877_v16, %v15640_v9  ;;  %v13849_v52 = vsub.f32 %v6878_v53, %v15642_v6  ;;  %v9898_v35 = vpop.eup %9897  ;;  %9905 = vpow2.f32 %v5303_v8  ;;  %v4544_v16 = vunpack.c.l.bf16 %v4458_v30 }
 0x70a   : > { %v9900_v13 = vpop.eup %9899  ;;  %v6872_v14 = vunpack.c.l.bf16 %v13839_v42  ;;  %v6524_v24 = vunpack.c.l.bf16 %v6247_v4  ;;  %v4017_v28 = vmul.f32 %v3877_v18, %v3737_v32  ;;  %v6525_v39 = vunpack.c.h.bf16 %v6247_v4 }
 0x70b   : > { %15641 = vst [vmem:[#allocation99_spill] sm:$0xff] %v13844_v51  ;;  %v9902_v60 = vpop.eup %9901  ;;  %v3866_v11 = vunpack.c.l.bf16 %v460_v31  ;;  %v4682_v29 = vsub.f32 0.0, %v4542_v2  ;;  %v4683_v48 = vsub.f32 0.0, %v4543_v46  ;;  %v5314_v63 = vpack.c.bf16 %v9898_v35, %v9898_v35  ;;  %v3547_v2 = vpop.f32.mrf.mxu2 }
 0x70c   : > { %15643 = vst [vmem:[#allocation100_spill] sm:$0xff] %v13849_v52  ;;  %v3867_v53 = vunpack.c.h.bf16 %v460_v31  ;;  %v4006_v10 = vunpack.c.l.bf16 %v13780_v26  ;;  %v4007_v38 = vunpack.c.h.bf16 %v13780_v26  ;;  %v5535_v8 = vadd.f32 1.0, %v5395_v41 }
 0x70d   : > { %v5536_v30 = vadd.f32 1.0, %v5396_v59  ;;  %v13859_v9 = vmax.f32 %v3877_v18, 0.0  ;;  %v4684_v6 = vsub.f32 0.0, %v4544_v16  ;;  %v6148_v17 = vmul.f32 0.6931472, %v9900_v13 }
 0x70e   : > { %v9904_v62 = vpop.eup %9903  ;;  %v6150_v32 = vmul.f32 0.6931472, %v9902_v60  ;;  %v4154_v33 = vpack.c.bf16 %v4017_v28, %v4017_v28  ;;  %v15644_v31 = vunpack.c.l.bf16 %v13782_v5  ;;  %v15645_v52 = vunpack.c.h.bf16 %v13782_v5  ;;  %v3488_v28 = vpop.f32.mrf.mxu1 }
 0x70f   : > { %v9906_v46 = vpop.eup %9905  ;;  %v4817_v41 = vpack.c.bf16 %v4683_v48, %v4682_v29  ;;  %v3607_v18 = vadd.f32 %v3606_v20, %v13747_v58  ;;  %v15646_v59 = vunpack.c.l.bf16 %v13760_v45  ;;  %v5397_v13 = vunpack.c.l.bf16 %v5314_v63  ;;  %v389_v20 = vld [vmem:[%s10386_s25 + $0x2c] sm:$0xff] }
 0x710   : > { %v6664_v35 = vadd.f32 %v6524_v24, %v15644_v31  ;;  %v6665_v26 = vadd.f32 %v6525_v39, %v15645_v52  ;;  %v4146_v60 = vmul.f32 %v4006_v10, %v3866_v11  ;;  %v4147_v4 = vmul.f32 %v4007_v38, %v3867_v53 }
 0x711   : > { %v13869_v16 = vsub.f32 %v6872_v14, %v15646_v59  ;;  %v5673_v51 = vpack.c.bf16 %v5536_v30, %v5535_v8  ;;  %v4374_v57 = vpack.c.bf16 %v13859_v9, %v13859_v9  ;;  %v4818_v24 = vpack.c.bf16 %v4684_v6, %v4684_v6 }
 0x712   : > { %v3548_v5 = vadd.f32 %v3547_v2, %v13730_v12  ;;  %v6244_v52 = vpack.c.bf16 %v6150_v32, %v6148_v17  ;;  %v13874_v39 = vunpack.c.l.bf16 %v4154_v33  ;;  %v4366_v29 = vmax.f32 %v4006_v10, 0.0 }
 0x713   : > { %15647 = vst [vmem:[#allocation101_spill] sm:$0xff] %v13869_v16  ;;  %v5388_v48 = vpack.c.bf16 %v9906_v46, %v9904_v62  ;;  %v13877_v31 = vpack.c.bf16 %v6665_v26, %v6664_v35  ;;  %v4902_v14 = vunpack.c.l.bf16 %v4817_v41  ;;  %v3489_v11 = vadd.f32 %v3488_v28, %v13737_v1 }
 0x714   : > { %v13880_v63 = vpack.c.bf16 %v3607_v18, %v3607_v18  ;;  %v5537_v53 = vadd.f32 1.0, %v5397_v13  ;;  %v13882_v8 = vpack.c.bf16 %v4147_v4, %v4146_v60  ;;  %v4367_v30 = vmax.f32 %v4007_v38, 0.0  ;;  %v3549_v60 = vpop.f32.mrf.mxu2 }
 0x715   : > { %v4903_v9 = vunpack.c.h.bf16 %v4817_v41  ;;  %v5755_v6 = vunpack.c.l.bf16 %v5673_v51  ;;  %v3742_v2 = vunpack.c.l.bf16 %v389_v20  ;;  %v4904_v17 = vunpack.c.l.bf16 %v4818_v24 }
 0x716   : > { %15648 = vst [vmem:[#allocation102_spill] sm:$0xff] %v13882_v8  ;;  %v13884_v33 = vpack.c.bf16 %v3548_v5, %v3489_v11  ;;  %v6519_v10 = vunpack.c.l.bf16 %v6244_v52  ;;  %v5756_v62 = vunpack.c.h.bf16 %v5673_v51  ;;  %v5526_v32 = vunpack.c.l.bf16 %v5388_v48 }
 0x717   : > { %v3882_v46 = vunpack.c.l.bf16 %v13826_v47  ;;  %v5527_v35 = vunpack.c.h.bf16 %v5388_v48  ;;  %v3743_v26 = vunpack.c.h.bf16 %v389_v20  ;;  %v5053_v59 = vmul.f32 1.442695, %v4902_v14  ;;  %v3490_v14 = vpop.f32.mrf.mxu1 }
 0x718   : > { %v4462_v18 = vand.u32 2147450879, %v13880_v63  ;;  %v6520_v13 = vunpack.c.h.bf16 %v6244_v52  ;;  %v5674_v4 = vpack.c.bf16 %v5537_v53, %v5537_v53  ;;  %v3883_v38 = vunpack.c.h.bf16 %v13826_v47 }
 0x719   : > { %v5055_v41 = vmul.f32 1.442695, %v4903_v9  ;;  %v6884_v28 = vunpack.c.l.bf16 %v13877_v31  ;;  %9907 = vlog2.f32 %v5755_v6  ;;  %v5057_v24 = vmul.f32 1.442695, %v4904_v17 }
 0x71a   : > { %v4461_v51 = vand.u32 2147450879, %v13884_v33  ;;  %v15649_v5 = vunpack.c.l.bf16 %v13808_v25  ;;  %9909 = vlog2.f32 %v5756_v62  ;;  %v5666_v48 = vadd.f32 1.0, %v5526_v32 }
 0x71b   : > { %v4022_v20 = vmul.f32 %v3882_v46, %v3742_v2  ;;  %v5667_v16 = vadd.f32 1.0, %v5527_v35  ;;  %9911 = vpow2.f32 %v5053_v59  ;;  %v4551_v52 = vunpack.c.l.bf16 %v4462_v18  ;;  %v3608_v59 = vpop.f32.mrf.mxu3 }
 0x71c   : > { %v6659_v11 = vadd.f32 %v6519_v10, %v15649_v5  ;;  %v3550_v47 = vadd.f32 %v3549_v60, %v13730_v12  ;;  %v15650_v53 = vunpack.c.h.bf16 %v13808_v25  ;;  %v5757_v45 = vunpack.c.l.bf16 %v5674_v4 }
 0x71d   : > { %v4023_v6 = vmul.f32 %v3883_v38, %v3743_v26  ;;  %9913 = vpow2.f32 %v5055_v41  ;;  %v4549_v17 = vunpack.c.l.bf16 %v4461_v51  ;;  %v4550_v55 = vunpack.c.h.bf16 %v4461_v51 }
 0x71e   : > { %v6660_v9 = vadd.f32 %v6520_v13, %v15650_v53  ;;  %9915 = vpow2.f32 %v5057_v24  ;;  %v3491_v10 = vadd.f32 %v3490_v14, %v13737_v1  ;;  %v6885_v62 = vunpack.c.h.bf16 %v13877_v31 }
 0x71f   : > { %v13898_v2 = vpack.c.bf16 %v4367_v30, %v4366_v29  ;;  %v4242_v32 = vmax.f32 %v3882_v46, 0.0  ;;  %v4243_v35 = vmax.f32 %v3883_v38, 0.0  ;;  %v9908_v18 = vpop.eup %9907  ;;  %v13900_v60 = vunpack.c.l.bf16 %v4374_v57  ;;  %v390_v46 = vld [vmem:[%s10386_s25 + $0x34] sm:$0xf] }
 0x720   : > { %v5748_v25 = vpack.c.bf16 %v5667_v16, %v5666_v48  ;;  %v4691_v13 = vsub.f32 0.0, %v4551_v52  ;;  %v13902_v26 = vpack.c.bf16 %v3550_v47, %v3491_v10  ;;  %v9910_v4 = vpop.eup %9909  ;;  %v15651_v41 = vunpack.c.l.bf16 %v13778_v43 }
 0x721   : > { %v13908_v51 = vpack.c.bf16 %v6660_v9, %v6659_v11  ;;  %v13911_v31 = vpack.c.bf16 %v4023_v6, %v4022_v20  ;;  %v9912_v30 = vpop.eup %9911  ;;  %9917 = vlog2.f32 %v5757_v45  ;;  %v4689_v57 = vsub.f32 0.0, %v4549_v17 }
 0x722   : > { %v13906_v24 = vsub.f32 %v6884_v28, %v15651_v41  ;;  %v4690_v38 = vsub.f32 0.0, %v4550_v55  ;;  %v3609_v16 = vadd.f32 %v3608_v59, %v13747_v58  ;;  %v15654_v48 = vunpack.c.h.bf16 %v13778_v43 }
 0x723   : > { %15653 = vst [vmem:[#allocation104_spill] sm:$0xff] %v13908_v51  ;;  %v9914_v5 = vpop.eup %9913  ;;  %v13921_v52 = vpack.c.bf16 %v4243_v35, %v4242_v32  ;;  %v5886_v47 = vunpack.c.l.bf16 %v5748_v25  ;;  %v4822_v53 = vpack.c.bf16 %v4691_v13, %v4691_v13  ;;  %v4465_v55 = vand.u32 2147450879, %v13902_v26 }
 0x724   : > { %15652 = vst [vmem:[#allocation103_spill] sm:$0xff] %v13906_v24  ;;  %v13917_v14 = vsub.f32 %v6885_v62, %v15654_v48  ;;  %v9916_v20 = vpop.eup %9915  ;;  %v6879_v9 = vunpack.c.l.bf16 %v13908_v51  ;;  %v5887_v6 = vunpack.c.h.bf16 %v5748_v25  ;;  %v3744_v17 = vunpack.c.l.bf16 %v390_v46 }
 0x725   : > { %v3884_v43 = vunpack.c.l.bf16 %v13828_v56  ;;  %v5317_v10 = vpack.c.bf16 %v9914_v5, %v9912_v30  ;;  %v4821_v59 = vpack.c.bf16 %v4690_v38, %v4689_v57  ;;  %v13928_v41 = vpack.c.bf16 %v3609_v16, %v3609_v16  ;;  %v3611_v57 = vpop.f32.mrf.mxu3 }
 0x726   : > { %15655 = vst [vmem:[#allocation105_spill] sm:$0xff] %v13917_v14  ;;  %v5900_v32 = vmul.f32 0.6931472, %v9908_v18  ;;  %v5902_v35 = vmul.f32 0.6931472, %v9910_v4  ;;  %v5318_v13 = vpack.c.bf16 %v9916_v20, %v9916_v20  ;;  %9919 = vlog2.f32 %v5886_v47  ;;  %v393_v18 = vld [vmem:[%s10386_s25 + $0x48] sm:$0xff] }
 0x727   : > { %v9918_v45 = vpop.eup %9917  ;;  %v4911_v29 = vunpack.c.l.bf16 %v4822_v53  ;;  %v4556_v11 = vunpack.c.l.bf16 %v4465_v55  ;;  %v4557_v25 = vunpack.c.h.bf16 %v4465_v55  ;;  %9921 = vlog2.f32 %v5887_v6 }
 0x728   : > { %v13932_v30 = vmul.f32 %v3884_v43, %v3744_v17  ;;  %v4244_v46 = vmax.f32 %v3884_v43, 0.0  ;;  %v5402_v38 = vunpack.c.l.bf16 %v5317_v10  ;;  %v5403_v16 = vunpack.c.h.bf16 %v5317_v10 }
 0x729   : > { %v4909_v5 = vunpack.c.l.bf16 %v4821_v59  ;;  %v4466_v4 = vand.u32 2147450879, %v13928_v41  ;;  %v6173_v62 = vpack.c.bf16 %v5902_v35, %v5900_v32  ;;  %v5904_v20 = vmul.f32 0.6931472, %v9918_v45 }
 0x72a   : > { %v5404_v48 = vunpack.c.l.bf16 %v5318_v13  ;;  %v4910_v47 = vunpack.c.h.bf16 %v4821_v59  ;;  %v5071_v53 = vmul.f32 1.442695, %v4911_v29  ;;  %v4696_v28 = vsub.f32 0.0, %v4556_v11 }
 0x72b   : > { %v4697_v55 = vsub.f32 0.0, %v4557_v25  ;;  %v3612_v6 = vadd.f32 %v3611_v57, %v13747_v58  ;;  %v15656_v17 = vunpack.c.l.bf16 %v13815_v49  ;;  %v4158_v43 = vpack.c.bf16 %v13932_v30, %v13932_v30  ;;  %v3552_v57 = vpop.f32.mrf.mxu2 }
 0x72c   : > { %v4378_v10 = vpack.c.bf16 %v4244_v46, %v4244_v46  ;;  %v3749_v14 = vunpack.c.l.bf16 %v393_v18  ;;  %v9920_v24 = vpop.eup %9919  ;;  %v5542_v51 = vadd.f32 1.0, %v5402_v38  ;;  %v5543_v32 = vadd.f32 1.0, %v5403_v16  ;;  %v3493_v16 = vpop.f32.mrf.mxu1 }
 0x72d   : > { %v13939_v56 = vsub.f32 %v6879_v9, %v15656_v17  ;;  %v5067_v45 = vmul.f32 1.442695, %v4909_v5  ;;  %v4558_v35 = vunpack.c.l.bf16 %v4466_v4  ;;  %v9922_v59 = vpop.eup %9921  ;;  %v6395_v29 = vunpack.c.l.bf16 %v6173_v62 }
 0x72e   : > { %v6396_v11 = vunpack.c.h.bf16 %v6173_v62  ;;  %v5544_v13 = vadd.f32 1.0, %v5404_v48  ;;  %v5069_v25 = vmul.f32 1.442695, %v4910_v47  ;;  %v6174_v42 = vpack.c.bf16 %v5904_v20, %v5904_v20 }
 0x72f   : > { %15657 = vst [vmem:[#allocation106_spill] sm:$0xff] %v13939_v56  ;;  %9923 = vpow2.f32 %v5071_v53  ;;  %v4825_v9 = vpack.c.bf16 %v4697_v55, %v4696_v28  ;;  %v13943_v17 = vpack.c.bf16 %v3612_v6, %v3612_v6  ;;  %v13945_v56 = vunpack.c.l.bf16 %v4378_v10 }
 0x730   : > { %v3750_v30 = vunpack.c.h.bf16 %v393_v18  ;;  %v3889_v46 = vunpack.c.l.bf16 %v13884_v33  ;;  %v3890_v38 = vunpack.c.h.bf16 %v13884_v33  ;;  %v5677_v5 = vpack.c.bf16 %v5543_v32, %v5542_v51 }
 0x731   : > { %9925 = vpow2.f32 %v5067_v45  ;;  %v4698_v4 = vsub.f32 0.0, %v4558_v35  ;;  %v3553_v62 = vadd.f32 %v3552_v57, %v13730_v12  ;;  %v6162_v48 = vmul.f32 0.6931472, %v9920_v24 }
 0x732   : > { %v6164_v47 = vmul.f32 0.6931472, %v9922_v59  ;;  %v5678_v20 = vpack.c.bf16 %v5544_v13, %v5544_v13  ;;  %9927 = vpow2.f32 %v5069_v25  ;;  %v6397_v28 = vunpack.c.l.bf16 %v6174_v42 }
 0x733   : > { %v4916_v53 = vunpack.c.l.bf16 %v4825_v9  ;;  %v3494_v55 = vadd.f32 %v3493_v16, %v13737_v1  ;;  %v4470_v18 = vand.u32 2147450879, %v13943_v17  ;;  %v15658_v6 = vunpack.c.l.bf16 %v13836_v0 }
 0x734   : > { %v4029_v51 = vmul.f32 %v3889_v46, %v3749_v14  ;;  %v4030_v10 = vmul.f32 %v3890_v38, %v3750_v30  ;;  %v4917_v32 = vunpack.c.h.bf16 %v4825_v9  ;;  %v15659_v24 = vunpack.c.h.bf16 %v13836_v0 }
 0x735   : > { %v13954_v33 = vadd.f32 %v6395_v29, %v15658_v6  ;;  %v9924_v45 = vpop.eup %9923  ;;  %v5762_v59 = vunpack.c.l.bf16 %v5677_v5  ;;  %v4826_v42 = vpack.c.bf16 %v4698_v4, %v4698_v4  ;;  %v13960_v13 = vpack.c.bf16 %v3553_v62, %v3494_v55  ;;  %v3554_v55 = vpop.f32.mrf.mxu2 }
 0x736   : > { %v13958_v35 = vadd.f32 %v6396_v11, %v15659_v24  ;;  %v6248_v25 = vpack.c.bf16 %v6164_v47, %v6162_v48  ;;  %v5764_v57 = vunpack.c.l.bf16 %v5678_v20  ;;  %v13962_v16 = vunpack.c.l.bf16 %v4158_v43 }
 0x737   : > { %v4249_v49 = vmax.f32 %v3889_v46, 0.0  ;;  %v9926_v29 = vpop.eup %9925  ;;  %v6537_v14 = vadd.f32 %v6397_v28, %v13900_v60  ;;  %v4250_v30 = vmax.f32 %v3890_v38, 0.0  ;;  %v5081_v9 = vmul.f32 1.442695, %v4916_v53  ;;  %v3495_v60 = vpop.f32.mrf.mxu1 }
 0x738   : > { %v4565_v6 = vunpack.c.l.bf16 %v4470_v18  ;;  %v9928_v22 = vpop.eup %9927  ;;  %v13966_v0 = vpack.c.bf16 %v4030_v10, %v4029_v51  ;;  %v3891_v11 = vunpack.c.l.bf16 %v13880_v63  ;;  %v5322_v4 = vpack.c.bf16 %v9924_v45, %v9924_v45 }
 0x739   : > { %v5083_v62 = vmul.f32 1.442695, %v4917_v32  ;;  %9929 = vlog2.f32 %v5762_v59  ;;  %v3751_v48 = vunpack.c.l.bf16 %v394_v15  ;;  %v4918_v43 = vunpack.c.l.bf16 %v4826_v42 }
 0x73a   : > { %15660 = vst [vmem:[#allocation107_spill] sm:$0xff] %v13966_v0  ;;  %v4469_v46 = vand.u32 2147450879, %v13960_v13  ;;  %v6526_v47 = vunpack.c.l.bf16 %v6248_v25  ;;  %v6527_v20 = vunpack.c.h.bf16 %v6248_v25  ;;  %v5763_v24 = vunpack.c.h.bf16 %v5677_v5 }
 0x73b   : > { %9931 = vlog2.f32 %v5764_v57  ;;  %v5321_v38 = vpack.c.bf16 %v9928_v22, %v9926_v29  ;;  %v4705_v28 = vsub.f32 0.0, %v4565_v6  ;;  %v3555_v53 = vadd.f32 %v3554_v55, %v13730_v12 }
 0x73c   : > { %9933 = vpow2.f32 %v5081_v9  ;;  %v6674_v63 = vpack.c.bf16 %v6537_v14, %v6537_v14  ;;  %v4251_v18 = vmax.f32 %v3891_v11, 0.0  ;;  %v5411_v51 = vunpack.c.l.bf16 %v5322_v4  ;;  %v397_v9 = vld [vmem:[%s10386_s25 + $0x64] sm:$0xff] }
 0x73d   : > { %9935 = vpow2.f32 %v5083_v62  ;;  %v5085_v10 = vmul.f32 1.442695, %v4918_v43  ;;  %v4563_v15 = vunpack.c.l.bf16 %v4469_v46  ;;  %v4564_v32 = vunpack.c.h.bf16 %v4469_v46 }
 0x73e   : > { %v3496_v45 = vadd.f32 %v3495_v60, %v13737_v1  ;;  %v15661_v59 = vunpack.c.l.bf16 %v13898_v2  ;;  %v15662_v42 = vunpack.c.h.bf16 %v13898_v2  ;;  %9937 = vlog2.f32 %v5763_v24 }
 0x73f   : > { %v13976_v25 = vpack.c.bf16 %v4250_v30, %v4249_v49  ;;  %v9930_v57 = vpop.eup %9929  ;;  %v5409_v29 = vunpack.c.l.bf16 %v5321_v38  ;;  %v5410_v14 = vunpack.c.h.bf16 %v5321_v38  ;;  %v4830_v6 = vpack.c.bf16 %v4705_v28, %v4705_v28  ;;  %v3613_v38 = vpop.f32.mrf.mxu3 }
 0x740   : > { %v6666_v5 = vadd.f32 %v6526_v47, %v15661_v59  ;;  %v6667_v22 = vadd.f32 %v6527_v20, %v15662_v42  ;;  %v13979_v4 = vpack.c.bf16 %v3555_v53, %v3496_v45  ;;  %v13981_v55 = vunpack.c.l.bf16 %v6674_v63 }
 0x741   : > { %v9932_v62 = vpop.eup %9931  ;;  %v13984_v46 = vmul.f32 %v3891_v11, %v3751_v48  ;;  %v4382_v47 = vpack.c.bf16 %v4251_v18, %v4251_v18  ;;  %v5551_v20 = vadd.f32 1.0, %v5411_v51  ;;  %9939 = vpow2.f32 %v5085_v10 }
 0x742   : > { %v9934_v2 = vpop.eup %9933  ;;  %v4703_v49 = vsub.f32 0.0, %v4563_v15  ;;  %v4704_v30 = vsub.f32 0.0, %v4564_v32  ;;  %v13986_v60 = vpack.c.bf16 %v6667_v22, %v6666_v5  ;;  %v3756_v28 = vunpack.c.l.bf16 %v397_v9 }
 0x743   : > { %v9936_v24 = vpop.eup %9935  ;;  %v3896_v53 = vunpack.c.l.bf16 %v13902_v26  ;;  %v5549_v63 = vadd.f32 1.0, %v5409_v29  ;;  %v5550_v45 = vadd.f32 1.0, %v5410_v14  ;;  %v4925_v59 = vunpack.c.l.bf16 %v4830_v6 }
 0x744   : > { %15663 = vst [vmem:[#allocation108_spill] sm:$0xff] %v13986_v60  ;;  %v4473_v11 = vand.u32 2147450879, %v13979_v4  ;;  %v9938_v48 = vpop.eup %9937  ;;  %v4162_v10 = vpack.c.bf16 %v13984_v46, %v13984_v46  ;;  %v3897_v15 = vunpack.c.h.bf16 %v13902_v26  ;;  %v5918_v32 = vmul.f32 0.6931472, %v9932_v62 }
 0x745   : > { %v5682_v5 = vpack.c.bf16 %v5551_v20, %v5551_v20  ;;  %v13997_v42 = vunpack.c.l.bf16 %v4382_v47  ;;  %v4829_v22 = vpack.c.bf16 %v4704_v30, %v4703_v49  ;;  %v6886_v29 = vunpack.c.l.bf16 %v13986_v60 }
 0x746   : > { %v3757_v14 = vunpack.c.h.bf16 %v397_v9  ;;  %v4036_v6 = vmul.f32 %v3896_v53, %v3756_v28  ;;  %v5325_v43 = vpack.c.bf16 %v9936_v24, %v9934_v2  ;;  %v5681_v18 = vpack.c.bf16 %v5550_v45, %v5549_v63 }
 0x747   : > { %v9940_v3 = vpop.eup %9939  ;;  %v5099_v0 = vmul.f32 1.442695, %v4925_v59  ;;  %v4570_v51 = vunpack.c.l.bf16 %v4473_v11  ;;  %v4571_v36 = vunpack.c.h.bf16 %v4473_v11  ;;  %v5914_v21 = vmul.f32 0.6931472, %v9930_v57 }
 0x748   : > { %v5916_v46 = vmul.f32 0.6931472, %v9938_v48  ;;  %v4256_v23 = vmax.f32 %v3896_v53, 0.0  ;;  %v4257_v26 = vmax.f32 %v3897_v15, 0.0  ;;  %v6178_v62 = vpack.c.bf16 %v5918_v32, %v5918_v32  ;;  %v398_v48 = vld [vmem:[%s10386_s25 + $0x6c] sm:$0xf] }
 0x749   : > { %v5771_v47 = vunpack.c.l.bf16 %v5682_v5  ;;  %v4923_v20 = vunpack.c.l.bf16 %v4829_v22  ;;  %v3614_v49 = vadd.f32 %v3613_v38, %v13747_v58  ;;  %v5416_v30 = vunpack.c.l.bf16 %v5325_v43 }
 0x74a   : > { %v5417_v9 = vunpack.c.h.bf16 %v5325_v43  ;;  %v5326_v28 = vpack.c.bf16 %v9940_v3, %v9940_v3  ;;  %v4924_v2 = vunpack.c.h.bf16 %v4829_v22  ;;  %v5769_v24 = vunpack.c.l.bf16 %v5681_v18 }
 0x74b   : > { %9941 = vpow2.f32 %v5099_v0  ;;  %v4710_v63 = vsub.f32 0.0, %v4570_v51  ;;  %v4711_v45 = vsub.f32 0.0, %v4571_v36  ;;  %v14001_v59 = vpack.c.bf16 %v5916_v46, %v5914_v21 }
 0x74c   : > { %v5770_v57 = vunpack.c.h.bf16 %v5681_v18  ;;  %v4037_v11 = vmul.f32 %v3897_v15, %v3757_v14  ;;  %v14003_v53 = vpack.c.bf16 %v4257_v26, %v4256_v23  ;;  %v6404_v32 = vunpack.c.l.bf16 %v6178_v62 }
 0x74d   : > { %9943 = vlog2.f32 %v5771_v47  ;;  %v5095_v5 = vmul.f32 1.442695, %v4923_v20  ;;  %v14006_v60 = vpack.c.bf16 %v3614_v49, %v3614_v49  ;;  %v5556_v38 = vadd.f32 1.0, %v5416_v30 }
 0x74e   : > { %v5557_v43 = vadd.f32 1.0, %v5417_v9  ;;  %v5418_v3 = vunpack.c.l.bf16 %v5326_v28  ;;  %v5097_v22 = vmul.f32 1.442695, %v4924_v2  ;;  %9945 = vlog2.f32 %v5769_v24  ;;  %v401_v2 = vld [vmem:[%s10386_s25 + $0x80] sm:$0xff] }
 0x74f   : > { %v3758_v0 = vunpack.c.l.bf16 %v398_v48  ;;  %v3898_v36 = vunpack.c.l.bf16 %v13928_v41  ;;  %v4833_v21 = vpack.c.bf16 %v4711_v45, %v4710_v63  ;;  %v15664_v18 = vunpack.c.l.bf16 %v13882_v8 }
 0x750   : > { %9947 = vlog2.f32 %v5770_v57  ;;  %v14013_v23 = vunpack.c.l.bf16 %v4162_v10  ;;  %v14015_v15 = vpack.c.bf16 %v4037_v11, %v4036_v6  ;;  %v6402_v46 = vunpack.c.l.bf16 %v14001_v59 }
 0x751   : > { %v14011_v51 = vsub.f32 %v6886_v29, %v15664_v18  ;;  %v9942_v14 = vpop.eup %9941  ;;  %v6544_v26 = vadd.f32 %v6404_v32, %v13945_v56  ;;  %9949 = vpow2.f32 %v5095_v5  ;;  %v4474_v62 = vand.u32 2147450879, %v14006_v60 }
 0x752   : > { %15666 = vst [vmem:[#allocation110_spill] sm:$0xff] %v14013_v23  ;;  %v5685_v41 = vpack.c.bf16 %v5557_v43, %v5556_v38  ;;  %v5558_v20 = vadd.f32 1.0, %v5418_v3  ;;  %9951 = vpow2.f32 %v5097_v22  ;;  %v4038_v49 = vmul.f32 %v3898_v36, %v3758_v0 }
 0x753   : > { %15665 = vst [vmem:[#allocation109_spill] sm:$0xff] %v14011_v51  ;;  %v9944_v29 = vpop.eup %9943  ;;  %v4258_v6 = vmax.f32 %v3898_v36, 0.0  ;;  %v4930_v30 = vunpack.c.l.bf16 %v4833_v21  ;;  %v6403_v9 = vunpack.c.h.bf16 %v14001_v59  ;;  %v5330_v56 = vpack.c.bf16 %v9942_v14, %v9942_v14 }
 0x754   : > { %15667 = vst [vmem:[#allocation111_spill] sm:$0xff] %v14015_v15  ;;  %v4931_v24 = vunpack.c.h.bf16 %v4833_v21  ;;  %v9946_v63 = vpop.eup %9945  ;;  %v15668_v45 = vunpack.c.l.bf16 %v13921_v52  ;;  %v6678_v11 = vpack.c.bf16 %v6544_v26, %v6544_v26  ;;  %v3903_v48 = vunpack.c.l.bf16 %v13960_v13  ;;  %v3557_v26 = vpop.f32.mrf.mxu2 }
 0x755   : > { %v4572_v32 = vunpack.c.l.bf16 %v4474_v62  ;;  %v5932_v38 = vmul.f32 0.6931472, %v9944_v29  ;;  %v5776_v43 = vunpack.c.l.bf16 %v5685_v41  ;;  %v5686_v3 = vpack.c.bf16 %v5558_v20, %v5558_v20  ;;  %v3498_v15 = vpop.f32.mrf.mxu1 }
 0x756   : > { %v14027_v57 = vadd.f32 %v6402_v46, %v15668_v45  ;;  %v9948_v5 = vpop.eup %9947  ;;  %v3904_v59 = vunpack.c.h.bf16 %v13960_v13  ;;  %v4166_v0 = vpack.c.bf16 %v4038_v49, %v4038_v49  ;;  %v4386_v36 = vpack.c.bf16 %v4258_v6, %v4258_v6 }
 0x757   : > { %v9950_v22 = vpop.eup %9949  ;;  %v3763_v18 = vunpack.c.l.bf16 %v401_v2  ;;  %v5109_v21 = vmul.f32 1.442695, %v4930_v30  ;;  %v5928_v28 = vmul.f32 0.6931472, %v9946_v63  ;;  %v3764_v10 = vunpack.c.h.bf16 %v401_v2 }
 0x758   : > { %v9952_v14 = vpop.eup %9951  ;;  %v5425_v46 = vunpack.c.l.bf16 %v5330_v56  ;;  %v5111_v45 = vmul.f32 1.442695, %v4931_v24  ;;  %v5930_v47 = vmul.f32 0.6931472, %v9948_v5  ;;  %v5777_v51 = vunpack.c.h.bf16 %v5685_v41  ;;  %v402_v41 = vld [vmem:[%s10386_s25 + $0x88] sm:$0xf] }
 0x759   : > { %v4263_v62 = vmax.f32 %v3903_v48, 0.0  ;;  %v4712_v8 = vsub.f32 0.0, %v4572_v32  ;;  %v6182_v29 = vpack.c.bf16 %v5932_v38, %v5932_v38  ;;  %9953 = vlog2.f32 %v5776_v43 }
 0x75a   : > { %v5778_v20 = vunpack.c.l.bf16 %v5686_v3  ;;  %v4264_v13 = vmax.f32 %v3904_v59, 0.0  ;;  %v14031_v49 = vunpack.c.l.bf16 %v6678_v11  ;;  %v5329_v6 = vpack.c.bf16 %v9952_v14, %v9950_v22 }
 0x75b   : > { %9955 = vpow2.f32 %v5109_v21  ;;  %v3558_v30 = vadd.f32 %v3557_v26, %v13730_v12  ;;  %v4043_v2 = vmul.f32 %v3903_v48, %v3763_v18  ;;  %v4044_v56 = vmul.f32 %v3904_v59, %v3764_v10 }
 0x75c   : > { %v5565_v24 = vadd.f32 1.0, %v5425_v46  ;;  %9957 = vpow2.f32 %v5111_v45  ;;  %v6181_v63 = vpack.c.bf16 %v5930_v47, %v5928_v28  ;;  %v4834_v32 = vpack.c.bf16 %v4712_v8, %v4712_v8 }
 0x75d   : > { %9959 = vlog2.f32 %v5777_v51  ;;  %v3499_v5 = vadd.f32 %v3498_v15, %v13737_v1  ;;  %v15669_v38 = vunpack.c.h.bf16 %v13921_v52  ;;  %v6411_v11 = vunpack.c.l.bf16 %v6182_v29 }
 0x75e   : > { %9961 = vlog2.f32 %v5778_v20  ;;  %v14040_v3 = vpack.c.bf16 %v4264_v13, %v4263_v62  ;;  %v14042_v22 = vunpack.c.l.bf16 %v4386_v36  ;;  %v5423_v10 = vunpack.c.l.bf16 %v5329_v6 }
 0x75f   : > { %v14038_v43 = vadd.f32 %v6403_v9, %v15669_v38  ;;  %v5424_v48 = vunpack.c.h.bf16 %v5329_v6  ;;  %v14044_v59 = vpack.c.bf16 %v3558_v30, %v3499_v5  ;;  %v9954_v51 = vpop.eup %9953  ;;  %v14048_v47 = vunpack.c.l.bf16 %v4166_v0  ;;  %v405_v9 = vld [vmem:[%s10386_s25 + $0x9c] sm:$0xff] }
 0x760   : > { %v3765_v15 = vunpack.c.l.bf16 %v402_v41  ;;  %v5690_v52 = vpack.c.bf16 %v5565_v24, %v5565_v24  ;;  %v6409_v18 = vunpack.c.l.bf16 %v6181_v63  ;;  %v14051_v21 = vpack.c.bf16 %v4044_v56, %v4043_v2 }
 0x761   : > { %15670 = vst [vmem:[#allocation112_spill] sm:$0xff] %v14048_v47  ;;  %v9956_v28 = vpop.eup %9955  ;;  %v3905_v36 = vunpack.c.l.bf16 %v13943_v17  ;;  %v4932_v14 = vunpack.c.l.bf16 %v4834_v32  ;;  %v6410_v45 = vunpack.c.h.bf16 %v6181_v63  ;;  %v6551_v26 = vadd.f32 %v6411_v11, %v13997_v42 }
 0x762   : > { %15671 = vst [vmem:[#allocation113_spill] sm:$0xff] %v14051_v21  ;;  %v9958_v46 = vpop.eup %9957  ;;  %v5563_v20 = vadd.f32 1.0, %v5423_v10  ;;  %v5564_v13 = vadd.f32 1.0, %v5424_v48  ;;  %v3770_v6 = vunpack.c.l.bf16 %v405_v9  ;;  %v4477_v30 = vand.u32 2147450879, %v14044_v59 }
 0x763   : > { %v9960_v0 = vpop.eup %9959  ;;  %v5785_v2 = vunpack.c.l.bf16 %v5690_v52  ;;  %v3771_v56 = vunpack.c.h.bf16 %v405_v9  ;;  %v3910_v17 = vunpack.c.l.bf16 %v13979_v4  ;;  %v3911_v41 = vunpack.c.h.bf16 %v13979_v4  ;;  %v3616_v9 = vpop.f32.mrf.mxu3 }
 0x764   : > { %v9962_v24 = vpop.eup %9961  ;;  %v15672_v63 = vunpack.c.l.bf16 %v13976_v25  ;;  %v4045_v32 = vmul.f32 %v3905_v36, %v3765_v15  ;;  %v5333_v5 = vpack.c.bf16 %v9958_v46, %v9956_v28  ;;  %v5113_v38 = vmul.f32 1.442695, %v4932_v14 }
 0x765   : > { %v6682_v11 = vpack.c.bf16 %v6551_v26, %v6551_v26  ;;  %v5942_v10 = vmul.f32 0.6931472, %v9954_v51  ;;  %v5944_v48 = vmul.f32 0.6931472, %v9960_v0  ;;  %v4265_v8 = vmax.f32 %v3905_v36, 0.0 }
 0x766   : > { %v14062_v42 = vadd.f32 %v6409_v18, %v15672_v63  ;;  %v5946_v29 = vmul.f32 0.6931472, %v9962_v24  ;;  %v5689_v62 = vpack.c.bf16 %v5564_v13, %v5563_v20  ;;  %v4577_v61 = vunpack.c.l.bf16 %v4477_v30  ;;  %v406_v0 = vld [vmem:[%s10386_s25 + $0xa4] sm:$0xf] }
 0x767   : > { %v4578_v52 = vunpack.c.h.bf16 %v4477_v30  ;;  %9963 = vlog2.f32 %v5785_v2  ;;  %v4050_v37 = vmul.f32 %v3910_v17, %v3770_v6  ;;  %v4051_v4 = vmul.f32 %v3911_v41, %v3771_v56 }
 0x768   : > { %v4270_v40 = vmax.f32 %v3910_v17, 0.0  ;;  %v4271_v44 = vmax.f32 %v3911_v41, 0.0  ;;  %v5430_v18 = vunpack.c.l.bf16 %v5333_v5  ;;  %v5431_v63 = vunpack.c.h.bf16 %v5333_v5 }
 0x769   : > { %9965 = vpow2.f32 %v5113_v38  ;;  %v15673_v15 = vunpack.c.h.bf16 %v13976_v25  ;;  %v6185_v51 = vpack.c.bf16 %v5944_v48, %v5942_v10  ;;  %v4390_v36 = vpack.c.bf16 %v4265_v8, %v4265_v8 }
 0x76a   : > { %v3617_v14 = vadd.f32 %v3616_v9, %v13747_v58  ;;  %v6186_v46 = vpack.c.bf16 %v5946_v29, %v5946_v29  ;;  %v5783_v26 = vunpack.c.l.bf16 %v5689_v62  ;;  %v4717_v20 = vsub.f32 0.0, %v4577_v61 }
 0x76b   : > { %v14066_v28 = vadd.f32 %v6410_v45, %v15673_v15  ;;  %v4718_v13 = vsub.f32 0.0, %v4578_v52  ;;  %v14070_v6 = vunpack.c.l.bf16 %v6682_v11  ;;  %v5784_v30 = vunpack.c.h.bf16 %v5689_v62 }
 0x76c   : > { %v4170_v24 = vpack.c.bf16 %v4045_v32, %v4045_v32  ;;  %v14072_v2 = vpack.c.bf16 %v4051_v4, %v4050_v37  ;;  %v14075_v25 = vpack.c.bf16 %v4271_v44, %v4270_v40  ;;  %v5570_v45 = vadd.f32 1.0, %v5430_v18  ;;  %v409_v4 = vld [vmem:[%s10386_s25 + $0xb8] sm:$0xff]  ;;  %v3559_v18 = vpop.f32.mrf.mxu2 }
 0x76d   : > { %v5571_v17 = vadd.f32 1.0, %v5431_v63  ;;  %v9964_v8 = vpop.eup %9963  ;;  %v6416_v41 = vunpack.c.l.bf16 %v6185_v51  ;;  %v14077_v5 = vunpack.c.l.bf16 %v4390_v36  ;;  %v3772_v29 = vunpack.c.l.bf16 %v406_v0 }
 0x76e   : > { %15674 = vst [vmem:[#allocation114_spill] sm:$0xff] %v14072_v2  ;;  %v14079_v61 = vpack.c.bf16 %v3617_v14, %v3617_v14  ;;  %v6418_v11 = vunpack.c.l.bf16 %v6186_v46  ;;  %9967 = vlog2.f32 %v5783_v26  ;;  %v3912_v37 = vunpack.c.l.bf16 %v14006_v60 }
 0x76f   : > { %v9966_v38 = vpop.eup %9965  ;;  %v4837_v62 = vpack.c.bf16 %v4718_v13, %v4717_v20  ;;  %9969 = vlog2.f32 %v5784_v30  ;;  %v14084_v44 = vunpack.c.l.bf16 %v4170_v24  ;;  %v5960_v10 = vmul.f32 0.6931472, %v9964_v8  ;;  %v3500_v13 = vpop.f32.mrf.mxu1 }
 0x770   : > { %v5693_v48 = vpack.c.bf16 %v5571_v17, %v5570_v45  ;;  %v6417_v63 = vunpack.c.h.bf16 %v6185_v51  ;;  %v15676_v60 = vunpack.c.l.bf16 %v14003_v53  ;;  %v5334_v36 = vpack.c.bf16 %v9966_v38, %v9966_v38 }
 0x771   : > { %15675 = vst [vmem:[#allocation115_spill] sm:$0xff] %v14084_v44  ;;  %v4478_v14 = vand.u32 2147450879, %v14079_v61  ;;  %v6558_v46 = vadd.f32 %v6418_v11, %v14042_v22  ;;  %v4052_v26 = vmul.f32 %v3912_v37, %v3772_v29  ;;  %v4272_v0 = vmax.f32 %v3912_v37, 0.0 }
 0x772   : > { %v14092_v15 = vadd.f32 %v6416_v41, %v15676_v60  ;;  %v4937_v20 = vunpack.c.l.bf16 %v4837_v62  ;;  %v3777_v30 = vunpack.c.l.bf16 %v409_v4  ;;  %v3778_v24 = vunpack.c.h.bf16 %v409_v4 }
 0x773   : > { %v4938_v45 = vunpack.c.h.bf16 %v4837_v62  ;;  %v3560_v17 = vadd.f32 %v3559_v18, %v13730_v12  ;;  %v6190_v51 = vpack.c.bf16 %v5960_v10, %v5960_v10  ;;  %v5790_v32 = vunpack.c.l.bf16 %v5693_v48 }
 0x774   : > { %v9968_v8 = vpop.eup %9967  ;;  %v3917_v41 = vunpack.c.l.bf16 %v14044_v59  ;;  %v3918_v38 = vunpack.c.h.bf16 %v14044_v59  ;;  %v5791_v56 = vunpack.c.h.bf16 %v5693_v48  ;;  %v5432_v22 = vunpack.c.l.bf16 %v5334_v36  ;;  %v410_v36 = vld [vmem:[%s10386_s25 + $0xc0] sm:$0xf] }
 0x775   : > { %v9970_v60 = vpop.eup %9969  ;;  %v4579_v29 = vunpack.c.l.bf16 %v4478_v14  ;;  %v3501_v11 = vadd.f32 %v3500_v13, %v13737_v1  ;;  %v15677_v37 = vunpack.c.h.bf16 %v14003_v53  ;;  %v6686_v62 = vpack.c.bf16 %v6558_v46, %v6558_v46  ;;  %v413_v53 = vld [vmem:[%s10386_s25 + $0xd4] sm:$0xff] }
 0x776   : > { %v4174_v18 = vpack.c.bf16 %v4052_v26, %v4052_v26  ;;  %v5123_v10 = vmul.f32 1.442695, %v4937_v20  ;;  %v5956_v40 = vmul.f32 0.6931472, %v9968_v8  ;;  %v4394_v9 = vpack.c.bf16 %v4272_v0, %v4272_v0 }
 0x777   : > { %v14102_v4 = vadd.f32 %v6417_v63, %v15677_v37  ;;  %v5125_v52 = vmul.f32 1.442695, %v4938_v45  ;;  %v3681_v2 = vpack.c.bf16 %v3560_v17, %v3501_v11  ;;  %v5958_v59 = vmul.f32 0.6931472, %v9970_v60 }
 0x778   : > { %v6425_v21 = vunpack.c.l.bf16 %v6190_v51  ;;  %9971 = vlog2.f32 %v5790_v32  ;;  %v4057_v48 = vmul.f32 %v3917_v41, %v3777_v30  ;;  %v5572_v14 = vadd.f32 1.0, %v5432_v22 }
 0x779   : > { %9973 = vlog2.f32 %v5791_v56  ;;  %v4058_v13 = vmul.f32 %v3918_v38, %v3778_v24  ;;  %v4719_v23 = vsub.f32 0.0, %v4579_v29  ;;  %v14106_v63 = vunpack.c.l.bf16 %v6686_v62 }
 0x77a   : > { %v4277_v46 = vmax.f32 %v3917_v41, 0.0  ;;  %v4278_v37 = vmax.f32 %v3918_v38, 0.0  ;;  %9975 = vpow2.f32 %v5123_v10  ;;  %v3779_v26 = vunpack.c.l.bf16 %v410_v36 }
 0x77b   : > { %15678 = vst [vmem:[#allocation116_spill] sm:$0xff] %v14106_v63  ;;  %9977 = vpow2.f32 %v5125_v52  ;;  %v3919_v0 = vunpack.c.l.bf16 %v14079_v61  ;;  %v4481_v20 = vand.u32 2147450879, %v3681_v2  ;;  %v6189_v45 = vpack.c.bf16 %v5958_v59, %v5956_v40 }
 0x77c   : > { %v6565_v32 = vadd.f32 %v6425_v21, %v14077_v5  ;;  %v3784_v30 = vunpack.c.l.bf16 %v413_v53  ;;  %v3785_v17 = vunpack.c.h.bf16 %v413_v53  ;;  %v5694_v56 = vpack.c.bf16 %v5572_v14, %v5572_v14 }
 0x77d   : > { %v4838_v8 = vpack.c.bf16 %v4719_v23, %v4719_v23  ;;  %v3924_v24 = vunpack.c.l.bf16 %v3681_v2  ;;  %v3925_v51 = vunpack.c.h.bf16 %v3681_v2  ;;  %v14112_v38 = vunpack.c.l.bf16 %v4394_v9 }
 0x77e   : > { %v9972_v60 = vpop.eup %9971  ;;  %v14114_v52 = vunpack.c.l.bf16 %v4174_v18  ;;  %v14116_v22 = vpack.c.bf16 %v4058_v13, %v4057_v48  ;;  %v14118_v40 = vpack.c.bf16 %v4278_v37, %v4277_v46  ;;  %v4059_v21 = vmul.f32 %v3919_v0, %v3779_v26 }
 0x77f   : > { %v9974_v61 = vpop.eup %9973  ;;  %v4584_v5 = vunpack.c.l.bf16 %v4481_v20  ;;  %v4585_v29 = vunpack.c.h.bf16 %v4481_v20  ;;  %v6423_v23 = vunpack.c.l.bf16 %v6189_v45  ;;  %v6424_v62 = vunpack.c.h.bf16 %v6189_v45 }
 0x780   : > { %15679 = vst [vmem:[#allocation117_spill] sm:$0xff] %v14116_v22  ;;  %v9976_v11 = vpop.eup %9975  ;;  %v6690_v2 = vpack.c.bf16 %v6565_v32, %v6565_v32  ;;  %v4279_v10 = vmax.f32 %v3919_v0, 0.0  ;;  %v5792_v36 = vunpack.c.l.bf16 %v5694_v56  ;;  %v4939_v14 = vunpack.c.l.bf16 %v4838_v8 }
 0x781   : > { %v9978_v59 = vpop.eup %9977  ;;  %v4064_v9 = vmul.f32 %v3924_v24, %v3784_v30  ;;  %v4065_v53 = vmul.f32 %v3925_v51, %v3785_v17  ;;  %v5970_v18 = vmul.f32 0.6931472, %v9972_v60  ;;  %v5972_v41 = vmul.f32 0.6931472, %v9974_v61 }
 0x782   : > { %v4284_v48 = vmax.f32 %v3924_v24, 0.0  ;;  %v4285_v13 = vmax.f32 %v3925_v51, 0.0  ;;  %v4178_v37 = vpack.c.bf16 %v4059_v21, %v4059_v21  ;;  %v4724_v26 = vsub.f32 0.0, %v4584_v5 }
 0x783   : > { %v4725_v47 = vsub.f32 0.0, %v4585_v29  ;;  %v14121_v20 = vunpack.c.l.bf16 %v6690_v2  ;;  %v5337_v63 = vpack.c.bf16 %v9978_v59, %v9976_v11  ;;  %v4398_v0 = vpack.c.bf16 %v4279_v10, %v4279_v10  ;;  %v3618_v2 = vpop.f32.mrf.mxu3 }
 0x784   : > { %9979 = vlog2.f32 %v5792_v36  ;;  %v5127_v32 = vmul.f32 1.442695, %v4939_v14  ;;  %v14124_v56 = vpack.c.bf16 %v4065_v53, %v4064_v9  ;;  %v6761_v30 = vunpack.c.h.bf16 %v12845_v54  ;;  %v15688_v14 = vld [vmem:[#allocation16_spill] sm:$0xff] }
 0x785   : > { %15680 = vst [vmem:[#allocation118_spill] sm:$0xff] %v14121_v20  ;;  %v6193_v17 = vpack.c.bf16 %v5972_v41, %v5970_v18  ;;  %v14128_v24 = vpack.c.bf16 %v4285_v13, %v4284_v48  ;;  %v6754_v51 = vunpack.c.h.bf16 %v12784_v27  ;;  %v15682_v60 = vunpack.c.l.bf16 %v14040_v3  ;;  %v15689_v48 = vld [vmem:[#allocation13_spill] sm:$0xff]  ;;  %v3562_v20 = vpop.f32.mrf.mxu2 }
 0x786   : > { %15681 = vst [vmem:[#allocation119_spill] sm:$0xff] %v14124_v56  ;;  %v15683_v21 = vunpack.c.h.bf16 %v14040_v3  ;;  %v14139_v29 = vunpack.c.l.bf16 %v4178_v37  ;;  %v4841_v11 = vpack.c.bf16 %v4725_v47, %v4724_v26  ;;  %v5437_v41 = vunpack.c.l.bf16 %v5337_v63 }
 0x787   : > { %v14133_v61 = vadd.f32 %v6423_v23, %v15682_v60  ;;  %v5438_v10 = vunpack.c.h.bf16 %v5337_v63  ;;  %v14143_v59 = vunpack.c.l.bf16 %v4398_v0  ;;  %9981 = vpow2.f32 %v5127_v32  ;;  %v15685_v23 = vld [vmem:[#allocation36_spill] sm:$0xff]  ;;  %v15691_v60 = vld [vmem:[#allocation15_spill] sm:$0xff] }
 0x788   : > { %v14137_v5 = vadd.f32 %v6424_v62, %v15683_v21  ;;  %15684 = vst [vmem:[#allocation120_spill] sm:$0xff] %v14139_v29  ;;  %v15686_v36 = vunpack.c.h.bf16 %v15685_v23  ;;  %v15687_v62 = vld [vmem:[#allocation14_spill] sm:$0xff]  ;;  %v6430_v53 = vunpack.c.l.bf16 %v6193_v17  ;;  %v3619_v18 = vadd.f32 %v3618_v2, %v13747_v58  ;;  %v15692_v21 = vld [vmem:[#allocation44_spill] sm:$0xff]  ;;  %v3503_v2 = vpop.f32.mrf.mxu1 }
 0x789   : > { %v7171_v9 = vpack.c.bf16 %v15688_v14, %v15687_v62  ;;  %v15690_v13 = vunpack.c.h.bf16 %v15689_v48  ;;  %v4944_v26 = vunpack.c.l.bf16 %v4841_v11  ;;  %v4945_v0 = vunpack.c.h.bf16 %v4841_v11  ;;  %v414_v32 = vld [vmem:[%s10386_s25 + $0xdc] sm:$0xf] }
 0x78a   : > { %v7041_v3 = vsub.f32 %v6761_v30, %v15686_v36  ;;  %v9980_v63 = vpop.eup %9979  ;;  %v7172_v27 = vpack.c.bf16 %v15692_v21, %v15691_v60  ;;  %v15693_v23 = vld [vmem:[#allocation18_spill] sm:$0xff]  ;;  %v15694_v30 = vld [vmem:[#allocation20_spill] sm:$0xff]  ;;  %v5577_v8 = vadd.f32 1.0, %v5437_v41  ;;  %v5578_v62 = vadd.f32 1.0, %v5438_v10 }
 0x78b   : > { %v7034_v37 = vsub.f32 %v6754_v51, %v15690_v13  ;;  %v7173_v36 = vpack.c.bf16 %v15694_v30, %v15693_v23  ;;  %v7248_v54 = vunpack.c.h.bf16 %v7171_v9  ;;  %v6431_v47 = vunpack.c.h.bf16 %v6193_v17 }
 0x78c   : > { %v7249_v48 = vunpack.c.h.bf16 %v7172_v27  ;;  %v15695_v13 = vunpack.c.l.bf16 %v14075_v25  ;;  %v5974_v45 = vmul.f32 0.6931472, %v9980_v63  ;;  %v3682_v46 = vpack.c.bf16 %v3619_v18, %v3619_v18 }
 0x78d   : > { %v14159_v14 = vpack.c.bf16 %v7041_v3, %v7034_v37  ;;  %v7250_v51 = vunpack.c.h.bf16 %v7173_v36  ;;  %v3786_v60 = vunpack.c.l.bf16 %v414_v32  ;;  %v9982_v21 = vpop.eup %9981  ;;  %v7241_v23 = vunpack.c.l.bf16 %v7171_v9 }
 0x78e   : > { %v14164_v11 = vadd.f32 %v6430_v53, %v15695_v13  ;;  %v7390_v44 = vadd.f32 %v7249_v48, %v7248_v54  ;;  %v7242_v41 = vunpack.c.l.bf16 %v7172_v27  ;;  %v7243_v10 = vunpack.c.l.bf16 %v7173_v36 }
 0x78f   : > { %v5697_v3 = vpack.c.bf16 %v5578_v62, %v5577_v8  ;;  %v5137_v37 = vmul.f32 1.442695, %v4944_v26  ;;  %v5139_v30 = vmul.f32 1.442695, %v4945_v0  ;;  %v6673_v17 = vpack.c.bf16 %v13958_v35, %v13954_v33  ;;  %v15699_v26 = vld [vmem:[#allocation19_spill] sm:$0xff]  ;;  %v15700_v0 = vld [vmem:[#allocation22_spill] sm:$0xff] }
 0x790   : > { %15696 = vst [vmem:[#allocation36_spill] sm:$0xff] %v14164_v11  ;;  %v6677_v53 = vpack.c.bf16 %v14038_v43, %v14027_v57  ;;  %v7251_v63 = vunpack.c.h.bf16 %v14159_v14  ;;  %v7391_v18 = vadd.f32 %v7390_v44, %v7250_v51  ;;  %v7381_v32 = vadd.f32 %v7242_v41, %v7241_v23  ;;  %v15732_v11 = vld [vmem:[#allocation37_spill] sm:$0xff] }
 0x791   : > { %v15697_v54 = vunpack.c.h.bf16 %v14075_v25  ;;  %v3926_v27 = vunpack.c.l.bf16 %v3682_v46  ;;  %v4482_v8 = vand.u32 2147450879, %v3682_v46  ;;  %v14177_v36 = vpack.c.bf16 %v15700_v0, %v15699_v26 }
 0x792   : > { %v6194_v33 = vpack.c.bf16 %v5974_v45, %v5974_v45  ;;  %v5338_v35 = vpack.c.bf16 %v9982_v21, %v9982_v21  ;;  %v7392_v62 = vadd.f32 %v7391_v18, %v7251_v63  ;;  %v7382_v48 = vadd.f32 %v7381_v32, %v7243_v10  ;;  %v14186_v10 = vld [vmem:[%s10386_s25 + $0xf0] sm:$0xff] }
 0x793   : > { %v14173_v9 = vadd.f32 %v6431_v47, %v15697_v54  ;;  %9983 = vpow2.f32 %v5137_v37  ;;  %v3504_v57 = vadd.f32 %v3503_v2, %v13737_v1  ;;  %v3563_v43 = vadd.f32 %v3562_v20, %v13730_v12 }
 0x794   : > { %v6755_v44 = vunpack.c.l.bf16 %v6673_v17  ;;  %v5797_v25 = vunpack.c.l.bf16 %v5697_v3  ;;  %9985 = vpow2.f32 %v5139_v30  ;;  %v6756_v47 = vunpack.c.h.bf16 %v6673_v17 }
 0x795   : > { %15698 = vst [vmem:[#allocation14_spill] sm:$0xff] %v14173_v9  ;;  %v6762_v51 = vunpack.c.l.bf16 %v6677_v53  ;;  %v14181_v46 = vmax.f32 %v3926_v27, 0.0  ;;  %v6763_v13 = vunpack.c.h.bf16 %v6677_v53  ;;  %v6896_v23 = vunpack.c.h.bf16 %v13851_v7 }
 0x796   : > { %v6903_v45 = vunpack.c.h.bf16 %v13911_v31  ;;  %v6432_v21 = vunpack.c.l.bf16 %v6194_v33  ;;  %v5439_v41 = vunpack.c.l.bf16 %v5338_v35  ;;  %v15701_v2 = vunpack.c.l.bf16 %v13851_v7  ;;  %v3621_v33 = vpop.f32.mrf.mxu3 }
 0x797   : > { %v15702_v20 = vunpack.c.l.bf16 %v13911_v31  ;;  %v4586_v30 = vunpack.c.l.bf16 %v4482_v8  ;;  %v7036_v17 = vsub.f32 %v6756_v47, %v6896_v23  ;;  %v15703_v53 = vsub.f32 %v13981_v55, %v13874_v39 }
 0x798   : > { %v7035_v37 = vsub.f32 %v6755_v44, %v15701_v2  ;;  %v7043_v18 = vsub.f32 %v6763_v13, %v6903_v45  ;;  %v15704_v32 = vsub.f32 %v14031_v49, %v13962_v16  ;;  %v5798_v26 = vunpack.c.h.bf16 %v5697_v3 }
 0x799   : > { %v7042_v63 = vsub.f32 %v6762_v51, %v15702_v20  ;;  %9987 = vlog2.f32 %v5797_v25  ;;  %v14198_v0 = vmul.f32 %v3926_v27, %v3786_v60  ;;  %v9984_v35 = vpop.eup %9983  ;;  %v4402_v31 = vpack.c.bf16 %v14181_v46, %v14181_v46  ;;  %v15705_v46 = vld [vmem:[#allocation28_spill] sm:$0xff] }
 0x79a   : > { %v7177_v54 = vpack.c.bf16 %v15704_v32, %v15703_v53  ;;  %v3685_v8 = vpack.c.bf16 %v3563_v43, %v3504_v57  ;;  %v3791_v44 = vunpack.c.l.bf16 %v14186_v10  ;;  %v7176_v47 = vpack.c.bf16 %v7043_v18, %v7036_v17  ;;  %v9986_v51 = vpop.eup %9985 }
 0x79b   : > { %v7175_v7 = vpack.c.bf16 %v7042_v63, %v7035_v37  ;;  %v6572_v39 = vadd.f32 %v6432_v21, %v14112_v38  ;;  %v7244_v16 = vunpack.c.l.bf16 %v14159_v14  ;;  %v5579_v3 = vadd.f32 1.0, %v5439_v41  ;;  %v15706_v63 = vld [vmem:[#allocation24_spill] sm:$0xff] }
 0x79c   : > { %v4726_v60 = vsub.f32 0.0, %v4586_v30  ;;  %v3622_v27 = vadd.f32 %v3621_v33, %v13747_v58  ;;  %v7254_v25 = vunpack.c.h.bf16 %v7177_v54  ;;  %v7253_v13 = vunpack.c.h.bf16 %v7176_v47 }
 0x79d   : > { %v7252_v55 = vunpack.c.h.bf16 %v7175_v7  ;;  %v7245_v49 = vunpack.c.l.bf16 %v7175_v7  ;;  %v7383_v45 = vadd.f32 %v7382_v48, %v7244_v16  ;;  %v6775_v57 = vunpack.c.h.bf16 %v15705_v46 }
 0x79e   : > { %9989 = vlog2.f32 %v5798_v26  ;;  %v3792_v43 = vunpack.c.h.bf16 %v14186_v10  ;;  %v3931_v2 = vunpack.c.l.bf16 %v3685_v8  ;;  %v7247_v37 = vunpack.c.l.bf16 %v7177_v54  ;;  %v15707_v26 = vld [vmem:[#allocation21_spill] sm:$0xff] }
 0x79f   : > { %v7393_v23 = vadd.f32 %v7392_v62, %v7252_v55  ;;  %v9988_v38 = vpop.eup %9987  ;;  %v7246_v20 = vunpack.c.l.bf16 %v7176_v47  ;;  %v7384_v14 = vadd.f32 %v7383_v45, %v7245_v49  ;;  %v6768_v41 = vunpack.c.h.bf16 %v15706_v63  ;;  %v15709_v49 = vld [vmem:[#allocation17_spill] sm:$0xff] }
 0x7a0   : > { %v6694_v30 = vpack.c.bf16 %v6572_v39, %v6572_v39  ;;  %v5698_v17 = vpack.c.bf16 %v5579_v3, %v5579_v3  ;;  %v14209_v18 = vpack.c.bf16 %v3622_v27, %v3622_v27  ;;  %v7395_v62 = vsel %vm1407_vm0, %v7254_v25, 0.0  ;;  %v15711_v27 = vld [vmem:[#allocation41_spill] sm:$0xff]  ;;  %v15713_v25 = vld [vmem:[#allocation26_spill] sm:$0xff] }
 0x7a1   : > { %v7394_v21 = vadd.f32 %v7393_v23, %v7253_v13  ;;  %v4842_v48 = vpack.c.bf16 %v4726_v60, %v4726_v60  ;;  %v7385_v32 = vadd.f32 %v7384_v14, %v7246_v20  ;;  %v15708_v33 = vunpack.c.h.bf16 %v15707_v26  ;;  %v15712_v13 = vld [vmem:[#allocation23_spill] sm:$0xff]  ;;  %v15714_v60 = vld [vmem:[#allocation30_spill] sm:$0xff] }
 0x7a2   : > { %v5341_v7 = vpack.c.bf16 %v9986_v51, %v9984_v35  ;;  %v3932_v54 = vunpack.c.h.bf16 %v3685_v8  ;;  %v4485_v55 = vand.u32 2147450879, %v3685_v8  ;;  %v7386_v47 = vsel %vm1407_vm0, %v7247_v37, 0.0 }
 0x7a3   : > { %v7396_v53 = vadd.f32 %v7395_v62, %v7394_v21  ;;  %v7055_v10 = vsub.f32 %v6775_v57, %v15708_v33  ;;  %v7387_v16 = vadd.f32 %v7386_v47, %v7385_v32  ;;  %v15710_v39 = vunpack.c.h.bf16 %v15709_v49 }
 0x7a4   : > { %v7179_v23 = vpack.c.bf16 %v15712_v13, %v15711_v27  ;;  %v7180_v45 = vpack.c.bf16 %v15714_v60, %v15713_v25  ;;  %v9990_v46 = vpop.eup %9989  ;;  %v14223_v35 = vunpack.c.l.bf16 %v4402_v31  ;;  %v14225_v8 = vmul.f32 %v3931_v2, %v3791_v44  ;;  %v3564_v60 = vpop.f32.mrf.mxu2 }
 0x7a5   : > { %7397 = vadd.xlane.f32.xlu2 %v7396_v53  ;;  %v7048_v3 = vsub.f32 %v6768_v41, %v15710_v39  ;;  %v4486_v51 = vand.u32 2147450879, %v14209_v18  ;;  %v14228_v37 = vunpack.c.l.bf16 %v6694_v30  ;;  %v5799_v21 = vunpack.c.l.bf16 %v5698_v17  ;;  %7388 = vadd.xlane.f32.xlu1 %v7387_v16  ;;  %v3623_v16 = vpop.f32.mrf.mxu3 }
 0x7a6   : > { %v14230_v20 = vmax.f32 %v3931_v2, 0.0  ;;  %v4946_v63 = vunpack.c.l.bf16 %v4842_v48  ;;  %v14232_v41 = vmul.f32 %v3932_v54, %v3792_v43  ;;  %v7262_v62 = vunpack.c.h.bf16 %v14177_v36 }
 0x7a7   : > { %v7181_v14 = vpack.c.bf16 %v7055_v10, %v7048_v3  ;;  %v7263_v53 = vunpack.c.h.bf16 %v7179_v23  ;;  %v5444_v32 = vunpack.c.l.bf16 %v5341_v7  ;;  %v14235_v31 = vmax.f32 %v3932_v54, 0.0 }
 0x7a8   : > { %v4591_v44 = vunpack.c.l.bf16 %v4485_v55  ;;  %v4592_v26 = vunpack.c.h.bf16 %v4485_v55  ;;  %v5984_v33 = vmul.f32 0.6931472, %v9988_v38  ;;  %v4593_v47 = vunpack.c.l.bf16 %v4486_v51 }
 0x7a9   : > { %v7264_v30 = vunpack.c.h.bf16 %v7180_v45  ;;  %v7408_v49 = vadd.f32 %v7263_v53, %v7262_v62  ;;  %v5986_v17 = vmul.f32 0.6931472, %v9990_v46  ;;  %9991 = vlog2.f32 %v5799_v21  ;;  %v15715_v62 = vld [vmem:[#allocation31_spill] sm:$0xff] }
 0x7aa   : > { %v5445_v2 = vunpack.c.h.bf16 %v5341_v7  ;;  %v7255_v48 = vunpack.c.l.bf16 %v14177_v36  ;;  %v7265_v43 = vunpack.c.h.bf16 %v7181_v14  ;;  %v7256_v39 = vunpack.c.l.bf16 %v7179_v23  ;;  %v3505_v36 = vpop.f32.mrf.mxu1  ;;  %v15716_v23 = vld [vmem:[#allocation38_spill] sm:$0xff] }
 0x7ab   : > { %v7409_v10 = vadd.f32 %v7408_v49, %v7264_v30  ;;  %v7257_v3 = vunpack.c.l.bf16 %v7180_v45  ;;  %v5584_v27 = vadd.f32 1.0, %v5444_v32  ;;  %v5141_v13 = vmul.f32 1.442695, %v4946_v63  ;;  %v15719_v30 = vld [vmem:[#allocation29_spill] sm:$0xff] }
 0x7ac   : > { %v4731_v54 = vsub.f32 0.0, %v4591_v44  ;;  %v4732_v25 = vsub.f32 0.0, %v4592_v26  ;;  %v4733_v55 = vsub.f32 0.0, %v4593_v47  ;;  %v3624_v38 = vadd.f32 %v3623_v16, %v13747_v58  ;;  %v15717_v44 = vld [vmem:[#allocation27_spill] sm:$0xff]  ;;  %v15718_v26 = vld [vmem:[#allocation32_spill] sm:$0xff]  ;;  %v15720_v49 = vld [vmem:[#allocation33_spill] sm:$0xff] }
 0x7ad   : > { %v14239_v51 = vadd.f32 %v7409_v10, %v7265_v43  ;;  %v7399_v46 = vadd.f32 %v7256_v39, %v7255_v48  ;;  %v14241_v7 = vpack.c.bf16 %v5986_v17, %v5984_v33  ;;  %v5585_v21 = vadd.f32 1.0, %v5445_v2  ;;  %v15721_v33 = vld [vmem:[#allocation25_spill] sm:$0xff] }
 0x7ae   : > { %v6782_v53 = vunpack.c.h.bf16 %v15715_v62  ;;  %v6789_v45 = vunpack.c.h.bf16 %v15716_v23  ;;  %v3565_v63 = vadd.f32 %v3564_v60, %v13730_v12  ;;  %v7185_v47 = vpack.c.bf16 %v15718_v26, %v15717_v44  ;;  %v14257_v23 = vld [vmem:[%s10386_s25 + $0xf8] sm:$0xf] }
 0x7af   : > { %v7400_v32 = vadd.f32 %v7399_v46, %v7257_v3  ;;  %v7186_v16 = vpack.c.bf16 %v15720_v49, %v15719_v30  ;;  %v9992_v43 = vpop.eup %9991  ;;  %9993 = vpow2.f32 %v5141_v13  ;;  %v7258_v48 = vunpack.c.l.bf16 %v7181_v14  ;;  %v15724_v26 = vld [vmem:[#allocation34_spill] sm:$0xff] }
 0x7b0   : > { %v15722_v17 = vunpack.c.h.bf16 %v15721_v33  ;;  %v15723_v10 = vunpack.c.h.bf16 %v12999_v19  ;;  %v14254_v62 = vpack.c.bf16 %v4732_v25, %v4731_v54  ;;  %v4846_v3 = vpack.c.bf16 %v4733_v55, %v4733_v55 }
 0x7b1   : > { %v3506_v60 = vadd.f32 %v3505_v36, %v13737_v1  ;;  %v14260_v46 = vpack.c.bf16 %v3624_v38, %v3624_v38  ;;  %v14262_v44 = vadd.f32 %v7400_v32, %v7258_v48  ;;  %v7187_v14 = vpack.c.bf16 %v13167_v34, %v15724_v26 }
 0x7b2   : > { %v7062_v2 = vsub.f32 %v6782_v53, %v15722_v17  ;;  %v7069_v39 = vsub.f32 %v6789_v45, %v15723_v10  ;;  %v7269_v30 = vunpack.c.l.bf16 %v7185_v47  ;;  %v14266_v53 = vpack.c.bf16 %v5585_v21, %v5584_v27 }
 0x7b3   : > { %v14268_v19 = vpack.c.bf16 %v3565_v63, %v3506_v60  ;;  %v7270_v54 = vunpack.c.l.bf16 %v7186_v16  ;;  %v7276_v25 = vunpack.c.h.bf16 %v7185_v47  ;;  %v7271_v55 = vunpack.c.l.bf16 %v7187_v14  ;;  %v15725_v63 = vld [vmem:[#allocation46_spill] sm:$0xff] }
 0x7b4   : > { %v7188_v13 = vpack.c.bf16 %v7069_v39, %v7062_v2  ;;  %v7277_v49 = vunpack.c.h.bf16 %v7186_v16  ;;  %v7278_v36 = vunpack.c.h.bf16 %v7187_v14  ;;  %v4951_v38 = vunpack.c.l.bf16 %v14254_v62 }
 0x7b5   : > { %v4952_v32 = vunpack.c.h.bf16 %v14254_v62  ;;  %v4490_v48 = vand.u32 2147450879, %v14260_v46  ;;  %v7417_v34 = vadd.f32 %v7270_v54, %v7269_v30  ;;  %v9994_v33 = vpop.eup %9993  ;;  %v4953_v17 = vunpack.c.l.bf16 %v4846_v3  ;;  %v15726_v62 = vld [vmem:[#allocation40_spill] sm:$0xff] }
 0x7b6   : > { %v7426_v27 = vadd.f32 %v7277_v49, %v7276_v25  ;;  %v6796_v21 = vunpack.c.h.bf16 %v13176_v50  ;;  %v6803_v2 = vunpack.c.h.bf16 %v15725_v63  ;;  %v4489_v10 = vand.u32 2147450879, %v14268_v19  ;;  %v15730_v63 = vld [vmem:[#allocation35_spill] sm:$0xff] }
 0x7b7   : > { %v7272_v16 = vunpack.c.l.bf16 %v7188_v13  ;;  %v7418_v39 = vadd.f32 %v7417_v34, %v7271_v55  ;;  %v5988_v60 = vmul.f32 0.6931472, %v9992_v43  ;;  %v7279_v26 = vunpack.c.h.bf16 %v7188_v13  ;;  %v15733_v55 = vld [vmem:[#allocation42_spill] sm:$0xff]  ;;  %v15734_v34 = vld [vmem:[#allocation39_spill] sm:$0xff] }
 0x7b8   : > { %v7427_v14 = vadd.f32 %v7426_v27, %v7278_v36  ;;  %v15727_v45 = vunpack.c.h.bf16 %v15726_v62  ;;  %v5804_v30 = vunpack.c.l.bf16 %v14266_v53  ;;  %v5342_v3 = vpack.c.bf16 %v9994_v33, %v9994_v33  ;;  %v15735_v27 = vld [vmem:[#allocation43_spill] sm:$0xff]  ;;  %v15737_v62 = vld [vmem:[#allocation50_spill] sm:$0xff] }
 0x7b9   : > { %v4600_v54 = vunpack.c.l.bf16 %v4490_v48  ;;  %v14281_v25 = vadd.f32 %v7418_v39, %v7272_v16  ;;  %v5155_v50 = vmul.f32 1.442695, %v4953_v17  ;;  %v15731_v47 = vunpack.c.h.bf16 %v15730_v63  ;;  %v3567_v17 = vpop.f32.mrf.mxu2 }
 0x7ba   : > { %v7083_v57 = vsub.f32 %v6803_v2, %v15727_v45  ;;  %v14283_v49 = vadd.f32 %v7427_v14, %v7279_v26  ;;  %v7192_v43 = vpack.c.bf16 %v15733_v55, %v15732_v11  ;;  %v4598_v13 = vunpack.c.l.bf16 %v4489_v10  ;;  %v15736_v2 = vld [vmem:[#allocation45_spill] sm:$0xff]  ;;  %v3508_v11 = vpop.f32.mrf.mxu1 }
 0x7bb   : > { %15728 = vst [vmem:[#allocation16_spill] sm:$0xff] %v14281_v25  ;;  %v7076_v9 = vsub.f32 %v6796_v21, %v15731_v47  ;;  %v4599_v36 = vunpack.c.h.bf16 %v4489_v10  ;;  %v7193_v45 = vpack.c.bf16 %v15735_v27, %v15734_v34  ;;  %v7194_v33 = vpack.c.bf16 %v15737_v62, %v15736_v2  ;;  %v3626_v2 = vpop.f32.mrf.mxu3 }
 0x7bc   : > { %15729 = vst [vmem:[#allocation13_spill] sm:$0xff] %v14283_v49  ;;  %v6198_v48 = vpack.c.bf16 %v5988_v60, %v5988_v60  ;;  %v5805_v16 = vunpack.c.h.bf16 %v14266_v53  ;;  %v7283_v26 = vunpack.c.l.bf16 %v7192_v43  ;;  %v4740_v14 = vsub.f32 0.0, %v4600_v54 }
 0x7bd   : > { %v7195_v39 = vpack.c.bf16 %v7083_v57, %v7076_v9  ;;  %v7284_v63 = vunpack.c.l.bf16 %v7193_v45  ;;  %v7285_v21 = vunpack.c.l.bf16 %v7194_v33  ;;  %v7290_v47 = vunpack.c.h.bf16 %v7192_v43 }
 0x7be   : > { %v5446_v49 = vunpack.c.l.bf16 %v5342_v3  ;;  %9995 = vpow2.f32 %v5155_v50  ;;  %v7291_v10 = vunpack.c.h.bf16 %v7193_v45  ;;  %v7292_v55 = vunpack.c.h.bf16 %v7194_v33 }
 0x7bf   : > { %v4738_v25 = vsub.f32 0.0, %v4598_v13  ;;  %v4739_v34 = vsub.f32 0.0, %v4599_v36  ;;  %v3568_v27 = vadd.f32 %v3567_v17, %v13730_v12  ;;  %v7435_v60 = vadd.f32 %v7284_v63, %v7283_v26 }
 0x7c0   : > { %9997 = vlog2.f32 %v5804_v30  ;;  %v5151_v53 = vmul.f32 1.442695, %v4951_v38  ;;  %v5153_v62 = vmul.f32 1.442695, %v4952_v32  ;;  %v7444_v9 = vadd.f32 %v7291_v10, %v7290_v47 }
 0x7c1   : > { %v4850_v57 = vpack.c.bf16 %v4740_v14, %v4740_v14  ;;  %v3509_v54 = vadd.f32 %v3508_v11, %v13737_v1  ;;  %v7286_v56 = vunpack.c.l.bf16 %v7195_v39  ;;  %v7436_v43 = vadd.f32 %v7435_v60, %v7285_v21 }
 0x7c2   : > { %v5586_v3 = vadd.f32 1.0, %v5446_v49  ;;  %v3627_v50 = vadd.f32 %v3626_v2, %v13747_v58  ;;  %v7293_v45 = vunpack.c.h.bf16 %v7195_v39  ;;  %v7445_v33 = vadd.f32 %v7444_v9, %v7292_v55 }
 0x7c3   : > { %v6439_v13 = vunpack.c.l.bf16 %v6198_v48  ;;  %v4849_v36 = vpack.c.bf16 %v4739_v34, %v4738_v25  ;;  %v14297_v22 = vpack.c.bf16 %v3568_v27, %v3509_v54  ;;  %v14299_v17 = vadd.f32 %v7436_v43, %v7286_v56 }
 0x7c4   : > { %v9996_v30 = vpop.eup %9995  ;;  %v15739_v38 = vpack.c.bf16 %v14198_v0, %v14198_v0  ;;  %v14308_v26 = vpack.c.bf16 %v14232_v41, %v14225_v8  ;;  %9999 = vpow2.f32 %v5151_v53  ;;  %v14310_v49 = vadd.f32 %v7445_v33, %v7293_v45  ;;  %v421_v53 = vld [vmem:[%s10386_s25 + $0x10c] sm:$0xff] }
 0x7c5   : > { %15738 = vst [vmem:[#allocation15_spill] sm:$0xff] %v14299_v17  ;;  %v14316_v56 = vpack.c.bf16 %v14235_v31, %v14230_v20  ;;  %10001 = vpow2.f32 %v5153_v62  ;;  %v4960_v48 = vunpack.c.l.bf16 %v4850_v57  ;;  %v6437_v0 = vunpack.c.l.bf16 %v14241_v7  ;;  %v15752_v31 = vld [vmem:[#allocation54_spill] sm:$0xff] }
 0x7c6   : > { %v14304_v32 = vunpack.c.l.bf16 %v15739_v38  ;;  %15740 = vst [vmem:[#allocation44_spill] sm:$0xff] %v14308_v26  ;;  %v9998_v39 = vpop.eup %9997  ;;  %v5702_v14 = vpack.c.bf16 %v5586_v3, %v5586_v3  ;;  %v15742_v8 = vunpack.c.l.bf16 %v14257_v23  ;;  %v15743_v41 = vunpack.c.l.bf16 %v14209_v18 }
 0x7c7   : > { %15741 = vst [vmem:[#allocation18_spill] sm:$0xff] %v14310_v49  ;;  %v14323_v21 = vpack.c.bf16 %v3627_v50, %v3627_v50  ;;  %v6579_v47 = vadd.f32 %v6439_v13, %v14143_v59  ;;  %10003 = vlog2.f32 %v5805_v16  ;;  %v4958_v11 = vunpack.c.l.bf16 %v4849_v36 }
 0x7c8   : > { %v4073_v63 = vmul.f32 %v15743_v41, %v15742_v8  ;;  %v4493_v20 = vand.u32 2147450879, %v14297_v22  ;;  %v15744_v10 = vmov %v15743_v41  ;;  %v5346_v34 = vpack.c.bf16 %v9996_v30, %v9996_v30 }
 0x7c9   : > { %v4293_v55 = vmax.f32 %v15744_v10, 0.0  ;;  %v4959_v27 = vunpack.c.h.bf16 %v4849_v36  ;;  %v6438_v23 = vunpack.c.h.bf16 %v14241_v7  ;;  %v5169_v62 = vmul.f32 1.442695, %v4960_v48 }
 0x7ca   : > { %v10000_v59 = vpop.eup %9999  ;;  %v15745_v16 = vunpack.c.l.bf16 %v14118_v40  ;;  %v5806_v57 = vunpack.c.l.bf16 %v5702_v14  ;;  %v4186_v54 = vpack.c.bf16 %v4073_v63, %v4073_v63  ;;  %v4494_v18 = vand.u32 2147450879, %v14323_v21  ;;  %v3569_v14 = vpop.f32.mrf.mxu2 }
 0x7cb   : > { %v10002_v43 = vpop.eup %10001  ;;  %v6698_v3 = vpack.c.bf16 %v6579_v47, %v6579_v47  ;;  %v5165_v50 = vmul.f32 1.442695, %v4958_v11  ;;  %v4605_v45 = vunpack.c.l.bf16 %v4493_v20  ;;  %v4606_v7 = vunpack.c.h.bf16 %v4493_v20 }
 0x7cc   : > { %v14336_v9 = vadd.f32 %v6437_v0, %v15745_v16  ;;  %v4406_v33 = vpack.c.bf16 %v4293_v55, %v4293_v55  ;;  %v5453_v13 = vunpack.c.l.bf16 %v5346_v34  ;;  %v3798_v36 = vunpack.c.l.bf16 %v421_v53  ;;  %v3510_v55 = vpop.f32.mrf.mxu1 }
 0x7cd   : > { %v5167_v30 = vmul.f32 1.442695, %v4959_v27  ;;  %v10004_v38 = vpop.eup %10003  ;;  %v3799_v48 = vunpack.c.h.bf16 %v421_v53  ;;  %v3938_v8 = vunpack.c.l.bf16 %v14268_v19  ;;  %v3939_v0 = vunpack.c.h.bf16 %v14268_v19  ;;  %v14344_v53 = vld [vmem:[%s10386_s25 + $0x114] sm:$0xf] }
 0x7ce   : > { %10005 = vpow2.f32 %v5169_v62  ;;  %v5998_v41 = vmul.f32 0.6931472, %v9998_v39  ;;  %v5345_v63 = vpack.c.bf16 %v10002_v43, %v10000_v59  ;;  %v4607_v47 = vunpack.c.l.bf16 %v4494_v18 }
 0x7cf   : > { %10007 = vlog2.f32 %v5806_v57  ;;  %v14341_v11 = vunpack.c.l.bf16 %v6698_v3  ;;  %v4745_v20 = vsub.f32 0.0, %v4605_v45  ;;  %v4746_v10 = vsub.f32 0.0, %v4606_v7 }
 0x7d0   : > { %10009 = vpow2.f32 %v5165_v50  ;;  %v6000_v34 = vmul.f32 0.6931472, %v10004_v38  ;;  %v5593_v27 = vadd.f32 1.0, %v5453_v13  ;;  %v3570_v16 = vadd.f32 %v3569_v14, %v13730_v12 }
 0x7d1   : > { %15746 = vst [vmem:[#allocation20_spill] sm:$0xff] %v14341_v11  ;;  %10011 = vpow2.f32 %v5167_v30  ;;  %v15747_v19 = vunpack.c.h.bf16 %v14118_v40  ;;  %v14351_v39 = vunpack.c.l.bf16 %v4186_v54  ;;  %v4078_v59 = vmul.f32 %v3938_v8, %v3798_v36 }
 0x7d2   : > { %v4079_v57 = vmul.f32 %v3939_v0, %v3799_v48  ;;  %v5451_v18 = vunpack.c.l.bf16 %v5345_v63  ;;  %v5452_v43 = vunpack.c.h.bf16 %v5345_v63  ;;  %v4747_v3 = vsub.f32 0.0, %v4607_v47 }
 0x7d3   : > { %v14349_v62 = vadd.f32 %v6438_v23, %v15747_v19  ;;  %v3511_v50 = vadd.f32 %v3510_v55, %v13737_v1  ;;  %v14354_v7 = vunpack.c.l.bf16 %v4406_v33  ;;  %v14356_v13 = vmax.f32 %v3938_v8, 0.0  ;;  %v15749_v33 = vld [vmem:[#allocation47_spill] sm:$0xff]  ;;  %v15750_v55 = vld [vmem:[#allocation53_spill] sm:$0xff]  ;;  %v15751_v19 = vld [vmem:[#allocation48_spill] sm:$0xff] }
 0x7d4   : > { %v10006_v45 = vpop.eup %10005  ;;  %v4853_v38 = vpack.c.bf16 %v4746_v10, %v4745_v20  ;;  %v14361_v54 = vpack.c.bf16 %v6000_v34, %v5998_v41  ;;  %v5706_v36 = vpack.c.bf16 %v5593_v27, %v5593_v27  ;;  %v14365_v63 = vpack.c.bf16 %v4079_v57, %v4078_v59  ;;  %v3628_v27 = vpop.f32.mrf.mxu3 }
 0x7d5   : > { %15748 = vst [vmem:[#allocation19_spill] sm:$0xff] %v14349_v62  ;;  %v10008_v40 = vpop.eup %10007  ;;  %v14363_v48 = vpack.c.bf16 %v3570_v16, %v3511_v50  ;;  %v4299_v47 = vmax.f32 %v3939_v0, 0.0  ;;  %v7199_v8 = vpack.c.bf16 %v15750_v55, %v15749_v33  ;;  %v7200_v25 = vpack.c.bf16 %v15752_v31, %v15751_v19 }
 0x7d6   : > { %v10010_v14 = vpop.eup %10009  ;;  %v5591_v10 = vadd.f32 1.0, %v5451_v18  ;;  %v5592_v60 = vadd.f32 1.0, %v5452_v43  ;;  %v5350_v2 = vpack.c.bf16 %v10006_v45, %v10006_v45  ;;  %v4854_v23 = vpack.c.bf16 %v4747_v3, %v4747_v3 }
 0x7d7   : > { %v10012_v20 = vpop.eup %10011  ;;  %v6002_v41 = vmul.f32 0.6931472, %v10008_v40  ;;  %v4965_v34 = vunpack.c.l.bf16 %v4853_v38  ;;  %v7304_v16 = vunpack.c.h.bf16 %v7199_v8  ;;  %v7305_v50 = vunpack.c.h.bf16 %v7200_v25 }
 0x7d8   : > { %v5813_v30 = vunpack.c.l.bf16 %v5706_v36  ;;  %v4966_v59 = vunpack.c.h.bf16 %v4853_v38  ;;  %v4497_v0 = vand.u32 2147450879, %v14363_v48  ;;  %v3629_v57 = vadd.f32 %v3628_v27, %v13747_v58 }
 0x7d9   : > { %v5349_v33 = vpack.c.bf16 %v10012_v20, %v10010_v14  ;;  %v7462_v55 = vadd.f32 %v7305_v50, %v7304_v16  ;;  %v7297_v49 = vunpack.c.l.bf16 %v7199_v8  ;;  %v7298_v31 = vunpack.c.l.bf16 %v7200_v25  ;;  %v15753_v8 = vld [vmem:[#allocation59_spill] sm:$0xff] }
 0x7da   : > { %v6444_v18 = vunpack.c.l.bf16 %v14361_v54  ;;  %v5460_v43 = vunpack.c.l.bf16 %v5350_v2  ;;  %v4967_v45 = vunpack.c.l.bf16 %v4854_v23  ;;  %v14374_v3 = vpack.c.bf16 %v3629_v57, %v3629_v57  ;;  %v15754_v23 = vld [vmem:[#allocation56_spill] sm:$0xff] }
 0x7db   : > { %v6202_v40 = vpack.c.bf16 %v6002_v41, %v6002_v41  ;;  %v5705_v19 = vpack.c.bf16 %v5592_v60, %v5591_v10  ;;  %v5179_v17 = vmul.f32 1.442695, %v4965_v34  ;;  %v7453_v29 = vadd.f32 %v7298_v31, %v7297_v49 }
 0x7dc   : > { %v5181_v36 = vmul.f32 1.442695, %v4966_v59  ;;  %v4612_v38 = vunpack.c.l.bf16 %v4497_v0  ;;  %v4613_v11 = vunpack.c.h.bf16 %v4497_v0  ;;  %v4498_v26 = vand.u32 2147450879, %v14374_v3 }
 0x7dd   : > { %10013 = vlog2.f32 %v5813_v30  ;;  %v5458_v14 = vunpack.c.l.bf16 %v5349_v33  ;;  %v5459_v20 = vunpack.c.h.bf16 %v5349_v33  ;;  %v6817_v25 = vunpack.c.h.bf16 %v15753_v8  ;;  %v15755_v33 = vld [vmem:[#allocation52_spill] sm:$0xff]  ;;  %v15757_v8 = vld [vmem:[#allocation49_spill] sm:$0xff] }
 0x7de   : > { %v5600_v27 = vadd.f32 1.0, %v5460_v43  ;;  %v5183_v16 = vmul.f32 1.442695, %v4967_v45  ;;  %v4614_v2 = vunpack.c.l.bf16 %v4498_v26  ;;  %v6810_v50 = vunpack.c.h.bf16 %v15754_v23 }
 0x7df   : > { %v6445_v41 = vunpack.c.h.bf16 %v14361_v54  ;;  %v5811_v60 = vunpack.c.l.bf16 %v5705_v19  ;;  %v3940_v49 = vunpack.c.l.bf16 %v14260_v46  ;;  %10015 = vpow2.f32 %v5179_v17 }
 0x7e0   : > { %10017 = vpow2.f32 %v5181_v36  ;;  %v4752_v10 = vsub.f32 0.0, %v4612_v38  ;;  %v4753_v34 = vsub.f32 0.0, %v4613_v11  ;;  %v4754_v59 = vsub.f32 0.0, %v4614_v2  ;;  %v15760_v36 = vld [vmem:[#allocation57_spill] sm:$0xff] }
 0x7e1   : > { %v6446_v30 = vunpack.c.l.bf16 %v6202_v40  ;;  %v5598_v0 = vadd.f32 1.0, %v5458_v14  ;;  %v5599_v57 = vadd.f32 1.0, %v5459_v20  ;;  %v15756_v31 = vunpack.c.h.bf16 %v15755_v33  ;;  %v15761_v38 = vld [vmem:[#allocation61_spill] sm:$0xff] }
 0x7e2   : > { %v5710_v45 = vpack.c.bf16 %v5600_v27, %v5600_v27  ;;  %10019 = vpow2.f32 %v5183_v16  ;;  %v4858_v26 = vpack.c.bf16 %v4754_v59, %v4754_v59  ;;  %v15758_v23 = vunpack.c.h.bf16 %v15757_v8 }
 0x7e3   : > { %v7097_v43 = vsub.f32 %v6817_v25, %v15756_v31  ;;  %v10014_v62 = vpop.eup %10013  ;;  %v15759_v46 = vunpack.c.l.bf16 %v14128_v24  ;;  %v14390_v11 = vpack.c.bf16 %v4299_v47, %v14356_v13  ;;  %v7201_v14 = vpack.c.bf16 %v15761_v38, %v15760_v36 }
 0x7e4   : > { %v7090_v54 = vsub.f32 %v6810_v50, %v15758_v23  ;;  %v5812_v20 = vunpack.c.h.bf16 %v5705_v19  ;;  %v4857_v25 = vpack.c.bf16 %v4753_v34, %v4752_v10  ;;  %v4974_v27 = vunpack.c.l.bf16 %v4858_v26 }
 0x7e5   : > { %v14387_v17 = vadd.f32 %v6444_v18, %v15759_v46  ;;  %v10016_v2 = vpop.eup %10015  ;;  %10021 = vlog2.f32 %v5811_v60  ;;  %v14395_v50 = vmax.f32 %v3940_v49, 0.0  ;;  %v7306_v59 = vunpack.c.h.bf16 %v7201_v14 }
 0x7e6   : > { %v7202_v16 = vpack.c.bf16 %v7097_v43, %v7090_v54  ;;  %v7299_v33 = vunpack.c.l.bf16 %v7201_v14  ;;  %v10018_v18 = vpop.eup %10017  ;;  %v14398_v31 = vadd.f32 %v6446_v30, %v14223_v35  ;;  %v6016_v13 = vmul.f32 0.6931472, %v10014_v62 }
 0x7e7   : > { %v14400_v47 = vpack.c.bf16 %v5599_v57, %v5598_v0  ;;  %v5820_v8 = vunpack.c.l.bf16 %v5710_v45  ;;  %v7463_v46 = vadd.f32 %v7462_v55, %v7306_v59  ;;  %v15762_v43 = vunpack.c.h.bf16 %v14128_v24 }
 0x7e8   : > { %v7307_v23 = vunpack.c.h.bf16 %v7202_v16  ;;  %v7300_v19 = vunpack.c.l.bf16 %v7202_v16  ;;  %v7454_v10 = vadd.f32 %v7453_v29, %v7299_v33  ;;  %v10020_v34 = vpop.eup %10019  ;;  %10023 = vlog2.f32 %v5812_v20 }
 0x7e9   : > { %v14404_v60 = vadd.f32 %v6445_v41, %v15762_v43  ;;  %v4972_v26 = vunpack.c.l.bf16 %v4857_v25  ;;  %v5197_v54 = vmul.f32 1.442695, %v4974_v27  ;;  %v5353_v36 = vpack.c.bf16 %v10018_v18, %v10016_v2 }
 0x7ea   : > { %v4973_v38 = vunpack.c.h.bf16 %v4857_v25  ;;  %v14406_v35 = vadd.f32 %v7463_v46, %v7307_v23  ;;  %v14408_v62 = vadd.f32 %v7454_v10, %v7300_v19  ;;  %v15763_v29 = vunpack.c.l.bf16 %v14344_v53  ;;  %v3513_v53 = vpop.f32.mrf.mxu1 }
 0x7eb   : > { %v4410_v24 = vpack.c.bf16 %v14395_v50, %v14395_v50  ;;  %v10022_v41 = vpop.eup %10021  ;;  %v6206_v57 = vpack.c.bf16 %v6016_v13, %v6016_v13  ;;  %v5818_v45 = vunpack.c.l.bf16 %v14400_v47  ;;  %10025 = vlog2.f32 %v5820_v8 }
 0x7ec   : > { %v14415_v0 = vmul.f32 %v3940_v49, %v15763_v29  ;;  %v5354_v14 = vpack.c.bf16 %v10020_v34, %v10020_v34  ;;  %v5193_v20 = vmul.f32 1.442695, %v4972_v26  ;;  %10027 = vpow2.f32 %v5197_v54  ;;  %v3572_v49 = vpop.f32.mrf.mxu2  ;;  %v15764_v34 = vld [vmem:[#allocation107_spill] sm:$0xff] }
 0x7ed   : > { %v6681_v25 = vpack.c.bf16 %v14066_v28, %v14062_v42  ;;  %v6685_v27 = vpack.c.bf16 %v14102_v4, %v14092_v15  ;;  %v5465_v16 = vunpack.c.l.bf16 %v5353_v36  ;;  %v5195_v2 = vmul.f32 1.442695, %v4973_v38  ;;  %v15765_v28 = vld [vmem:[#allocation111_spill] sm:$0xff] }
 0x7ee   : > { %v3514_v59 = vadd.f32 %v3513_v53, %v13737_v1  ;;  %v3573_v33 = vadd.f32 %v3572_v49, %v13730_v12  ;;  %v10024_v18 = vpop.eup %10023  ;;  %v5466_v19 = vunpack.c.h.bf16 %v5353_v36  ;;  %v5467_v10 = vunpack.c.l.bf16 %v5354_v14  ;;  %v15768_v36 = vld [vmem:[#allocation110_spill] sm:$0xff]  ;;  %v15771_v49 = vld [vmem:[#allocation112_spill] sm:$0xff] }
 0x7ef   : > { %v6769_v13 = vunpack.c.l.bf16 %v6681_v25  ;;  %v6770_v8 = vunpack.c.h.bf16 %v6681_v25  ;;  %v6776_v23 = vunpack.c.l.bf16 %v6685_v27  ;;  %v6777_v46 = vunpack.c.h.bf16 %v6685_v27  ;;  %v15770_v27 = vld [vmem:[#allocation116_spill] sm:$0xff] }
 0x7f0   : > { %v6910_v42 = vunpack.c.h.bf16 %v15764_v34  ;;  %v6917_v43 = vunpack.c.h.bf16 %v15765_v28  ;;  %10029 = vpow2.f32 %v5193_v20  ;;  %v15766_v15 = vunpack.c.l.bf16 %v15764_v34 }
 0x7f1   : > { %v15767_v26 = vunpack.c.l.bf16 %v15765_v28  ;;  %v14432_v38 = vpack.c.bf16 %v3573_v33, %v3514_v59  ;;  %v10026_v29 = vpop.eup %10025  ;;  %10031 = vpow2.f32 %v5195_v2  ;;  %v15769_v14 = vsub.f32 %v14070_v6, %v15768_v36 }
 0x7f2   : > { %v7049_v4 = vsub.f32 %v6769_v13, %v15766_v15  ;;  %v7050_v25 = vsub.f32 %v6770_v8, %v6910_v42  ;;  %v7057_v53 = vsub.f32 %v6777_v46, %v6917_v43  ;;  %v15772_v40 = vsub.f32 %v15770_v27, %v15771_v49  ;;  %v10028_v20 = vpop.eup %10027  ;;  %v425_v27 = vld [vmem:[%s10386_s25 + $0x128] sm:$0xff] }
 0x7f3   : > { %v7056_v54 = vsub.f32 %v6776_v23, %v15767_v26  ;;  %v6012_v30 = vmul.f32 0.6931472, %v10022_v41  ;;  %v6014_v34 = vmul.f32 0.6931472, %v10024_v18  ;;  %v6453_v13 = vunpack.c.l.bf16 %v6206_v57 }
 0x7f4   : > { %v7184_v55 = vpack.c.bf16 %v15772_v40, %v15769_v14  ;;  %v5819_v23 = vunpack.c.h.bf16 %v14400_v47  ;;  %v5605_v59 = vadd.f32 1.0, %v5465_v16  ;;  %v5606_v33 = vadd.f32 1.0, %v5466_v19 }
 0x7f5   : > { %v7182_v15 = vpack.c.bf16 %v7056_v54, %v7049_v4  ;;  %v7183_v28 = vpack.c.bf16 %v7057_v53, %v7050_v25  ;;  %v5607_v2 = vadd.f32 1.0, %v5467_v10  ;;  %v4501_v42 = vand.u32 2147450879, %v14432_v38 }
 0x7f6   : > { %10033 = vlog2.f32 %v5818_v45  ;;  %v5358_v6 = vpack.c.bf16 %v10028_v20, %v10028_v20  ;;  %v7268_v43 = vunpack.c.h.bf16 %v7184_v55  ;;  %v7261_v26 = vunpack.c.l.bf16 %v7184_v55  ;;  %v10030_v40 = vpop.eup %10029 }
 0x7f7   : > { %v7266_v8 = vunpack.c.h.bf16 %v7182_v15  ;;  %v7259_v46 = vunpack.c.l.bf16 %v7182_v15  ;;  %v7267_v36 = vunpack.c.h.bf16 %v7183_v28  ;;  %v7260_v57 = vunpack.c.l.bf16 %v7183_v28  ;;  %v10032_v16 = vpop.eup %10031 }
 0x7f8   : > { %v6593_v18 = vadd.f32 %v6453_v13, %v14354_v7  ;;  %10035 = vlog2.f32 %v5819_v23  ;;  %v6030_v19 = vmul.f32 0.6931472, %v10026_v29  ;;  %v5713_v10 = vpack.c.bf16 %v5606_v33, %v5605_v59 }
 0x7f9   : > { %v7411_v41 = vadd.f32 %v14239_v51, %v7266_v8  ;;  %v7402_v47 = vadd.f32 %v14262_v44, %v7259_v46  ;;  %v5714_v4 = vpack.c.bf16 %v5607_v2, %v5607_v2  ;;  %v4619_v25 = vunpack.c.l.bf16 %v4501_v42 }
 0x7fa   : > { %v5474_v53 = vunpack.c.l.bf16 %v5358_v6  ;;  %v7413_v55 = vsel %vm1407_vm0, %v7268_v43, 0.0  ;;  %v7404_v14 = vsel %vm1407_vm0, %v7261_v26, 0.0  ;;  %v4620_v51 = vunpack.c.h.bf16 %v4501_v42 }
 0x7fb   : > { %v7412_v54 = vadd.f32 %v7411_v41, %v7267_v36  ;;  %v7403_v45 = vadd.f32 %v7402_v47, %v7260_v57  ;;  %v5357_v49 = vpack.c.bf16 %v10032_v16, %v10030_v40  ;;  %v4759_v15 = vsub.f32 0.0, %v4619_v25 }
 0x7fc   : > { %v10034_v28 = vpop.eup %10033  ;;  %v6319_v7 = vunpack.c.h.bf16 %v14390_v11  ;;  %v4190_v29 = vpack.c.bf16 %v14415_v0, %v14415_v0  ;;  %v6320_v13 = vunpack.c.l.bf16 %v4410_v24  ;;  %v4760_v23 = vsub.f32 0.0, %v4620_v51 }
 0x7fd   : > { %v7414_v20 = vadd.f32 %v7413_v55, %v7412_v54  ;;  %v7405_v44 = vadd.f32 %v7404_v14, %v7403_v45  ;;  %v15773_v59 = vpack.c.bf16 %v14398_v31, %v14398_v31  ;;  %v6205_v2 = vpack.c.bf16 %v6014_v34, %v6012_v30  ;;  %v3631_v14 = vpop.f32.mrf.mxu3 }
 0x7fe   : > { %v6706_v8 = vpack.c.bf16 %v6593_v18, %v6593_v18  ;;  %v5827_v46 = vunpack.c.l.bf16 %v5714_v4  ;;  %v10036_v42 = vpop.eup %10035  ;;  %v3805_v6 = vunpack.c.l.bf16 %v425_v27  ;;  %v5825_v43 = vunpack.c.l.bf16 %v5713_v10 }
 0x7ff   : > { %v14457_v33 = vunpack.c.l.bf16 %v15773_v59  ;;  %7415 = vadd.xlane.f32.xlu0 %v7414_v20  ;;  %7406 = vadd.xlane.f32.xlu1 %v7405_v44  ;;  %v5614_v26 = vadd.f32 1.0, %v5474_v53  ;;  %v4861_v0 = vpack.c.bf16 %v4760_v23, %v4759_v15  ;;  %v6210_v40 = vpack.c.bf16 %v6030_v19, %v6030_v19 }
 0x800   : > { %v5826_v36 = vunpack.c.h.bf16 %v5713_v10  ;;  %v5472_v50 = vunpack.c.l.bf16 %v5357_v49  ;;  %v5473_v24 = vunpack.c.h.bf16 %v5357_v49  ;;  %v6026_v41 = vmul.f32 0.6931472, %v10034_v28 }
 0x801   : > { %v3806_v57 = vunpack.c.h.bf16 %v425_v27  ;;  %v4979_v47 = vunpack.c.l.bf16 %v4861_v0  ;;  %v4980_v31 = vunpack.c.h.bf16 %v4861_v0  ;;  %v6028_v16 = vmul.f32 0.6931472, %v10036_v42 }
 0x802   : > { %v3945_v30 = vunpack.c.l.bf16 %v14297_v22  ;;  %v3946_v34 = vunpack.c.h.bf16 %v14297_v22  ;;  %10037 = vlog2.f32 %v5827_v46  ;;  %v5718_v18 = vpack.c.bf16 %v5614_v26, %v5614_v26  ;;  %v426_v22 = vld [vmem:[%s10386_s25 + $0x130] sm:$0xf] }
 0x803   : > { %10039 = vlog2.f32 %v5825_v43  ;;  %v5207_v4 = vmul.f32 1.442695, %v4979_v47  ;;  %v5209_v54 = vmul.f32 1.442695, %v4980_v31  ;;  %v6460_v45 = vunpack.c.l.bf16 %v6210_v40 }
 0x804   : > { %10041 = vlog2.f32 %v5826_v36  ;;  %v5612_v19 = vadd.f32 1.0, %v5472_v50  ;;  %v5613_v10 = vadd.f32 1.0, %v5473_v24  ;;  %v6451_v25 = vunpack.c.l.bf16 %v6205_v2 }
 0x805   : > { %v6452_v53 = vunpack.c.h.bf16 %v6205_v2  ;;  %v3947_v55 = vunpack.c.l.bf16 %v14323_v21  ;;  %10043 = vpow2.f32 %v5207_v4  ;;  %v14462_v51 = vunpack.c.l.bf16 %v6706_v8 }
 0x806   : > { %v4085_v27 = vmul.f32 %v3945_v30, %v3805_v6  ;;  %10045 = vpow2.f32 %v5209_v54  ;;  %v3632_v49 = vadd.f32 %v3631_v14, %v13747_v58  ;;  %v4086_v20 = vmul.f32 %v3946_v34, %v3806_v57 }
 0x807   : > { %v4305_v44 = vmax.f32 %v3945_v30, 0.0  ;;  %v4306_v15 = vmax.f32 %v3946_v34, 0.0  ;;  %v5834_v28 = vunpack.c.l.bf16 %v5718_v18  ;;  %v14466_v59 = vpack.c.bf16 %v6028_v16, %v6026_v41  ;;  %v429_v16 = vld [vmem:[%s10386_s25 + $0x144] sm:$0xff] }
 0x808   : > { %v10038_v23 = vpop.eup %10037  ;;  %v6600_v46 = vadd.f32 %v6460_v45, %v6320_v13  ;;  %v5717_v2 = vpack.c.bf16 %v5613_v10, %v5612_v19  ;;  %v14468_v21 = vpack.c.bf16 %v3632_v49, %v3632_v49  ;;  %v14472_v6 = vunpack.c.l.bf16 %v4190_v29 }
 0x809   : > { %v10040_v42 = vpop.eup %10039  ;;  %v3807_v43 = vunpack.c.l.bf16 %v426_v22  ;;  %v4307_v26 = vmax.f32 %v3947_v55, 0.0  ;;  %v15774_v40 = vunpack.c.l.bf16 %v14316_v56  ;;  %v15775_v50 = vunpack.c.h.bf16 %v14316_v56 }
 0x80a   : > { %v10042_v0 = vpop.eup %10041  ;;  %v4502_v41 = vand.u32 2147450879, %v14468_v21  ;;  %v14485_v47 = vpack.c.bf16 %v4086_v20, %v4085_v27  ;;  %v14487_v29 = vpack.c.bf16 %v4306_v15, %v4305_v44  ;;  %v6044_v31 = vmul.f32 0.6931472, %v10038_v23 }
 0x80b   : > { %v14476_v36 = vadd.f32 %v6451_v25, %v15774_v40  ;;  %v14480_v13 = vadd.f32 %v6452_v53, %v15775_v50  ;;  %v10044_v57 = vpop.eup %10043  ;;  %10047 = vlog2.f32 %v5834_v28  ;;  %v6458_v34 = vunpack.c.l.bf16 %v14466_v59  ;;  %v430_v40 = vld [vmem:[%s10386_s25 + $0x14c] sm:$0xf] }
 0x80c   : > { %15776 = vst [vmem:[#allocation22_spill] sm:$0xff] %v14485_v47  ;;  %v10046_v30 = vpop.eup %10045  ;;  %v6710_v18 = vpack.c.bf16 %v6600_v46, %v6600_v46  ;;  %v5832_v56 = vunpack.c.l.bf16 %v5717_v2  ;;  %v4621_v4 = vunpack.c.l.bf16 %v4502_v41  ;;  %v4087_v54 = vmul.f32 %v3947_v55, %v3807_v43 }
 0x80d   : > { %v4414_v45 = vpack.c.bf16 %v4307_v26, %v4307_v26  ;;  %v5833_v19 = vunpack.c.h.bf16 %v5717_v2  ;;  %v5361_v10 = vpack.c.bf16 %v10046_v30, %v10044_v57  ;;  %v6040_v25 = vmul.f32 0.6931472, %v10040_v42 }
 0x80e   : > { %v3812_v53 = vunpack.c.l.bf16 %v429_v16  ;;  %v3813_v14 = vunpack.c.h.bf16 %v429_v16  ;;  %v4761_v27 = vsub.f32 0.0, %v4621_v4  ;;  %v6042_v22 = vmul.f32 0.6931472, %v10042_v0 }
 0x80f   : > { %v6214_v49 = vpack.c.bf16 %v6044_v31, %v6044_v31  ;;  %v5479_v20 = vunpack.c.l.bf16 %v5361_v10  ;;  %v5480_v44 = vunpack.c.h.bf16 %v5361_v10  ;;  %v3952_v15 = vunpack.c.l.bf16 %v14363_v48 }
 0x810   : > { %v3953_v28 = vunpack.c.h.bf16 %v14363_v48  ;;  %10049 = vlog2.f32 %v5832_v56  ;;  %v4862_v23 = vpack.c.bf16 %v4761_v27, %v4761_v27  ;;  %v6459_v55 = vunpack.c.h.bf16 %v14466_v59 }
 0x811   : > { %v10048_v46 = vpop.eup %10047  ;;  %10051 = vlog2.f32 %v5833_v19  ;;  %v5619_v2 = vadd.f32 1.0, %v5479_v20  ;;  %v5620_v42 = vadd.f32 1.0, %v5480_v44  ;;  %v15777_v43 = vunpack.c.l.bf16 %v14390_v11 }
 0x812   : > { %v14498_v0 = vunpack.c.l.bf16 %v6710_v18  ;;  %v3954_v50 = vunpack.c.l.bf16 %v14374_v3  ;;  %v4981_v41 = vunpack.c.l.bf16 %v4862_v23  ;;  %v6213_v57 = vpack.c.bf16 %v6042_v22, %v6040_v25 }
 0x813   : > { %v14496_v26 = vadd.f32 %v6458_v34, %v15777_v43  ;;  %v4194_v48 = vpack.c.bf16 %v4087_v54, %v4087_v54  ;;  %v6327_v31 = vunpack.c.l.bf16 %v4414_v45  ;;  %v6467_v16 = vunpack.c.l.bf16 %v6214_v49 }
 0x814   : > { %v4092_v30 = vmul.f32 %v3952_v15, %v3812_v53  ;;  %v4093_v56 = vmul.f32 %v3953_v28, %v3813_v14  ;;  %v6058_v59 = vmul.f32 0.6931472, %v10048_v46  ;;  %v5211_v4 = vmul.f32 1.442695, %v4981_v41  ;;  %v3515_v41 = vpop.f32.mrf.mxu1 }
 0x815   : > { %v4312_v19 = vmax.f32 %v3952_v15, 0.0  ;;  %v4313_v10 = vmax.f32 %v3953_v28, 0.0  ;;  %v3814_v27 = vunpack.c.l.bf16 %v430_v40  ;;  %v5721_v34 = vpack.c.bf16 %v5620_v42, %v5619_v2 }
 0x816   : > { %v10050_v20 = vpop.eup %10049  ;;  %v14504_v18 = vadd.f32 %v6459_v55, %v6319_v7  ;;  %v6325_v3 = vunpack.c.l.bf16 %v14487_v29  ;;  %v4314_v25 = vmax.f32 %v3954_v50, 0.0  ;;  %10053 = vpow2.f32 %v5211_v4  ;;  %v433_v7 = vld [vmem:[%s10386_s25 + $0x160] sm:$0xff] }
 0x817   : > { %v10052_v54 = vpop.eup %10051  ;;  %v6326_v53 = vunpack.c.h.bf16 %v14487_v29  ;;  %v6607_v22 = vadd.f32 %v6467_v16, %v6327_v31  ;;  %v6465_v49 = vunpack.c.l.bf16 %v6213_v57  ;;  %v6466_v44 = vunpack.c.h.bf16 %v6213_v57  ;;  %v3574_v29 = vpop.f32.mrf.mxu2 }
 0x818   : > { %v14511_v15 = vunpack.c.l.bf16 %v4194_v48  ;;  %v6218_v11 = vpack.c.bf16 %v6058_v59, %v6058_v59  ;;  %v14514_v28 = vpack.c.bf16 %v4093_v56, %v4092_v30  ;;  %v4417_v23 = vpack.c.bf16 %v4313_v10, %v4312_v19 }
 0x819   : > { %v4094_v46 = vmul.f32 %v3954_v50, %v3814_v27  ;;  %v5839_v55 = vunpack.c.l.bf16 %v5721_v34  ;;  %v6054_v2 = vmul.f32 0.6931472, %v10050_v20  ;;  %v6056_v42 = vmul.f32 0.6931472, %v10052_v54 }
 0x81a   : > { %15778 = vst [vmem:[#allocation28_spill] sm:$0xff] %v14511_v15  ;;  %v4418_v43 = vpack.c.bf16 %v4314_v25, %v4314_v25  ;;  %v5840_v40 = vunpack.c.h.bf16 %v5721_v34  ;;  %v6714_v4 = vpack.c.bf16 %v6607_v22, %v6607_v22  ;;  %v3819_v14 = vunpack.c.l.bf16 %v433_v7 }
 0x81b   : > { %15779 = vst [vmem:[#allocation24_spill] sm:$0xff] %v14514_v28  ;;  %v3516_v31 = vadd.f32 %v3515_v41, %v13737_v1  ;;  %v3575_v57 = vadd.f32 %v3574_v29, %v13730_v12  ;;  %v6474_v16 = vunpack.c.l.bf16 %v6218_v11  ;;  %v3820_v59 = vunpack.c.h.bf16 %v433_v7  ;;  %v434_v29 = vld [vmem:[%s10386_s25 + $0x168] sm:$0xf] }
 0x81c   : > { %v10054_v48 = vpop.eup %10053  ;;  %v3959_v30 = vunpack.c.l.bf16 %v14432_v38  ;;  %v3960_v50 = vunpack.c.h.bf16 %v14432_v38  ;;  %v14520_v56 = vadd.f32 %v6465_v49, %v6325_v3  ;;  %10055 = vlog2.f32 %v5839_v55 }
 0x81d   : > { %v5362_v19 = vpack.c.bf16 %v10054_v48, %v10054_v48  ;;  %v14522_v10 = vpack.c.bf16 %v3575_v57, %v3516_v31  ;;  %v14524_v27 = vadd.f32 %v6466_v44, %v6326_v53  ;;  %v6217_v34 = vpack.c.bf16 %v6056_v42, %v6054_v2 }
 0x81e   : > { %v6334_v20 = vunpack.c.l.bf16 %v4418_v43  ;;  %10057 = vlog2.f32 %v5840_v40  ;;  %v14526_v25 = vunpack.c.l.bf16 %v6714_v4  ;;  %v6332_v54 = vunpack.c.l.bf16 %v4417_v23 }
 0x81f   : > { %v4198_v22 = vpack.c.bf16 %v4094_v46, %v4094_v46  ;;  %v5481_v11 = vunpack.c.l.bf16 %v5362_v19  ;;  %v4099_v41 = vmul.f32 %v3959_v30, %v3819_v14  ;;  %v4100_v38 = vmul.f32 %v3960_v50, %v3820_v59 }
 0x820   : > { %15780 = vst [vmem:[#allocation21_spill] sm:$0xff] %v14526_v25  ;;  %v6614_v7 = vadd.f32 %v6474_v16, %v6334_v20  ;;  %v4505_v3 = vand.u32 2147450879, %v14522_v10  ;;  %v4319_v49 = vmax.f32 %v3959_v30, 0.0  ;;  %v4320_v55 = vmax.f32 %v3960_v50, 0.0 }
 0x821   : > { %v3961_v31 = vunpack.c.l.bf16 %v14468_v21  ;;  %v5621_v53 = vadd.f32 1.0, %v5481_v11  ;;  %v6472_v44 = vunpack.c.l.bf16 %v6217_v34  ;;  %v6473_v2 = vunpack.c.h.bf16 %v6217_v34 }
 0x822   : > { %v4626_v42 = vunpack.c.l.bf16 %v4505_v3  ;;  %v4627_v43 = vunpack.c.h.bf16 %v4505_v3  ;;  %v10056_v40 = vpop.eup %10055  ;;  %v6333_v4 = vunpack.c.h.bf16 %v4417_v23  ;;  %v6718_v16 = vpack.c.bf16 %v6614_v7, %v6614_v7  ;;  %v437_v23 = vld [vmem:[%s10386_s25 + $0x17c] sm:$0xff] }
 0x823   : > { %v5722_v57 = vpack.c.bf16 %v5621_v53, %v5621_v53  ;;  %v3821_v59 = vunpack.c.l.bf16 %v434_v29  ;;  %v14534_v21 = vunpack.c.l.bf16 %v4198_v22  ;;  %v14536_v19 = vpack.c.bf16 %v4320_v55, %v4319_v49  ;;  %v15785_v7 = vld [vmem:[#allocation65_spill] sm:$0xff] }
 0x824   : > { %v10058_v48 = vpop.eup %10057  ;;  %v4766_v30 = vsub.f32 0.0, %v4626_v42  ;;  %v4767_v50 = vsub.f32 0.0, %v4627_v43  ;;  %v4321_v34 = vmax.f32 %v3961_v31, 0.0  ;;  %v14538_v11 = vadd.f32 %v6472_v44, %v6332_v54 }
 0x825   : > { %15781 = vst [vmem:[#allocation17_spill] sm:$0xff] %v14534_v21  ;;  %v5841_v20 = vunpack.c.l.bf16 %v5722_v57  ;;  %v14540_v3 = vadd.f32 %v6473_v2, %v6333_v4  ;;  %v14542_v46 = vpack.c.bf16 %v4100_v38, %v4099_v41  ;;  %v6068_v53 = vmul.f32 0.6931472, %v10056_v40  ;;  %v15792_v21 = vld [vmem:[#allocation117_spill] sm:$0xff] }
 0x826   : > { %15782 = vst [vmem:[#allocation41_spill] sm:$0xff] %v14538_v11  ;;  %v4865_v14 = vpack.c.bf16 %v4767_v50, %v4766_v30  ;;  %v6070_v45 = vmul.f32 0.6931472, %v10058_v48  ;;  %v14546_v42 = vunpack.c.l.bf16 %v6718_v16  ;;  %v4101_v22 = vmul.f32 %v3961_v31, %v3821_v59  ;;  %v15787_v30 = vld [vmem:[#allocation113_spill] sm:$0xff]  ;;  %v3633_v50 = vpop.f32.mrf.mxu3 }
 0x827   : > { %15783 = vst [vmem:[#allocation23_spill] sm:$0xff] %v14540_v3  ;;  %10059 = vlog2.f32 %v5841_v20  ;;  %v6339_v43 = vunpack.c.l.bf16 %v14536_v19  ;;  %v4422_v54 = vpack.c.bf16 %v4321_v34, %v4321_v34  ;;  %v3826_v44 = vunpack.c.l.bf16 %v437_v23  ;;  %v15788_v34 = vld [vmem:[#allocation114_spill] sm:$0xff] }
 0x828   : > { %15784 = vst [vmem:[#allocation26_spill] sm:$0xff] %v14542_v46  ;;  %v4986_v49 = vunpack.c.l.bf16 %v4865_v14  ;;  %v4987_v55 = vunpack.c.h.bf16 %v4865_v14  ;;  %v3966_v2 = vunpack.c.l.bf16 %v14522_v10  ;;  %v3827_v41 = vunpack.c.h.bf16 %v437_v23  ;;  %v15800_v3 = vld [vmem:[#allocation14_spill] sm:$0xff] }
 0x829   : > { %15786 = vst [vmem:[#allocation30_spill] sm:$0xff] %v14546_v42  ;;  %v3967_v38 = vunpack.c.h.bf16 %v14522_v10  ;;  %v6221_v57 = vpack.c.bf16 %v6070_v45, %v6068_v53  ;;  %v6340_v48 = vunpack.c.h.bf16 %v14536_v19  ;;  %v6924_v31 = vunpack.c.h.bf16 %v15787_v30  ;;  %v15797_v42 = vld [vmem:[#allocation119_spill] sm:$0xff] }
 0x82a   : > { %v5221_v4 = vmul.f32 1.442695, %v4986_v49  ;;  %v5223_v40 = vmul.f32 1.442695, %v4987_v55  ;;  %v4202_v59 = vpack.c.bf16 %v4101_v22, %v4101_v22  ;;  %v6931_v20 = vunpack.c.h.bf16 %v15788_v34  ;;  %v15789_v22 = vld [vmem:[#allocation58_spill] sm:$0xff] }
 0x82b   : > { %v6341_v24 = vunpack.c.l.bf16 %v4422_v54  ;;  %v4106_v10 = vmul.f32 %v3966_v2, %v3826_v44  ;;  %v3634_v45 = vadd.f32 %v3633_v50, %v13747_v58  ;;  %v4107_v19 = vmul.f32 %v3967_v38, %v3827_v41  ;;  %v15793_v44 = vld [vmem:[#allocation70_spill] sm:$0xff]  ;;  %v15794_v50 = vld [vmem:[#allocation60_spill] sm:$0xff] }
 0x82c   : > { %10061 = vpow2.f32 %v5221_v4  ;;  %v4326_v49 = vmax.f32 %v3966_v2, 0.0  ;;  %v4327_v55 = vmax.f32 %v3967_v38, 0.0  ;;  %v6479_v16 = vunpack.c.l.bf16 %v6221_v57  ;;  %v15790_v4 = vld [vmem:[#allocation63_spill] sm:$0xff] }
 0x82d   : > { %v10060_v23 = vpop.eup %10059  ;;  %10063 = vpow2.f32 %v5223_v40  ;;  %v3706_v8 = vpack.c.bf16 %v3634_v45, %v3634_v45  ;;  %v6689_v14 = vpack.c.bf16 %v14137_v5, %v14133_v61  ;;  %v14562_v29 = vpack.c.bf16 %v15790_v4, %v15789_v22 }
 0x82e   : > { %v6072_v53 = vmul.f32 0.6931472, %v10060_v23  ;;  %v6831_v40 = vunpack.c.h.bf16 %v15793_v44  ;;  %v15795_v23 = vld [vmem:[#allocation64_spill] sm:$0xff]  ;;  %v6480_v2 = vunpack.c.h.bf16 %v6221_v57  ;;  %v14570_v38 = vunpack.c.l.bf16 %v4202_v59 }
 0x82f   : > { %15791 = vst [vmem:[#allocation31_spill] sm:$0xff] %v14562_v29  ;;  %v14568_v41 = vpack.c.bf16 %v15795_v23, %v15794_v50  ;;  %v4506_v45 = vand.u32 2147450879, %v3706_v8  ;;  %v14573_v22 = vpack.c.bf16 %v4327_v55, %v4326_v49  ;;  %v14577_v44 = vadd.f32 %v6479_v16, %v6339_v43  ;;  %v438_v50 = vld [vmem:[%s10386_s25 + $0x184] sm:$0xf] }
 0x830   : > { %v6222_v46 = vpack.c.bf16 %v6072_v53, %v6072_v53  ;;  %v7311_v53 = vunpack.c.l.bf16 %v14562_v29  ;;  %v14579_v25 = vpack.c.bf16 %v4107_v19, %v4106_v10  ;;  %v6783_v59 = vunpack.c.l.bf16 %v6689_v14  ;;  %v15799_v29 = vld [vmem:[#allocation36_spill] sm:$0xff] }
 0x831   : > { %15796 = vst [vmem:[#allocation38_spill] sm:$0xff] %v14568_v41  ;;  %v7312_v4 = vunpack.c.l.bf16 %v14568_v41  ;;  %v4628_v57 = vunpack.c.l.bf16 %v4506_v45  ;;  %v3968_v28 = vunpack.c.l.bf16 %v3706_v8  ;;  %v6784_v47 = vunpack.c.h.bf16 %v6689_v14 }
 0x832   : > { %v10062_v5 = vpop.eup %10061  ;;  %v6481_v15 = vunpack.c.l.bf16 %v6222_v46  ;;  %15798 = vst [vmem:[#allocation27_spill] sm:$0xff] %v14577_v44  ;;  %v14584_v46 = vadd.f32 %v6480_v2, %v6340_v48  ;;  %v6693_v41 = vpack.c.bf16 %v15800_v3, %v15799_v29  ;;  %v6346_v16 = vunpack.c.l.bf16 %v14573_v22 }
 0x833   : > { %v10064_v54 = vpop.eup %10063  ;;  %v14582_v61 = vadd.f32 %v7312_v4, %v7311_v53  ;;  %v4768_v55 = vsub.f32 0.0, %v4628_v57  ;;  %v3828_v10 = vunpack.c.l.bf16 %v438_v50  ;;  %v15801_v8 = vunpack.c.l.bf16 %v15787_v30 }
 0x834   : > { %v5365_v23 = vpack.c.bf16 %v10064_v54, %v10062_v5  ;;  %v6621_v49 = vadd.f32 %v6481_v15, %v6341_v24  ;;  %v6790_v45 = vunpack.c.l.bf16 %v6693_v41  ;;  %v6791_v44 = vunpack.c.h.bf16 %v6693_v41 }
 0x835   : > { %v4866_v19 = vpack.c.bf16 %v4768_v55, %v4768_v55  ;;  %v7063_v14 = vsub.f32 %v6783_v59, %v15801_v8  ;;  %v4328_v48 = vmax.f32 %v3968_v28, 0.0  ;;  %v7064_v2 = vsub.f32 %v6784_v47, %v6924_v31  ;;  %v15803_v59 = vld [vmem:[#allocation118_spill] sm:$0xff] }
 0x836   : > { %v5486_v11 = vunpack.c.l.bf16 %v5365_v23  ;;  %v5487_v43 = vunpack.c.h.bf16 %v5365_v23  ;;  %v6722_v24 = vpack.c.bf16 %v6621_v49, %v6621_v49  ;;  %v15802_v53 = vunpack.c.l.bf16 %v15788_v34 }
 0x837   : > { %v4988_v15 = vunpack.c.l.bf16 %v4866_v19  ;;  %v7071_v29 = vsub.f32 %v6791_v44, %v6931_v20  ;;  %v6347_v57 = vunpack.c.h.bf16 %v14573_v22  ;;  %v4108_v23 = vmul.f32 %v3968_v28, %v3828_v10  ;;  %v15807_v20 = vld [vmem:[#allocation55_spill] sm:$0xff]  ;;  %v15810_v10 = vld [vmem:[#allocation62_spill] sm:$0xff] }
 0x838   : > { %v5626_v54 = vadd.f32 1.0, %v5486_v11  ;;  %v5627_v5 = vadd.f32 1.0, %v5487_v43  ;;  %v7070_v3 = vsub.f32 %v6790_v45, %v15802_v53  ;;  %v15804_v11 = vld [vmem:[#allocation115_spill] sm:$0xff]  ;;  %v15806_v47 = vsub.f32 %v14228_v37, %v14114_v52  ;;  %v15812_v53 = vld [vmem:[#allocation16_spill] sm:$0xff] }
 0x839   : > { %v5225_v41 = vmul.f32 1.442695, %v4988_v15  ;;  %v7190_v30 = vpack.c.bf16 %v7071_v29, %v7064_v2  ;;  %v15805_v43 = vsub.f32 %v15803_v59, %v15804_v11  ;;  %v4426_v19 = vpack.c.bf16 %v4328_v48, %v4328_v48  ;;  %v15815_v59 = vld [vmem:[#allocation67_spill] sm:$0xff] }
 0x83a   : > { %v5725_v4 = vpack.c.bf16 %v5627_v5, %v5626_v54  ;;  %v7189_v55 = vpack.c.bf16 %v7070_v3, %v7063_v14  ;;  %v15808_v44 = vunpack.c.h.bf16 %v15807_v20  ;;  %v15809_v45 = vunpack.c.h.bf16 %v15785_v7  ;;  %v15813_v7 = vld [vmem:[#allocation13_spill] sm:$0xff]  ;;  %v15816_v11 = vld [vmem:[#allocation71_spill] sm:$0xff] }
 0x83b   : > { %v7191_v31 = vpack.c.bf16 %v15806_v47, %v15805_v43  ;;  %v14605_v54 = vunpack.c.l.bf16 %v6722_v24  ;;  %10065 = vpow2.f32 %v5225_v41  ;;  %v15811_v14 = vunpack.c.h.bf16 %v15810_v10  ;;  %v15814_v24 = vld [vmem:[#allocation19_spill] sm:$0xff]  ;;  %v3518_v47 = vpop.f32.mrf.mxu1 }
 0x83c   : > { %v5846_v49 = vunpack.c.l.bf16 %v5725_v4  ;;  %v5847_v34 = vunpack.c.h.bf16 %v5725_v4  ;;  %v7104_v8 = vsub.f32 %v15809_v45, %v15808_v44  ;;  %v7273_v28 = vunpack.c.l.bf16 %v7189_v55 }
 0x83d   : > { %v7111_v5 = vsub.f32 %v6831_v40, %v15811_v14  ;;  %v4206_v2 = vpack.c.bf16 %v4108_v23, %v4108_v23  ;;  %v7275_v15 = vunpack.c.l.bf16 %v7191_v31  ;;  %v7280_v52 = vunpack.c.h.bf16 %v7189_v55  ;;  %v15818_v14 = vld [vmem:[#allocation44_spill] sm:$0xff] }
 0x83e   : > { %10067 = vlog2.f32 %v5846_v49  ;;  %v7274_v37 = vunpack.c.l.bf16 %v7190_v30  ;;  %v7420_v48 = vadd.f32 %v15812_v53, %v7273_v28  ;;  %v7282_v3 = vunpack.c.h.bf16 %v7191_v31  ;;  %v3577_v49 = vpop.f32.mrf.mxu2 }
 0x83f   : > { %10069 = vlog2.f32 %v5847_v34  ;;  %v7281_v29 = vunpack.c.h.bf16 %v7190_v30  ;;  %v7429_v4 = vadd.f32 %v15813_v7, %v7280_v52  ;;  %v6697_v41 = vpack.c.bf16 %v15814_v24, %v14336_v9  ;;  %v441_v9 = vld [vmem:[%s10386_s25 + $0x198] sm:$0xff] }
 0x840   : > { %v14615_v43 = vpack.c.bf16 %v15816_v11, %v15815_v59  ;;  %v14619_v23 = vunpack.c.l.bf16 %v4426_v19  ;;  %v7421_v55 = vadd.f32 %v7420_v48, %v7274_v37  ;;  %v14621_v34 = vpack.c.bf16 %v7111_v5, %v7104_v8 }
 0x841   : > { %v7422_v30 = vsel %vm1407_vm0, %v7275_v15, 0.0  ;;  %v7430_v31 = vadd.f32 %v7429_v4, %v7281_v29  ;;  %v3519_v20 = vadd.f32 %v3518_v47, %v13737_v1  ;;  %v3578_v44 = vadd.f32 %v3577_v49, %v13730_v12  ;;  %v10066_v45 = vpop.eup %10065 }
 0x842   : > { %v14627_v28 = vunpack.c.l.bf16 %v4206_v2  ;;  %v7423_v10 = vadd.f32 %v7422_v30, %v7421_v55  ;;  %v7431_v19 = vsel %vm1407_vm0, %v7282_v3, 0.0  ;;  %v5366_v53 = vpack.c.bf16 %v10066_v45, %v10066_v45 }
 0x843   : > { %v7432_v8 = vadd.f32 %v7431_v19, %v7430_v31  ;;  %v3709_v5 = vpack.c.bf16 %v3578_v44, %v3519_v20  ;;  %v6797_v48 = vunpack.c.l.bf16 %v6697_v41  ;;  %v3833_v7 = vunpack.c.l.bf16 %v441_v9 }
 0x844   : > { %15817 = vst [vmem:[#allocation32_spill] sm:$0xff] %v14627_v28  ;;  %v10068_v37 = vpop.eup %10067  ;;  %7424 = vadd.xlane.f32.xlu2 %v7423_v10  ;;  %v3834_v4 = vunpack.c.h.bf16 %v441_v9  ;;  %v6701_v24 = vpack.c.bf16 %v14404_v60, %v14387_v17  ;;  %v5488_v59 = vunpack.c.l.bf16 %v5366_v53  ;;  %v6798_v47 = vunpack.c.h.bf16 %v6697_v41 }
 0x845   : > { %v10070_v15 = vpop.eup %10069  ;;  %v6082_v29 = vmul.f32 0.6931472, %v10068_v37  ;;  %7433 = vadd.xlane.f32.xlu1 %v7432_v8  ;;  %v3973_v11 = vunpack.c.l.bf16 %v3709_v5  ;;  %v3974_v3 = vunpack.c.h.bf16 %v3709_v5  ;;  %v4509_v55 = vand.u32 2147450879, %v3709_v5 }
 0x846   : > { %v6084_v2 = vmul.f32 0.6931472, %v10070_v15  ;;  %v6804_v49 = vunpack.c.l.bf16 %v6701_v24  ;;  %v5628_v20 = vadd.f32 1.0, %v5488_v59  ;;  %v6805_v44 = vunpack.c.h.bf16 %v6701_v24 }
 0x847   : > { %v15819_v45 = vunpack.c.l.bf16 %v15792_v21  ;;  %v4333_v9 = vmax.f32 %v3973_v11, 0.0  ;;  %v4334_v19 = vmax.f32 %v3974_v3, 0.0  ;;  %v4633_v37 = vunpack.c.l.bf16 %v4509_v55 }
 0x848   : > { %v6225_v31 = vpack.c.bf16 %v6084_v2, %v6082_v29  ;;  %v4634_v17 = vunpack.c.h.bf16 %v4509_v55  ;;  %v5726_v53 = vpack.c.bf16 %v5628_v20, %v5628_v20  ;;  %v4113_v8 = vmul.f32 %v3973_v11, %v3833_v7  ;;  %v3636_v2 = vpop.f32.mrf.mxu3 }
 0x849   : > { %v7077_v10 = vsub.f32 %v6797_v48, %v15819_v45  ;;  %v4114_v15 = vmul.f32 %v3974_v3, %v3834_v4  ;;  %v4773_v5 = vsub.f32 0.0, %v4633_v37  ;;  %v15820_v50 = vunpack.c.l.bf16 %v15797_v42  ;;  %v15824_v3 = vld [vmem:[#allocation20_spill] sm:$0xff]  ;;  %v3520_v37 = vpop.f32.mrf.mxu1 }
 0x84a   : > { %v6486_v60 = vunpack.c.l.bf16 %v6225_v31  ;;  %v6487_v40 = vunpack.c.h.bf16 %v6225_v31  ;;  %v4774_v41 = vsub.f32 0.0, %v4634_v17  ;;  %v5848_v29 = vunpack.c.l.bf16 %v5726_v53 }
 0x84b   : > { %v7084_v30 = vsub.f32 %v6804_v49, %v15820_v50  ;;  %v15821_v24 = vunpack.c.h.bf16 %v15792_v21  ;;  %v15822_v59 = vunpack.c.h.bf16 %v15797_v42  ;;  %v14643_v20 = vpack.c.bf16 %v4334_v19, %v4333_v9 }
 0x84c   : > { %v4869_v7 = vpack.c.bf16 %v4774_v41, %v4773_v5  ;;  %v3637_v4 = vadd.f32 %v3636_v2, %v13747_v58  ;;  %v14650_v50 = vadd.f32 %v6486_v60, %v6346_v16  ;;  %10071 = vlog2.f32 %v5848_v29  ;;  %v442_v16 = vld [vmem:[%s10386_s25 + $0x1a0] sm:$0xf] }
 0x84d   : > { %v7078_v48 = vsub.f32 %v6798_v47, %v15821_v24  ;;  %v7085_v45 = vsub.f32 %v6805_v44, %v15822_v59  ;;  %v14646_v11 = vpack.c.bf16 %v7084_v30, %v7077_v10  ;;  %v14652_v21 = vpack.c.bf16 %v4114_v15, %v4113_v8  ;;  %v15825_v47 = vld [vmem:[#allocation120_spill] sm:$0xff]  ;;  %v15828_v5 = vld [vmem:[#allocation15_spill] sm:$0xff] }
 0x84e   : > { %v15826_v42 = vsub.f32 %v15824_v3, %v15825_v47  ;;  %v15827_v49 = vsub.f32 %v14457_v33, %v14304_v32  ;;  %v14664_v44 = vadd.f32 %v6487_v40, %v6347_v57  ;;  %v4993_v30 = vunpack.c.l.bf16 %v4869_v7 }
 0x84f   : > { %15823 = vst [vmem:[#allocation29_spill] sm:$0xff] %v14652_v21  ;;  %v4994_v10 = vunpack.c.h.bf16 %v4869_v7  ;;  %v14666_v9 = vpack.c.bf16 %v7085_v45, %v7078_v48  ;;  %v3710_v19 = vpack.c.bf16 %v3637_v4, %v3637_v4  ;;  %v7287_v17 = vunpack.c.l.bf16 %v14646_v11  ;;  %v3579_v45 = vpop.f32.mrf.mxu2 }
 0x850   : > { %v14660_v31 = vpack.c.bf16 %v15827_v49, %v15826_v42  ;;  %v14672_v60 = vpack.c.bf16 %v14480_v13, %v14476_v36  ;;  %v5235_v33 = vmul.f32 1.442695, %v4993_v30  ;;  %v6353_v22 = vunpack.c.l.bf16 %v14643_v20  ;;  %v3638_v7 = vpop.f32.mrf.mxu3 }
 0x851   : > { %v5237_v53 = vmul.f32 1.442695, %v4994_v10  ;;  %v3835_v57 = vunpack.c.l.bf16 %v442_v16  ;;  %v3975_v40 = vunpack.c.l.bf16 %v3710_v19  ;;  %v4510_v8 = vand.u32 2147450879, %v3710_v19 }
 0x852   : > { %v7289_v15 = vunpack.c.l.bf16 %v14660_v31  ;;  %v7438_v41 = vadd.f32 %v15828_v5, %v7287_v17  ;;  %10073 = vpow2.f32 %v5235_v33  ;;  %v3521_v2 = vadd.f32 %v3520_v37, %v13737_v1  ;;  %v10072_v13 = vpop.eup %10071 }
 0x853   : > { %v7288_v36 = vunpack.c.l.bf16 %v14666_v9  ;;  %10075 = vpow2.f32 %v5237_v53  ;;  %v4115_v24 = vmul.f32 %v3975_v40, %v3835_v57  ;;  %v4335_v48 = vmax.f32 %v3975_v40, 0.0 }
 0x854   : > { %v4635_v59 = vunpack.c.l.bf16 %v4510_v8  ;;  %v6086_v4 = vmul.f32 0.6931472, %v10072_v13  ;;  %v3580_v3 = vadd.f32 %v3579_v45, %v13730_v12  ;;  %v7294_v42 = vunpack.c.h.bf16 %v14646_v11  ;;  %v445_v8 = vld [vmem:[%s10386_s25 + $0x1b4] sm:$0xff] }
 0x855   : > { %v7439_v47 = vadd.f32 %v7438_v41, %v7288_v36  ;;  %v3639_v10 = vadd.f32 %v3638_v7, %v13747_v58  ;;  %v7440_v16 = vsel %vm1407_vm0, %v7289_v15, 0.0  ;;  %v7295_v33 = vunpack.c.h.bf16 %v14666_v9 }
 0x856   : > { %v4775_v30 = vsub.f32 0.0, %v4635_v59  ;;  %v6226_v19 = vpack.c.bf16 %v6086_v4, %v6086_v4  ;;  %v3713_v37 = vpack.c.bf16 %v3580_v3, %v3521_v2  ;;  %v4210_v53 = vpack.c.bf16 %v4115_v24, %v4115_v24 }
 0x857   : > { %v7441_v17 = vadd.f32 %v7440_v16, %v7439_v47  ;;  %v4430_v57 = vpack.c.bf16 %v4335_v48, %v4335_v48  ;;  %v7296_v5 = vunpack.c.h.bf16 %v14660_v31  ;;  %v3840_v36 = vunpack.c.l.bf16 %v445_v8 }
 0x858   : > { %v4870_v40 = vpack.c.bf16 %v4775_v30, %v4775_v30  ;;  %v10074_v41 = vpop.eup %10073  ;;  %v6488_v11 = vunpack.c.l.bf16 %v6226_v19  ;;  %v3841_v13 = vunpack.c.h.bf16 %v445_v8  ;;  %v3980_v59 = vunpack.c.l.bf16 %v3713_v37 }
 0x859   : > { %7442 = vadd.xlane.f32.xlu0 %v7441_v17  ;;  %v10076_v45 = vpop.eup %10075  ;;  %v3981_v15 = vunpack.c.h.bf16 %v3713_v37  ;;  %v4513_v2 = vand.u32 2147450879, %v3713_v37  ;;  %v3714_v4 = vpack.c.bf16 %v3639_v10, %v3639_v10  ;;  %v446_v17 = vld [vmem:[%s10386_s25 + $0x1bc] sm:$0xf] }
 0x85a   : > { %v4995_v7 = vunpack.c.l.bf16 %v4870_v40  ;;  %v6628_v9 = vadd.f32 %v6488_v11, %v14619_v23  ;;  %v5369_v24 = vpack.c.bf16 %v10076_v45, %v10074_v41  ;;  %v4120_v48 = vmul.f32 %v3980_v59, %v3840_v36  ;;  %v15829_v37 = vld [vmem:[#allocation18_spill] sm:$0xff]  ;;  %v3582_v36 = vpop.f32.mrf.mxu2 }
 0x85b   : > { %v4340_v3 = vmax.f32 %v3980_v59, 0.0  ;;  %v4121_v30 = vmul.f32 %v3981_v15, %v3841_v13  ;;  %v4341_v31 = vmax.f32 %v3981_v15, 0.0  ;;  %v4640_v16 = vunpack.c.l.bf16 %v4513_v2 }
 0x85c   : > { %v5239_v47 = vmul.f32 1.442695, %v4995_v7  ;;  %v6726_v19 = vpack.c.bf16 %v6628_v9, %v6628_v9  ;;  %v5493_v49 = vunpack.c.l.bf16 %v5369_v24  ;;  %v5494_v8 = vunpack.c.h.bf16 %v5369_v24 }
 0x85d   : > { %v4641_v32 = vunpack.c.h.bf16 %v4513_v2  ;;  %v14691_v40 = vpack.c.bf16 %v4341_v31, %v4340_v3  ;;  %v4780_v55 = vsub.f32 0.0, %v4640_v16  ;;  %v7447_v10 = vadd.f32 %v15829_v37, %v7294_v42 }
 0x85e   : > { %10077 = vpow2.f32 %v5239_v47  ;;  %v5633_v52 = vadd.f32 1.0, %v5493_v49  ;;  %v5634_v23 = vadd.f32 1.0, %v5494_v8  ;;  %v14694_v41 = vunpack.c.l.bf16 %v4430_v57 }
 0x85f   : > { %v4781_v11 = vsub.f32 0.0, %v4641_v32  ;;  %v14696_v13 = vunpack.c.l.bf16 %v4210_v53  ;;  %v14698_v59 = vpack.c.bf16 %v4121_v30, %v4120_v48  ;;  %v3842_v45 = vunpack.c.l.bf16 %v446_v17  ;;  %v3523_v32 = vpop.f32.mrf.mxu1  ;;  %v449_v17 = vld [vmem:[%s10386_s25 + $0x1d0] sm:$0xff] }
 0x860   : > { %v3982_v7 = vunpack.c.l.bf16 %v3714_v4  ;;  %v14700_v15 = vunpack.c.l.bf16 %v6726_v19  ;;  %v5729_v2 = vpack.c.bf16 %v5634_v23, %v5633_v52  ;;  %v4514_v24 = vand.u32 2147450879, %v3714_v4  ;;  %v3641_v23 = vpop.f32.mrf.mxu3 }
 0x861   : > { %15830 = vst [vmem:[#allocation33_spill] sm:$0xff] %v14698_v59  ;;  %v4873_v9 = vpack.c.bf16 %v4781_v11, %v4780_v55  ;;  %v7448_v49 = vadd.f32 %v7447_v10, %v7295_v33  ;;  %v7449_v57 = vsel %vm1407_vm0, %v7296_v5, 0.0 }
 0x862   : > { %15831 = vst [vmem:[#allocation25_spill] sm:$0xff] %v14700_v15  ;;  %v4342_v42 = vmax.f32 %v3982_v7, 0.0  ;;  %v5853_v47 = vunpack.c.l.bf16 %v5729_v2  ;;  %v5854_v53 = vunpack.c.h.bf16 %v5729_v2  ;;  %v4642_v52 = vunpack.c.l.bf16 %v4514_v24  ;;  %v14710_v24 = vld [vmem:[%s10386_s25 + $0x1d8] sm:$0xf] }
 0x863   : > { %v5000_v31 = vunpack.c.l.bf16 %v4873_v9  ;;  %v5001_v48 = vunpack.c.h.bf16 %v4873_v9  ;;  %v7450_v55 = vadd.f32 %v7449_v57, %v7448_v49  ;;  %v4122_v5 = vmul.f32 %v3982_v7, %v3842_v45 }
 0x864   : > { %v10078_v30 = vpop.eup %10077  ;;  %10079 = vlog2.f32 %v5853_v47  ;;  %v4434_v37 = vpack.c.bf16 %v4342_v42, %v4342_v42  ;;  %v4782_v10 = vsub.f32 0.0, %v4642_v52  ;;  %v3524_v2 = vadd.f32 %v3523_v32, %v13737_v1 }
 0x865   : > { %v5370_v4 = vpack.c.bf16 %v10078_v30, %v10078_v30  ;;  %v5249_v8 = vmul.f32 1.442695, %v5000_v31  ;;  %v5251_v33 = vmul.f32 1.442695, %v5001_v48  ;;  %10081 = vlog2.f32 %v5854_v53  ;;  %7451 = vadd.xlane.f32.xlu2 %v7450_v55  ;;  %v3584_v31 = vpop.f32.mrf.mxu2 }
 0x866   : > { %v3583_v9 = vadd.f32 %v3582_v36, %v13730_v12  ;;  %v4874_v57 = vpack.c.bf16 %v4782_v10, %v4782_v10  ;;  %v3847_v47 = vunpack.c.l.bf16 %v449_v17  ;;  %v3848_v7 = vunpack.c.h.bf16 %v449_v17 }
 0x867   : > { %v5495_v11 = vunpack.c.l.bf16 %v5370_v4  ;;  %10083 = vpow2.f32 %v5249_v8  ;;  %v3642_v42 = vadd.f32 %v3641_v23, %v13747_v58  ;;  %v4214_v48 = vpack.c.bf16 %v4122_v5, %v4122_v5 }
 0x868   : > { %10085 = vpow2.f32 %v5251_v33  ;;  %v3717_v45 = vpack.c.bf16 %v3583_v9, %v3524_v2  ;;  %v5002_v30 = vunpack.c.l.bf16 %v4874_v57  ;;  %v14715_v52 = vunpack.c.l.bf16 %v4434_v37  ;;  %v3525_v2 = vpop.f32.mrf.mxu1 }
 0x869   : > { %v5635_v53 = vadd.f32 1.0, %v5495_v11  ;;  %v3849_v36 = vunpack.c.l.bf16 %v14710_v24  ;;  %v3718_v11 = vpack.c.bf16 %v3642_v42, %v3642_v42  ;;  %v3585_v17 = vadd.f32 %v3584_v31, %v13730_v12 }
 0x86a   : > { %v10080_v32 = vpop.eup %10079  ;;  %v3987_v4 = vunpack.c.l.bf16 %v3717_v45  ;;  %v3988_v8 = vunpack.c.h.bf16 %v3717_v45  ;;  %v4517_v19 = vand.u32 2147450879, %v3717_v45  ;;  %v5253_v49 = vmul.f32 1.442695, %v5002_v30  ;;  %v453_v30 = vld [vmem:[%s10386_s25 + $0x1ec] sm:$0xff] }
 0x86b   : > { %v5730_v55 = vpack.c.bf16 %v5635_v53, %v5635_v53  ;;  %v10082_v33 = vpop.eup %10081  ;;  %v6096_v10 = vmul.f32 0.6931472, %v10080_v32  ;;  %v3526_v42 = vadd.f32 %v3525_v2, %v13737_v1  ;;  %v3855_v59 = vunpack.c.h.bf16 %v453_v30 }
 0x86c   : > { %v6098_v5 = vmul.f32 0.6931472, %v10082_v33  ;;  %v4127_v37 = vmul.f32 %v3987_v4, %v3847_v47  ;;  %v4128_v57 = vmul.f32 %v3988_v8, %v3848_v7  ;;  %10087 = vpow2.f32 %v5253_v49 }
 0x86d   : > { %v10084_v23 = vpop.eup %10083  ;;  %v5855_v9 = vunpack.c.l.bf16 %v5730_v55  ;;  %v4347_v24 = vmax.f32 %v3987_v4, 0.0  ;;  %v4348_v53 = vmax.f32 %v3988_v8, 0.0  ;;  %v4647_v3 = vunpack.c.l.bf16 %v4517_v19 }
 0x86e   : > { %v10086_v16 = vpop.eup %10085  ;;  %v14719_v29 = vpack.c.bf16 %v6098_v5, %v6096_v10  ;;  %v14723_v32 = vpack.c.bf16 %v4128_v57, %v4127_v37  ;;  %v4648_v33 = vunpack.c.h.bf16 %v4517_v19  ;;  %v3989_v4 = vunpack.c.l.bf16 %v3718_v11 }
 0x86f   : > { %10089 = vlog2.f32 %v5855_v9  ;;  %v5373_v45 = vpack.c.bf16 %v10086_v16, %v10084_v23  ;;  %v14725_v31 = vpack.c.bf16 %v4348_v53, %v4347_v24  ;;  %v4787_v55 = vsub.f32 0.0, %v4647_v3 }
 0x870   : > { %15832 = vst [vmem:[#allocation34_spill] sm:$0xff] %v14723_v32  ;;  %v6493_v47 = vunpack.c.l.bf16 %v14719_v29  ;;  %v14728_v8 = vunpack.c.l.bf16 %v4214_v48  ;;  %v4788_v10 = vsub.f32 0.0, %v4648_v33  ;;  %v3721_v5 = vpack.c.bf16 %v3585_v17, %v3526_v42 }
 0x871   : > { %v5500_v7 = vunpack.c.l.bf16 %v5373_v45  ;;  %v5501_v49 = vunpack.c.h.bf16 %v5373_v45  ;;  %v3854_v9 = vunpack.c.l.bf16 %v453_v30  ;;  %v6494_v16 = vunpack.c.h.bf16 %v14719_v29 }
 0x872   : > { %v10088_v57 = vpop.eup %10087  ;;  %v4877_v24 = vpack.c.bf16 %v4788_v10, %v4787_v55  ;;  %v4518_v53 = vand.u32 2147450879, %v3718_v11  ;;  %v14736_v48 = vadd.f32 %v6493_v47, %v6353_v22  ;;  %v4129_v33 = vmul.f32 %v3989_v4, %v3849_v36 }
 0x873   : > { %v5640_v2 = vadd.f32 1.0, %v5500_v7  ;;  %v5641_v23 = vadd.f32 1.0, %v5501_v49  ;;  %v5374_v42 = vpack.c.bf16 %v10088_v57, %v10088_v57  ;;  %v3994_v10 = vunpack.c.l.bf16 %v3721_v5 }
 0x874   : > { %v5007_v7 = vunpack.c.l.bf16 %v4877_v24  ;;  %v5008_v49 = vunpack.c.h.bf16 %v4877_v24  ;;  %v4649_v11 = vunpack.c.l.bf16 %v4518_v53  ;;  %v4218_v15 = vpack.c.bf16 %v4129_v33, %v4129_v33  ;;  %v3643_v24 = vpop.f32.mrf.mxu3 }
 0x875   : > { %v10090_v45 = vpop.eup %10089  ;;  %v5733_v17 = vpack.c.bf16 %v5641_v23, %v5640_v2  ;;  %v5502_v55 = vunpack.c.l.bf16 %v5374_v42  ;;  %v4349_v22 = vmax.f32 %v3989_v4, 0.0  ;;  %v3995_v36 = vunpack.c.h.bf16 %v3721_v5 }
 0x876   : > { %v6100_v29 = vmul.f32 0.6931472, %v10090_v45  ;;  %v5263_v28 = vmul.f32 1.442695, %v5007_v7  ;;  %v5265_v19 = vmul.f32 1.442695, %v5008_v49  ;;  %v4134_v57 = vmul.f32 %v3994_v10, %v3854_v9 }
 0x877   : > { %v5860_v37 = vunpack.c.l.bf16 %v5733_v17  ;;  %v5861_v21 = vunpack.c.h.bf16 %v5733_v17  ;;  %v5642_v32 = vadd.f32 1.0, %v5502_v55  ;;  %v4789_v2 = vsub.f32 0.0, %v4649_v11 }
 0x878   : > { %v6230_v3 = vpack.c.bf16 %v6100_v29, %v6100_v29  ;;  %v4354_v30 = vmax.f32 %v3994_v10, 0.0  ;;  %v4135_v42 = vmul.f32 %v3995_v36, %v3855_v59  ;;  %v4355_v29 = vmax.f32 %v3995_v36, 0.0 }
 0x879   : > { %10091 = vlog2.f32 %v5860_v37  ;;  %v5734_v23 = vpack.c.bf16 %v5642_v32, %v5642_v32  ;;  %v4878_v17 = vpack.c.bf16 %v4789_v2, %v4789_v2  ;;  %v4438_v37 = vpack.c.bf16 %v4349_v22, %v4349_v22 }
 0x87a   : > { %v6495_v47 = vunpack.c.l.bf16 %v6230_v3  ;;  %10093 = vlog2.f32 %v5861_v21  ;;  %v4521_v33 = vand.u32 2147450879, %v3721_v5  ;;  %v14739_v21 = vpack.c.bf16 %v4135_v42, %v4134_v57 }
 0x87b   : > { %10095 = vpow2.f32 %v5263_v28  ;;  %v5862_v53 = vunpack.c.l.bf16 %v5734_v23  ;;  %v5009_v3 = vunpack.c.l.bf16 %v4878_v17  ;;  %v3644_v32 = vadd.f32 %v3643_v24, %v13747_v58 }
 0x87c   : > { %v6635_v45 = vadd.f32 %v6495_v47, %v14694_v41  ;;  %10097 = vpow2.f32 %v5265_v19  ;;  %15833 = vst [vmem:[#allocation46_spill] sm:$0xff] %v14739_v21  ;;  %v14742_v9 = vpack.c.bf16 %v4355_v29, %v4354_v30  ;;  %v4654_v7 = vunpack.c.l.bf16 %v4521_v33  ;;  %v454_v19 = vld [vmem:[%s10386_s25 + $0x1f4] sm:$0xf] }
 0x87d   : > { %10099 = vlog2.f32 %v5862_v53  ;;  %v4655_v41 = vunpack.c.h.bf16 %v4521_v33  ;;  %v15834_v59 = vunpack.c.h.bf16 %v14643_v20  ;;  %v5267_v11 = vmul.f32 1.442695, %v5009_v3 }
 0x87e   : > { %v6730_v4 = vpack.c.bf16 %v6635_v45, %v6635_v45  ;;  %v14751_v2 = vunpack.c.l.bf16 %v4438_v37  ;;  %v4794_v36 = vsub.f32 0.0, %v4654_v7  ;;  %v14753_v30 = vunpack.c.l.bf16 %v4218_v15 }
 0x87f   : > { %v10092_v28 = vpop.eup %10091  ;;  %v14747_v55 = vadd.f32 %v6494_v16, %v15834_v59  ;;  %v4795_v23 = vsub.f32 0.0, %v4655_v41  ;;  %10101 = vpow2.f32 %v5267_v11  ;;  %v3722_v24 = vpack.c.bf16 %v3644_v32, %v3644_v32 }
 0x880   : > { %v10094_v49 = vpop.eup %10093  ;;  %v14749_v10 = vunpack.c.l.bf16 %v6730_v4  ;;  %v6110_v5 = vmul.f32 0.6931472, %v10092_v28  ;;  %15835 = vst [vmem:[#allocation40_spill] sm:$0xff] %v14753_v30  ;;  %v3856_v45 = vunpack.c.l.bf16 %v454_v19  ;;  %v6709_v32 = vpack.c.bf16 %v14504_v18, %v14496_v26 }
 0x881   : > { %v10096_v22 = vpop.eup %10095  ;;  %v6112_v47 = vmul.f32 0.6931472, %v10094_v49  ;;  %v4881_v20 = vpack.c.bf16 %v4795_v23, %v4794_v36  ;;  %v3996_v33 = vunpack.c.l.bf16 %v3722_v24  ;;  %v4522_v15 = vand.u32 2147450879, %v3722_v24 }
 0x882   : > { %v10098_v57 = vpop.eup %10097  ;;  %v6819_v21 = vunpack.c.h.bf16 %v6709_v32 }
 0x883   : > { %v5377_v17 = vpack.c.bf16 %v10098_v57, %v10096_v22  ;;  %v6233_v29 = vpack.c.bf16 %v6112_v47, %v6110_v5  ;;  %v10100_v4 = vpop.eup %10099  ;;  %v5014_v41 = vunpack.c.l.bf16 %v4881_v20  ;;  %v5015_v19 = vunpack.c.h.bf16 %v4881_v20 }
 0x884   : > { %v6114_v7 = vmul.f32 0.6931472, %v10100_v4  ;;  %v4136_v49 = vmul.f32 %v3996_v33, %v3856_v45  ;;  %v6811_v22 = vunpack.c.l.bf16 %v14672_v60  ;;  %v6812_v5 = vunpack.c.h.bf16 %v14672_v60 }
 0x885   : > { %v5507_v3 = vunpack.c.l.bf16 %v5377_v17  ;;  %v5508_v28 = vunpack.c.h.bf16 %v5377_v17  ;;  %v10102_v47 = vpop.eup %10101  ;;  %v6500_v36 = vunpack.c.l.bf16 %v6233_v29  ;;  %v5277_v57 = vmul.f32 1.442695, %v5014_v41 }
 0x886   : > { %v6234_v23 = vpack.c.bf16 %v6114_v7, %v6114_v7  ;;  %v5279_v42 = vmul.f32 1.442695, %v5015_v19  ;;  %v6501_v17 = vunpack.c.h.bf16 %v6233_v29  ;;  %v5378_v53 = vpack.c.bf16 %v10102_v47, %v10102_v47 }
 0x887   : > { %v5647_v59 = vadd.f32 1.0, %v5507_v3  ;;  %v5648_v11 = vadd.f32 1.0, %v5508_v28  ;;  %v4656_v37 = vunpack.c.l.bf16 %v4522_v15  ;;  %10103 = vpow2.f32 %v5277_v57  ;;  %v3587_v57 = vpop.f32.mrf.mxu2 }
 0x888   : > { %v6502_v26 = vunpack.c.l.bf16 %v6234_v23  ;;  %v4222_v18 = vpack.c.bf16 %v4136_v49, %v4136_v49  ;;  %v6818_v20 = vunpack.c.l.bf16 %v6709_v32  ;;  %v5509_v3 = vunpack.c.l.bf16 %v5378_v53  ;;  %v3528_v23 = vpop.f32.mrf.mxu1 }
 0x889   : > { %v5737_v24 = vpack.c.bf16 %v5648_v11, %v5647_v59  ;;  %10105 = vpow2.f32 %v5279_v42  ;;  %v4356_v60 = vmax.f32 %v3996_v33, 0.0  ;;  %v4796_v16 = vsub.f32 0.0, %v4656_v37 }
 0x88a   : > { %v6642_v28 = vadd.f32 %v6502_v26, %v14715_v52  ;;  %v15836_v7 = vunpack.c.l.bf16 %v14691_v40  ;;  %v15837_v29 = vunpack.c.h.bf16 %v14691_v40  ;;  %v5649_v19 = vadd.f32 1.0, %v5509_v3 }
 0x88b   : > { %v5867_v45 = vunpack.c.l.bf16 %v5737_v24  ;;  %v5868_v4 = vunpack.c.h.bf16 %v5737_v24  ;;  %v4882_v49 = vpack.c.bf16 %v4796_v16, %v4796_v16  ;;  %v15838_v53 = vunpack.c.l.bf16 %v15818_v14 }
 0x88c   : > { %v14767_v41 = vadd.f32 %v6500_v36, %v15836_v7  ;;  %v14771_v15 = vadd.f32 %v6501_v17, %v15837_v29  ;;  %v15839_v52 = vunpack.c.h.bf16 %v15818_v14  ;;  %v5738_v37 = vpack.c.bf16 %v5649_v19, %v5649_v19 }
 0x88d   : > { %10107 = vlog2.f32 %v5867_v45  ;;  %v7091_v42 = vsub.f32 %v6811_v22, %v15838_v53  ;;  %v15840_v32 = vunpack.c.l.bf16 %v14365_v63  ;;  %v15841_v11 = vunpack.c.h.bf16 %v14365_v63  ;;  %v10104_v22 = vpop.eup %10103 }
 0x88e   : > { %10109 = vlog2.f32 %v5868_v4  ;;  %v7092_v33 = vsub.f32 %v6812_v5, %v15839_v52  ;;  %v15842_v40 = vsub.f32 %v14462_v51, %v14351_v39  ;;  %v15843_v36 = vsub.f32 %v14498_v0, %v14472_v6 }
 0x88f   : > { %v7098_v59 = vsub.f32 %v6818_v20, %v15840_v32  ;;  %v7099_v47 = vsub.f32 %v6819_v21, %v15841_v11  ;;  %v6734_v17 = vpack.c.bf16 %v6642_v28, %v6642_v28  ;;  %v4442_v14 = vpack.c.bf16 %v4356_v60, %v4356_v60  ;;  %v10106_v26 = vpop.eup %10105 }
 0x890   : > { %v7205_v16 = vpack.c.bf16 %v15843_v36, %v15842_v40  ;;  %v5016_v5 = vunpack.c.l.bf16 %v4882_v49  ;;  %v14787_v24 = vunpack.c.l.bf16 %v4222_v18  ;;  %v5869_v20 = vunpack.c.l.bf16 %v5738_v37  ;;  %v457_v49 = vld [vmem:[%s10386_s25 + $0x208] sm:$0xff] }
 0x891   : > { %v7203_v45 = vpack.c.bf16 %v7098_v59, %v7091_v42  ;;  %v7204_v63 = vpack.c.bf16 %v7099_v47, %v7092_v33  ;;  %v5381_v4 = vpack.c.bf16 %v10106_v26, %v10104_v22  ;;  %v3529_v51 = vadd.f32 %v3528_v23, %v13737_v1 }
 0x892   : > { %v7310_v21 = vunpack.c.h.bf16 %v7205_v16  ;;  %v5281_v39 = vmul.f32 1.442695, %v5016_v5  ;;  %v3588_v6 = vadd.f32 %v3587_v57, %v13730_v12  ;;  %10111 = vlog2.f32 %v5869_v20 }
 0x893   : > { %v10108_v0 = vpop.eup %10107  ;;  %v7308_v3 = vunpack.c.h.bf16 %v7203_v45  ;;  %v7309_v28 = vunpack.c.h.bf16 %v7204_v63  ;;  %v7303_v60 = vunpack.c.l.bf16 %v7205_v16  ;;  %v5514_v29 = vunpack.c.l.bf16 %v5381_v4 }
 0x894   : > { %v10110_v7 = vpop.eup %10109  ;;  %v6124_v18 = vmul.f32 0.6931472, %v10108_v0  ;;  %v5515_v19 = vunpack.c.h.bf16 %v5381_v4  ;;  %10113 = vpow2.f32 %v5281_v39  ;;  %v7467_v52 = vsel %vm1407_vm0, %v7310_v21, 0.0 }
 0x895   : > { %v6126_v53 = vmul.f32 0.6931472, %v10110_v7  ;;  %v7465_v42 = vadd.f32 %v14406_v35, %v7308_v3  ;;  %v7301_v33 = vunpack.c.l.bf16 %v7203_v45  ;;  %v5654_v37 = vadd.f32 1.0, %v5514_v29  ;;  %v3646_v7 = vpop.f32.mrf.mxu3 }
 0x896   : > { %v5655_v32 = vadd.f32 1.0, %v5515_v19  ;;  %v7302_v59 = vunpack.c.l.bf16 %v7204_v63  ;;  %v3725_v11 = vpack.c.bf16 %v3588_v6, %v3529_v51  ;;  %v3861_v16 = vunpack.c.l.bf16 %v457_v49 }
 0x897   : > { %v14794_v47 = vpack.c.bf16 %v6126_v53, %v6124_v18  ;;  %v7466_v40 = vadd.f32 %v7465_v42, %v7309_v28  ;;  %v7456_v36 = vadd.f32 %v14408_v62, %v7301_v33  ;;  %v3862_v57 = vunpack.c.h.bf16 %v457_v49  ;;  %v458_v53 = vld [vmem:[%s10386_s25 + $0x210] sm:$0xf]  ;;  %v14804_v42 = vpop.xlane.xlu2 %7925 }
 0x898   : > { %v5741_v23 = vpack.c.bf16 %v5655_v32, %v5654_v37  ;;  %v4001_v22 = vunpack.c.l.bf16 %v3725_v11  ;;  %v4002_v5 = vunpack.c.h.bf16 %v3725_v11  ;;  %v10112_v26 = vpop.eup %10111  ;;  %v14797_v20 = vunpack.c.l.bf16 %v6734_v17  ;;  %15844 = vst [vmem:[#allocation35_spill] sm:$0xff] %v14804_v42 }
 0x899   : > { %v14799_v35 = vunpack.c.l.bf16 %v4442_v14  ;;  %v7468_v45 = vadd.f32 %v7467_v52, %v7466_v40  ;;  %v7457_v21 = vadd.f32 %v7456_v36, %v7302_v59  ;;  %v6128_v63 = vmul.f32 0.6931472, %v10112_v26  ;;  %v3589_v26 = vpop.f32.mrf.mxu2 }
 0x89a   : > { %v10114_v4 = vpop.eup %10113  ;;  %v5874_v39 = vunpack.c.l.bf16 %v5741_v23  ;;  %v5875_v51 = vunpack.c.h.bf16 %v5741_v23  ;;  %v7458_v6 = vsel %vm1407_vm0, %v7303_v60, 0.0  ;;  %v6507_v62 = vunpack.c.l.bf16 %v14794_v47  ;;  %v3530_v23 = vpop.f32.mrf.mxu1 }
 0x89b   : > { %v5382_v0 = vpack.c.bf16 %v10114_v4, %v10114_v4  ;;  %7469 = vadd.xlane.f32.xlu0 %v7468_v45  ;;  %v7459_v3 = vadd.f32 %v7458_v6, %v7457_v21  ;;  %v4141_v28 = vmul.f32 %v4001_v22, %v3861_v16  ;;  %v6238_v17 = vpack.c.bf16 %v6128_v63, %v6128_v63 }
 0x89c   : > { %10115 = vlog2.f32 %v5874_v39  ;;  %v4142_v14 = vmul.f32 %v4002_v5, %v3862_v57  ;;  %v4361_v18 = vmax.f32 %v4001_v22, 0.0  ;;  %v4362_v19 = vmax.f32 %v4002_v5, 0.0 }
 0x89d   : > { %10117 = vlog2.f32 %v5875_v51  ;;  %v5516_v29 = vunpack.c.l.bf16 %v5382_v0  ;;  %7460 = vadd.xlane.f32.xlu1 %v7459_v3  ;;  %v4525_v49 = vand.u32 2147450879, %v3725_v11  ;;  %v6508_v52 = vunpack.c.h.bf16 %v14794_v47 }
 0x89e   : > { %v6509_v33 = vunpack.c.l.bf16 %v6238_v17  ;;  %v3647_v37 = vadd.f32 %v3646_v7, %v13747_v58  ;;  %v15845_v32 = vunpack.c.l.bf16 %v14725_v31  ;;  %v14815_v57 = vpack.c.bf16 %v4142_v14, %v4141_v28 }
 0x89f   : > { %v5656_v40 = vadd.f32 1.0, %v5516_v29  ;;  %v4661_v36 = vunpack.c.l.bf16 %v4525_v49  ;;  %v4662_v16 = vunpack.c.h.bf16 %v4525_v49  ;;  %v3863_v5 = vunpack.c.l.bf16 %v458_v53 }
 0x8a0   : > { %v14812_v59 = vadd.f32 %v6507_v62, %v15845_v32  ;;  %v6649_v11 = vadd.f32 %v6509_v33, %v14751_v2  ;;  %15846 = vst [vmem:[#allocation37_spill] sm:$0xff] %v14815_v57  ;;  %v3726_v22 = vpack.c.bf16 %v3647_v37, %v3647_v37  ;;  %v14817_v47 = vpack.c.bf16 %v4362_v19, %v4361_v18  ;;  %v15867_v32 = vld [vmem:[#allocation69_spill] sm:$0xff] }
 0x8a1   : > { %v5742_v45 = vpack.c.bf16 %v5656_v40, %v5656_v40  ;;  %v4801_v21 = vsub.f32 0.0, %v4661_v36  ;;  %v4802_v4 = vsub.f32 0.0, %v4662_v16  ;;  %v3531_v62 = vadd.f32 %v3530_v23, %v13737_v1  ;;  %v461_v36 = vld [vmem:[%s10386_s25 + $0x224] sm:$0xff] }
 0x8a2   : > { %v10116_v63 = vpop.eup %10115  ;;  %v6738_v39 = vpack.c.bf16 %v6649_v11, %v6649_v11  ;;  %v4003_v51 = vunpack.c.l.bf16 %v3726_v22  ;;  %v4526_v6 = vand.u32 2147450879, %v3726_v22  ;;  %v3590_v7 = vadd.f32 %v3589_v26, %v13730_v12  ;;  %v14830_v22 = vpop.xlane.xlu2 %7928 }
 0x8a3   : > { %v10118_v0 = vpop.eup %10117  ;;  %v6138_v3 = vmul.f32 0.6931472, %v10116_v63  ;;  %v5876_v2 = vunpack.c.l.bf16 %v5742_v45  ;;  %v4885_v28 = vpack.c.bf16 %v4802_v4, %v4801_v21  ;;  %v15848_v33 = vunpack.c.h.bf16 %v14725_v31  ;;  %15849 = vst [vmem:[#allocation39_spill] sm:$0xff] %v14830_v22  ;;  %v3648_v45 = vpop.f32.mrf.mxu3  ;;  %v15879_v22 = vld [vmem:[#allocation30_spill] sm:$0xff] }
 0x8a4   : > { %v14821_v17 = vunpack.c.l.bf16 %v6738_v39  ;;  %v6140_v14 = vmul.f32 0.6931472, %v10118_v0  ;;  %v4143_v18 = vmul.f32 %v4003_v51, %v3863_v5  ;;  %v4363_v29 = vmax.f32 %v4003_v51, 0.0 }
 0x8a5   : > { %10119 = vlog2.f32 %v5876_v2  ;;  %v5021_v19 = vunpack.c.l.bf16 %v4885_v28  ;;  %v5022_v49 = vunpack.c.h.bf16 %v4885_v28  ;;  %v4663_v53 = vunpack.c.l.bf16 %v4526_v6 }
 0x8a6   : > { %15847 = vst [vmem:[#allocation42_spill] sm:$0xff] %v14821_v17  ;;  %v14825_v37 = vadd.f32 %v6508_v52, %v15848_v33  ;;  %v6241_v1 = vpack.c.bf16 %v6140_v14, %v6138_v3  ;;  %v3729_v11 = vpack.c.bf16 %v3590_v7, %v3531_v62  ;;  %v4226_v31 = vpack.c.bf16 %v4143_v18, %v4143_v18 }
 0x8a7   : > { %v5291_v12 = vmul.f32 1.442695, %v5021_v19  ;;  %v5293_v16 = vmul.f32 1.442695, %v5022_v49  ;;  %v4803_v23 = vsub.f32 0.0, %v4663_v53  ;;  %v4446_v52 = vpack.c.bf16 %v4363_v29, %v4363_v29 }
 0x8a8   : > { %v6514_v21 = vunpack.c.l.bf16 %v6241_v1  ;;  %v3868_v63 = vunpack.c.l.bf16 %v461_v36  ;;  %v6515_v39 = vunpack.c.h.bf16 %v6241_v1  ;;  %v3869_v51 = vunpack.c.h.bf16 %v461_v36  ;;  %v462_v19 = vld [vmem:[%s10386_s25 + $0x22c] sm:$0xf]  ;;  %s7981_s25 = smul.u32 160, %s10325_s17 }
 0x8a9   : > { %10121 = vpow2.f32 %v5291_v12  ;;  %v4886_v4 = vpack.c.bf16 %v4803_v23, %v4803_v23  ;;  %v4008_v6 = vunpack.c.l.bf16 %v3729_v11  ;;  %v4009_v3 = vunpack.c.h.bf16 %v3729_v11 }
 0x8aa   : > { %10123 = vpow2.f32 %v5293_v16  ;;  %v4529_v2 = vand.u32 2147450879, %v3729_v11  ;;  %v3649_v28 = vadd.f32 %v3648_v45, %v13747_v58  ;;  %v14836_v14 = vunpack.c.l.bf16 %v4446_v52 }
 0x8ab   : > { %v10120_v62 = vpop.eup %10119  ;;  %v5023_v0 = vunpack.c.l.bf16 %v4886_v4  ;;  %v14838_v18 = vunpack.c.l.bf16 %v4226_v31  ;;  %v4368_v29 = vmax.f32 %v4008_v6, 0.0  ;;  %v4148_v53 = vmul.f32 %v4008_v6, %v3868_v63 }
 0x8ac   : > { %v6142_v7 = vmul.f32 0.6931472, %v10120_v62  ;;  %v4369_v33 = vmax.f32 %v4009_v3, 0.0  ;;  %v4668_v1 = vunpack.c.l.bf16 %v4529_v2  ;;  %v4149_v36 = vmul.f32 %v4009_v3, %v3869_v51 }
 0x8ad   : > { %v5295_v49 = vmul.f32 1.442695, %v5023_v0  ;;  %v4669_v16 = vunpack.c.h.bf16 %v4529_v2  ;;  %v3730_v23 = vpack.c.bf16 %v3649_v28, %v3649_v28  ;;  %v3870_v45 = vunpack.c.l.bf16 %v462_v19  ;;  %v14855_v28 = vpop.permute.xlu2 %7897 }
 0x8ae   : > { %v6242_v12 = vpack.c.bf16 %v6142_v7, %v6142_v7  ;;  %v14841_v11 = vpack.c.bf16 %v4369_v33, %v4368_v29  ;;  %v4808_v58 = vsub.f32 0.0, %v4668_v1  ;;  %v15850_v0 = vunpack.c.l.bf16 %v14742_v9  ;;  %15852 = vst [vmem:[#allocation43_spill] sm:$0xff] %v14855_v28 }
 0x8af   : > { %v10122_v4 = vpop.eup %10121  ;;  %10125 = vpow2.f32 %v5295_v49  ;;  %v4809_v31 = vsub.f32 0.0, %v4669_v16  ;;  %v4010_v40 = vunpack.c.l.bf16 %v3730_v23  ;;  %v4530_v5 = vand.u32 2147450879, %v3730_v23 }
 0x8b0   : > { %v10124_v52 = vpop.eup %10123  ;;  %v6516_v62 = vunpack.c.l.bf16 %v6242_v12  ;;  %v14845_v63 = vadd.f32 %v6514_v21, %v15850_v0  ;;  %v15851_v6 = vunpack.c.h.bf16 %v14742_v9  ;;  %v14853_v2 = vpack.c.bf16 %v14524_v27, %v14520_v56  ;;  %v14863_v27 = vpop.xlane.xlu1 %7931 }
 0x8b1   : > { %v5385_v3 = vpack.c.bf16 %v10124_v52, %v10122_v4  ;;  %v14858_v29 = vpack.c.bf16 %v4149_v36, %v4148_v53  ;;  %v4889_v19 = vpack.c.bf16 %v4809_v31, %v4808_v58  ;;  %v4370_v49 = vmax.f32 %v4010_v40, 0.0  ;;  %15854 = vst [vmem:[#allocation50_spill] sm:$0xff] %v14863_v27 }
 0x8b2   : > { %v14849_v51 = vadd.f32 %v6515_v39, %v15851_v6  ;;  %v6656_v7 = vadd.f32 %v6516_v62, %v14799_v35  ;;  %v4670_v9 = vunpack.c.l.bf16 %v4530_v5  ;;  %v14861_v23 = vmul.f32 %v4010_v40, %v3870_v45  ;;  %v15862_v35 = vld [vmem:[#allocation38_spill] sm:$0xff] }
 0x8b3   : > { %15853 = vst [vmem:[#allocation45_spill] sm:$0xff] %v14858_v29  ;;  %v5521_v33 = vunpack.c.l.bf16 %v5385_v3  ;;  %v5522_v21 = vunpack.c.h.bf16 %v5385_v3  ;;  %v5028_v12 = vunpack.c.l.bf16 %v4889_v19  ;;  %v5029_v16 = vunpack.c.h.bf16 %v4889_v19  ;;  %v15855_v3 = vld [vmem:[#allocation41_spill] sm:$0xff] }
 0x8b4   : > { %v6742_v39 = vpack.c.bf16 %v6656_v7, %v6656_v7  ;;  %v4810_v53 = vsub.f32 0.0, %v4670_v9  ;;  %v4450_v31 = vpack.c.bf16 %v4370_v49, %v4370_v49  ;;  %v15856_v7 = vld [vmem:[#allocation23_spill] sm:$0xff]  ;;  %v7319_v1 = vunpack.c.h.bf16 %v15862_v35 }
 0x8b5   : > { %v10126_v56 = vpop.eup %10125  ;;  %v5661_v4 = vadd.f32 1.0, %v5521_v33  ;;  %v5662_v52 = vadd.f32 1.0, %v5522_v21  ;;  %v5305_v58 = vmul.f32 1.442695, %v5028_v12  ;;  %v5307_v62 = vmul.f32 1.442695, %v5029_v16  ;;  %v14873_v16 = vpop.xlane.xlu2 %7937 }
 0x8b6   : > { %v5386_v36 = vpack.c.bf16 %v10126_v56, %v10126_v56  ;;  %v4890_v6 = vpack.c.bf16 %v4810_v53, %v4810_v53  ;;  %v6717_v40 = vpack.c.bf16 %v15856_v7, %v15855_v3  ;;  %v14869_v45 = vunpack.c.l.bf16 %v6742_v39  ;;  %15857 = vst [vmem:[#allocation47_spill] sm:$0xff] %v14873_v16  ;;  %v15860_v7 = vld [vmem:[#allocation22_spill] sm:$0xff]  ;;  %v15868_v33 = vld [vmem:[#allocation75_spill] sm:$0xff] }
 0x8b7   : > { %v5745_v0 = vpack.c.bf16 %v5662_v52, %v5661_v4  ;;  %10127 = vpow2.f32 %v5305_v58  ;;  %v14875_v56 = vunpack.c.l.bf16 %v4450_v31  ;;  %v6825_v4 = vunpack.c.l.bf16 %v14853_v2  ;;  %v15870_v16 = vld [vmem:[#allocation82_spill] sm:$0xff] }
 0x8b8   : > { %v5523_v19 = vunpack.c.l.bf16 %v5386_v36  ;;  %10129 = vpow2.f32 %v5307_v62  ;;  %v5030_v12 = vunpack.c.l.bf16 %v4890_v6  ;;  %v6826_v52 = vunpack.c.h.bf16 %v14853_v2 }
 0x8b9   : > { %v5881_v21 = vunpack.c.l.bf16 %v5745_v0  ;;  %v5882_v9 = vunpack.c.h.bf16 %v5745_v0  ;;  %v6832_v53 = vunpack.c.l.bf16 %v6717_v40  ;;  %v6833_v36 = vunpack.c.h.bf16 %v6717_v40  ;;  %v15859_v0 = vld [vmem:[#allocation31_spill] sm:$0xff] }
 0x8ba   : > { %v5663_v49 = vadd.f32 1.0, %v5523_v19  ;;  %v5309_v39 = vmul.f32 1.442695, %v5030_v12  ;;  %v15858_v3 = vunpack.c.l.bf16 %v14615_v43  ;;  %v7318_v6 = vunpack.c.h.bf16 %v15859_v0  ;;  %v15861_v19 = vld [vmem:[#allocation24_spill] sm:$0xff]  ;;  %v15866_v0 = vld [vmem:[#allocation74_spill] sm:$0xff] }
 0x8bb   : > { %10131 = vlog2.f32 %v5881_v21  ;;  %v6966_v31 = vunpack.c.h.bf16 %v15860_v7  ;;  %v6973_v5 = vunpack.c.h.bf16 %v15861_v19  ;;  %v15863_v12 = vunpack.c.l.bf16 %v14621_v34 }
 0x8bc   : > { %10133 = vlog2.f32 %v5882_v9  ;;  %v5746_v58 = vpack.c.bf16 %v5663_v49, %v5663_v49  ;;  %v7472_v62 = vadd.f32 %v14582_v61, %v15858_v3  ;;  %v7320_v9 = vunpack.c.h.bf16 %v14615_v43  ;;  %v14890_v61 = vpop.xlane.xlu1 %7940 }
 0x8bd   : > { %10135 = vpow2.f32 %v5309_v39  ;;  %v10128_v2 = vpop.eup %10127  ;;  %v7321_v49 = vunpack.c.h.bf16 %v14621_v34  ;;  %15864 = vst [vmem:[#allocation53_spill] sm:$0xff] %v14890_v61  ;;  %v7480_v3 = vadd.f32 %v7319_v1, %v7318_v6  ;;  %v15865_v39 = vld [vmem:[#allocation68_spill] sm:$0xff]  ;;  %v14898_v35 = vpack.c.bf16 %v15868_v33, %v15867_v32  ;;  %v14906_v1 = vpop.xlane.xlu0 %7934 }
 0x8be   : > { %v5883_v21 = vunpack.c.l.bf16 %v5746_v58  ;;  %v7473_v40 = vadd.f32 %v7472_v62, %v15863_v12  ;;  %v10130_v60 = vpop.eup %10129  ;;  %v14894_v26 = vpack.c.bf16 %v15866_v0, %v15865_v39  ;;  %v15869_v58 = vld [vmem:[#allocation76_spill] sm:$0xff]  ;;  %v15871_v62 = vld [vmem:[#allocation73_spill] sm:$0xff]  ;;  %15873 = vst [vmem:[#allocation48_spill] sm:$0xff] %v14906_v1  ;;  %v15874_v6 = vunpack.c.l.bf16 %v15860_v7 }
 0x8bf   : > { %v14902_v28 = vpack.c.bf16 %v15870_v16, %v15869_v58  ;;  %v5389_v43 = vpack.c.bf16 %v10130_v60, %v10128_v2  ;;  %v6838_v34 = vunpack.c.h.bf16 %v15871_v62  ;;  %v15872_v12 = vld [vmem:[#allocation80_spill] sm:$0xff]  ;;  %v7106_v0 = vsub.f32 %v6826_v52, %v6966_v31  ;;  %v15876_v60 = vld [vmem:[#allocation21_spill] sm:$0xff]  ;;  %v14918_v31 = vpop.xlane.xlu2 %7946 }
 0x8c0   : > { %10137 = vlog2.f32 %v5883_v21  ;;  %v6845_v29 = vunpack.c.h.bf16 %v15872_v12  ;;  %v7105_v39 = vsub.f32 %v6825_v4, %v15874_v6  ;;  %v15875_v32 = vunpack.c.l.bf16 %v15861_v19  ;;  %v15877_v2 = vld [vmem:[#allocation28_spill] sm:$0xff]  ;;  %v15880_v12 = vld [vmem:[#allocation17_spill] sm:$0xff]  ;;  %v15882_v6 = vld [vmem:[#allocation66_spill] sm:$0xff] }
 0x8c1   : > { %v10132_v61 = vpop.eup %10131  ;;  %v7113_v57 = vsub.f32 %v6833_v36, %v6973_v5  ;;  %v5528_v58 = vunpack.c.l.bf16 %v5389_v43  ;;  %v5529_v21 = vunpack.c.h.bf16 %v5389_v43  ;;  %v15878_v62 = vsub.f32 %v15876_v60, %v15877_v2  ;;  %v15884_v2 = vld [vmem:[#allocation72_spill] sm:$0xff] }
 0x8c2   : > { %v7112_v33 = vsub.f32 %v6832_v53, %v15875_v32  ;;  %v10134_v27 = vpop.eup %10133  ;;  %v6152_v16 = vmul.f32 0.6931472, %v10132_v61  ;;  %v15881_v30 = vsub.f32 %v15879_v22, %v15880_v12  ;;  %v7481_v52 = vadd.f32 %v7480_v3, %v7320_v9 }
 0x8c3   : > { %v10136_v1 = vpop.eup %10135  ;;  %v6154_v42 = vmul.f32 0.6931472, %v10134_v27  ;;  %v7211_v4 = vpack.c.bf16 %v7113_v57, %v7106_v0  ;;  %v5668_v53 = vadd.f32 1.0, %v5528_v58  ;;  %v5669_v5 = vadd.f32 1.0, %v5529_v21 }
 0x8c4   : > { %v7212_v17 = vpack.c.bf16 %v15881_v30, %v15878_v62  ;;  %v7210_v7 = vpack.c.bf16 %v7112_v33, %v7105_v39  ;;  %v5390_v36 = vpack.c.bf16 %v10136_v1, %v10136_v1  ;;  %v15883_v32 = vunpack.c.h.bf16 %v15882_v6  ;;  %v14927_v12 = vpop.xlane.xlu1 %7949  ;;  %v15886_v6 = vld [vmem:[#allocation27_spill] sm:$0xff] }
 0x8c5   : > { %v14920_v61 = vpack.c.bf16 %v6154_v42, %v6152_v16  ;;  %v15885_v22 = vunpack.c.h.bf16 %v15884_v2  ;;  %v5749_v27 = vpack.c.bf16 %v5669_v5, %v5668_v53  ;;  %v7316_v57 = vunpack.c.l.bf16 %v7211_v4 }
 0x8c6   : > { %v7317_v19 = vunpack.c.l.bf16 %v7212_v17  ;;  %v7315_v43 = vunpack.c.l.bf16 %v7210_v7  ;;  %v7118_v60 = vsub.f32 %v6838_v34, %v15883_v32  ;;  %v10138_v62 = vpop.eup %10137  ;;  %v5530_v39 = vunpack.c.l.bf16 %v5390_v36  ;;  %v14929_v34 = vpop.permute.xlu0 %7899 }
 0x8c7   : > { %v7125_v30 = vsub.f32 %v6845_v29, %v15885_v22  ;;  %v7322_v9 = vunpack.c.h.bf16 %v7210_v7  ;;  %v6156_v3 = vmul.f32 0.6931472, %v10138_v62  ;;  %v7323_v1 = vunpack.c.h.bf16 %v7211_v4  ;;  %v15887_v62 = vld [vmem:[#allocation26_spill] sm:$0xff] }
 0x8c8   : > { %v7474_v0 = vadd.f32 %v7473_v40, %v7315_v43  ;;  %v7476_v33 = vsel %vm1407_vm0, %v7317_v19, 0.0  ;;  %v5888_v58 = vunpack.c.l.bf16 %v5749_v27  ;;  %v5889_v42 = vunpack.c.h.bf16 %v5749_v27 }
 0x8c9   : > { %v5670_v16 = vadd.f32 1.0, %v5530_v39  ;;  %v7324_v21 = vunpack.c.h.bf16 %v7212_v17  ;;  %v6521_v29 = vunpack.c.l.bf16 %v14920_v61  ;;  %v6522_v53 = vunpack.c.h.bf16 %v14920_v61 }
 0x8ca   : > { %v6246_v5 = vpack.c.bf16 %v6156_v3, %v6156_v3  ;;  %v7475_v36 = vadd.f32 %v7474_v0, %v7316_v57  ;;  %10139 = vlog2.f32 %v5888_v58  ;;  %v7482_v40 = vadd.f32 %v7481_v52, %v7321_v49  ;;  %v14941_v57 = vpop.xlane.xlu2 %7955 }
 0x8cb   : > { %v5750_v7 = vpack.c.bf16 %v5670_v16, %v5670_v16  ;;  %v7485_v19 = vsel %vm1407_vm0, %v7324_v21, 0.0  ;;  %10141 = vlog2.f32 %v5889_v42  ;;  %v6721_v17 = vpack.c.bf16 %v14584_v46, %v15886_v6 }
 0x8cc   : > { %v6523_v4 = vunpack.c.l.bf16 %v6246_v5  ;;  %v7477_v43 = vadd.f32 %v7476_v33, %v7475_v36  ;;  %v7483_v2 = vadd.f32 %v7482_v40, %v7322_v9  ;;  %v6725_v22 = vpack.c.bf16 %v14664_v44, %v14650_v50  ;;  %v15892_v40 = vld [vmem:[#allocation32_spill] sm:$0xff] }
 0x8cd   : > { %v5890_v32 = vunpack.c.l.bf16 %v5750_v7  ;;  %v6980_v61 = vunpack.c.h.bf16 %v15887_v62  ;;  %v6839_v39 = vunpack.c.l.bf16 %v6721_v17  ;;  %v6840_v49 = vunpack.c.h.bf16 %v6721_v17  ;;  %v15891_v7 = vld [vmem:[#allocation25_spill] sm:$0xff] }
 0x8ce   : > { %v6663_v27 = vadd.f32 %v6523_v4, %v14836_v14  ;;  %7478 = vadd.xlane.f32.xlu2 %v7477_v43  ;;  %v6987_v52 = vunpack.c.h.bf16 %v14579_v25  ;;  %v7484_v3 = vadd.f32 %v7483_v2, %v7323_v1  ;;  %v6846_v0 = vunpack.c.l.bf16 %v6725_v22  ;;  %v14955_v6 = vpop.xlane.xlu0 %7943 }
 0x8cf   : > { %10143 = vlog2.f32 %v5890_v32  ;;  %v6847_v46 = vunpack.c.h.bf16 %v6725_v22  ;;  %v15888_v9 = vunpack.c.l.bf16 %v15887_v62  ;;  %v7120_v50 = vsub.f32 %v6840_v49, %v6980_v61 }
 0x8d0   : > { %v6746_v33 = vpack.c.bf16 %v6663_v27, %v6663_v27  ;;  %v7216_v44 = vpack.c.bf16 %v7125_v30, %v7118_v60  ;;  %v10140_v42 = vpop.eup %10139  ;;  %v7486_v16 = vadd.f32 %v7485_v19, %v7484_v3  ;;  %v15889_v14 = vunpack.c.l.bf16 %v14579_v25 }
 0x8d1   : > { %v7119_v58 = vsub.f32 %v6839_v39, %v15888_v9  ;;  %v7127_v5 = vsub.f32 %v6847_v46, %v6987_v52  ;;  %v15890_v36 = vsub.f32 %v14605_v54, %v14570_v38  ;;  %v15893_v1 = vsub.f32 %v15891_v7, %v15892_v40  ;;  %v10142_v43 = vpop.eup %10141  ;;  %v14962_v54 = vpop.xlane.xlu1 %7958 }
 0x8d2   : > { %v7126_v21 = vsub.f32 %v6846_v0, %v15889_v14  ;;  %v14957_v17 = vunpack.c.l.bf16 %v6746_v33  ;;  %v6166_v60 = vmul.f32 0.6931472, %v10140_v42  ;;  %v7325_v30 = vunpack.c.l.bf16 %v14894_v26  ;;  %7487 = vadd.xlane.f32.xlu1 %v7486_v16  ;;  %v14989_v40 = vpop.xlane.xlu2 %7964 }
 0x8d3   : > { %v14953_v4 = vpack.c.bf16 %v15893_v1, %v15890_v36  ;;  %v7326_v25 = vunpack.c.l.bf16 %v14898_v35  ;;  %v6168_v19 = vmul.f32 0.6931472, %v10142_v43  ;;  %v7218_v2 = vpack.c.bf16 %v7127_v5, %v7120_v50 }
 0x8d4   : > { %v7217_v32 = vpack.c.bf16 %v7126_v21, %v7119_v58  ;;  %v7327_v38 = vunpack.c.l.bf16 %v14902_v28  ;;  %v7156_v22 = vsub.f32 %v14869_v45, %v14787_v24  ;;  %v15894_v62 = vpack.c.bf16 %v14861_v23, %v14861_v23 }
 0x8d5   : > { %v7331_v27 = vunpack.c.l.bf16 %v14953_v4  ;;  %v7489_v39 = vadd.f32 %v7326_v25, %v7325_v30  ;;  %v10144_v49 = vpop.eup %10143  ;;  %v15895_v52 = vunpack.c.l.bf16 %v14817_v47  ;;  %v14976_v0 = vpack.c.bf16 %v6168_v19, %v6166_v60 }
 0x8d6   : > { %v14969_v61 = vunpack.c.l.bf16 %v15894_v62  ;;  %v7328_v46 = vunpack.c.l.bf16 %v7216_v44  ;;  %v7332_v33 = vunpack.c.h.bf16 %v14894_v26  ;;  %v6170_v9 = vmul.f32 0.6931472, %v10144_v49  ;;  %v14998_v49 = vpop.xlane.xlu0 %7952 }
 0x8d7   : > { %v14974_v3 = vadd.f32 %v6521_v29, %v15895_v52  ;;  %v7329_v58 = vunpack.c.l.bf16 %v7217_v32  ;;  %v7490_v50 = vadd.f32 %v7489_v39, %v7327_v38  ;;  %v7333_v23 = vunpack.c.h.bf16 %v14898_v35  ;;  %v15897_v38 = vld [vmem:[#allocation84_spill] sm:$0xff] }
 0x8d8   : > { %v15896_v42 = vunpack.c.h.bf16 %v14817_v47  ;;  %v7163_v14 = vsub.f32 %v14957_v17, %v14838_v18  ;;  %v7330_v21 = vunpack.c.l.bf16 %v7218_v2  ;;  %v7334_v29 = vunpack.c.h.bf16 %v14902_v28 }
 0x8d9   : > { %v6528_v5 = vunpack.c.l.bf16 %v14976_v0  ;;  %v6250_v36 = vpack.c.bf16 %v6170_v9, %v6170_v9  ;;  %v7491_v7 = vadd.f32 %v7490_v50, %v7328_v46  ;;  %v7494_v26 = vsel %vm1407_vm0, %v7331_v27, 0.0  ;;  %v15898_v27 = vld [vmem:[#allocation90_spill] sm:$0xff]  ;;  %v15002_v9 = vpop.xlane.xlu1 %7967  ;;  %v15900_v50 = vld [vmem:[#allocation33_spill] sm:$0xff] }
 0x8da   : > { %v14982_v16 = vadd.f32 %v6522_v53, %v15896_v42  ;;  %v6529_v35 = vunpack.c.h.bf16 %v14976_v0  ;;  %v7335_v1 = vunpack.c.h.bf16 %v7216_v44  ;;  %v7336_v47 = vunpack.c.h.bf16 %v7217_v32 }
 0x8db   : > { %v7498_v53 = vadd.f32 %v7333_v23, %v7332_v33  ;;  %v6530_v43 = vunpack.c.l.bf16 %v6250_v36  ;;  %v7492_v60 = vadd.f32 %v7491_v7, %v7329_v58  ;;  %v6729_v30 = vpack.c.bf16 %v14747_v55, %v14736_v48 }
 0x8dc   : > { %v6733_v28 = vpack.c.bf16 %v14771_v15, %v14767_v41  ;;  %v7337_v25 = vunpack.c.h.bf16 %v7218_v2  ;;  %v6852_v62 = vunpack.c.h.bf16 %v15897_v38  ;;  %v6859_v39 = vunpack.c.h.bf16 %v15898_v27  ;;  %v15899_v2 = vld [vmem:[#allocation29_spill] sm:$0xff] }
 0x8dd   : > { %v7499_v19 = vadd.f32 %v7498_v53, %v7334_v29  ;;  %v6670_v44 = vadd.f32 %v6530_v43, %v14875_v56  ;;  %v7493_v32 = vadd.f32 %v7492_v60, %v7330_v21  ;;  %v6853_v52 = vunpack.c.l.bf16 %v6729_v30  ;;  %v15901_v29 = vld [vmem:[#allocation77_spill] sm:$0xff] }
 0x8de   : > { %v6854_v0 = vunpack.c.h.bf16 %v6729_v30  ;;  %v7338_v46 = vunpack.c.h.bf16 %v14953_v4  ;;  %v6860_v48 = vunpack.c.l.bf16 %v6733_v28  ;;  %v6861_v55 = vunpack.c.h.bf16 %v6733_v28  ;;  %v15904_v53 = vld [vmem:[#allocation81_spill] sm:$0xff]  ;;  %v15907_v28 = vld [vmem:[#allocation78_spill] sm:$0xff] }
 0x8df   : > { %v7500_v33 = vadd.f32 %v7499_v19, %v7335_v1  ;;  %v6750_v41 = vpack.c.bf16 %v6670_v44, %v6670_v44  ;;  %v7495_v15 = vadd.f32 %v7494_v26, %v7493_v32  ;;  %v6994_v58 = vunpack.c.h.bf16 %v15899_v2  ;;  %v15908_v19 = vld [vmem:[#allocation83_spill] sm:$0xff]  ;;  %v15910_v44 = vld [vmem:[#allocation85_spill] sm:$0xff] }
 0x8e0   : > { %v7001_v23 = vunpack.c.h.bf16 %v15900_v50  ;;  %v15902_v36 = vunpack.c.h.bf16 %v15901_v29  ;;  %v15903_v21 = vunpack.c.l.bf16 %v15899_v2  ;;  %v15905_v4 = vunpack.c.h.bf16 %v15904_v53 }
 0x8e1   : > { %v7501_v42 = vadd.f32 %v7500_v33, %v7336_v47  ;;  %7496 = vadd.xlane.f32.xlu0 %v7495_v15  ;;  %v7134_v43 = vsub.f32 %v6854_v0, %v6994_v58  ;;  %v15906_v60 = vunpack.c.l.bf16 %v15900_v50  ;;  %v7220_v38 = vpack.c.bf16 %v15908_v19, %v15907_v28  ;;  %v15909_v47 = vld [vmem:[#allocation79_spill] sm:$0xff] }
 0x8e2   : > { %v7132_v56 = vsub.f32 %v6852_v62, %v15902_v36  ;;  %v7133_v7 = vsub.f32 %v6853_v52, %v15903_v21  ;;  %v7139_v1 = vsub.f32 %v6859_v39, %v15905_v4  ;;  %v7141_v26 = vsub.f32 %v6861_v55, %v7001_v23  ;;  %v15911_v62 = vld [vmem:[#allocation87_spill] sm:$0xff]  ;;  %v15040_v4 = vpop.xlane.xlu0 %7961 }
 0x8e3   : > { %v7140_v30 = vsub.f32 %v6860_v48, %v15906_v60  ;;  %v7502_v27 = vadd.f32 %v7501_v42, %v7337_v25  ;;  %v7221_v32 = vpack.c.bf16 %v15910_v44, %v15909_v47  ;;  %v15912_v33 = vld [vmem:[#allocation91_spill] sm:$0xff]  ;;  %v7503_v39 = vsel %vm1407_vm0, %v7338_v46, 0.0  ;;  %v15027_v25 = vpop.xlane.xlu2 %7973 }
 0x8e4   : > { %v7222_v52 = vpack.c.bf16 %v15912_v33, %v15911_v62  ;;  %v7223_v2 = vpack.c.bf16 %v7139_v1, %v7132_v56  ;;  %v7225_v0 = vpack.c.bf16 %v7141_v26, %v7134_v43  ;;  %v15913_v48 = vsub.f32 %v14749_v10, %v14696_v13  ;;  %v15917_v62 = vld [vmem:[#allocation51_spill] sm:$0xff] }
 0x8e5   : > { %v7224_v15 = vpack.c.bf16 %v7140_v30, %v7133_v7  ;;  %v15914_v55 = vsub.f32 %v14797_v20, %v14728_v8  ;;  %v7504_v50 = vadd.f32 %v7503_v39, %v7502_v27  ;;  %v7346_v23 = vunpack.c.h.bf16 %v7220_v38  ;;  %v7389_v30 = vpop.xlane.xlu1 %7388 }
 0x8e6   : > { %v7347_v42 = vunpack.c.h.bf16 %v7221_v32  ;;  %v7348_v29 = vunpack.c.h.bf16 %v7222_v52  ;;  %v15915_v36 = vunpack.c.l.bf16 %v14841_v11  ;;  %v15916_v46 = vunpack.c.h.bf16 %v14841_v11 }
 0x8e7   : > { %v7226_v58 = vpack.c.bf16 %v15914_v55, %v15913_v48  ;;  %v15037_v7 = vunpack.c.l.bf16 %v6750_v41  ;;  %7505 = vadd.xlane.f32.xlu2 %v7504_v50  ;;  %v7339_v10 = vunpack.c.l.bf16 %v7220_v38  ;;  %v7340_v20 = vunpack.c.l.bf16 %v7221_v32  ;;  %v15919_v55 = vld [vmem:[#allocation98_spill] sm:$0xff] }
 0x8e8   : > { %v15031_v56 = vadd.f32 %v6528_v5, %v15915_v36  ;;  %v15035_v21 = vadd.f32 %v6529_v35, %v15916_v46  ;;  %v7516_v8 = vadd.f32 %v7347_v42, %v7346_v23  ;;  %v7341_v53 = vunpack.c.l.bf16 %v7222_v52 }
 0x8e9   : > { %v7352_v13 = vunpack.c.h.bf16 %v7226_v58  ;;  %v7349_v1 = vunpack.c.h.bf16 %v7223_v2  ;;  %v7350_v43 = vunpack.c.h.bf16 %v7224_v15  ;;  %v7351_v60 = vunpack.c.h.bf16 %v7225_v0 }
 0x8ea   : > { %v7517_v11 = vadd.f32 %v7516_v8, %v7348_v29  ;;  %v7342_v35 = vunpack.c.l.bf16 %v7223_v2  ;;  %v7507_v26 = vadd.f32 %v7340_v20, %v7339_v10  ;;  %v7982_v41 = vlaneseq  ;;  %v15918_v2 = vld [vmem:[#allocation93_spill] sm:$0xff]  ;;  %v15920_v8 = vld [vmem:[#allocation35_spill] sm:$0xff]  ;;  %v15921_v20 = vld [vmem:[#allocation34_spill] sm:$0xff] }
 0x8eb   : > { %v7521_v5 = vsel %vm1407_vm0, %v7352_v13, 0.0  ;;  %v7343_v28 = vunpack.c.l.bf16 %v7224_v15  ;;  %v7344_v19 = vunpack.c.l.bf16 %v7225_v0  ;;  %v7345_v27 = vunpack.c.l.bf16 %v7226_v58  ;;  %v7398_v23 = vpop.xlane.xlu2 %7397 }
 0x8ec   : > { %v15043_v47 = vstv %s7981_s25  ;;  %v7518_v38 = vadd.f32 %v7517_v11, %v7349_v1  ;;  %v7508_v44 = vadd.f32 %v7507_v26, %v7341_v53  ;;  %v15045_v32 = vshrl.u32 %v7982_v41, 7 }
 0x8ed   : > { %v8044_v33 = vadd.f32 %v15917_v62, %v7389_v30  ;;  %v6737_v52 = vpack.c.bf16 %v14825_v37, %v14812_v59  ;;  %v6741_v39 = vpack.c.bf16 %v14849_v51, %v14845_v63  ;;  %v6866_v48 = vunpack.c.h.bf16 %v15918_v2  ;;  %v15922_v30 = vld [vmem:[#allocation46_spill] sm:$0xff]  ;;  %v7407_v24 = vpop.xlane.xlu1 %7406 }
 0x8ee   : > { %v6873_v15 = vunpack.c.h.bf16 %v15919_v55  ;;  %v7519_v0 = vadd.f32 %v7518_v38, %v7350_v43  ;;  %v7509_v58 = vadd.f32 %v7508_v44, %v7342_v35  ;;  %v7984_v50 = vadd.s32 8, %v15045_v32  ;;  %v15062_v35 = vpop.xlane.xlu0 %7970 }
 0x8ef   : > { %v8004_v42 = vadd.s32 %v15043_v47, %v15045_v32  ;;  %v6867_v29 = vunpack.c.l.bf16 %v6737_v52  ;;  %v6868_v36 = vunpack.c.h.bf16 %v6737_v52  ;;  %v6874_v46 = vunpack.c.l.bf16 %v6741_v39 }
 0x8f0   : > { %v6875_v13 = vunpack.c.h.bf16 %v6741_v39  ;;  %v7520_v59 = vadd.f32 %v7519_v0, %v7351_v60  ;;  %v7510_v37 = vadd.f32 %v7509_v58, %v7343_v28  ;;  %v8005_v63 = vadd.s32 %v15043_v47, %v7984_v50  ;;  %v15923_v60 = vld [vmem:[#allocation86_spill] sm:$0xff]  ;;  %v15929_v58 = vld [vmem:[#allocation88_spill] sm:$0xff] }
 0x8f1   : > { %vm8024_vm3 = vcmp.lt.s32.totalorder %v8004_v42, 300  ;;  %v7512_v51 = vsel %vm1407_vm0, %v7345_v27, 0.0  ;;  %v8045_v10 = vadd.f32 %v15920_v8, %v7398_v23  ;;  %v7008_v53 = vunpack.c.h.bf16 %v15921_v20  ;;  %v15926_v27 = vld [vmem:[#allocation92_spill] sm:$0xff]  ;;  %v15930_v50 = vld [vmem:[#allocation94_spill] sm:$0xff]  ;;  %v15931_v23 = vld [vmem:[#allocation89_spill] sm:$0xff] }
 0x8f2   : > { %v7522_v1 = vadd.f32 %v7521_v5, %v7520_v59  ;;  %v7511_v43 = vadd.f32 %v7510_v37, %v7344_v19  ;;  %vm8025_vm5 = vcmp.lt.s32.totalorder %v8005_v63, 300  ;;  %v7015_v11 = vunpack.c.h.bf16 %v15922_v30  ;;  %v15932_v42 = vld [vmem:[#allocation95_spill] sm:$0xff]  ;;  %v15933_v59 = vld [vmem:[#allocation96_spill] sm:$0xff]  ;;  %v15934_v37 = vld [vmem:[#allocation101_spill] sm:$0xff] }
 0x8f3   : > { %v8064_v26 = vsel %vm8024_vm3, %v8044_v33, 0.0  ;;  %v15924_v41 = vunpack.c.h.bf16 %v15923_v60  ;;  %v15925_v38 = vunpack.c.l.bf16 %v15921_v20  ;;  %v15927_v62 = vunpack.c.h.bf16 %v15926_v27 }
 0x8f4   : > { %7523 = vadd.xlane.f32.xlu0 %v7522_v1  ;;  %v7513_v39 = vadd.f32 %v7512_v51, %v7511_v43  ;;  %v7148_v2 = vsub.f32 %v6868_v36, %v7008_v53  ;;  %v15928_v5 = vunpack.c.l.bf16 %v15922_v30  ;;  %v7155_v55 = vsub.f32 %v6875_v13, %v7015_v11  ;;  %v15935_v51 = vld [vmem:[#allocation42_spill] sm:$0xff]  ;;  %v15936_v36 = vld [vmem:[#allocation40_spill] sm:$0xff] }
 0x8f5   : > { %v7146_v28 = vsub.f32 %v6866_v48, %v15924_v41  ;;  %v7147_v44 = vsub.f32 %v6867_v29, %v15925_v38  ;;  %v7153_v52 = vsub.f32 %v6873_v15, %v15927_v62  ;;  %v8065_v0 = vsel %vm8025_vm5, %v8045_v10, 0.0 }
 0x8f6   : > { %v7154_v19 = vsub.f32 %v6874_v46, %v15928_v5  ;;  %v7227_v33 = vpack.c.bf16 %v15930_v50, %v15929_v58  ;;  %v7228_v48 = vpack.c.bf16 %v15932_v42, %v15931_v23  ;;  %v7229_v29 = vpack.c.bf16 %v15934_v37, %v15933_v59  ;;  %7514 = vadd.xlane.f32.xlu1 %v7513_v39  ;;  %v15939_v42 = vld [vmem:[#allocation50_spill] sm:$0xff] }
 0x8f7   : > { %v7230_v63 = vpack.c.bf16 %v7153_v52, %v7146_v28  ;;  %v7232_v8 = vpack.c.bf16 %v7155_v55, %v7148_v2  ;;  %v15937_v20 = vsub.f32 %v15935_v51, %v15936_v36  ;;  %v7170_v43 = vsub.f32 %v15037_v7, %v14969_v61  ;;  %v7416_v2 = vpop.xlane.xlu0 %7415  ;;  %v15938_v55 = vld [vmem:[#allocation39_spill] sm:$0xff]  ;;  %v15941_v51 = vld [vmem:[#allocation108_spill] sm:$0xff] }
 0x8f8   : > { %v7231_v15 = vpack.c.bf16 %v7154_v19, %v7147_v44  ;;  %v7353_v13 = vunpack.c.l.bf16 %v7227_v33  ;;  %v7354_v10 = vunpack.c.l.bf16 %v7228_v48  ;;  %v7355_v53 = vunpack.c.l.bf16 %v7229_v29 }
 0x8f9   : > { %v7233_v46 = vpack.c.bf16 %v7156_v22, %v15937_v20  ;;  %v7360_v1 = vunpack.c.h.bf16 %v7227_v33  ;;  %v15087_v30 = vsel %vm8084_vm4, %v8065_v0, 0.0  ;;  %v15090_v11 = vsel %vm8084_vm4, %v8064_v26, 0.0 }
 0x8fa   : > { %v7356_v41 = vunpack.c.l.bf16 %v7230_v63  ;;  %v7525_v28 = vadd.f32 %v7354_v10, %v7353_v13  ;;  %v7361_v38 = vunpack.c.h.bf16 %v7228_v48  ;;  %v7362_v44 = vunpack.c.h.bf16 %v7229_v29  ;;  %v15940_v29 = vld [vmem:[#allocation104_spill] sm:$0xff] }
 0x8fb   : > { %v7359_v60 = vunpack.c.l.bf16 %v7233_v46  ;;  %v7357_v45 = vunpack.c.l.bf16 %v7231_v15  ;;  %v7358_v22 = vunpack.c.l.bf16 %v7232_v8  ;;  %v7363_v62 = vunpack.c.h.bf16 %v7230_v63 }
 0x8fc   : > { %v7526_v52 = vadd.f32 %v7525_v28, %v7355_v53  ;;  %v7364_v39 = vunpack.c.h.bf16 %v7231_v15  ;;  %v7534_v61 = vadd.f32 %v7361_v38, %v7360_v1  ;;  %v7986_v7 = vadd.s32 24, %v15045_v32 }
 0x8fd   : > { %v7530_v27 = vsel %vm1407_vm0, %v7359_v60, 0.0  ;;  %v7365_v5 = vunpack.c.h.bf16 %v7232_v8  ;;  %v7366_v26 = vunpack.c.h.bf16 %v7233_v46  ;;  %v7985_v19 = vadd.s32 16, %v15045_v32 }
 0x8fe   : > { %v8046_v0 = vadd.f32 %v15938_v55, %v7407_v24  ;;  %v7527_v58 = vadd.f32 %v7526_v52, %v7356_v41  ;;  %v7535_v50 = vadd.f32 %v7534_v61, %v7362_v44  ;;  %v8007_v33 = vadd.s32 %v15043_v47, %v7986_v7  ;;  %v15943_v44 = vld [vmem:[#allocation45_spill] sm:$0xff]  ;;  %v15947_v7 = vld [vmem:[#allocation102_spill] sm:$0xff] }
 0x8ff   : > { %v6745_v23 = vpack.c.bf16 %v14982_v16, %v14974_v3  ;;  %v8047_v48 = vadd.f32 %v15939_v42, %v7416_v2  ;;  %v8006_v59 = vadd.s32 %v15043_v47, %v7985_v19  ;;  %v6749_v37 = vpack.c.bf16 %v15035_v21, %v15031_v56  ;;  %v15942_v21 = vld [vmem:[#allocation37_spill] sm:$0xff] }
 0x900   : > { %v6880_v63 = vunpack.c.h.bf16 %v15940_v29  ;;  %v7528_v15 = vadd.f32 %v7527_v58, %v7357_v45  ;;  %v7536_v8 = vadd.f32 %v7535_v50, %v7363_v62  ;;  %vm8027_vm6 = vcmp.lt.s32.totalorder %v8007_v33, 300  ;;  %v15944_v45 = vld [vmem:[#allocation97_spill] sm:$0xff]  ;;  %v15952_v33 = vld [vmem:[#allocation100_spill] sm:$0xff] }
 0x901   : > { %v6887_v36 = vunpack.c.h.bf16 %v15941_v51  ;;  %vm8026_vm7 = vcmp.lt.s32.totalorder %v8006_v59, 300  ;;  %v6881_v20 = vunpack.c.l.bf16 %v6745_v23  ;;  %v6882_v46 = vunpack.c.h.bf16 %v6745_v23  ;;  %v15953_v23 = vld [vmem:[#allocation105_spill] sm:$0xff] }
 0x902   : > { %v6888_v13 = vunpack.c.l.bf16 %v6749_v37  ;;  %v7529_v10 = vadd.f32 %v7528_v15, %v7358_v22  ;;  %v7537_v3 = vadd.f32 %v7536_v8, %v7364_v39  ;;  %v7539_v16 = vsel %vm1407_vm0, %v7366_v26, 0.0  ;;  %v15955_v59 = vld [vmem:[#allocation109_spill] sm:$0xff] }
 0x903   : > { %v8066_v53 = vsel %vm8026_vm7, %v8046_v0, 0.0  ;;  %v8067_v1 = vsel %vm8027_vm6, %v8047_v48, 0.0  ;;  %v6889_v56 = vunpack.c.h.bf16 %v6749_v37  ;;  %v7022_v41 = vunpack.c.h.bf16 %v15942_v21  ;;  %v15954_v48 = vld [vmem:[#allocation106_spill] sm:$0xff] }
 0x904   : > { %v8088_v60 = vsel %vm8084_vm4, %v8066_v53, 0.0  ;;  %v7531_v28 = vadd.f32 %v7530_v27, %v7529_v10  ;;  %v7538_v38 = vadd.f32 %v7537_v3, %v7365_v5  ;;  %v7029_v24 = vunpack.c.h.bf16 %v15943_v44  ;;  %v15950_v27 = vld [vmem:[#allocation99_spill] sm:$0xff] }
 0x905   : > { %v15945_v62 = vunpack.c.h.bf16 %v15944_v45  ;;  %v15946_v61 = vunpack.c.l.bf16 %v15942_v21  ;;  %v7162_v39 = vsub.f32 %v6882_v46, %v7022_v41  ;;  %v15948_v2 = vunpack.c.h.bf16 %v15947_v7  ;;  %v15951_v5 = vld [vmem:[#allocation103_spill] sm:$0xff]  ;;  %v7425_v41 = vpop.xlane.xlu2 %7424 }
 0x906   : > { %v15949_v19 = vunpack.c.l.bf16 %v15943_v44  ;;  %7532 = vadd.xlane.f32.xlu2 %v7531_v28  ;;  %v7540_v0 = vadd.f32 %v7539_v16, %v7538_v38  ;;  %v7169_v58 = vsub.f32 %v6889_v56, %v7029_v24  ;;  %v7234_v50 = vpack.c.bf16 %v15951_v5, %v15950_v27  ;;  %v7434_v28 = vpop.xlane.xlu1 %7433  ;;  %v15958_v7 = vld [vmem:[#allocation47_spill] sm:$0xff]  ;;  %v15959_v5 = vld [vmem:[#allocation53_spill] sm:$0xff] }
 0x907   : > { %v7160_v52 = vsub.f32 %v6880_v63, %v15945_v62  ;;  %v7161_v22 = vsub.f32 %v6881_v20, %v15946_v61  ;;  %v7167_v26 = vsub.f32 %v6887_v36, %v15948_v2  ;;  %v7235_v42 = vpack.c.bf16 %v15953_v23, %v15952_v33  ;;  %v15957_v62 = vld [vmem:[#allocation48_spill] sm:$0xff]  ;;  %v7443_v61 = vpop.xlane.xlu0 %7442 }
 0x908   : > { %v7168_v55 = vsub.f32 %v6888_v13, %v15949_v19  ;;  %v7236_v37 = vpack.c.bf16 %v15955_v59, %v15954_v48  ;;  %v7240_v15 = vpack.c.bf16 %v7170_v43, %v7163_v14  ;;  %7541 = vadd.xlane.f32.xlu1 %v7540_v0  ;;  %v7239_v8 = vpack.c.bf16 %v7169_v58, %v7162_v39  ;;  %v15956_v13 = vld [vmem:[#allocation43_spill] sm:$0xff] }
 0x909   : > { %v7237_v29 = vpack.c.bf16 %v7167_v26, %v7160_v52  ;;  %v7367_v51 = vunpack.c.l.bf16 %v7234_v50  ;;  %v7368_v36 = vunpack.c.l.bf16 %v7235_v42  ;;  %v7374_v20 = vunpack.c.h.bf16 %v7234_v50 }
 0x90a   : > { %v7238_v63 = vpack.c.bf16 %v7168_v55, %v7161_v22  ;;  %v8087_v46 = vadd.f32 %v15087_v30, %v15090_v11  ;;  %v7975_v10 = vsel %vm2746_vm2, %v15956_v13, 0.0  ;;  %v7369_v3 = vunpack.c.l.bf16 %v7236_v37 }
 0x90b   : > { %v8090_v16 = vsel %vm8084_vm4, %v8067_v1, 0.0  ;;  %v7543_v53 = vadd.f32 %v7368_v36, %v7367_v51  ;;  %v7375_v56 = vunpack.c.h.bf16 %v7235_v42  ;;  %v7376_v21 = vunpack.c.h.bf16 %v7236_v37 }
 0x90c   : > { %v8089_v18 = vadd.f32 %v8088_v60, %v8087_v46  ;;  %v7370_v17 = vunpack.c.l.bf16 %v7237_v29  ;;  %v7371_v14 = vunpack.c.l.bf16 %v7238_v63  ;;  %v7373_v43 = vunpack.c.l.bf16 %v7240_v15 }
 0x90d   : > { %v7372_v38 = vunpack.c.l.bf16 %v7239_v8  ;;  %v7544_v44 = vadd.f32 %v7543_v53, %v7369_v3  ;;  %v7552_v24 = vadd.f32 %v7375_v56, %v7374_v20  ;;  %v7987_v30 = vadd.s32 32, %v15045_v32 }
 0x90e   : > { %v7377_v11 = vunpack.c.h.bf16 %v7237_v29  ;;  %v7378_v45 = vunpack.c.h.bf16 %v7238_v63  ;;  %v8048_v52 = vadd.f32 %v15957_v62, %v7425_v41  ;;  %v7988_v1 = vadd.s32 40, %v15045_v32  ;;  %v7452_v41 = vpop.xlane.xlu2 %7451 }
 0x90f   : > { %v7545_v22 = vadd.f32 %v7544_v44, %v7370_v17  ;;  %v7553_v39 = vadd.f32 %v7552_v24, %v7376_v21  ;;  %v8008_v60 = vadd.s32 %v15043_v47, %v7987_v30  ;;  %v8049_v2 = vadd.f32 %v15958_v7, %v7434_v28 }
 0x910   : > { %v7379_v26 = vunpack.c.h.bf16 %v7239_v8  ;;  %v7380_v19 = vunpack.c.h.bf16 %v7240_v15  ;;  %v8009_v55 = vadd.s32 %v15043_v47, %v7988_v1  ;;  %v7989_v0 = vadd.s32 48, %v15045_v32  ;;  %7976 = vadd.xlane.f32.xlu1 %v7975_v10 }
 0x911   : > { %v7546_v58 = vadd.f32 %v7545_v22, %v7371_v14  ;;  %v7554_v27 = vadd.f32 %v7553_v39, %v7377_v11  ;;  %vm8028_vm8 = vcmp.lt.s32.totalorder %v8008_v60, 300  ;;  %v8050_v50 = vadd.f32 %v15959_v5, %v7443_v61 }
 0x912   : > { %v8068_v33 = vsel %vm8028_vm8, %v8048_v52, 0.0  ;;  %v8091_v23 = vadd.f32 %v8090_v16, %v8089_v18  ;;  %vm8029_vm9 = vcmp.lt.s32.totalorder %v8009_v55, 300  ;;  %v8010_v42 = vadd.s32 %v15043_v47, %v7989_v0  ;;  %v7461_v18 = vpop.xlane.xlu1 %7460 }
 0x913   : > { %v7547_v48 = vadd.f32 %v7546_v58, %v7372_v38  ;;  %v7555_v59 = vadd.f32 %v7554_v27, %v7378_v45  ;;  %v8092_v37 = vsel %vm8084_vm4, %v8068_v33, 0.0  ;;  %v8069_v29 = vsel %vm8029_vm9, %v8049_v2, 0.0 }
 0x914   : > { %v7548_v63 = vsel %vm1407_vm0, %v7373_v43, 0.0  ;;  %v8093_v15 = vadd.f32 %v8092_v37, %v8091_v23  ;;  %vm8030_vm10 = vcmp.lt.s32.totalorder %v8010_v42, 300  ;;  %v8094_v36 = vsel %vm8084_vm4, %v8069_v29, 0.0 }
 0x915   : > { %v7549_v8 = vadd.f32 %v7548_v63, %v7547_v48  ;;  %v7556_v51 = vadd.f32 %v7555_v59, %v7379_v26  ;;  %v8070_v20 = vsel %vm8030_vm10, %v8050_v50, 0.0  ;;  %v7557_v46 = vsel %vm1407_vm0, %v7380_v19, 0.0 }
 0x916   : > { %v8095_v13 = vadd.f32 %v8094_v36, %v8093_v15  ;;  %v8096_v10 = vsel %vm8084_vm4, %v8070_v20, 0.0  ;;  %v7978_v53 = vsel %vm2746_vm2, %v14929_v34, 0.0  ;;  %v7990_v56 = vadd.s32 56, %v15045_v32  ;;  %v7470_v34 = vpop.xlane.xlu0 %7469 }
 0x917   : > { %7550 = vadd.xlane.f32.xlu0 %v7549_v8  ;;  %v7558_v3 = vadd.f32 %v7557_v46, %v7556_v51  ;;  %v7991_v21 = vadd.s32 64, %v15045_v32  ;;  %v7992_v43 = vadd.s32 72, %v15045_v32  ;;  %v7993_v28 = vadd.s32 80, %v15045_v32 }
 0x918   : > { %v8097_v16 = vadd.f32 %v8096_v10, %v8095_v13  ;;  %v8011_v17 = vadd.s32 %v15043_v47, %v7990_v56  ;;  %v8051_v38 = vadd.f32 %v14955_v6, %v7452_v41  ;;  %v8052_v44 = vadd.f32 %v14918_v31, %v7461_v18 }
 0x919   : > { %7559 = vadd.xlane.f32.xlu2 %v7558_v3  ;;  %v8012_v14 = vadd.s32 %v15043_v47, %v7991_v21  ;;  %v8013_v24 = vadd.s32 %v15043_v47, %v7992_v43  ;;  %v8014_v30 = vadd.s32 %v15043_v47, %v7993_v28  ;;  %v7994_v1 = vadd.s32 88, %v15045_v32 }
 0x91a   : > { %vm8031_vm11 = vcmp.lt.s32.totalorder %v8011_v17, 300  ;;  %v7995_v61 = vadd.s32 96, %v15045_v32  ;;  %v8053_v22 = vadd.f32 %v14927_v12, %v7470_v34  ;;  %v7996_v58 = vadd.s32 104, %v15045_v32 }
 0x91b   : > { %vm8032_vm12 = vcmp.lt.s32.totalorder %v8012_v14, 300  ;;  %v8071_v62 = vsel %vm8031_vm11, %v8051_v38, 0.0  ;;  %vm8033_vm13 = vcmp.lt.s32.totalorder %v8013_v24, 300  ;;  %vm8034_vm14 = vcmp.lt.s32.totalorder %v8014_v30, 300 }
 0x91c   : > { %v8072_v52 = vsel %vm8032_vm12, %v8052_v44, 0.0  ;;  %v8098_v31 = vsel %vm8084_vm4, %v8071_v62, 0.0  ;;  %v8015_v7 = vadd.s32 %v15043_v47, %v7994_v1  ;;  %v8016_v2 = vadd.s32 %v15043_v47, %v7995_v61 }
 0x91d   : > { %v8100_v39 = vsel %vm8084_vm4, %v8072_v52, 0.0  ;;  %v8099_v60 = vadd.f32 %v8098_v31, %v8097_v16  ;;  %v8073_v19 = vsel %vm8033_vm13, %v8053_v22, 0.0  ;;  %v7997_v12 = vadd.s32 112, %v15045_v32 }
 0x91e   : > { %v8102_v50 = vsel %vm8084_vm4, %v8073_v19, 0.0  ;;  %vm8035_vm15 = vcmp.lt.s32.totalorder %v8015_v7, 300  ;;  %vm8036_vm0 = vcmp.lt.s32.totalorder %v8016_v2, 300  ;;  %v8017_v48 = vadd.s32 %v15043_v47, %v7996_v58 }
 0x91f   : > { %7979 = vadd.xlane.f32.xlu0 %v7978_v53  ;;  %v8101_v55 = vadd.f32 %v8100_v39, %v8099_v60  ;;  %v8018_v59 = vadd.s32 %v15043_v47, %v7997_v12  ;;  %v7998_v15 = vadd.s32 120, %v15045_v32 }
 0x920   : > { %vm8037_vm1 = vcmp.lt.s32.totalorder %v8017_v48, 300 }
 0x921   : > { %v8103_v42 = vadd.f32 %v8102_v50, %v8101_v55  ;;  %vm8038_vm2 = vcmp.lt.s32.totalorder %v8018_v59, 300  ;;  %v8019_v13 = vadd.s32 %v15043_v47, %v7998_v15 }
 0x923   : > { %vm8039_vm3 = vcmp.lt.s32.totalorder %v8019_v13, 300 }
 0x941   : > { %v7479_v11 = vpop.xlane.xlu2 %7478 }
 0x942   : > { %v8054_v6 = vadd.f32 %v14998_v49, %v7479_v11 }
 0x944   : > { %v8074_v0 = vsel %vm8034_vm14, %v8054_v6, 0.0 }
 0x945   : > { %v7488_v45 = vpop.xlane.xlu1 %7487  ;;  %v8104_v33 = vsel %vm8084_vm4, %v8074_v0, 0.0 }
 0x946   : > { %v8055_v27 = vadd.f32 %v14941_v57, %v7488_v45  ;;  %v8105_v37 = vadd.f32 %v8104_v33, %v8103_v42  ;;  %v7999_v57 = vadd.s32 128, %v15045_v32 }
 0x948   : > { %v8075_v29 = vsel %vm8035_vm15, %v8055_v27, 0.0  ;;  %v8020_v3 = vadd.s32 %v15043_v47, %v7999_v57 }
 0x949   : > { %v8106_v51 = vsel %vm8084_vm4, %v8075_v29, 0.0 }
 0x94a   : > { %v8107_v46 = vadd.f32 %v8106_v51, %v8105_v37  ;;  %vm8040_vm5 = vcmp.lt.s32.totalorder %v8020_v3, 300 }
 0x954   : > { %v7497_v26 = vpop.xlane.xlu0 %7496 }
 0x955   : > { %v8056_v5 = vadd.f32 %v14962_v54, %v7497_v26 }
 0x957   : > { %v8076_v63 = vsel %vm8036_vm0, %v8056_v5, 0.0 }
 0x958   : > { %v8108_v36 = vsel %vm8084_vm4, %v8076_v63, 0.0 }
 0x959   : > { %v8109_v53 = vadd.f32 %v8108_v36, %v8107_v46 }
 0x95a   : > { %v7506_v23 = vpop.xlane.xlu2 %7505 }
 0x95b   : > { %v8057_v54 = vadd.f32 %v15040_v4, %v7506_v23  ;;  %v8000_v4 = vadd.s32 136, %v15045_v32 }
 0x95d   : > { %v8077_v56 = vsel %vm8037_vm1, %v8057_v54, 0.0  ;;  %v8021_v28 = vadd.s32 %v15043_v47, %v8000_v4 }
 0x95e   : > { %v8110_v17 = vsel %vm8084_vm4, %v8077_v56, 0.0 }
 0x95f   : > { %v8111_v43 = vadd.f32 %v8110_v17, %v8109_v53  ;;  %vm8041_vm6 = vcmp.lt.s32.totalorder %v8021_v28, 300 }
 0x967   : > { %v7524_v10 = vpop.xlane.xlu0 %7523 }
 0x968   : > { %v8059_v41 = vadd.f32 %v15002_v9, %v7524_v10  ;;  %v8002_v9 = vadd.s32 152, %v15045_v32 }
 0x969   : > { %v7515_v49 = vpop.xlane.xlu1 %7514 }
 0x96a   : > { %v8058_v8 = vadd.f32 %v14989_v40, %v7515_v49  ;;  %v8001_v40 = vadd.s32 144, %v15045_v32  ;;  %v8079_v44 = vsel %vm8039_vm3, %v8059_v41, 0.0  ;;  %v8023_v61 = vadd.s32 %v15043_v47, %v8002_v9 }
 0x96b   : > { %v8114_v62 = vsel %vm8084_vm4, %v8079_v44, 0.0 }
 0x96c   : > { %v8078_v21 = vsel %vm8038_vm2, %v8058_v8, 0.0  ;;  %v8022_v38 = vadd.s32 %v15043_v47, %v8001_v40  ;;  %vm8043_vm8 = vcmp.lt.s32.totalorder %v8023_v61, 300 }
 0x96d   : > { %v8112_v14 = vsel %vm8084_vm4, %v8078_v21, 0.0 }
 0x96e   : > { %v8113_v34 = vadd.f32 %v8112_v14, %v8111_v43  ;;  %vm8042_vm7 = vcmp.lt.s32.totalorder %v8022_v38, 300 }
 0x970   : > { %v8115_v1 = vadd.f32 %v8114_v62, %v8113_v34 }
 0x979   : > { %v7533_v16 = vpop.xlane.xlu2 %7532 }
 0x97a   : > { %v8060_v18 = vadd.f32 %v15062_v35, %v7533_v16 }
 0x97b   : > { %v7542_v20 = vpop.xlane.xlu1 %7541 }
 0x97c   : > { %v8080_v24 = vsel %vm8040_vm5, %v8060_v18, 0.0  ;;  %v8061_v35 = vadd.f32 %v15027_v25, %v7542_v20 }
 0x97d   : > { %v8116_v52 = vsel %vm8084_vm4, %v8080_v24, 0.0 }
 0x97e   : > { %v8117_v22 = vadd.f32 %v8116_v52, %v8115_v1  ;;  %v8081_v6 = vsel %vm8041_vm6, %v8061_v35, 0.0 }
 0x97f   : > { %v8118_v39 = vsel %vm8084_vm4, %v8081_v6, 0.0 }
 0x980   : > { %v8119_v7 = vadd.f32 %v8118_v39, %v8117_v22 }
 0x983   : > { %v7977_v30 = vpop.xlane.xlu1 %7976 }
 0x98a   : > { %v7551_v11 = vpop.xlane.xlu0 %7550 }
 0x98b   : > { %v8062_v45 = vadd.f32 %v7977_v30, %v7551_v11 }
 0x98c   : > { %v7560_v32 = vpop.xlane.xlu2 %7559 }
 0x98d   : > { %v8082_v31 = vsel %vm8042_vm7, %v8062_v45, 0.0 }
 0x98e   : > { %v8120_v60 = vsel %vm8084_vm4, %v8082_v31, 0.0 }
 0x98f   : > { %v8121_v19 = vadd.f32 %v8120_v60, %v8119_v7 }
 0x992   : > { %v7980_v25 = vpop.xlane.xlu0 %7979 }
 0x993   : > { %v8063_v2 = vadd.f32 %v7980_v25, %v7560_v32 }
 0x995   : > { %v8083_v26 = vsel %vm8043_vm8, %v8063_v2, 0.0 }
 0x996   : > { %v8122_v55 = vsel %vm8084_vm4, %v8083_v26, 0.0 }
 0x997   : > { %v8123_v0 = vadd.f32 %v8122_v55, %v8121_v19 }
 0x999   : > { %8124 = vadd.xlane.f32.xlu1 %v8123_v0 }
 0xa0c   : > { %v8125_v47 = vpop.xlane.xlu1 %8124 }
 0xa0d   : > { %v8126_v58 = vrot.slane %v8125_v47, 4 }
 0xa0f   : > { %v8127_v12 = vadd.f32 %v8126_v58, %v8125_v47 }
 0xa11   : > { %v8128_v49 = vrot.slane %v8127_v12, 2 }
 0xa13   : > { %v8129_v27 = vadd.f32 %v8128_v49, %v8127_v12 }
 0xa15   : > { %v8130_v5 = vrot.slane %v8129_v27, 1 }
 0xa17   : > { %v8131_v50 = vadd.f32 %v8130_v5, %v8129_v27 }
 0xa19   : > { %9489 = vpush %v8131_v50 }
 0xa4a   : > { %s9490_s22 = spop %9489 }
 0xa4b   : > { %v8133_v33 = vstv %s9490_s22 }
 0xa4c   : > { %8134 = vst [vmem:[%s380_s11] sm:$0xff] %v8133_v33 }
 0xa4d   : > { %10204 = shalt.err (!%p10201_p7)
}
 0xa4e   : > { %9493 = dma.vmem_to_hbm [thread:$0]  (%p10350_p11), %s8149_s15, 128, %s8151_s19, %s8136_s12  }
 0xa4f PF: > { %s15960_s13 = sld [smem:[#allocation8_spill]]  ;;  %p9500_p8 = pnand %p8223_p9, %p10354_p12 }
 0xa51   : > { %p9501_p10 = pneg %p9500_p8 }
 0xa55   : > { %s8162_s27 = sand.u32 1, %s15960_s13  }
 0xa56   : > { %s8163_s23 = scalar_lea.sflag [#allocation4], %s8162_s27 }
 0xa57   : > { %10226 = dma.done.wait (%p9501_p10), %s8163_s23, 128  }
 0xa58   : > { %10228 = vsyncadd (%p9501_p10), %s8163_s23, 4294967168  ;;  %s15962_s16 = sld [smem:[#allocation10_spill]]  ;;  %s15965_s13 = smov %s10235_s14 }
 0xa59   : > { %s15963_s26 = sld [smem:[#allocation9_spill]] }
 0xa5a   : > { %s15964_s15 = sld [smem:[#allocation11_spill]] }
 0xa5e   : > { %p23_p1 = scmp.ge.s32.totalorder %s15962_s16, 4  }
 0xa5f   : > { %s15966_s14 = smov %s15963_s26 }
 0xa60   :  { %25 = sbr.rel (!%p23_p1) target bundleno = 5 (0x5), region = 105 }
 0xa65   :  { %8169 = vsyncpa [#allocation3], 1 }
 0xa66   :  { %8171 = vsyncpa [#allocation3 + $0x1], 1 }
 0xa67   :  { %8172 = vsyncpa [#allocation4], 1 }
 0xa68   :  { %8174 = vsyncpa [#allocation4 + $0x1], 1 }

</bundles_post_ra>
